<compile_context>
chip_gen: v7x
topology: tpu7x:2x2x1
jax: 0.10.0
libtpu: 0.0.40
codegen_flags: <defaults>
</compile_context>

<pallas_src>
import jax
import jax.numpy as jnp
from jax.experimental import pallas as pl
from jax.experimental.pallas import tpu as pltpu


def _effective_kernel_size(kernel_size: int) -> int:
    # Mirrors Mexh_fast.__init__ (result is always even).
    k = kernel_size - 1
    if kernel_size % 2 == 0:
        k += 1
    return k


def mexh_conv1d_kernel(fb_ref, xa_ref, xb_ref, o_ref):
    # fb_ref: (K, 1, C, 1) precomputed Mexican-hat filter bank, broadcast-ready
    # xa_ref: (TN, TL)     current chunk of the padded signal
    # xb_ref: (TN, TL)     next chunk (only its first K-1 columns are used: halo)
    # o_ref:  (TN, C, TL)  output tile
    tn, tl = xa_ref.shape
    k_taps = fb_ref.shape[0]

    fb = fb_ref[...]                                           # (K, 1, C, 1), loaded once
    # Halo'd signal window for this output tile: columns [j*TL, j*TL + TL + K - 1).
    xx = jnp.concatenate([xa_ref[...], xb_ref[:, :k_taps - 1]], axis=-1)  # (TN, TL+K-1)

    acc = jnp.zeros(o_ref.shape, jnp.float32)                  # (TN, C, TL)
    # Unrolled MAC over the K taps (K is small & static); lanes = output-length axis.
    for k in range(k_taps):
        xk = xx[:, k:k + tl]                                   # (TN, TL) static slice
        acc = acc + fb[k] * xk[:, None, :]                     # (1,C,1)*(TN,1,TL)
    o_ref[...] = acc.astype(o_ref.dtype)


def mexh_fast_forward(waveforms, a_param, b_param, kernel_size, *,
                      tile_n=8, tile_l=512):
    """JAX/Pallas equivalent of Mexh_fast.forward.

    waveforms: (N, 1, L) float32
    a_param, b_param: (out_channels,) float32
    """
    assert tile_n % 8 == 0 and tile_l % 128 == 0
    K = _effective_kernel_size(kernel_size)
    assert 2 <= K <= tile_l + 1, "effective kernel size must fit one halo chunk"

    N, in_c, L = waveforms.shape
    assert in_c == 1, "MexhConv only supports one input channel"
    C = a_param.shape[0]

    L_out = L + 2 - K + 1                       # conv1d, stride=1, padding=1
    assert L_out > 0

    # ---- Tiling / padding bookkeeping (all static Python ints) ------------------
    num_l = pl.cdiv(L_out, tile_l)              # output-length tiles
    L_out_pad = num_l * tile_l                  # lane-dense output width
    N_pad = pl.cdiv(N, tile_n) * tile_n         # batch padded to sublane tile
    W = (num_l + 1) * tile_l                    # signal width so block (j+1) is valid

    # ---- Filter bank computed ONCE in plain JAX (hoisted out of the kernel) -----
    half = K // 2
    t_right = jnp.linspace(0.0, K / 2 - 1, half, dtype=jnp.float32)
    t_left = jnp.linspace(-(K / 2) + 1, -1.0, half, dtype=jnp.float32)
    t_full = jnp.concatenate([t_left, t_right])                      # (K,)
    shift = (b_param.astype(jnp.float32) / a_param.astype(jnp.float32)).reshape(C, 1)
    p = t_full[None, :] - shift                                      # (C, K)
    filt = (1.0 - p * p) * jnp.exp(-0.5 * p * p)                     # (C, K)
    fb = filt.T.reshape(K, 1, C, 1)                                  # broadcast-ready

    # One pad op: conv padding (1 left) + right zeros covering conv pad, lane
    # alignment and the (j+1) halo chunk; batch padded to a multiple of tile_n.
    x = waveforms[:, 0, :].astype(jnp.float32)
    x_p = jnp.pad(x, ((0, N_pad - N), (1, W - L - 1)))               # (N_pad, W)

    grid = (N_pad // tile_n, num_l)

    out = pl.pallas_call(
        mexh_conv1d_kernel,
        out_shape=jax.ShapeDtypeStruct((N_pad, C, L_out_pad), jnp.float32),
        grid=grid,
        in_specs=[
            pl.BlockSpec((K, 1, C, 1), lambda i, j: (0, 0, 0, 0)),    # filter bank
            pl.BlockSpec((tile_n, tile_l), lambda i, j: (i, j)),      # current chunk
            pl.BlockSpec((tile_n, tile_l), lambda i, j: (i, j + 1)),  # halo chunk
        ],
        out_specs=pl.BlockSpec((tile_n, C, tile_l), lambda i, j: (i, 0, j)),
        compiler_params=pltpu.CompilerParams(
            dimension_semantics=("parallel", "parallel")),
    )(fb, x_p, x_p)

    return out[:N, :, :L_out]


def _reference_forward(waveforms, a_param, b_param, kernel_size):
    # Pure-JAX reference replicating the PyTorch semantics, for verification.
    K = _effective_kernel_size(kernel_size)
    half = K // 2
    t_right = jnp.linspace(0.0, K / 2 - 1, half, dtype=jnp.float32)
    t_left = jnp.linspace(-(K / 2) + 1, -1.0, half, dtype=jnp.float32)
    t_full = jnp.concatenate([t_left, t_right])
    C = a_param.shape[0]
    shift = (b_param / a_param).reshape(C, 1)
    p = t_full[None, :] - shift
    filt = (1.0 - p ** 2) * jnp.exp(-(p ** 2) / 2.0)                  # (C, K)
    x_pad = jnp.pad(waveforms[:, 0, :], ((0, 0), (1, 1)))
    N, L_pad = x_pad.shape
    L_out = L_pad - K + 1
    out = jnp.zeros((N, C, L_out), jnp.float32)
    for k in range(K):
        out = out + filt[:, k][None, :, None] * x_pad[:, k:k + L_out][:, None, :]
    return out


if __name__ == "__main__":
    # Small but representative shapes: batch=12 (2 batch tiles after padding to 16),
    # in_channels=1 (required), signal length=700 (2 output-length tiles of 512,
    # exercising the halo path), out_channels=8, kernel_size=16 -> effective K=16.
    N, L = 12, 700
    out_channels, kernel_size = 8, 16

    key = jax.random.PRNGKey(0)
    waveforms = jax.random.normal(key, (N, 1, L), dtype=jnp.float32)

    # Deterministic parameter init matching nn.Parameter(torch.linspace(...)):
    a_param = jnp.linspace(1.0, 10.0, out_channels, dtype=jnp.float32)
    b_param = jnp.linspace(0.0, 10.0, out_channels, dtype=jnp.float32)

    y = mexh_fast_forward(waveforms, a_param, b_param, kernel_size)
    y = jax.block_until_ready(y)

    K = _effective_kernel_size(kernel_size)
    y_ref = _reference_forward(waveforms, a_param, b_param, kernel_size)
    assert y.shape == (N, out_channels, L - K + 3), y.shape
    assert jnp.allclose(y, y_ref, atol=1e-5, rtol=1e-5)

    print("KERNEL_OK")
</pallas_src>

<mosaic_0001>
module attributes {stable_mosaic.version = 11 : i64} {
  func.func @mexh_conv1d_kernel(%arg0: i32, %arg1: i32, %arg2: memref<16x1x8x1xf32, #tpu.memory_space<vmem>>, %arg3: memref<8x512xf32, #tpu.memory_space<vmem>>, %arg4: memref<8x512xf32, #tpu.memory_space<vmem>>, %arg5: memref<8x8x512xf32, #tpu.memory_space<vmem>>) attributes {dimension_semantics = [#tpu.dimension_semantics<parallel>, #tpu.dimension_semantics<parallel>], iteration_bounds = array<i64: 2, 2>, scalar_prefetch = 0 : i64, scratch_operands = 0 : i64, tpu.core_type = #tpu.core_type<tc>, window_params = [{pipeline_mode = #tpu.pipeline_mode<synchronous>, transform_indices = @transform_0, window_bounds = array<i64: 16, 1, 8, 1>}, {transform_indices = @transform_1, window_bounds = array<i64: 8, 512>}, {transform_indices = @transform_2, window_bounds = array<i64: 8, 512>}, {transform_indices = @transform_3, window_bounds = array<i64: 8, 8, 512>}]} {
    %c0 = arith.constant 0 : index
    %c0_0 = arith.constant 0 : index
    %c0_1 = arith.constant 0 : index
    %c0_2 = arith.constant 0 : index
    %0 = vector.load %arg2[%c0, %c0_0, %c0_1, %c0_2] : memref<16x1x8x1xf32, #tpu.memory_space<vmem>>, vector<16x1x8x1xf32>
    %c0_3 = arith.constant 0 : index
    %c0_4 = arith.constant 0 : index
    %1 = vector.load %arg3[%c0_3, %c0_4] : memref<8x512xf32, #tpu.memory_space<vmem>>, vector<8x512xf32>
    %c0_5 = arith.constant 0 : index
    %c0_6 = arith.constant 0 : index
    %2 = vector.load %arg4[%c0_5, %c0_6] : memref<8x512xf32, #tpu.memory_space<vmem>>, vector<8x15xf32>
    %3 = tpu.concatenate %1, %2 in 1 : vector<8x512xf32>, vector<8x15xf32> -> vector<8x527xf32>
    %cst = arith.constant 0.000000e+00 : f32
    %4 = vector.broadcast %cst : f32 to vector<8x8x512xf32>
    %5 = vector.extract_strided_slice %3 {offsets = [0, 0], sizes = [8, 512], strides = [1, 1]} : vector<8x527xf32> to vector<8x512xf32>
    %6 = vector.extract_strided_slice %0 {offsets = [0, 0, 0, 0], sizes = [1, 1, 8, 1], strides = [1, 1, 1, 1]} : vector<16x1x8x1xf32> to vector<1x1x8x1xf32>
    %7 = vector.shape_cast %6 : vector<1x1x8x1xf32> to vector<1x8x1xf32>
    %8 = vector.shape_cast %5 : vector<8x512xf32> to vector<8x1x512xf32>
    %9 = vector.broadcast %7 : vector<1x8x1xf32> to vector<8x8x512xf32>
    %10 = vector.broadcast %8 : vector<8x1x512xf32> to vector<8x8x512xf32>
    %11 = arith.mulf %9, %10 : vector<8x8x512xf32>
    %12 = arith.addf %4, %11 : vector<8x8x512xf32>
    %13 = vector.extract_strided_slice %3 {offsets = [0, 1], sizes = [8, 512], strides = [1, 1]} : vector<8x527xf32> to vector<8x512xf32>
    %14 = vector.extract_strided_slice %0 {offsets = [1, 0, 0, 0], sizes = [1, 1, 8, 1], strides = [1, 1, 1, 1]} : vector<16x1x8x1xf32> to vector<1x1x8x1xf32>
    %15 = vector.shape_cast %14 : vector<1x1x8x1xf32> to vector<1x8x1xf32>
    %16 = vector.shape_cast %13 : vector<8x512xf32> to vector<8x1x512xf32>
    %17 = vector.broadcast %15 : vector<1x8x1xf32> to vector<8x8x512xf32>
    %18 = vector.broadcast %16 : vector<8x1x512xf32> to vector<8x8x512xf32>
    %19 = arith.mulf %17, %18 : vector<8x8x512xf32>
    %20 = arith.addf %12, %19 : vector<8x8x512xf32>
    %21 = vector.extract_strided_slice %3 {offsets = [0, 2], sizes = [8, 512], strides = [1, 1]} : vector<8x527xf32> to vector<8x512xf32>
    %22 = vector.extract_strided_slice %0 {offsets = [2, 0, 0, 0], sizes = [1, 1, 8, 1], strides = [1, 1, 1, 1]} : vector<16x1x8x1xf32> to vector<1x1x8x1xf32>
    %23 = vector.shape_cast %22 : vector<1x1x8x1xf32> to vector<1x8x1xf32>
    %24 = vector.shape_cast %21 : vector<8x512xf32> to vector<8x1x512xf32>
    %25 = vector.broadcast %23 : vector<1x8x1xf32> to vector<8x8x512xf32>
    %26 = vector.broadcast %24 : vector<8x1x512xf32> to vector<8x8x512xf32>
    %27 = arith.mulf %25, %26 : vector<8x8x512xf32>
    %28 = arith.addf %20, %27 : vector<8x8x512xf32>
    %29 = vector.extract_strided_slice %3 {offsets = [0, 3], sizes = [8, 512], strides = [1, 1]} : vector<8x527xf32> to vector<8x512xf32>
    %30 = vector.extract_strided_slice %0 {offsets = [3, 0, 0, 0], sizes = [1, 1, 8, 1], strides = [1, 1, 1, 1]} : vector<16x1x8x1xf32> to vector<1x1x8x1xf32>
    %31 = vector.shape_cast %30 : vector<1x1x8x1xf32> to vector<1x8x1xf32>
    %32 = vector.shape_cast %29 : vector<8x512xf32> to vector<8x1x512xf32>
    %33 = vector.broadcast %31 : vector<1x8x1xf32> to vector<8x8x512xf32>
    %34 = vector.broadcast %32 : vector<8x1x512xf32> to vector<8x8x512xf32>
    %35 = arith.mulf %33, %34 : vector<8x8x512xf32>
    %36 = arith.addf %28, %35 : vector<8x8x512xf32>
    %37 = vector.extract_strided_slice %3 {offsets = [0, 4], sizes = [8, 512], strides = [1, 1]} : vector<8x527xf32> to vector<8x512xf32>
    %38 = vector.extract_strided_slice %0 {offsets = [4, 0, 0, 0], sizes = [1, 1, 8, 1], strides = [1, 1, 1, 1]} : vector<16x1x8x1xf32> to vector<1x1x8x1xf32>
    %39 = vector.shape_cast %38 : vector<1x1x8x1xf32> to vector<1x8x1xf32>
    %40 = vector.shape_cast %37 : vector<8x512xf32> to vector<8x1x512xf32>
    %41 = vector.broadcast %39 : vector<1x8x1xf32> to vector<8x8x512xf32>
    %42 = vector.broadcast %40 : vector<8x1x512xf32> to vector<8x8x512xf32>
    %43 = arith.mulf %41, %42 : vector<8x8x512xf32>
    %44 = arith.addf %36, %43 : vector<8x8x512xf32>
    %45 = vector.extract_strided_slice %3 {offsets = [0, 5], sizes = [8, 512], strides = [1, 1]} : vector<8x527xf32> to vector<8x512xf32>
    %46 = vector.extract_strided_slice %0 {offsets = [5, 0, 0, 0], sizes = [1, 1, 8, 1], strides = [1, 1, 1, 1]} : vector<16x1x8x1xf32> to vector<1x1x8x1xf32>
    %47 = vector.shape_cast %46 : vector<1x1x8x1xf32> to vector<1x8x1xf32>
    %48 = vector.shape_cast %45 : vector<8x512xf32> to vector<8x1x512xf32>
    %49 = vector.broadcast %47 : vector<1x8x1xf32> to vector<8x8x512xf32>
    %50 = vector.broadcast %48 : vector<8x1x512xf32> to vector<8x8x512xf32>
    %51 = arith.mulf %49, %50 : vector<8x8x512xf32>
    %52 = arith.addf %44, %51 : vector<8x8x512xf32>
    %53 = vector.extract_strided_slice %3 {offsets = [0, 6], sizes = [8, 512], strides = [1, 1]} : vector<8x527xf32> to vector<8x512xf32>
    %54 = vector.extract_strided_slice %0 {offsets = [6, 0, 0, 0], sizes = [1, 1, 8, 1], strides = [1, 1, 1, 1]} : vector<16x1x8x1xf32> to vector<1x1x8x1xf32>
    %55 = vector.shape_cast %54 : vector<1x1x8x1xf32> to vector<1x8x1xf32>
    %56 = vector.shape_cast %53 : vector<8x512xf32> to vector<8x1x512xf32>
    %57 = vector.broadcast %55 : vector<1x8x1xf32> to vector<8x8x512xf32>
    %58 = vector.broadcast %56 : vector<8x1x512xf32> to vector<8x8x512xf32>
    %59 = arith.mulf %57, %58 : vector<8x8x512xf32>
    %60 = arith.addf %52, %59 : vector<8x8x512xf32>
    %61 = vector.extract_strided_slice %3 {offsets = [0, 7], sizes = [8, 512], strides = [1, 1]} : vector<8x527xf32> to vector<8x512xf32>
    %62 = vector.extract_strided_slice %0 {offsets = [7, 0, 0, 0], sizes = [1, 1, 8, 1], strides = [1, 1, 1, 1]} : vector<16x1x8x1xf32> to vector<1x1x8x1xf32>
    %63 = vector.shape_cast %62 : vector<1x1x8x1xf32> to vector<1x8x1xf32>
    %64 = vector.shape_cast %61 : vector<8x512xf32> to vector<8x1x512xf32>
    %65 = vector.broadcast %63 : vector<1x8x1xf32> to vector<8x8x512xf32>
    %66 = vector.broadcast %64 : vector<8x1x512xf32> to vector<8x8x512xf32>
    %67 = arith.mulf %65, %66 : vector<8x8x512xf32>
    %68 = arith.addf %60, %67 : vector<8x8x512xf32>
    %69 = vector.extract_strided_slice %3 {offsets = [0, 8], sizes = [8, 512], strides = [1, 1]} : vector<8x527xf32> to vector<8x512xf32>
    %70 = vector.extract_strided_slice %0 {offsets = [8, 0, 0, 0], sizes = [1, 1, 8, 1], strides = [1, 1, 1, 1]} : vector<16x1x8x1xf32> to vector<1x1x8x1xf32>
    %71 = vector.shape_cast %70 : vector<1x1x8x1xf32> to vector<1x8x1xf32>
    %72 = vector.shape_cast %69 : vector<8x512xf32> to vector<8x1x512xf32>
    %73 = vector.broadcast %71 : vector<1x8x1xf32> to vector<8x8x512xf32>
    %74 = vector.broadcast %72 : vector<8x1x512xf32> to vector<8x8x512xf32>
    %75 = arith.mulf %73, %74 : vector<8x8x512xf32>
    %76 = arith.addf %68, %75 : vector<8x8x512xf32>
    %77 = vector.extract_strided_slice %3 {offsets = [0, 9], sizes = [8, 512], strides = [1, 1]} : vector<8x527xf32> to vector<8x512xf32>
    %78 = vector.extract_strided_slice %0 {offsets = [9, 0, 0, 0], sizes = [1, 1, 8, 1], strides = [1, 1, 1, 1]} : vector<16x1x8x1xf32> to vector<1x1x8x1xf32>
    %79 = vector.shape_cast %78 : vector<1x1x8x1xf32> to vector<1x8x1xf32>
    %80 = vector.shape_cast %77 : vector<8x512xf32> to vector<8x1x512xf32>
    %81 = vector.broadcast %79 : vector<1x8x1xf32> to vector<8x8x512xf32>
    %82 = vector.broadcast %80 : vector<8x1x512xf32> to vector<8x8x512xf32>
    %83 = arith.mulf %81, %82 : vector<8x8x512xf32>
    %84 = arith.addf %76, %83 : vector<8x8x512xf32>
    %85 = vector.extract_strided_slice %3 {offsets = [0, 10], sizes = [8, 512], strides = [1, 1]} : vector<8x527xf32> to vector<8x512xf32>
    %86 = vector.extract_strided_slice %0 {offsets = [10, 0, 0, 0], sizes = [1, 1, 8, 1], strides = [1, 1, 1, 1]} : vector<16x1x8x1xf32> to vector<1x1x8x1xf32>
    %87 = vector.shape_cast %86 : vector<1x1x8x1xf32> to vector<1x8x1xf32>
    %88 = vector.shape_cast %85 : vector<8x512xf32> to vector<8x1x512xf32>
    %89 = vector.broadcast %87 : vector<1x8x1xf32> to vector<8x8x512xf32>
    %90 = vector.broadcast %88 : vector<8x1x512xf32> to vector<8x8x512xf32>
    %91 = arith.mulf %89, %90 : vector<8x8x512xf32>
    %92 = arith.addf %84, %91 : vector<8x8x512xf32>
    %93 = vector.extract_strided_slice %3 {offsets = [0, 11], sizes = [8, 512], strides = [1, 1]} : vector<8x527xf32> to vector<8x512xf32>
    %94 = vector.extract_strided_slice %0 {offsets = [11, 0, 0, 0], sizes = [1, 1, 8, 1], strides = [1, 1, 1, 1]} : vector<16x1x8x1xf32> to vector<1x1x8x1xf32>
    %95 = vector.shape_cast %94 : vector<1x1x8x1xf32> to vector<1x8x1xf32>
    %96 = vector.shape_cast %93 : vector<8x512xf32> to vector<8x1x512xf32>
    %97 = vector.broadcast %95 : vector<1x8x1xf32> to vector<8x8x512xf32>
    %98 = vector.broadcast %96 : vector<8x1x512xf32> to vector<8x8x512xf32>
    %99 = arith.mulf %97, %98 : vector<8x8x512xf32>
    %100 = arith.addf %92, %99 : vector<8x8x512xf32>
    %101 = vector.extract_strided_slice %3 {offsets = [0, 12], sizes = [8, 512], strides = [1, 1]} : vector<8x527xf32> to vector<8x512xf32>
    %102 = vector.extract_strided_slice %0 {offsets = [12, 0, 0, 0], sizes = [1, 1, 8, 1], strides = [1, 1, 1, 1]} : vector<16x1x8x1xf32> to vector<1x1x8x1xf32>
    %103 = vector.shape_cast %102 : vector<1x1x8x1xf32> to vector<1x8x1xf32>
    %104 = vector.shape_cast %101 : vector<8x512xf32> to vector<8x1x512xf32>
    %105 = vector.broadcast %103 : vector<1x8x1xf32> to vector<8x8x512xf32>
    %106 = vector.broadcast %104 : vector<8x1x512xf32> to vector<8x8x512xf32>
    %107 = arith.mulf %105, %106 : vector<8x8x512xf32>
    %108 = arith.addf %100, %107 : vector<8x8x512xf32>
    %109 = vector.extract_strided_slice %3 {offsets = [0, 13], sizes = [8, 512], strides = [1, 1]} : vector<8x527xf32> to vector<8x512xf32>
    %110 = vector.extract_strided_slice %0 {offsets = [13, 0, 0, 0], sizes = [1, 1, 8, 1], strides = [1, 1, 1, 1]} : vector<16x1x8x1xf32> to vector<1x1x8x1xf32>
    %111 = vector.shape_cast %110 : vector<1x1x8x1xf32> to vector<1x8x1xf32>
    %112 = vector.shape_cast %109 : vector<8x512xf32> to vector<8x1x512xf32>
    %113 = vector.broadcast %111 : vector<1x8x1xf32> to vector<8x8x512xf32>
    %114 = vector.broadcast %112 : vector<8x1x512xf32> to vector<8x8x512xf32>
    %115 = arith.mulf %113, %114 : vector<8x8x512xf32>
    %116 = arith.addf %108, %115 : vector<8x8x512xf32>
    %117 = vector.extract_strided_slice %3 {offsets = [0, 14], sizes = [8, 512], strides = [1, 1]} : vector<8x527xf32> to vector<8x512xf32>
    %118 = vector.extract_strided_slice %0 {offsets = [14, 0, 0, 0], sizes = [1, 1, 8, 1], strides = [1, 1, 1, 1]} : vector<16x1x8x1xf32> to vector<1x1x8x1xf32>
    %119 = vector.shape_cast %118 : vector<1x1x8x1xf32> to vector<1x8x1xf32>
    %120 = vector.shape_cast %117 : vector<8x512xf32> to vector<8x1x512xf32>
    %121 = vector.broadcast %119 : vector<1x8x1xf32> to vector<8x8x512xf32>
    %122 = vector.broadcast %120 : vector<8x1x512xf32> to vector<8x8x512xf32>
    %123 = arith.mulf %121, %122 : vector<8x8x512xf32>
    %124 = arith.addf %116, %123 : vector<8x8x512xf32>
    %125 = vector.extract_strided_slice %3 {offsets = [0, 15], sizes = [8, 512], strides = [1, 1]} : vector<8x527xf32> to vector<8x512xf32>
    %126 = vector.extract_strided_slice %0 {offsets = [15, 0, 0, 0], sizes = [1, 1, 8, 1], strides = [1, 1, 1, 1]} : vector<16x1x8x1xf32> to vector<1x1x8x1xf32>
    %127 = vector.shape_cast %126 : vector<1x1x8x1xf32> to vector<1x8x1xf32>
    %128 = vector.shape_cast %125 : vector<8x512xf32> to vector<8x1x512xf32>
    %129 = vector.broadcast %127 : vector<1x8x1xf32> to vector<8x8x512xf32>
    %130 = vector.broadcast %128 : vector<8x1x512xf32> to vector<8x8x512xf32>
    %131 = arith.mulf %129, %130 : vector<8x8x512xf32>
    %132 = arith.addf %124, %131 : vector<8x8x512xf32>
    %c0_7 = arith.constant 0 : index
    %c0_8 = arith.constant 0 : index
    %c0_9 = arith.constant 0 : index
    %133 = vector.load %arg5[%c0_7, %c0_8, %c0_9] : memref<8x8x512xf32, #tpu.memory_space<vmem>>, vector<8x8x512xf32>
    tpu.vector_store %arg5[%c0_7, %c0_8, %c0_9], %132 {strides = array<i32>} : memref<8x8x512xf32, #tpu.memory_space<vmem>>, vector<8x8x512xf32>,
    return
  }
  func.func @transform_0(%arg0: i32, %arg1: i32) -> (i32, i32, i32, i32) {
    %c0_i32 = arith.constant 0 : i32
    %c0_i32_0 = arith.constant 0 : i32
    %c0_i32_1 = arith.constant 0 : i32
    %c0_i32_2 = arith.constant 0 : i32
    %c0_i32_3 = arith.constant 0 : i32
    return %c0_i32, %c0_i32_0, %c0_i32_1, %c0_i32_2 : i32, i32, i32, i32
  }
  func.func @transform_1(%arg0: i32, %arg1: i32) -> (i32, i32) {
    %c0_i32 = arith.constant 0 : i32
    return %arg0, %arg1 : i32, i32
  }
  func.func @transform_2(%arg0: i32, %arg1: i32) -> (i32, i32) {
    %c1_i32 = arith.constant 1 : i32
    %0 = arith.addi %arg1, %c1_i32 : i32
    %c0_i32 = arith.constant 0 : i32
    return %arg0, %0 : i32, i32
  }
  func.func @transform_3(%arg0: i32, %arg1: i32) -> (i32, i32, i32) {
    %c0_i32 = arith.constant 0 : i32
    %c0_i32_0 = arith.constant 0 : i32
    return %arg0, %c0_i32, %arg1 : i32, i32, i32
  }
}

</mosaic_0001>

<bundles_post_ra>
// kernel: tpu_custom_call.1
= control target key start
LH: loop header
LB: loop body
LE: loop exit
PB: predicated region body
PF: predicated region fallthrough
CT: control target
= control target key end

     0   :  { %8 = vsyncpa [#allocation3], 0  ;;  %s10446_s0 = inlined_call_operand.vmem [shape: f32[16,1,8,1], index: 0, kind: input, shape index: {}]   ;;  %s10447_s1 = inlined_call_operand.hbm [shape: f32[16,1536], index: 1, kind: input, shape index: {}]   ;;  %s10448_s2 = inlined_call_operand.hbm [shape: f32[16,1536], index: 2, kind: input, shape index: {}]   ;;  %s10449_s3 = inlined_call_operand.hbm [shape: f32[16,8,1024], index: 3, kind: output, shape index: {}]  }
   0x1   :  { %10 = vsyncpa [#allocation3 + $0x1], 0 }
   0x2   :  { %11 = vsyncpa [#allocation6], 0 }
   0x3   :  { %13 = vsyncpa [#allocation6 + $0x1], 0 }
   0x4   :  { %14 = vsyncpa [#allocation4], 0 }
   0x5   :  { %16 = vsyncpa [#allocation4 + $0x1], 0  ;;  %s5318_s12 = smov 0   ;;  %s5320_s13 = smov 0  }
   0x6   :  { %s5322_s14 = smov 0   ;;  %s5324_s15 = smov 0  }
   0x7   :  { %s5326_s16 = smov 0   ;;  %s5328_s17 = smov 0  }
   0x8   :  { %s5330_s18 = smov 0   ;;  %s5332_s19 = smov 0  }
   0x9   :  { %s5334_s20 = smov 0   ;;  %s5336_s21 = smov 0  }
   0xa   :  { %s5338_s22 = smov 0  }
   0xb LB: > { %10842 = sst [smem:[#allocation11_spill]] %s5265_s20  ;;  %s4927_s23 = sadd.s32 4294967295, %s5273_s22   ;;  %s5273_s22 = sphi %s5338_s22, %s22_s22   ;;  %s5269_s21 = sphi %s5336_s21, %s12033_s21   ;;  %s5265_s20 = sphi %s5334_s20, %s12025_s20   ;;  %s5261_s19 = sphi %s5332_s19, %s12024_s19   ;;  %s5257_s18 = sphi %s5330_s18, %s12023_s18   ;;  %s5253_s17 = sphi %s5328_s17, %s12032_s17   ;;  %s5249_s16 = sphi %s5326_s16, %s12031_s16   ;;  %s5245_s15 = sphi %s5324_s15, %s12030_s15   ;;  %s5241_s14 = sphi %s5322_s14, %s12029_s14   ;;  %s5237_s13 = sphi %s5320_s13, %s12028_s13   ;;  %s5233_s12 = sphi %s5318_s12, %s12027_s12  }
   0xc   : > { %10843 = sst [smem:[#allocation12_spill]] %s5269_s21  ;;  %s4928_s24 = sadd.s32 4294967294, %s5273_s22  }
   0xd   : > { %s31_s25 = sadd.s32 1, %s5265_s20  ;;  %s34_s26 = sadd.s32 1, %s5269_s21 }
   0xe   : > { %p32_p0 = scmp.ge.s32.totalorder %s31_s25, 2  ;;  %s64_s27 = sadd.s32 1, %s5253_s17 }
   0xf   : > { %p71_p1 = scmp.ne.s32.totalorder %s5253_s17, %s5249_s16  ;;  %p10456_p2 = scmp.eq.s32.totalorder %s5273_s22, 0 }
  0x10   : > { %s5381_s28 = scalar_select %p32_p0, 0, %s31_s25  }
  0x11   : > { %s12035_s26 = smov (!%p32_p0, %s34_s26), %s5269_s21  ;;  %p5391_p3 = por %p10456_p2, %p71_p1 }
  0x12   : > { %10844 = sst [smem:[#allocation13_spill]] %s5381_s28  ;;  %s60_s29 = ssub.s32 %s5265_s20, %s5381_s28 }
  0x13   : > { %p36_p4 = scmp.ge.s32.totalorder %s12035_s26, 2  ;;  %p77_p5 = scmp.ne.s32.totalorder %s5249_s16, %s5245_s15 }
  0x14   : > { %p5397_p6 = scmp.eq.s32.totalorder %s4927_s23, 0  ;;  %s88_s5 = sadd.s32 1, %s5381_s28 }
  0x15   : > { %s12037_s26 = smov (%p36_p4, %s12035_s26), 0  ;;  %s90_s7 = ssub.s32 %s31_s25, %s88_s5 }
  0x16   : > { %s10846_s4 = scalar_select %p5397_p6, 1, 0 }
  0x17   : > { %10847 = sst [smem:[#allocation14_spill]] %s12037_s26  ;;  %p5409_p7 = por %p5397_p6, %p77_p5 }
  0x18   : > { %s59_s8 = ssub.s32 %s5269_s21, %s12037_s26  ;;  %p133_p8 = scmp.eq.s32.totalorder %s4927_s23, 3 }
  0x19   : > { %s10848_s6 = scalar_select %p5409_p7, 1, 0 }
  0x1a   : > { %s61_s9 = sor.u32 %s60_s29, %s59_s8  ;;  %s91_s10 = sor.u32 %s90_s7, %s59_s8 }
  0x1b   : > { %p62_p9 = scmp.eq.s32.totalorder %s61_s9, 0  ;;  %p5415_p10 = scmp.eq.s32.totalorder %s91_s10, 0 }
  0x1c   : > { %p5422_p11 = por %p133_p8, %p71_p1  ;;  %p139_p12 = scmp.eq.s32.totalorder %s4928_s24, 3 }
  0x1d   : > { %s5427_s25 = scalar_select %p62_p9, %s5253_s17, %s64_s27  }
  0x1e   : > { %s10850_s28 = scalar_select %p5422_p11, 1, 0 }
  0x1f   : > { %p5432_p13 = por %p139_p12, %p77_p5  ;;  %p10455_p0 = scmp.lt.s32.totalorder %s5273_s22, 4 }
  0x20   : > { %s162_s29 = sand.u32 1, %s5253_s17   ;;  %s4932_s7 = sshll.u32 %s5265_s20, 2 }
  0x21   : > { %s10851_s23 = scalar_select %p5432_p13, 1, 0 }
  0x22   : > { %s4931_s5 = sshll.u32 %s162_s29, 5  ;;  %s4949_s8 = smul.u32 12, %s5269_s21 }
  0x23   : > { %s166_s9 = scalar_lea.vmem [#allocation2], %s4931_s5  ;;  %p5446_p1 = pnand %p10455_p0, %p5391_p3 }
  0x24   : > { %s176_s10 = sshll.u32 %s166_s9, 4  ;;  %s5450_s27 = sadd.s32 %s4949_s8, %s4932_s7  ;;  %s5440_s10 = int_to_ptr.vmem [resolvable:$true] %s176_s10 }
  0x25   : > { %s10454_s26 = sshll.u32 %s5450_s27, 7  ;;  %s163_s30 = scalar_lea.sflag [#allocation3], %s162_s29 }
  0x26   : > { %s5459_s9 = scalar_lea.hbm %s10447_s1, %s10454_s26  ;;  %p5088_p8 = pneg %p5446_p1 }
  0x27   : > { %s5086_s20 = scalar_lea.hbm %s5459_s9, 512  ;;  %s5091_s21 = scalar_lea.hbm %s10447_s1, 3072 }
  0x28   : > { %p5087_p5 = scmp.ne.s32.totalorder %s5459_s9, %s5086_s20  ;;  %p5092_p0 = scmp.lt.u32.totalorder %s5459_s9, %s10447_s1 }
  0x29   : > { %p5093_p2 = scmp.lt.u32.totalorder %s5091_s21, %s5086_s20  ;;  %p5095_p3 = scmp.lt.u32.totalorder %s5086_s20, %s5459_s9 }
  0x2a   : > { %p5089_p9 = pnand %p5088_p8, %p5087_p5 }
  0x2b   : > { %p5094_p4 = por %p5093_p2, %p5092_p0 }
  0x2c   : > { %p5090_p12 = pneg %p5089_p9 }
  0x2d   : > { %p5096_p13 = por %p5095_p3, %p5094_p4 }
  0x2f   : > { %p5097_p11 = pnand %p5096_p13, %p5090_p12 }
  0x31   : > { %5100 = shalt.err (!%p5097_p11)
}
  0x32   : > { %s5101_s29 = scalar_lea.vmem %s5440_s10, 512  ;;  %s5275_s7 = smov [#allocation2]  }
  0x33   : > { %p5102_p5 = scmp.ne.s32.totalorder %s5440_s10, %s5101_s29  ;;  %s5106_s8 = sshll.u32 %s5275_s7, 4  ;;  %s5107_s8 = int_to_ptr.vmem [resolvable:$false] %s5106_s8 }
  0x34   : > { %s5108_s26 = scalar_lea.vmem %s5107_s8, 1024  ;;  %p5109_p6 = scmp.lt.s32.totalorder %s5440_s10, %s5107_s8 }
  0x35   : > { %p5104_p9 = pnand %p5102_p5, %p5088_p8  ;;  %p5110_p2 = scmp.lt.s32.totalorder %s5108_s26, %s5101_s29 }
  0x37   : > { %p5105_p7 = pneg %p5104_p9  ;;  %p5111_p0 = por %p5110_p2, %p5109_p6 }
  0x39   : > { %p5112_p4 = pnand %p5111_p0, %p5105_p7 }
  0x3b   : > { %5115 = shalt.err (!%p5112_p4)
}
  0x3c   : > { %4959 = dma.hbm_to_vmem [thread:$0]  (!%p5446_p1), %s5459_s9, 512, %s5440_s10, %s163_s30  }
  0x3d   : > { %p10853_p6 = scmp.lt.s32.totalorder %s5273_s22, 5  ;;  %p10854_p7 = scmp.ge.s32.totalorder %s5273_s22, 1 }
  0x3e   : > { %s94_s24 = sadd.s32 1, %s5241_s14  ;;  %p101_p13 = scmp.ne.s32.totalorder %s5241_s14, %s5237_s13 }
  0x3f   : > { %p5491_p11 = pnand %p10854_p7, %p10853_p6  ;;  %p107_p3 = scmp.ne.s32.totalorder %s5237_s13, %s5233_s12 }
  0x40   : > { %s5499_s21 = scalar_select %p5415_p10, %s5241_s14, %s94_s24  }
  0x41   : > { %s183_s5 = sand.u32 1, %s5241_s14   ;;  %s10856_s29 = sshll.u32 %s5450_s27, 7 }
  0x42   : > { %s4855_s26 = scalar_lea.hbm %s10448_s2, %s10856_s29  ;;  %p10857_p8 = scmp.eq.s32.totalorder %s5273_s22, 0 }
  0x43   : > { %p10858_p12 = scmp.ne.s32.totalorder %s10846_s4, 0  ;;  %s4934_s9 = sshll.u32 %s183_s5, 5 }
  0x44   : > { %p103_p1 = por %p101_p13, %p10857_p8  ;;  %s5519_s30 = scalar_lea.hbm %s4855_s26, 512 }
  0x45   : > { %p5515_p5 = por %p107_p3, %p10858_p12  ;;  %s187_s12 = scalar_lea.vmem [#allocation5], %s4934_s9 }
  0x46   : > { %s198_s11 = sshll.u32 %s187_s12, 4  ;;  %p10860_p10 = scmp.lt.s32.totalorder %s5273_s22, 4  ;;  %s5527_s11 = int_to_ptr.vmem [resolvable:$true] %s198_s11 }
  0x47   : > { %s10859_s10 = scalar_select %p5515_p5, 1, 0 }
  0x48   : > { %p5523_p9 = pnand %p10860_p10, %p103_p1  ;;  %s184_s4 = scalar_lea.sflag [#allocation6], %s183_s5 }
  0x49   : > { %s5146_s24 = scalar_lea.hbm %s4855_s26, 1024  ;;  %s5121_s8 = scalar_lea.hbm %s10448_s2, 3072 }
  0x4a   : > { %p5117_p2 = scmp.ne.s32.totalorder %s5519_s30, %s5146_s24  ;;  %p5118_p0 = pneg %p5523_p9 }
  0x4b   : > { %p5122_p7 = scmp.lt.u32.totalorder %s5519_s30, %s10448_s2  ;;  %p5123_p13 = scmp.lt.u32.totalorder %s5121_s8, %s5146_s24 }
  0x4c   : > { %p5119_p4 = pnand %p5118_p0, %p5117_p2  ;;  %p5125_p8 = scmp.lt.u32.totalorder %s5146_s24, %s5519_s30 }
  0x4d   : > { %p5124_p3 = por %p5123_p13, %p5122_p7 }
  0x4e   : > { %p5120_p6 = pneg %p5119_p4 }
  0x4f   : > { %p5126_p1 = por %p5125_p8, %p5124_p3 }
  0x51   : > { %p5127_p12 = pnand %p5126_p1, %p5120_p6 }
  0x53   : > { %5130 = shalt.err (!%p5127_p12)
}
  0x54   : > { %s5131_s5 = scalar_lea.vmem %s5527_s11, 512  ;;  %s5276_s26 = smov [#allocation5]  }
  0x55   : > { %p5132_p10 = scmp.ne.s32.totalorder %s5527_s11, %s5131_s5  ;;  %s5136_s29 = sshll.u32 %s5276_s26, 4  ;;  %s5137_s29 = int_to_ptr.vmem [resolvable:$false] %s5136_s29 }
  0x56   : > { %s5138_s7 = scalar_lea.vmem %s5137_s29, 1024  ;;  %p5139_p5 = scmp.lt.s32.totalorder %s5527_s11, %s5137_s29 }
  0x57   : > { %p5134_p2 = pnand %p5132_p10, %p5118_p0  ;;  %p5140_p7 = scmp.lt.s32.totalorder %s5138_s7, %s5131_s5 }
  0x59   : > { %p5135_p4 = pneg %p5134_p2  ;;  %p5141_p13 = por %p5140_p7, %p5139_p5 }
  0x5b   : > { %p5142_p3 = pnand %p5141_p13, %p5135_p4 }
  0x5d   : > { %5145 = shalt.err (!%p5142_p3)
}
  0x5e   : > { %4962 = dma.hbm_to_vmem [thread:$0]  (!%p5523_p9), %s5519_s30, 512, %s5527_s11, %s184_s4  }
  0x5f   : > { %207 = sbr.rel (%p5491_p11) target bundleno = 3226 (0xc9a), region = 32 }
  0x66   : > { %s5556_s24 = sand.u32 1, %s5249_s16   ;;  %p10862_p5 = scmp.ne.s32.totalorder %s10848_s6, 0 }
  0x67   : > { %s4938_s8 = sshll.u32 %s5556_s24, 5  ;;  %s210_s9 = scalar_lea.sflag [#allocation3], %s5556_s24 }
  0x68   : > { %s213_s12 = scalar_lea.vmem [#allocation2], %s4938_s8 }
  0x69   : > { %5220 = dma.done.wait (%p10862_p5), %s210_s9, 512  }
  0x6a   : > { %5222 = vsyncadd (%p10862_p5), %s210_s9, 4294966784  ;;  %s218_s30 = sand.u32 1, %s5237_s13   ;;  %p10863_p11 = scmp.ne.s32.totalorder %s10859_s10, 0 }
  0x6b   : > { %s5565_s11 = sshll.u32 %s218_s30, 5  ;;  %s219_s20 = scalar_lea.sflag [#allocation6], %s218_s30 }
  0x6c   : > { %s222_s27 = scalar_lea.vmem [#allocation5], %s5565_s11 }
  0x6d   : > { %5224 = dma.done.wait (%p10863_p11), %s219_s20, 512  }
  0x6e   : > { %5226 = vsyncadd (%p10863_p11), %s219_s20, 4294966784  ;;  %v5277_v0 = vmov 0   ;;  %v255_v1 = vld [vmem:[%s10446_s0] sm:$0xff]  ;;  %v5278_v2 = vmov 1966171168   ;;  %v287_v4 = vlaneseq  ;;  %v256_v5 = vld [vmem:[%s10446_s0 + $0x8] sm:$0xff] }
  0x6f   : > { %5077 = vset.pattern.permute.xlu0 %v5277_v0  ;;  %5078 = vset.pattern.permute.xlu1 %v5277_v0  ;;  %v285_v3 = vunpack.c.l.s4 %v5278_v2  ;;  %v257_v8 = vld [vmem:[%s10446_s0 + $0x10] sm:$0xff]  ;;  %v5079_v9 = vld [vmem:[%s213_s12] ss:$8 sps:$4 sm:$0xff]   ;;  %v5083_v12 = vld [vmem:[%s213_s12 + $0x4] ss:$8 sps:$4 sm:$0xff]   ;;  %s5279_s7 = smov 127  }
  0x70   : > { %350 = vperm.xlu0 %5077, %v255_v1   ;;  %v5578_v7 = vshrl.u32 %v287_v4, 7  ;;  %v5081_v10 = vld [vmem:[%s213_s12 + $0x10] ss:$8 sps:$4 sm:$0xff]   ;;  %v5084_v13 = vld [vmem:[%s213_s12 + $0x14] ss:$8 sps:$4 sm:$0xff]   ;;  %v275_v2 = vld [vmem:[%s222_s27] sm:$0xff] }
  0x71   : > { %v286_v6 = vunpack.c.0.s8 %v285_v3  ;;  %v578_v52 = vcombine.high %v275_v2, %v275_v2  ;;  %s5280_s8 = smov 126   ;;  %s5281_s30 = smov 125   ;;  %vm996_vm0 = vcmask 1039360   ;;  %vm1258_vm1 = vcmask 1031168  }
  0x72   : > { %v5591_v22 = vsub.s32 2, %v5578_v7  ;;  %v5594_v23 = vsub.s32 0, %v5578_v7  ;;  %v5597_v24 = vsub.s32 1, %v5578_v7  ;;  %v5600_v25 = vsub.s32 3, %v5578_v7  ;;  %s5282_s27 = smov 124   ;;  %s5283_s6 = smov 123  }
  0x73   : > { %v5584_v11 = vsub.s32 %v286_v6, %v5578_v7  ;;  %s5284_s29 = smov 122   ;;  %s5285_s9 = smov 121   ;;  %vm1520_vm2 = vcmask 1022976   ;;  %vm1782_vm3 = vcmask 1014784   ;;  %vm2044_vm4 = vcmask 1006592  }
  0x74   : > { %633 = vperm.xlu0 %5077, %v256_v5   ;;  %10864 = vst [vmem:[#allocation15_spill] sm:$0xff] %v5591_v22  ;;  %10865 = vst [vmem:[#allocation16_spill] sm:$0xff] %v5594_v23  ;;  %s5286_s11 = smov 120   ;;  %s5287_s4 = smov 119   ;;  %vm2306_vm5 = vcmask 998400   ;;  %vm2568_vm6 = vcmask 990208  }
  0x75   : > { %v290_v14 = vrot.slane %v5079_v9, %v5584_v11  ;;  %v304_v15 = vrot.slane %v5081_v10, %v5584_v11  ;;  %v297_v16 = vrot.slane %v5083_v12, %v5584_v11  ;;  %v311_v17 = vrot.slane %v5084_v13, %v5584_v11  ;;  %10866 = vst [vmem:[#allocation17_spill] sm:$0xff] %v5597_v24  ;;  %s5288_s26 = smov 118   ;;  %s5290_s12 = smov 116  }
  0x76   : > { %10867 = vst [vmem:[#allocation18_spill] sm:$0xff] %v5600_v25  ;;  %v585_v3 = vrot.slane %v275_v2, %v5584_v11  ;;  %v5709_v13 = vsub.s32 4, %v5578_v7  ;;  %v592_v2 = vrot.slane %v578_v52, %v5584_v11  ;;  %s5291_s20 = smov 115   ;;  %vm2830_vm7 = vcmask 982016   ;;  %s5292_s5 = smov 114  }
  0x77   : > { %v312_v18 = vcombine.low %v290_v14, %v304_v15  ;;  %v313_v19 = vcombine.high %v290_v14, %v304_v15  ;;  %v314_v20 = vcombine.low %v297_v16, %v311_v17  ;;  %v315_v21 = vcombine.high %v297_v16, %v311_v17  ;;  %s5293_s10 = smov 113   ;;  %p12021_p0 = scmp.ne.s32.totalorder %s10850_s28, 0 }
  0x78   : > { %1095 = vperm.xlu0 %5077, %v257_v8   ;;  %v601_v4 = vrot.slane %v585_v3, %v5584_v11  ;;  %v593_v5 = vcombine.high %v585_v3, %v585_v3  ;;  %vm3092_vm8 = vcmask 973824   ;;  %vm3354_vm9 = vcmask 965632  }
  0x79   : > { %v5603_v26 = vrot.slane %v312_v18, %v5584_v11  ;;  %v5606_v27 = vrot.slane %v313_v19, %v5584_v11  ;;  %v5609_v28 = vrot.slane %v314_v20, %v5584_v11  ;;  %v5612_v29 = vrot.slane %v315_v21, %v5584_v11 }
  0x7a   : > { %v615_v9 = vrot.slane %v593_v5, %v5584_v11  ;;  %vm3616_vm10 = vcmask 957440   ;;  %vm3878_vm11 = vcmask 949248   ;;  %vm4140_vm12 = vcmask 941056  }
  0x7b   : > { %10868 = vst [vmem:[#allocation19_spill] sm:$0xff] %v5603_v26  ;;  %10869 = vst [vmem:[#allocation20_spill] sm:$0xff] %v5606_v27  ;;  %v5632_v38 = vcombine.high %v5603_v26, %v5603_v26  ;;  %v5636_v39 = vcombine.high %v5606_v27, %v5606_v27  ;;  %v5672_v56 = vcombine.high %v5609_v28, %v5609_v28  ;;  %vm4402_vm13 = vcmask 932864  }
  0x7c   : > { %10870 = vst [vmem:[#allocation21_spill] sm:$0xff] %v5609_v28  ;;  %v5676_v57 = vcombine.high %v5612_v29, %v5612_v29  ;;  %v623_v6 = vcombine.low %v5603_v26, %v601_v4  ;;  %v627_v15 = vcombine.low %v5606_v27, %v615_v9  ;;  %v624_v5 = vcombine.high %v5603_v26, %v601_v4 }
  0x7d   : > { %10871 = vst [vmem:[#allocation22_spill] sm:$0xff] %v5632_v38  ;;  %10872 = vst [vmem:[#allocation23_spill] sm:$0xff] %v5636_v39  ;;  %vm4664_vm14 = vcmask 924672  }
  0x7e   : > { %v5703_v10 = vrot.slane %v623_v6, %v5591_v22  ;;  %v5706_v12 = vrot.slane %v623_v6, %v5594_v23  ;;  %v5719_v18 = vrot.slane %v623_v6, %v5709_v13  ;;  %v5722_v19 = vrot.slane %v623_v6, %v5597_v24 }
  0x7f   : > { %v5731_v21 = vrot.slane %v627_v15, %v5597_v24  ;;  %v5734_v3 = vrot.slane %v623_v6, %v5600_v25  ;;  %v5744_v42 = vrot.slane %v627_v15, %v5600_v25  ;;  %v5747_v41 = vrot.slane %v627_v15, %v5594_v23 }
  0x80   : > { %10874 = vst [vmem:[#allocation25_spill] sm:$0xff] %v5706_v12  ;;  %10875 = vst [vmem:[#allocation26_spill] sm:$0xff] %v5719_v18  ;;  %v5768_v40 = vrot.slane %v624_v5, %v5591_v22  ;;  %v5771_v53 = vrot.slane %v627_v15, %v5709_v13  ;;  %v5781_v50 = vrot.slane %v624_v5, %v5709_v13 }
  0x81   : > { %10876 = vst [vmem:[#allocation27_spill] sm:$0xff] %v5722_v19  ;;  %10877 = vst [vmem:[#allocation28_spill] sm:$0xff] %v5731_v21  ;;  %v5784_v49 = vrot.slane %v624_v5, %v5597_v24  ;;  %v5798_v48 = vrot.slane %v624_v5, %v5600_v25 }
  0x82   : > { %10878 = vst [vmem:[#allocation29_spill] sm:$0xff] %v5744_v42  ;;  %10881 = vst [vmem:[#allocation32_spill] sm:$0xff] %v5768_v40 }
  0x83   : > { %10882 = vst [vmem:[#allocation33_spill] sm:$0xff] %v5771_v53  ;;  %10883 = vst [vmem:[#allocation34_spill] sm:$0xff] %v5781_v50 }
  0x84   : > { %10884 = vst [vmem:[#allocation35_spill] sm:$0xff] %v5784_v49  ;;  %10886 = vst [vmem:[#allocation37_spill] sm:$0xff] %v5798_v48 }
  0xef   : > { %v5699_v8 = vpop.permute.xlu0 %350 }
  0xf0   : > { %10873 = vst [vmem:[#allocation24_spill] sm:$0xff] %v5699_v8 }
  0xf3   : > { %v5711_v14 = vpop.permute.xlu0 %633 }
  0xf4   : > { %v838_v16 = vmul.f32 %v5703_v10, %v5711_v14  ;;  %v836_v17 = vmul.f32 %v5706_v12, %v5711_v14  ;;  %v840_v7 = vmul.f32 %v5719_v18, %v5711_v14  ;;  %v837_v20 = vmul.f32 %v5722_v19, %v5711_v14 }
  0xf5   : > { %v844_v6 = vmul.f32 %v5744_v42, %v5711_v14  ;;  %v841_v4 = vmul.f32 %v5747_v41, %v5711_v14  ;;  %v845_v51 = vmul.f32 %v5771_v53, %v5711_v14 }
  0xf6   : > { %920 = vrot.lane.b32.xlu0 %v838_v16, %s5279_s7  ;;  %916 = vrot.lane.b32.xlu1 %v836_v17, %s5279_s7  ;;  %v842_v16 = vmul.f32 %v5731_v21, %v5711_v14  ;;  %v839_v17 = vmul.f32 %v5734_v3, %v5711_v14 }
  0xf7   : > { %v5946_v55 = vpop.permute.xlu0 %1095 }
  0xfa   : > { %924 = vrot.lane.b32.xlu0 %v840_v7, %s5279_s7  ;;  %918 = vrot.lane.b32.xlu1 %v837_v20, %s5279_s7  ;;  %v5756_v7 = vrot.slane %v624_v5, %v5594_v23  ;;  %v5759_v20 = vrot.slane %v627_v15, %v5591_v22  ;;  %v850_v15 = vmul.f32 %v5781_v50, %v5711_v14 }
  0xfb   : > { %v594_v5 = vcombine.high %v592_v2, %v592_v2 }
  0xfc   : > { %10879 = vst [vmem:[#allocation30_spill] sm:$0xff] %v5756_v7  ;;  %10880 = vst [vmem:[#allocation31_spill] sm:$0xff] %v5759_v20 }
  0xfe   : > { %928 = vrot.lane.b32.xlu0 %v842_v16, %s5279_s7  ;;  %922 = vrot.lane.b32.xlu1 %v839_v17, %s5279_s7  ;;  %v846_v16 = vmul.f32 %v5756_v7, %v5711_v14  ;;  %v843_v17 = vmul.f32 %v5759_v20, %v5711_v14 }
 0x102   : > { %932 = vrot.lane.b32.xlu0 %v844_v6, %s5279_s7  ;;  %926 = vrot.lane.b32.xlu1 %v841_v4, %s5279_s7  ;;  %v628_v6 = vcombine.high %v5606_v27, %v615_v9  ;;  %v848_v4 = vmul.f32 %v5768_v40, %v5711_v14  ;;  %v608_v9 = vrot.slane %v592_v2, %v5584_v11 }
 0x104   : > { %v5808_v47 = vrot.slane %v628_v6, %v5600_v25  ;;  %v5811_v46 = vrot.slane %v628_v6, %v5594_v23  ;;  %v5823_v36 = vrot.slane %v628_v6, %v5591_v22  ;;  %v5836_v34 = vrot.slane %v628_v6, %v5709_v13 }
 0x106   : > { %936 = vrot.lane.b32.xlu0 %v846_v16, %s5279_s7  ;;  %930 = vrot.lane.b32.xlu1 %v843_v17, %s5279_s7  ;;  %v847_v16 = vmul.f32 %v5784_v49, %v5711_v14  ;;  %v5795_v17 = vrot.slane %v628_v6, %v5597_v24  ;;  %10887 = vst [vmem:[#allocation38_spill] sm:$0xff] %v5808_v47  ;;  %10888 = vst [vmem:[#allocation39_spill] sm:$0xff] %v5811_v46 }
 0x107   : > { %10890 = vst [vmem:[#allocation41_spill] sm:$0xff] %v5823_v36  ;;  %10892 = vst [vmem:[#allocation43_spill] sm:$0xff] %v5836_v34 }
 0x108   : > { %10885 = vst [vmem:[#allocation36_spill] sm:$0xff] %v5795_v17  ;;  %v852_v52 = vmul.f32 %v5795_v17, %v5711_v14 }
 0x10a   : > { %940 = vrot.lane.b32.xlu0 %v848_v4, %s5279_s7  ;;  %934 = vrot.lane.b32.xlu1 %v845_v51, %s5279_s7  ;;  %v625_v51 = vcombine.low %v5609_v28, %v608_v9  ;;  %v849_v4 = vmul.f32 %v5798_v48, %v5711_v14 }
 0x10c   : > { %v5820_v37 = vrot.slane %v625_v51, %v5594_v23  ;;  %v5833_v35 = vrot.slane %v625_v51, %v5591_v22  ;;  %v5849_v33 = vrot.slane %v625_v51, %v5597_v24  ;;  %v5861_v32 = vrot.slane %v625_v51, %v5600_v25 }
 0x10e   : > { %944 = vrot.lane.b32.xlu0 %v850_v15, %s5279_s7  ;;  %938 = vrot.lane.b32.xlu1 %v847_v16, %s5279_s7  ;;  %v854_v15 = vmul.f32 %v5808_v47, %v5711_v14  ;;  %v851_v16 = vmul.f32 %v5811_v46, %v5711_v14  ;;  %10889 = vst [vmem:[#allocation40_spill] sm:$0xff] %v5820_v37  ;;  %10891 = vst [vmem:[#allocation42_spill] sm:$0xff] %v5833_v35 }
 0x10f   : > { %v856_v2 = vmul.f32 %v5820_v37, %v5711_v14  ;;  %10894 = vst [vmem:[#allocation45_spill] sm:$0xff] %v5849_v33  ;;  %10896 = vst [vmem:[#allocation47_spill] sm:$0xff] %v5861_v32  ;;  %v859_v31 = vmul.f32 %v5861_v32, %v5711_v14 }
 0x112   : > { %948 = vrot.lane.b32.xlu0 %v852_v52, %s5279_s7  ;;  %942 = vrot.lane.b32.xlu1 %v849_v4, %s5279_s7  ;;  %v622_v52 = vrot.slane %v594_v5, %v5584_v11  ;;  %v853_v4 = vmul.f32 %v5823_v36, %v5711_v14  ;;  %v858_v11 = vmul.f32 %v5833_v35, %v5711_v14 }
 0x113   : > { %v855_v5 = vmul.f32 %v5836_v34, %v5711_v14 }
 0x116   : > { %952 = vrot.lane.b32.xlu0 %v854_v15, %s5279_s7  ;;  %946 = vrot.lane.b32.xlu1 %v851_v16, %s5279_s7  ;;  %v629_v15 = vcombine.low %v5612_v29, %v622_v52  ;;  %v5846_v16 = vrot.slane %v625_v51, %v5709_v13 }
 0x118   : > { %10893 = vst [vmem:[#allocation44_spill] sm:$0xff] %v5846_v16  ;;  %v860_v6 = vmul.f32 %v5846_v16, %v5711_v14  ;;  %v5871_v30 = vrot.slane %v629_v15, %v5600_v25  ;;  %v5874_v1 = vrot.slane %v629_v15, %v5594_v23  ;;  %v5898_v63 = vrot.slane %v629_v15, %v5709_v13 }
 0x11a   : > { %956 = vrot.lane.b32.xlu0 %v856_v2, %s5279_s7  ;;  %950 = vrot.lane.b32.xlu1 %v853_v4, %s5279_s7  ;;  %v857_v2 = vmul.f32 %v5849_v33, %v5711_v14  ;;  %v5858_v4 = vrot.slane %v629_v15, %v5597_v24  ;;  %10897 = vst [vmem:[#allocation48_spill] sm:$0xff] %v5871_v30  ;;  %10898 = vst [vmem:[#allocation49_spill] sm:$0xff] %v5874_v1 }
 0x11b   : > { %v864_v51 = vmul.f32 %v5871_v30, %v5711_v14  ;;  %10902 = vst [vmem:[#allocation53_spill] sm:$0xff] %v5898_v63  ;;  %v865_v62 = vmul.f32 %v5898_v63, %v5711_v14  ;;  %v1127_v43 = vmul.f32 %v5946_v55, %v5898_v63 }
 0x11c   : > { %10895 = vst [vmem:[#allocation46_spill] sm:$0xff] %v5858_v4 }
 0x11e   : > { %960 = vrot.lane.b32.xlu0 %v858_v11, %s5279_s7  ;;  %954 = vrot.lane.b32.xlu1 %v855_v5, %s5279_s7  ;;  %v626_v11 = vcombine.high %v5609_v28, %v608_v9  ;;  %v862_v5 = vmul.f32 %v5858_v4, %v5711_v14  ;;  %v861_v9 = vmul.f32 %v5874_v1, %v5711_v14 }
 0x120   : > { %v5895_v0 = vrot.slane %v626_v11, %v5591_v22  ;;  %v5908_v61 = vrot.slane %v626_v11, %v5709_v13  ;;  %v5911_v60 = vrot.slane %v626_v11, %v5597_v24 }
 0x122   : > { %964 = vrot.lane.b32.xlu0 %v860_v6, %s5279_s7  ;;  %958 = vrot.lane.b32.xlu1 %v857_v2, %s5279_s7  ;;  %v5883_v6 = vrot.slane %v626_v11, %v5594_v23  ;;  %v5886_v2 = vrot.slane %v629_v15, %v5591_v22  ;;  %10901 = vst [vmem:[#allocation52_spill] sm:$0xff] %v5895_v0  ;;  %10903 = vst [vmem:[#allocation54_spill] sm:$0xff] %v5908_v61 }
 0x123   : > { %10904 = vst [vmem:[#allocation55_spill] sm:$0xff] %v5911_v60  ;;  %v870_v15 = vmul.f32 %v5908_v61, %v5711_v14 }
 0x124   : > { %10899 = vst [vmem:[#allocation50_spill] sm:$0xff] %v5883_v6  ;;  %10900 = vst [vmem:[#allocation51_spill] sm:$0xff] %v5886_v2  ;;  %v1125_v44 = vmul.f32 %v5946_v55, %v5886_v2 }
 0x126   : > { %968 = vrot.lane.b32.xlu0 %v862_v5, %s5279_s7  ;;  %962 = vrot.lane.b32.xlu1 %v859_v31, %s5279_s7  ;;  %v866_v5 = vmul.f32 %v5883_v6, %v5711_v14  ;;  %v863_v31 = vmul.f32 %v5886_v2, %v5711_v14 }
 0x12a   : > { %972 = vrot.lane.b32.xlu0 %v864_v51, %s5279_s7  ;;  %966 = vrot.lane.b32.xlu1 %v861_v9, %s5279_s7  ;;  %v630_v51 = vcombine.high %v5612_v29, %v622_v52  ;;  %v868_v9 = vmul.f32 %v5895_v0, %v5711_v14  ;;  %v867_v52 = vmul.f32 %v5911_v60, %v5711_v14 }
 0x12c   : > { %v5932_v59 = vrot.slane %v630_v51, %v5600_v25  ;;  %v5935_v58 = vrot.slane %v630_v51, %v5594_v23  ;;  %v5955_v54 = vrot.slane %v630_v51, %v5709_v13  ;;  %v1098_v13 = vmul.f32 %v5946_v55, %v5706_v12 }
 0x12e   : > { %976 = vrot.lane.b32.xlu0 %v866_v5, %s5279_s7  ;;  %970 = vrot.lane.b32.xlu1 %v863_v31, %s5279_s7  ;;  %v5920_v5 = vrot.slane %v630_v51, %v5597_v24  ;;  %v5923_v31 = vrot.slane %v626_v11, %v5600_v25  ;;  %10907 = vst [vmem:[#allocation58_spill] sm:$0xff] %v5932_v59  ;;  %10908 = vst [vmem:[#allocation59_spill] sm:$0xff] %v5935_v58 }
 0x12f   : > { %v874_v11 = vmul.f32 %v5932_v59, %v5711_v14  ;;  %10910 = vst [vmem:[#allocation61_spill] sm:$0xff] %v5955_v54  ;;  %v875_v45 = vmul.f32 %v5955_v54, %v5711_v14 }
 0x130   : > { %10905 = vst [vmem:[#allocation56_spill] sm:$0xff] %v5920_v5  ;;  %10906 = vst [vmem:[#allocation57_spill] sm:$0xff] %v5923_v31 }
 0x132   : > { %980 = vrot.lane.b32.xlu0 %v868_v9, %s5279_s7  ;;  %974 = vrot.lane.b32.xlu1 %v865_v62, %s5279_s7  ;;  %v872_v9 = vmul.f32 %v5920_v5, %v5711_v14  ;;  %v869_v62 = vmul.f32 %v5923_v31, %v5711_v14 }
 0x136   : > { %984 = vrot.lane.b32.xlu0 %v870_v15, %s5279_s7  ;;  %978 = vrot.lane.b32.xlu1 %v867_v52, %s5279_s7  ;;  %v871_v15 = vmul.f32 %v5935_v58, %v5711_v14  ;;  %v5944_v52 = vrot.slane %v630_v51, %v5591_v22  ;;  %v1100_v51 = vmul.f32 %v5946_v55, %v5703_v10 }
 0x138   : > { %10909 = vst [vmem:[#allocation60_spill] sm:$0xff] %v5944_v52 }
 0x13a   : > { %988 = vrot.lane.b32.xlu0 %v872_v9, %s5279_s7  ;;  %982 = vrot.lane.b32.xlu1 %v869_v62, %s5279_s7  ;;  %v873_v9 = vmul.f32 %v5944_v52, %v5711_v14  ;;  %v1099_v62 = vmul.f32 %v5946_v55, %v5722_v19  ;;  %v1105_v14 = vmul.f32 %v5946_v55, %v5759_v20 }
 0x13e   : > { %992 = vrot.lane.b32.xlu0 %v874_v11, %s5279_s7  ;;  %986 = vrot.lane.b32.xlu1 %v871_v15, %s5279_s7  ;;  %v1101_v11 = vmul.f32 %v5946_v55, %v5734_v3  ;;  %v1103_v15 = vmul.f32 %v5946_v55, %v5747_v41 }
 0x142   : > { %990 = vrot.lane.b32.xlu1 %v873_v9, %s5279_s7  ;;  %1180 = vrot.lane.b32.xlu0 %v1099_v62, %s5280_s8  ;;  %v1102_v9 = vmul.f32 %v5946_v55, %v5719_v18  ;;  %v1109_v62 = vmul.f32 %v5946_v55, %v5784_v49 }
 0x146   : > { %994 = vrot.lane.b32.xlu1 %v875_v45, %s5279_s7  ;;  %1184 = vrot.lane.b32.xlu0 %v1101_v11, %s5280_s8  ;;  %v1107_v45 = vmul.f32 %v5946_v55, %v5771_v53  ;;  %v1104_v11 = vmul.f32 %v5946_v55, %v5731_v21  ;;  %s5289_s7 = smov 117  }
 0x14a   : > { %1188 = vrot.lane.b32.xlu0 %v1103_v15, %s5280_s8  ;;  %1178 = vrot.lane.b32.xlu1 %v1098_v13, %s5280_s8  ;;  %v1111_v15 = vmul.f32 %v5946_v55, %v5798_v48  ;;  %v1106_v13 = vmul.f32 %v5946_v55, %v5744_v42 }
 0x14e   : > { %1192 = vrot.lane.b32.xlu0 %v1105_v14, %s5280_s8  ;;  %1182 = vrot.lane.b32.xlu1 %v1100_v51, %s5280_s8  ;;  %v1113_v14 = vmul.f32 %v5946_v55, %v5811_v46  ;;  %v1108_v51 = vmul.f32 %v5946_v55, %v5756_v7 }
 0x152   : > { %1196 = vrot.lane.b32.xlu0 %v1107_v45, %s5280_s8  ;;  %1186 = vrot.lane.b32.xlu1 %v1102_v9, %s5280_s8  ;;  %v1115_v45 = vmul.f32 %v5946_v55, %v5823_v36  ;;  %v1110_v9 = vmul.f32 %v5946_v55, %v5768_v40 }
 0x156   : > { %1200 = vrot.lane.b32.xlu0 %v1109_v62, %s5280_s8  ;;  %1190 = vrot.lane.b32.xlu1 %v1104_v11, %s5280_s8  ;;  %v1117_v62 = vmul.f32 %v5946_v55, %v5836_v34  ;;  %v1112_v11 = vmul.f32 %v5946_v55, %v5781_v50 }
 0x15a   : > { %1204 = vrot.lane.b32.xlu0 %v1111_v15, %s5280_s8  ;;  %1194 = vrot.lane.b32.xlu1 %v1106_v13, %s5280_s8  ;;  %v1119_v13 = vmul.f32 %v5946_v55, %v5849_v33 }
 0x15e   : > { %1208 = vrot.lane.b32.xlu0 %v1113_v14, %s5280_s8  ;;  %1198 = vrot.lane.b32.xlu1 %v1108_v51, %s5280_s8  ;;  %v1114_v14 = vmul.f32 %v5946_v55, %v5795_v17 }
 0x162   : > { %1212 = vrot.lane.b32.xlu0 %v1115_v45, %s5280_s8  ;;  %1202 = vrot.lane.b32.xlu1 %v1110_v9, %s5280_s8  ;;  %v1121_v45 = vmul.f32 %v5946_v55, %v5861_v32  ;;  %v1116_v9 = vmul.f32 %v5946_v55, %v5808_v47 }
 0x166   : > { %1216 = vrot.lane.b32.xlu0 %v1117_v62, %s5280_s8  ;;  %1206 = vrot.lane.b32.xlu1 %v1112_v11, %s5280_s8  ;;  %v1123_v11 = vmul.f32 %v5946_v55, %v5874_v1 }
 0x168   : > { %v6013_v15 = vpop.permute.xlu1 %916 }
 0x169   : > { %10911 = vst [vmem:[#allocation62_spill] sm:$0xff] %v6013_v15 }
 0x16a   : > { %1220 = vrot.lane.b32.xlu0 %v1119_v13, %s5280_s8  ;;  %1210 = vrot.lane.b32.xlu1 %v1114_v14, %s5280_s8  ;;  %v1118_v13 = vmul.f32 %v5946_v55, %v5820_v37 }
 0x16c   : > { %v6021_v51 = vpop.permute.xlu1 %918 }
 0x16d   : > { %10912 = vst [vmem:[#allocation63_spill] sm:$0xff] %v6021_v51 }
 0x16e   : > { %1224 = vrot.lane.b32.xlu0 %v1121_v45, %s5280_s8  ;;  %1214 = vrot.lane.b32.xlu1 %v1116_v9, %s5280_s8  ;;  %v1120_v45 = vmul.f32 %v5946_v55, %v5833_v35 }
 0x170   : > { %v6029_v62 = vpop.permute.xlu1 %922 }
 0x171   : > { %10913 = vst [vmem:[#allocation64_spill] sm:$0xff] %v6029_v62 }
 0x172   : > { %1228 = vrot.lane.b32.xlu0 %v1123_v11, %s5280_s8  ;;  %1218 = vrot.lane.b32.xlu1 %v1118_v13, %s5280_s8  ;;  %v1122_v11 = vmul.f32 %v5946_v55, %v5846_v16 }
 0x174   : > { %v6037_v14 = vpop.permute.xlu1 %926 }
 0x175   : > { %10914 = vst [vmem:[#allocation65_spill] sm:$0xff] %v6037_v14  ;;  %v1129_v14 = vmul.f32 %v5946_v55, %v5911_v60 }
 0x176   : > { %1232 = vrot.lane.b32.xlu0 %v1125_v44, %s5280_s8  ;;  %1222 = vrot.lane.b32.xlu1 %v1120_v45, %s5280_s8  ;;  %v1124_v44 = vmul.f32 %v5946_v55, %v5858_v4 }
 0x178   : > { %v6045_v9 = vpop.permute.xlu1 %930 }
 0x179   : > { %10915 = vst [vmem:[#allocation66_spill] sm:$0xff] %v6045_v9  ;;  %v1131_v9 = vmul.f32 %v5946_v55, %v5923_v31 }
 0x17a   : > { %1236 = vrot.lane.b32.xlu0 %v1127_v43, %s5280_s8  ;;  %1226 = vrot.lane.b32.xlu1 %v1122_v11, %s5280_s8  ;;  %v1126_v43 = vmul.f32 %v5946_v55, %v5871_v30 }
 0x17c   : > { %v6053_v13 = vpop.permute.xlu1 %934 }
 0x17d   : > { %10916 = vst [vmem:[#allocation67_spill] sm:$0xff] %v6053_v13  ;;  %v1133_v13 = vmul.f32 %v5946_v55, %v5935_v58 }
 0x17e   : > { %1240 = vrot.lane.b32.xlu0 %v1129_v14, %s5280_s8  ;;  %1230 = vrot.lane.b32.xlu1 %v1124_v44, %s5280_s8  ;;  %v1128_v14 = vmul.f32 %v5946_v55, %v5883_v6 }
 0x180   : > { %v6061_v45 = vpop.permute.xlu1 %938 }
 0x181   : > { %10917 = vst [vmem:[#allocation68_spill] sm:$0xff] %v6061_v45  ;;  %v1135_v45 = vmul.f32 %v5946_v55, %v5944_v52 }
 0x182   : > { %1244 = vrot.lane.b32.xlu0 %v1131_v9, %s5280_s8  ;;  %1234 = vrot.lane.b32.xlu1 %v1126_v43, %s5280_s8  ;;  %v1130_v9 = vmul.f32 %v5946_v55, %v5895_v0 }
 0x184   : > { %v6069_v11 = vpop.permute.xlu1 %942 }
 0x185   : > { %10918 = vst [vmem:[#allocation69_spill] sm:$0xff] %v6069_v11  ;;  %v1137_v11 = vmul.f32 %v5946_v55, %v5955_v54 }
 0x186   : > { %1248 = vrot.lane.b32.xlu0 %v1133_v13, %s5280_s8  ;;  %1238 = vrot.lane.b32.xlu1 %v1128_v14, %s5280_s8  ;;  %v1132_v13 = vmul.f32 %v5946_v55, %v5908_v61 }
 0x188   : > { %v6077_v44 = vpop.permute.xlu1 %946 }
 0x189   : > { %10919 = vst [vmem:[#allocation70_spill] sm:$0xff] %v6077_v44  ;;  %v1134_v44 = vmul.f32 %v5946_v55, %v5920_v5 }
 0x18a   : > { %1252 = vrot.lane.b32.xlu0 %v1135_v45, %s5280_s8  ;;  %1242 = vrot.lane.b32.xlu1 %v1130_v9, %s5280_s8  ;;  %v1136_v9 = vmul.f32 %v5946_v55, %v5932_v59 }
 0x18c   : > { %v6085_v43 = vpop.permute.xlu1 %950 }
 0x18d   : > { %10920 = vst [vmem:[#allocation71_spill] sm:$0xff] %v6085_v43 }
 0x18e   : > { %1256 = vrot.lane.b32.xlu0 %v1137_v11, %s5280_s8  ;;  %1246 = vrot.lane.b32.xlu1 %v1132_v13, %s5280_s8  ;;  %v258_v11 = vld [vmem:[%s10446_s0 + $0x18] sm:$0xff] }
 0x190   : > { %v6093_v14 = vpop.permute.xlu1 %954 }
 0x191   : > { %10921 = vst [vmem:[#allocation72_spill] sm:$0xff] %v6093_v14 }
 0x192   : > { %1250 = vrot.lane.b32.xlu1 %v1134_v44, %s5280_s8  ;;  %v6114_v44 = vpop.permute.xlu0 %920 }
 0x193   : > { %10926 = vst [vmem:[#allocation77_spill] sm:$0xff] %v6114_v44 }
 0x194   : > { %v6098_v45 = vpop.permute.xlu1 %958 }
 0x195   : > { %10922 = vst [vmem:[#allocation73_spill] sm:$0xff] %v6098_v45 }
 0x196   : > { %1254 = vrot.lane.b32.xlu1 %v1136_v9, %s5280_s8  ;;  %v6118_v55 = vpop.permute.xlu0 %924  ;;  %s4943_s8 = sshll.u32 %s5257_s18, 2 }
 0x197   : > { %10928 = vst [vmem:[#allocation79_spill] sm:$0xff] %v6118_v55 }
 0x198   : > { %v6106_v43 = vpop.permute.xlu1 %962 }
 0x199   : > { %10923 = vst [vmem:[#allocation74_spill] sm:$0xff] %v6106_v43 }
 0x19a   : > { %1357 = vperm.xlu1 %5078, %v258_v11   ;;  %v6124_v51 = vpop.permute.xlu0 %928 }
 0x19b   : > { %10931 = vst [vmem:[#allocation82_spill] sm:$0xff] %v6124_v51 }
 0x19c   : > { %v6108_v13 = vpop.permute.xlu1 %966 }
 0x19e   : > { %v6128_v11 = vpop.permute.xlu0 %932 }
 0x19f   : > { %10933 = vst [vmem:[#allocation84_spill] sm:$0xff] %v6128_v11 }
 0x1a0   : > { %v6110_v14 = vpop.permute.xlu1 %970 }
 0x1a1   : > { %10924 = vst [vmem:[#allocation75_spill] sm:$0xff] %v6110_v14 }
 0x1a2   : > { %v6134_v26 = vpop.permute.xlu0 %936 }
 0x1a3   : > { %10936 = vst [vmem:[#allocation87_spill] sm:$0xff] %v6134_v26 }
 0x1a4   : > { %v6112_v62 = vpop.permute.xlu1 %974 }
 0x1a5   : > { %10925 = vst [vmem:[#allocation76_spill] sm:$0xff] %v6112_v62 }
 0x1a8   : > { %v6116_v45 = vpop.permute.xlu1 %978 }
 0x1a9   : > { %10927 = vst [vmem:[#allocation78_spill] sm:$0xff] %v6116_v45  ;;  %v6138_v45 = vpop.permute.xlu0 %940 }
 0x1aa   : > { %10938 = vst [vmem:[#allocation89_spill] sm:$0xff] %v6138_v45 }
 0x1ac   : > { %v6120_v9 = vpop.permute.xlu1 %982 }
 0x1ad   : > { %10929 = vst [vmem:[#allocation80_spill] sm:$0xff] %v6120_v9 }
 0x1b0   : > { %v6122_v15 = vpop.permute.xlu1 %986 }
 0x1b1   : > { %10930 = vst [vmem:[#allocation81_spill] sm:$0xff] %v6122_v15  ;;  %v6144_v15 = vpop.permute.xlu0 %944 }
 0x1b2   : > { %10941 = vst [vmem:[#allocation92_spill] sm:$0xff] %v6144_v15 }
 0x1b4   : > { %v6126_v39 = vpop.permute.xlu1 %990 }
 0x1b5   : > { %10932 = vst [vmem:[#allocation83_spill] sm:$0xff] %v6126_v39  ;;  %v6148_v39 = vpop.permute.xlu0 %948 }
 0x1b6   : > { %10943 = vst [vmem:[#allocation94_spill] sm:$0xff] %v6148_v39 }
 0x1b8   : > { %v6130_v38 = vpop.permute.xlu1 %994 }
 0x1b9   : > { %10934 = vst [vmem:[#allocation85_spill] sm:$0xff] %v6130_v38 }
 0x1bc   : > { %v6132_v27 = vpop.permute.xlu1 %1178 }
 0x1bd   : > { %10935 = vst [vmem:[#allocation86_spill] sm:$0xff] %v6132_v27  ;;  %v6154_v27 = vpop.permute.xlu0 %952 }
 0x1be   : > { %10946 = vst [vmem:[#allocation97_spill] sm:$0xff] %v6154_v27 }
 0x1c0   : > { %v6136_v44 = vpop.permute.xlu1 %1182 }
 0x1c1   : > { %10937 = vst [vmem:[#allocation88_spill] sm:$0xff] %v6136_v44  ;;  %v6158_v44 = vpop.permute.xlu0 %956 }
 0x1c2   : > { %10948 = vst [vmem:[#allocation99_spill] sm:$0xff] %v6158_v44 }
 0x1c4   : > { %v6140_v55 = vpop.permute.xlu1 %1186 }
 0x1c5   : > { %10939 = vst [vmem:[#allocation90_spill] sm:$0xff] %v6140_v55 }
 0x1c8   : > { %v6142_v9 = vpop.permute.xlu1 %1190 }
 0x1c9   : > { %10940 = vst [vmem:[#allocation91_spill] sm:$0xff] %v6142_v9  ;;  %v6164_v9 = vpop.permute.xlu0 %960 }
 0x1ca   : > { %10951 = vst [vmem:[#allocation102_spill] sm:$0xff] %v6164_v9 }
 0x1cc   : > { %v6146_v51 = vpop.permute.xlu1 %1194 }
 0x1cd   : > { %10942 = vst [vmem:[#allocation93_spill] sm:$0xff] %v6146_v51  ;;  %v6168_v51 = vpop.permute.xlu0 %964 }
 0x1d0   : > { %v6150_v11 = vpop.permute.xlu1 %1198 }
 0x1d1   : > { %10944 = vst [vmem:[#allocation95_spill] sm:$0xff] %v6150_v11 }
 0x1d4   : > { %v6152_v38 = vpop.permute.xlu1 %1202 }
 0x1d5   : > { %10945 = vst [vmem:[#allocation96_spill] sm:$0xff] %v6152_v38  ;;  %v6174_v38 = vpop.permute.xlu0 %968 }
 0x1d8   : > { %v6156_v26 = vpop.permute.xlu1 %1206 }
 0x1d9   : > { %10947 = vst [vmem:[#allocation98_spill] sm:$0xff] %v6156_v26  ;;  %v6178_v26 = vpop.permute.xlu0 %972 }
 0x1da   : > { %10956 = vst [vmem:[#allocation107_spill] sm:$0xff] %v6178_v26 }
 0x1dc   : > { %v6160_v45 = vpop.permute.xlu1 %1210 }
 0x1dd   : > { %10949 = vst [vmem:[#allocation100_spill] sm:$0xff] %v6160_v45  ;;  %v6182_v45 = vpop.permute.xlu0 %976 }
 0x1de   : > { %10958 = vst [vmem:[#allocation109_spill] sm:$0xff] %v6182_v45 }
 0x1e0   : > { %v6162_v55 = vpop.permute.xlu1 %1214 }
 0x1e1   : > { %10950 = vst [vmem:[#allocation101_spill] sm:$0xff] %v6162_v55  ;;  %v6186_v9 = vpop.permute.xlu0 %980 }
 0x1e2   : > { %10960 = vst [vmem:[#allocation111_spill] sm:$0xff] %v6186_v9 }
 0x1e4   : > { %v6166_v15 = vpop.permute.xlu1 %1218 }
 0x1e5   : > { %10952 = vst [vmem:[#allocation103_spill] sm:$0xff] %v6166_v15  ;;  %v6190_v62 = vpop.permute.xlu0 %984 }
 0x1e6   : > { %10962 = vst [vmem:[#allocation113_spill] sm:$0xff] %v6190_v62 }
 0x1e8   : > { %v6170_v39 = vpop.permute.xlu1 %1222 }
 0x1e9   : > { %10953 = vst [vmem:[#allocation104_spill] sm:$0xff] %v6170_v39 }
 0x1ec   : > { %v6172_v11 = vpop.permute.xlu1 %1226 }
 0x1ed   : > { %10954 = vst [vmem:[#allocation105_spill] sm:$0xff] %v6172_v11  ;;  %v6194_v11 = vpop.permute.xlu0 %988 }
 0x1ee   : > { %10964 = vst [vmem:[#allocation115_spill] sm:$0xff] %v6194_v11 }
 0x1f0   : > { %v6176_v27 = vpop.permute.xlu1 %1230 }
 0x1f1   : > { %10955 = vst [vmem:[#allocation106_spill] sm:$0xff] %v6176_v27  ;;  %v6198_v27 = vpop.permute.xlu0 %992 }
 0x1f2   : > { %10966 = vst [vmem:[#allocation117_spill] sm:$0xff] %v6198_v27 }
 0x1f4   : > { %v6180_v44 = vpop.permute.xlu1 %1234 }
 0x1f5   : > { %10957 = vst [vmem:[#allocation108_spill] sm:$0xff] %v6180_v44  ;;  %v6202_v44 = vpop.permute.xlu0 %1180 }
 0x1f6   : > { %10968 = vst [vmem:[#allocation119_spill] sm:$0xff] %v6202_v44 }
 0x1f8   : > { %v6184_v55 = vpop.permute.xlu1 %1238 }
 0x1f9   : > { %10959 = vst [vmem:[#allocation110_spill] sm:$0xff] %v6184_v55 }
 0x1fc   : > { %v6188_v15 = vpop.permute.xlu1 %1242 }
 0x1fd   : > { %10961 = vst [vmem:[#allocation112_spill] sm:$0xff] %v6188_v15 }
 0x200   : > { %v6192_v39 = vpop.permute.xlu1 %1246 }
 0x201   : > { %10963 = vst [vmem:[#allocation114_spill] sm:$0xff] %v6192_v39 }
 0x204   : > { %v6196_v14 = vpop.permute.xlu1 %1250 }
 0x205   : > { %10965 = vst [vmem:[#allocation116_spill] sm:$0xff] %v6196_v14  ;;  %v6212_v14 = vpop.permute.xlu0 %1184 }
 0x206   : > { %10969 = vst [vmem:[#allocation120_spill] sm:$0xff] %v6212_v14 }
 0x208   : > { %v6200_v26 = vpop.permute.xlu1 %1254 }
 0x209   : > { %10967 = vst [vmem:[#allocation118_spill] sm:$0xff] %v6200_v26  ;;  %v6224_v27 = vpop.permute.xlu0 %1188 }
 0x20a   : > { %10970 = vst [vmem:[#allocation121_spill] sm:$0xff] %v6224_v27 }
 0x219   : > { %v6204_v45 = vpop.permute.xlu1 %1357 }
 0x21a   : > { %v1361_v55 = vmul.f32 %v6204_v45, %v5722_v19  ;;  %v1360_v15 = vmul.f32 %v6204_v45, %v5706_v12  ;;  %v1363_v26 = vmul.f32 %v6204_v45, %v5734_v3  ;;  %v1362_v44 = vmul.f32 %v6204_v45, %v5703_v10 }
 0x21b   : > { %v1365_v39 = vmul.f32 %v6204_v45, %v5747_v41  ;;  %v1369_v14 = vmul.f32 %v6204_v45, %v5771_v53 }
 0x21c   : > { %1442 = vrot.lane.b32.xlu1 %v1361_v55, %s5281_s30  ;;  %1440 = vrot.lane.b32.xlu0 %v1360_v15, %s5281_s30  ;;  %v1364_v55 = vmul.f32 %v6204_v45, %v5719_v18  ;;  %v1367_v15 = vmul.f32 %v6204_v45, %v5759_v20 }
 0x220   : > { %1446 = vrot.lane.b32.xlu1 %v1363_v26, %s5281_s30  ;;  %1444 = vrot.lane.b32.xlu0 %v1362_v44, %s5281_s30  ;;  %v1366_v26 = vmul.f32 %v6204_v45, %v5731_v21  ;;  %v6234_v44 = vpop.permute.xlu0 %1192 }
 0x221   : > { %10971 = vst [vmem:[#allocation122_spill] sm:$0xff] %v6234_v44  ;;  %v1375_v44 = vmul.f32 %v6204_v45, %v5811_v46 }
 0x224   : > { %1450 = vrot.lane.b32.xlu1 %v1365_v39, %s5281_s30  ;;  %1448 = vrot.lane.b32.xlu0 %v1364_v55, %s5281_s30  ;;  %v1368_v39 = vmul.f32 %v6204_v45, %v5744_v42  ;;  %v1371_v55 = vmul.f32 %v6204_v45, %v5784_v49  ;;  %v6246_v27 = vpop.permute.xlu0 %1196 }
 0x225   : > { %10972 = vst [vmem:[#allocation123_spill] sm:$0xff] %v6246_v27 }
 0x228   : > { %1454 = vrot.lane.b32.xlu1 %v1367_v15, %s5281_s30  ;;  %1452 = vrot.lane.b32.xlu0 %v1366_v26, %s5281_s30  ;;  %v1370_v15 = vmul.f32 %v6204_v45, %v5756_v7  ;;  %v1373_v26 = vmul.f32 %v6204_v45, %v5798_v48 }
 0x22c   : > { %1458 = vrot.lane.b32.xlu1 %v1369_v14, %s5281_s30  ;;  %1456 = vrot.lane.b32.xlu0 %v1368_v39, %s5281_s30  ;;  %v1372_v14 = vmul.f32 %v6204_v45, %v5768_v40  ;;  %v6256_v39 = vpop.permute.xlu0 %1200 }
 0x22d   : > { %10973 = vst [vmem:[#allocation124_spill] sm:$0xff] %v6256_v39  ;;  %v1381_v39 = vmul.f32 %v6204_v45, %v5849_v33 }
 0x230   : > { %1462 = vrot.lane.b32.xlu1 %v1371_v55, %s5281_s30  ;;  %1460 = vrot.lane.b32.xlu0 %v1370_v15, %s5281_s30  ;;  %v1374_v55 = vmul.f32 %v6204_v45, %v5781_v50  ;;  %v1377_v15 = vmul.f32 %v6204_v45, %v5823_v36  ;;  %v6268_v27 = vpop.permute.xlu0 %1204 }
 0x231   : > { %10974 = vst [vmem:[#allocation125_spill] sm:$0xff] %v6268_v27 }
 0x234   : > { %1466 = vrot.lane.b32.xlu1 %v1373_v26, %s5281_s30  ;;  %1464 = vrot.lane.b32.xlu0 %v1372_v14, %s5281_s30  ;;  %v1376_v26 = vmul.f32 %v6204_v45, %v5795_v17  ;;  %v1379_v14 = vmul.f32 %v6204_v45, %v5836_v34 }
 0x238   : > { %1470 = vrot.lane.b32.xlu1 %v1375_v44, %s5281_s30  ;;  %1468 = vrot.lane.b32.xlu0 %v1374_v55, %s5281_s30  ;;  %v1378_v44 = vmul.f32 %v6204_v45, %v5808_v47  ;;  %v6278_v55 = vpop.permute.xlu0 %1208 }
 0x239   : > { %10975 = vst [vmem:[#allocation126_spill] sm:$0xff] %v6278_v55  ;;  %v1387_v55 = vmul.f32 %v6204_v45, %v5886_v2 }
 0x23c   : > { %1474 = vrot.lane.b32.xlu1 %v1377_v15, %s5281_s30  ;;  %1472 = vrot.lane.b32.xlu0 %v1376_v26, %s5281_s30  ;;  %v1380_v15 = vmul.f32 %v6204_v45, %v5820_v37  ;;  %v1383_v26 = vmul.f32 %v6204_v45, %v5861_v32  ;;  %v6290_v27 = vpop.permute.xlu0 %1212 }
 0x23d   : > { %10976 = vst [vmem:[#allocation127_spill] sm:$0xff] %v6290_v27 }
 0x240   : > { %1478 = vrot.lane.b32.xlu1 %v1379_v14, %s5281_s30  ;;  %1476 = vrot.lane.b32.xlu0 %v1378_v44, %s5281_s30  ;;  %v1382_v14 = vmul.f32 %v6204_v45, %v5833_v35  ;;  %v1385_v44 = vmul.f32 %v6204_v45, %v5874_v1 }
 0x244   : > { %1482 = vrot.lane.b32.xlu1 %v1381_v39, %s5281_s30  ;;  %1480 = vrot.lane.b32.xlu0 %v1380_v15, %s5281_s30  ;;  %v1384_v39 = vmul.f32 %v6204_v45, %v5846_v16  ;;  %v6300_v15 = vpop.permute.xlu0 %1216 }
 0x245   : > { %10977 = vst [vmem:[#allocation128_spill] sm:$0xff] %v6300_v15  ;;  %v1393_v15 = vmul.f32 %v6204_v45, %v5923_v31 }
 0x248   : > { %1486 = vrot.lane.b32.xlu1 %v1383_v26, %s5281_s30  ;;  %1484 = vrot.lane.b32.xlu0 %v1382_v14, %s5281_s30  ;;  %v1386_v26 = vmul.f32 %v6204_v45, %v5858_v4  ;;  %v1389_v14 = vmul.f32 %v6204_v45, %v5898_v63  ;;  %v6312_v27 = vpop.permute.xlu0 %1220 }
 0x249   : > { %10978 = vst [vmem:[#allocation129_spill] sm:$0xff] %v6312_v27 }
 0x24c   : > { %1490 = vrot.lane.b32.xlu1 %v1385_v44, %s5281_s30  ;;  %1488 = vrot.lane.b32.xlu0 %v1384_v39, %s5281_s30  ;;  %v1388_v44 = vmul.f32 %v6204_v45, %v5871_v30  ;;  %v1391_v39 = vmul.f32 %v6204_v45, %v5911_v60 }
 0x250   : > { %1494 = vrot.lane.b32.xlu1 %v1387_v55, %s5281_s30  ;;  %1492 = vrot.lane.b32.xlu0 %v1386_v26, %s5281_s30  ;;  %v1390_v55 = vmul.f32 %v6204_v45, %v5883_v6  ;;  %v6322_v26 = vpop.permute.xlu0 %1224 }
 0x251   : > { %10979 = vst [vmem:[#allocation130_spill] sm:$0xff] %v6322_v26  ;;  %v1399_v26 = vmul.f32 %v6204_v45, %v5955_v54 }
 0x254   : > { %1498 = vrot.lane.b32.xlu1 %v1389_v14, %s5281_s30  ;;  %1496 = vrot.lane.b32.xlu0 %v1388_v44, %s5281_s30  ;;  %v1392_v14 = vmul.f32 %v6204_v45, %v5895_v0  ;;  %v1395_v44 = vmul.f32 %v6204_v45, %v5935_v58  ;;  %v6334_v27 = vpop.permute.xlu0 %1228 }
 0x255   : > { %10980 = vst [vmem:[#allocation131_spill] sm:$0xff] %v6334_v27 }
 0x258   : > { %1502 = vrot.lane.b32.xlu1 %v1391_v39, %s5281_s30  ;;  %1500 = vrot.lane.b32.xlu0 %v1390_v55, %s5281_s30  ;;  %v1394_v39 = vmul.f32 %v6204_v45, %v5908_v61  ;;  %v1397_v55 = vmul.f32 %v6204_v45, %v5944_v52 }
 0x25c   : > { %1506 = vrot.lane.b32.xlu1 %v1393_v15, %s5281_s30  ;;  %1504 = vrot.lane.b32.xlu0 %v1392_v14, %s5281_s30  ;;  %v1396_v15 = vmul.f32 %v6204_v45, %v5920_v5  ;;  %v6344_v14 = vpop.permute.xlu0 %1232 }
 0x25d   : > { %10981 = vst [vmem:[#allocation132_spill] sm:$0xff] %v6344_v14 }
 0x260   : > { %1510 = vrot.lane.b32.xlu1 %v1395_v44, %s5281_s30  ;;  %1508 = vrot.lane.b32.xlu0 %v1394_v39, %s5281_s30  ;;  %v1398_v44 = vmul.f32 %v6204_v45, %v5932_v59  ;;  %v259_v39 = vld [vmem:[%s10446_s0 + $0x20] sm:$0xff]  ;;  %v6355_v27 = vpop.permute.xlu0 %1236 }
 0x261   : > { %10982 = vst [vmem:[#allocation133_spill] sm:$0xff] %v6355_v27 }
 0x264   : > { %1514 = vrot.lane.b32.xlu1 %v1397_v55, %s5281_s30  ;;  %1512 = vrot.lane.b32.xlu0 %v1396_v15, %s5281_s30  ;;  %v6357_v55 = vpop.permute.xlu0 %1240 }
 0x265   : > { %10983 = vst [vmem:[#allocation134_spill] sm:$0xff] %v6357_v55 }
 0x268   : > { %1518 = vrot.lane.b32.xlu1 %v1399_v26, %s5281_s30  ;;  %1516 = vrot.lane.b32.xlu0 %v1398_v44, %s5281_s30  ;;  %v6359_v15 = vpop.permute.xlu0 %1244 }
 0x269   : > { %10984 = vst [vmem:[#allocation135_spill] sm:$0xff] %v6359_v15 }
 0x26c   : > { %1619 = vperm.xlu0 %5077, %v259_v39   ;;  %v6361_v14 = vpop.permute.xlu0 %1248 }
 0x26d   : > { %10985 = vst [vmem:[#allocation136_spill] sm:$0xff] %v6361_v14 }
 0x270   : > { %v6363_v11 = vpop.permute.xlu0 %1252 }
 0x271   : > { %10986 = vst [vmem:[#allocation137_spill] sm:$0xff] %v6363_v11 }
 0x274   : > { %v6365_v45 = vpop.permute.xlu0 %1256 }
 0x275   : > { %10987 = vst [vmem:[#allocation138_spill] sm:$0xff] %v6365_v45 }
 0x28e   : > { %v6367_v26 = vpop.permute.xlu0 %1440 }
 0x28f   : > { %10988 = vst [vmem:[#allocation139_spill] sm:$0xff] %v6367_v26 }
 0x292   : > { %v6369_v44 = vpop.permute.xlu0 %1444 }
 0x293   : > { %10989 = vst [vmem:[#allocation140_spill] sm:$0xff] %v6369_v44 }
 0x296   : > { %v6371_v62 = vpop.permute.xlu0 %1448 }
 0x297   : > { %10990 = vst [vmem:[#allocation141_spill] sm:$0xff] %v6371_v62 }
 0x29a   : > { %v6373_v9 = vpop.permute.xlu0 %1452 }
 0x29b   : > { %10991 = vst [vmem:[#allocation142_spill] sm:$0xff] %v6373_v9 }
 0x29e   : > { %v6375_v27 = vpop.permute.xlu0 %1456 }
 0x29f   : > { %10992 = vst [vmem:[#allocation143_spill] sm:$0xff] %v6375_v27 }
 0x2a2   : > { %v6377_v39 = vpop.permute.xlu0 %1460 }
 0x2a3   : > { %10993 = vst [vmem:[#allocation144_spill] sm:$0xff] %v6377_v39 }
 0x2a6   : > { %v6379_v55 = vpop.permute.xlu0 %1464 }
 0x2a7   : > { %10994 = vst [vmem:[#allocation145_spill] sm:$0xff] %v6379_v55 }
 0x2aa   : > { %v6381_v15 = vpop.permute.xlu0 %1468 }
 0x2ab   : > { %10995 = vst [vmem:[#allocation146_spill] sm:$0xff] %v6381_v15 }
 0x2ae   : > { %v6383_v14 = vpop.permute.xlu0 %1472 }
 0x2af   : > { %10996 = vst [vmem:[#allocation147_spill] sm:$0xff] %v6383_v14 }
 0x2b2   : > { %v6385_v11 = vpop.permute.xlu0 %1476 }
 0x2b3   : > { %10997 = vst [vmem:[#allocation148_spill] sm:$0xff] %v6385_v11  ;;  %v6407_v11 = vpop.permute.xlu1 %1442 }
 0x2b4   : > { %11008 = vst [vmem:[#allocation159_spill] sm:$0xff] %v6407_v11 }
 0x2b6   : > { %v6387_v45 = vpop.permute.xlu0 %1480 }
 0x2b7   : > { %10998 = vst [vmem:[#allocation149_spill] sm:$0xff] %v6387_v45 }
 0x2ba   : > { %v6389_v26 = vpop.permute.xlu0 %1484 }
 0x2bb   : > { %10999 = vst [vmem:[#allocation150_spill] sm:$0xff] %v6389_v26 }
 0x2be   : > { %v6391_v44 = vpop.permute.xlu0 %1488 }
 0x2bf   : > { %11000 = vst [vmem:[#allocation151_spill] sm:$0xff] %v6391_v44 }
 0x2c2   : > { %v6393_v62 = vpop.permute.xlu0 %1492 }
 0x2c3   : > { %11001 = vst [vmem:[#allocation152_spill] sm:$0xff] %v6393_v62 }
 0x2c6   : > { %v6395_v9 = vpop.permute.xlu0 %1496 }
 0x2c7   : > { %11002 = vst [vmem:[#allocation153_spill] sm:$0xff] %v6395_v9 }
 0x2ca   : > { %v6397_v27 = vpop.permute.xlu0 %1500 }
 0x2cb   : > { %11003 = vst [vmem:[#allocation154_spill] sm:$0xff] %v6397_v27 }
 0x2ce   : > { %v6399_v39 = vpop.permute.xlu0 %1504 }
 0x2cf   : > { %11004 = vst [vmem:[#allocation155_spill] sm:$0xff] %v6399_v39 }
 0x2d2   : > { %v6401_v55 = vpop.permute.xlu0 %1508 }
 0x2d3   : > { %11005 = vst [vmem:[#allocation156_spill] sm:$0xff] %v6401_v55  ;;  %v6417_v55 = vpop.permute.xlu1 %1446 }
 0x2d4   : > { %11009 = vst [vmem:[#allocation160_spill] sm:$0xff] %v6417_v55 }
 0x2d6   : > { %v6403_v15 = vpop.permute.xlu0 %1512 }
 0x2d7   : > { %11006 = vst [vmem:[#allocation157_spill] sm:$0xff] %v6403_v15  ;;  %v6429_v39 = vpop.permute.xlu1 %1450 }
 0x2d8   : > { %11010 = vst [vmem:[#allocation161_spill] sm:$0xff] %v6429_v39 }
 0x2da   : > { %v6405_v14 = vpop.permute.xlu0 %1516 }
 0x2db   : > { %11007 = vst [vmem:[#allocation158_spill] sm:$0xff] %v6405_v14 }
 0x2eb   : > { %v6409_v45 = vpop.permute.xlu0 %1619 }
 0x2ec   : > { %v1623_v26 = vmul.f32 %v6409_v45, %v5722_v19  ;;  %v1622_v9 = vmul.f32 %v6409_v45, %v5706_v12  ;;  %v1625_v14 = vmul.f32 %v6409_v45, %v5734_v3  ;;  %v1624_v11 = vmul.f32 %v6409_v45, %v5703_v10 }
 0x2ed   : > { %v1627_v15 = vmul.f32 %v6409_v45, %v5747_v41  ;;  %v1631_v55 = vmul.f32 %v6409_v45, %v5771_v53  ;;  %v1661_v27 = vmul.f32 %v6409_v45, %v5955_v54 }
 0x2ee   : > { %1704 = vrot.lane.b32.xlu0 %v1623_v26, %s5282_s27  ;;  %1702 = vrot.lane.b32.xlu1 %v1622_v9, %s5282_s27  ;;  %v1626_v26 = vmul.f32 %v6409_v45, %v5719_v18  ;;  %v1629_v9 = vmul.f32 %v6409_v45, %v5759_v20 }
 0x2f2   : > { %1708 = vrot.lane.b32.xlu0 %v1625_v14, %s5282_s27  ;;  %1706 = vrot.lane.b32.xlu1 %v1624_v11, %s5282_s27  ;;  %v1628_v14 = vmul.f32 %v6409_v45, %v5731_v21  ;;  %v6439_v11 = vpop.permute.xlu1 %1454 }
 0x2f3   : > { %11011 = vst [vmem:[#allocation162_spill] sm:$0xff] %v6439_v11  ;;  %v1637_v11 = vmul.f32 %v6409_v45, %v5811_v46 }
 0x2f6   : > { %1712 = vrot.lane.b32.xlu0 %v1627_v15, %s5282_s27  ;;  %1710 = vrot.lane.b32.xlu1 %v1626_v26, %s5282_s27  ;;  %v1630_v15 = vmul.f32 %v6409_v45, %v5744_v42  ;;  %v1633_v26 = vmul.f32 %v6409_v45, %v5784_v49  ;;  %v6451_v39 = vpop.permute.xlu1 %1458 }
 0x2f7   : > { %11012 = vst [vmem:[#allocation163_spill] sm:$0xff] %v6451_v39 }
 0x2fa   : > { %1716 = vrot.lane.b32.xlu0 %v1629_v9, %s5282_s27  ;;  %1714 = vrot.lane.b32.xlu1 %v1628_v14, %s5282_s27  ;;  %v1632_v9 = vmul.f32 %v6409_v45, %v5756_v7  ;;  %v1635_v14 = vmul.f32 %v6409_v45, %v5798_v48 }
 0x2fe   : > { %1720 = vrot.lane.b32.xlu0 %v1631_v55, %s5282_s27  ;;  %1718 = vrot.lane.b32.xlu1 %v1630_v15, %s5282_s27  ;;  %v1634_v55 = vmul.f32 %v6409_v45, %v5768_v40  ;;  %v6461_v15 = vpop.permute.xlu1 %1462 }
 0x2ff   : > { %11013 = vst [vmem:[#allocation164_spill] sm:$0xff] %v6461_v15  ;;  %v1643_v15 = vmul.f32 %v6409_v45, %v5849_v33 }
 0x302   : > { %1724 = vrot.lane.b32.xlu0 %v1633_v26, %s5282_s27  ;;  %1722 = vrot.lane.b32.xlu1 %v1632_v9, %s5282_s27  ;;  %v1636_v26 = vmul.f32 %v6409_v45, %v5781_v50  ;;  %v1639_v9 = vmul.f32 %v6409_v45, %v5823_v36  ;;  %v6473_v39 = vpop.permute.xlu1 %1466 }
 0x303   : > { %11014 = vst [vmem:[#allocation165_spill] sm:$0xff] %v6473_v39 }
 0x306   : > { %1728 = vrot.lane.b32.xlu0 %v1635_v14, %s5282_s27  ;;  %1726 = vrot.lane.b32.xlu1 %v1634_v55, %s5282_s27  ;;  %v1638_v14 = vmul.f32 %v6409_v45, %v5795_v17  ;;  %v1641_v55 = vmul.f32 %v6409_v45, %v5836_v34 }
 0x30a   : > { %1732 = vrot.lane.b32.xlu0 %v1637_v11, %s5282_s27  ;;  %1730 = vrot.lane.b32.xlu1 %v1636_v26, %s5282_s27  ;;  %v1640_v11 = vmul.f32 %v6409_v45, %v5808_v47  ;;  %v6483_v26 = vpop.permute.xlu1 %1470 }
 0x30b   : > { %11015 = vst [vmem:[#allocation166_spill] sm:$0xff] %v6483_v26  ;;  %v1649_v26 = vmul.f32 %v6409_v45, %v5886_v2 }
 0x30e   : > { %1736 = vrot.lane.b32.xlu0 %v1639_v9, %s5282_s27  ;;  %1734 = vrot.lane.b32.xlu1 %v1638_v14, %s5282_s27  ;;  %v1642_v9 = vmul.f32 %v6409_v45, %v5820_v37  ;;  %v1645_v14 = vmul.f32 %v6409_v45, %v5861_v32  ;;  %v6495_v39 = vpop.permute.xlu1 %1474 }
 0x30f   : > { %11016 = vst [vmem:[#allocation167_spill] sm:$0xff] %v6495_v39 }
 0x312   : > { %1740 = vrot.lane.b32.xlu0 %v1641_v55, %s5282_s27  ;;  %1738 = vrot.lane.b32.xlu1 %v1640_v11, %s5282_s27  ;;  %v1644_v55 = vmul.f32 %v6409_v45, %v5833_v35  ;;  %v1647_v11 = vmul.f32 %v6409_v45, %v5874_v1 }
 0x316   : > { %1744 = vrot.lane.b32.xlu0 %v1643_v15, %s5282_s27  ;;  %1742 = vrot.lane.b32.xlu1 %v1642_v9, %s5282_s27  ;;  %v1646_v15 = vmul.f32 %v6409_v45, %v5846_v16  ;;  %v6505_v9 = vpop.permute.xlu1 %1478 }
 0x317   : > { %11017 = vst [vmem:[#allocation168_spill] sm:$0xff] %v6505_v9  ;;  %v1655_v9 = vmul.f32 %v6409_v45, %v5923_v31 }
 0x31a   : > { %1748 = vrot.lane.b32.xlu0 %v1645_v14, %s5282_s27  ;;  %1746 = vrot.lane.b32.xlu1 %v1644_v55, %s5282_s27  ;;  %v1648_v14 = vmul.f32 %v6409_v45, %v5858_v4  ;;  %v1651_v55 = vmul.f32 %v6409_v45, %v5898_v63  ;;  %v6517_v39 = vpop.permute.xlu1 %1482 }
 0x31b   : > { %11018 = vst [vmem:[#allocation169_spill] sm:$0xff] %v6517_v39 }
 0x31e   : > { %1752 = vrot.lane.b32.xlu0 %v1647_v11, %s5282_s27  ;;  %1750 = vrot.lane.b32.xlu1 %v1646_v15, %s5282_s27  ;;  %v1650_v11 = vmul.f32 %v6409_v45, %v5871_v30  ;;  %v1653_v15 = vmul.f32 %v6409_v45, %v5911_v60 }
 0x322   : > { %1756 = vrot.lane.b32.xlu0 %v1649_v26, %s5282_s27  ;;  %1754 = vrot.lane.b32.xlu1 %v1648_v14, %s5282_s27  ;;  %v1652_v26 = vmul.f32 %v6409_v45, %v5883_v6  ;;  %v6527_v14 = vpop.permute.xlu1 %1486 }
 0x323   : > { %11019 = vst [vmem:[#allocation170_spill] sm:$0xff] %v6527_v14 }
 0x326   : > { %1760 = vrot.lane.b32.xlu0 %v1651_v55, %s5282_s27  ;;  %1758 = vrot.lane.b32.xlu1 %v1650_v11, %s5282_s27  ;;  %v1654_v55 = vmul.f32 %v6409_v45, %v5895_v0  ;;  %v1657_v11 = vmul.f32 %v6409_v45, %v5935_v58  ;;  %v6539_v39 = vpop.permute.xlu1 %1490 }
 0x327   : > { %11020 = vst [vmem:[#allocation171_spill] sm:$0xff] %v6539_v39 }
 0x32a   : > { %1764 = vrot.lane.b32.xlu0 %v1653_v15, %s5282_s27  ;;  %1762 = vrot.lane.b32.xlu1 %v1652_v26, %s5282_s27  ;;  %v1656_v15 = vmul.f32 %v6409_v45, %v5908_v61  ;;  %v1659_v26 = vmul.f32 %v6409_v45, %v5944_v52 }
 0x32e   : > { %1768 = vrot.lane.b32.xlu0 %v1655_v9, %s5282_s27  ;;  %1766 = vrot.lane.b32.xlu1 %v1654_v55, %s5282_s27  ;;  %v1658_v9 = vmul.f32 %v6409_v45, %v5920_v5  ;;  %v6549_v55 = vpop.permute.xlu1 %1494 }
 0x32f   : > { %11021 = vst [vmem:[#allocation172_spill] sm:$0xff] %v6549_v55 }
 0x332   : > { %1772 = vrot.lane.b32.xlu0 %v1657_v11, %s5282_s27  ;;  %1770 = vrot.lane.b32.xlu1 %v1656_v15, %s5282_s27  ;;  %v1660_v11 = vmul.f32 %v6409_v45, %v5932_v59  ;;  %v260_v15 = vld [vmem:[%s10446_s0 + $0x28] sm:$0xff]  ;;  %v6560_v39 = vpop.permute.xlu1 %1498 }
 0x333   : > { %11022 = vst [vmem:[#allocation173_spill] sm:$0xff] %v6560_v39 }
 0x336   : > { %1776 = vrot.lane.b32.xlu0 %v1659_v26, %s5282_s27  ;;  %1774 = vrot.lane.b32.xlu1 %v1658_v9, %s5282_s27  ;;  %v6562_v26 = vpop.permute.xlu1 %1502 }
 0x337   : > { %11023 = vst [vmem:[#allocation174_spill] sm:$0xff] %v6562_v26 }
 0x33a   : > { %1780 = vrot.lane.b32.xlu0 %v1661_v27, %s5282_s27  ;;  %1778 = vrot.lane.b32.xlu1 %v1660_v11, %s5282_s27  ;;  %v6564_v9 = vpop.permute.xlu1 %1506  ;;  %s4794_s27 = scalar_lea.sflag [#allocation4], %s5556_s24 }
 0x33b   : > { %11024 = vst [vmem:[#allocation175_spill] sm:$0xff] %v6564_v9 }
 0x33e   : > { %1881 = vperm.xlu1 %5078, %v260_v15   ;;  %v6566_v55 = vpop.permute.xlu1 %1510 }
 0x33f   : > { %11025 = vst [vmem:[#allocation176_spill] sm:$0xff] %v6566_v55 }
 0x342   : > { %v6568_v62 = vpop.permute.xlu1 %1514 }
 0x343   : > { %11026 = vst [vmem:[#allocation177_spill] sm:$0xff] %v6568_v62 }
 0x346   : > { %v6570_v45 = vpop.permute.xlu1 %1518 }
 0x347   : > { %11027 = vst [vmem:[#allocation178_spill] sm:$0xff] %v6570_v45 }
 0x360   : > { %v6572_v27 = vpop.permute.xlu1 %1702 }
 0x361   : > { %11028 = vst [vmem:[#allocation179_spill] sm:$0xff] %v6572_v27 }
 0x364   : > { %v6574_v11 = vpop.permute.xlu1 %1706 }
 0x365   : > { %11029 = vst [vmem:[#allocation180_spill] sm:$0xff] %v6574_v11 }
 0x368   : > { %v6576_v14 = vpop.permute.xlu1 %1710 }
 0x369   : > { %11030 = vst [vmem:[#allocation181_spill] sm:$0xff] %v6576_v14 }
 0x36c   : > { %v6578_v44 = vpop.permute.xlu1 %1714 }
 0x36d   : > { %11031 = vst [vmem:[#allocation182_spill] sm:$0xff] %v6578_v44 }
 0x370   : > { %v6580_v39 = vpop.permute.xlu1 %1718 }
 0x371   : > { %11032 = vst [vmem:[#allocation183_spill] sm:$0xff] %v6580_v39 }
 0x374   : > { %v6582_v15 = vpop.permute.xlu1 %1722 }
 0x375   : > { %11033 = vst [vmem:[#allocation184_spill] sm:$0xff] %v6582_v15 }
 0x378   : > { %v6584_v26 = vpop.permute.xlu1 %1726 }
 0x379   : > { %11034 = vst [vmem:[#allocation185_spill] sm:$0xff] %v6584_v26 }
 0x37c   : > { %v6586_v9 = vpop.permute.xlu1 %1730 }
 0x37d   : > { %11035 = vst [vmem:[#allocation186_spill] sm:$0xff] %v6586_v9 }
 0x380   : > { %v6588_v55 = vpop.permute.xlu1 %1734 }
 0x381   : > { %11036 = vst [vmem:[#allocation187_spill] sm:$0xff] %v6588_v55 }
 0x384   : > { %v6590_v62 = vpop.permute.xlu1 %1738 }
 0x385   : > { %11037 = vst [vmem:[#allocation188_spill] sm:$0xff] %v6590_v62  ;;  %v6612_v62 = vpop.permute.xlu0 %1704 }
 0x386   : > { %11048 = vst [vmem:[#allocation199_spill] sm:$0xff] %v6612_v62 }
 0x388   : > { %v6592_v45 = vpop.permute.xlu1 %1742 }
 0x389   : > { %11038 = vst [vmem:[#allocation189_spill] sm:$0xff] %v6592_v45 }
 0x38c   : > { %v6594_v27 = vpop.permute.xlu1 %1746 }
 0x38d   : > { %11039 = vst [vmem:[#allocation190_spill] sm:$0xff] %v6594_v27 }
 0x390   : > { %v6596_v11 = vpop.permute.xlu1 %1750 }
 0x391   : > { %11040 = vst [vmem:[#allocation191_spill] sm:$0xff] %v6596_v11 }
 0x394   : > { %v6598_v14 = vpop.permute.xlu1 %1754 }
 0x395   : > { %11041 = vst [vmem:[#allocation192_spill] sm:$0xff] %v6598_v14 }
 0x398   : > { %v6600_v44 = vpop.permute.xlu1 %1758 }
 0x399   : > { %11042 = vst [vmem:[#allocation193_spill] sm:$0xff] %v6600_v44 }
 0x39c   : > { %v6602_v39 = vpop.permute.xlu1 %1762 }
 0x39d   : > { %11043 = vst [vmem:[#allocation194_spill] sm:$0xff] %v6602_v39 }
 0x3a0   : > { %v6604_v15 = vpop.permute.xlu1 %1766 }
 0x3a1   : > { %11044 = vst [vmem:[#allocation195_spill] sm:$0xff] %v6604_v15 }
 0x3a4   : > { %v6606_v26 = vpop.permute.xlu1 %1770 }
 0x3a5   : > { %11045 = vst [vmem:[#allocation196_spill] sm:$0xff] %v6606_v26  ;;  %v6622_v26 = vpop.permute.xlu0 %1708 }
 0x3a6   : > { %11049 = vst [vmem:[#allocation200_spill] sm:$0xff] %v6622_v26 }
 0x3a8   : > { %v6608_v9 = vpop.permute.xlu1 %1774 }
 0x3a9   : > { %11046 = vst [vmem:[#allocation197_spill] sm:$0xff] %v6608_v9  ;;  %v6634_v15 = vpop.permute.xlu0 %1712 }
 0x3aa   : > { %11050 = vst [vmem:[#allocation201_spill] sm:$0xff] %v6634_v15 }
 0x3ac   : > { %v6610_v55 = vpop.permute.xlu1 %1778 }
 0x3ad   : > { %11047 = vst [vmem:[#allocation198_spill] sm:$0xff] %v6610_v55 }
 0x3bd   : > { %v6614_v45 = vpop.permute.xlu1 %1881 }
 0x3be   : > { %v1885_v27 = vmul.f32 %v6614_v45, %v5722_v19  ;;  %v1884_v44 = vmul.f32 %v6614_v45, %v5706_v12  ;;  %v1887_v55 = vmul.f32 %v6614_v45, %v5734_v3  ;;  %v1886_v62 = vmul.f32 %v6614_v45, %v5703_v10 }
 0x3bf   : > { %v1889_v9 = vmul.f32 %v6614_v45, %v5747_v41  ;;  %v1893_v26 = vmul.f32 %v6614_v45, %v5771_v53  ;;  %v1923_v39 = vmul.f32 %v6614_v45, %v5955_v54 }
 0x3c0   : > { %1966 = vrot.lane.b32.xlu1 %v1885_v27, %s5283_s6  ;;  %1964 = vrot.lane.b32.xlu0 %v1884_v44, %s5283_s6  ;;  %v1888_v27 = vmul.f32 %v6614_v45, %v5719_v18  ;;  %v1891_v44 = vmul.f32 %v6614_v45, %v5759_v20 }
 0x3c4   : > { %1970 = vrot.lane.b32.xlu1 %v1887_v55, %s5283_s6  ;;  %1968 = vrot.lane.b32.xlu0 %v1886_v62, %s5283_s6  ;;  %v1890_v55 = vmul.f32 %v6614_v45, %v5731_v21  ;;  %v6644_v62 = vpop.permute.xlu0 %1716 }
 0x3c5   : > { %11051 = vst [vmem:[#allocation202_spill] sm:$0xff] %v6644_v62  ;;  %v1899_v62 = vmul.f32 %v6614_v45, %v5811_v46 }
 0x3c8   : > { %1974 = vrot.lane.b32.xlu1 %v1889_v9, %s5283_s6  ;;  %1972 = vrot.lane.b32.xlu0 %v1888_v27, %s5283_s6  ;;  %v1892_v9 = vmul.f32 %v6614_v45, %v5744_v42  ;;  %v1895_v27 = vmul.f32 %v6614_v45, %v5784_v49  ;;  %v6656_v15 = vpop.permute.xlu0 %1720 }
 0x3c9   : > { %11052 = vst [vmem:[#allocation203_spill] sm:$0xff] %v6656_v15 }
 0x3cc   : > { %1978 = vrot.lane.b32.xlu1 %v1891_v44, %s5283_s6  ;;  %1976 = vrot.lane.b32.xlu0 %v1890_v55, %s5283_s6  ;;  %v1894_v44 = vmul.f32 %v6614_v45, %v5756_v7  ;;  %v1897_v55 = vmul.f32 %v6614_v45, %v5798_v48 }
 0x3d0   : > { %1982 = vrot.lane.b32.xlu1 %v1893_v26, %s5283_s6  ;;  %1980 = vrot.lane.b32.xlu0 %v1892_v9, %s5283_s6  ;;  %v1896_v26 = vmul.f32 %v6614_v45, %v5768_v40  ;;  %v6666_v9 = vpop.permute.xlu0 %1724 }
 0x3d1   : > { %11053 = vst [vmem:[#allocation204_spill] sm:$0xff] %v6666_v9  ;;  %v1905_v9 = vmul.f32 %v6614_v45, %v5849_v33 }
 0x3d4   : > { %1986 = vrot.lane.b32.xlu1 %v1895_v27, %s5283_s6  ;;  %1984 = vrot.lane.b32.xlu0 %v1894_v44, %s5283_s6  ;;  %v1898_v27 = vmul.f32 %v6614_v45, %v5781_v50  ;;  %v1901_v44 = vmul.f32 %v6614_v45, %v5823_v36  ;;  %v6678_v15 = vpop.permute.xlu0 %1728 }
 0x3d5   : > { %11054 = vst [vmem:[#allocation205_spill] sm:$0xff] %v6678_v15 }
 0x3d8   : > { %1990 = vrot.lane.b32.xlu1 %v1897_v55, %s5283_s6  ;;  %1988 = vrot.lane.b32.xlu0 %v1896_v26, %s5283_s6  ;;  %v1900_v55 = vmul.f32 %v6614_v45, %v5795_v17  ;;  %v1903_v26 = vmul.f32 %v6614_v45, %v5836_v34 }
 0x3dc   : > { %1994 = vrot.lane.b32.xlu1 %v1899_v62, %s5283_s6  ;;  %1992 = vrot.lane.b32.xlu0 %v1898_v27, %s5283_s6  ;;  %v1902_v62 = vmul.f32 %v6614_v45, %v5808_v47  ;;  %v6688_v27 = vpop.permute.xlu0 %1732 }
 0x3dd   : > { %11055 = vst [vmem:[#allocation206_spill] sm:$0xff] %v6688_v27  ;;  %v1911_v27 = vmul.f32 %v6614_v45, %v5886_v2 }
 0x3e0   : > { %1998 = vrot.lane.b32.xlu1 %v1901_v44, %s5283_s6  ;;  %1996 = vrot.lane.b32.xlu0 %v1900_v55, %s5283_s6  ;;  %v1904_v44 = vmul.f32 %v6614_v45, %v5820_v37  ;;  %v1907_v55 = vmul.f32 %v6614_v45, %v5861_v32  ;;  %v6700_v15 = vpop.permute.xlu0 %1736 }
 0x3e1   : > { %11056 = vst [vmem:[#allocation207_spill] sm:$0xff] %v6700_v15 }
 0x3e4   : > { %2002 = vrot.lane.b32.xlu1 %v1903_v26, %s5283_s6  ;;  %2000 = vrot.lane.b32.xlu0 %v1902_v62, %s5283_s6  ;;  %v1906_v26 = vmul.f32 %v6614_v45, %v5833_v35  ;;  %v1909_v62 = vmul.f32 %v6614_v45, %v5874_v1 }
 0x3e8   : > { %2006 = vrot.lane.b32.xlu1 %v1905_v9, %s5283_s6  ;;  %2004 = vrot.lane.b32.xlu0 %v1904_v44, %s5283_s6  ;;  %v1908_v9 = vmul.f32 %v6614_v45, %v5846_v16  ;;  %v6710_v44 = vpop.permute.xlu0 %1740 }
 0x3e9   : > { %11057 = vst [vmem:[#allocation208_spill] sm:$0xff] %v6710_v44  ;;  %v1917_v44 = vmul.f32 %v6614_v45, %v5923_v31 }
 0x3ec   : > { %2010 = vrot.lane.b32.xlu1 %v1907_v55, %s5283_s6  ;;  %2008 = vrot.lane.b32.xlu0 %v1906_v26, %s5283_s6  ;;  %v1910_v55 = vmul.f32 %v6614_v45, %v5858_v4  ;;  %v1913_v26 = vmul.f32 %v6614_v45, %v5898_v63  ;;  %v6722_v15 = vpop.permute.xlu0 %1744 }
 0x3ed   : > { %11058 = vst [vmem:[#allocation209_spill] sm:$0xff] %v6722_v15 }
 0x3f0   : > { %2014 = vrot.lane.b32.xlu1 %v1909_v62, %s5283_s6  ;;  %2012 = vrot.lane.b32.xlu0 %v1908_v9, %s5283_s6  ;;  %v1912_v62 = vmul.f32 %v6614_v45, %v5871_v30  ;;  %v1915_v9 = vmul.f32 %v6614_v45, %v5911_v60 }
 0x3f4   : > { %2018 = vrot.lane.b32.xlu1 %v1911_v27, %s5283_s6  ;;  %2016 = vrot.lane.b32.xlu0 %v1910_v55, %s5283_s6  ;;  %v1914_v27 = vmul.f32 %v6614_v45, %v5883_v6  ;;  %v6732_v55 = vpop.permute.xlu0 %1748 }
 0x3f5   : > { %11059 = vst [vmem:[#allocation210_spill] sm:$0xff] %v6732_v55 }
 0x3f8   : > { %2022 = vrot.lane.b32.xlu1 %v1913_v26, %s5283_s6  ;;  %2020 = vrot.lane.b32.xlu0 %v1912_v62, %s5283_s6  ;;  %v1916_v26 = vmul.f32 %v6614_v45, %v5895_v0  ;;  %v1919_v62 = vmul.f32 %v6614_v45, %v5935_v58  ;;  %v6744_v15 = vpop.permute.xlu0 %1752 }
 0x3f9   : > { %11060 = vst [vmem:[#allocation211_spill] sm:$0xff] %v6744_v15 }
 0x3fc   : > { %2026 = vrot.lane.b32.xlu1 %v1915_v9, %s5283_s6  ;;  %2024 = vrot.lane.b32.xlu0 %v1914_v27, %s5283_s6  ;;  %v1918_v9 = vmul.f32 %v6614_v45, %v5908_v61  ;;  %v1921_v27 = vmul.f32 %v6614_v45, %v5944_v52 }
 0x400   : > { %2030 = vrot.lane.b32.xlu1 %v1917_v44, %s5283_s6  ;;  %2028 = vrot.lane.b32.xlu0 %v1916_v26, %s5283_s6  ;;  %v1920_v44 = vmul.f32 %v6614_v45, %v5920_v5  ;;  %v6754_v26 = vpop.permute.xlu0 %1756 }
 0x401   : > { %11061 = vst [vmem:[#allocation212_spill] sm:$0xff] %v6754_v26 }
 0x404   : > { %2034 = vrot.lane.b32.xlu1 %v1919_v62, %s5283_s6  ;;  %2032 = vrot.lane.b32.xlu0 %v1918_v9, %s5283_s6  ;;  %v1922_v62 = vmul.f32 %v6614_v45, %v5932_v59  ;;  %v261_v9 = vld [vmem:[%s10446_s0 + $0x30] sm:$0xff]  ;;  %v6765_v15 = vpop.permute.xlu0 %1760 }
 0x405   : > { %11062 = vst [vmem:[#allocation213_spill] sm:$0xff] %v6765_v15 }
 0x408   : > { %2038 = vrot.lane.b32.xlu1 %v1921_v27, %s5283_s6  ;;  %2036 = vrot.lane.b32.xlu0 %v1920_v44, %s5283_s6  ;;  %v6767_v27 = vpop.permute.xlu0 %1764 }
 0x409   : > { %11063 = vst [vmem:[#allocation214_spill] sm:$0xff] %v6767_v27 }
 0x40c   : > { %2042 = vrot.lane.b32.xlu1 %v1923_v39, %s5283_s6  ;;  %2040 = vrot.lane.b32.xlu0 %v1922_v62, %s5283_s6  ;;  %v6769_v44 = vpop.permute.xlu0 %1768 }
 0x40d   : > { %11064 = vst [vmem:[#allocation215_spill] sm:$0xff] %v6769_v44 }
 0x410   : > { %2143 = vperm.xlu0 %5077, %v261_v9   ;;  %v6771_v26 = vpop.permute.xlu0 %1772 }
 0x411   : > { %11065 = vst [vmem:[#allocation216_spill] sm:$0xff] %v6771_v26 }
 0x414   : > { %v6773_v14 = vpop.permute.xlu0 %1776 }
 0x415   : > { %11066 = vst [vmem:[#allocation217_spill] sm:$0xff] %v6773_v14 }
 0x418   : > { %v6775_v45 = vpop.permute.xlu0 %1780 }
 0x419   : > { %11067 = vst [vmem:[#allocation218_spill] sm:$0xff] %v6775_v45 }
 0x432   : > { %v6777_v39 = vpop.permute.xlu0 %1964 }
 0x433   : > { %11068 = vst [vmem:[#allocation219_spill] sm:$0xff] %v6777_v39 }
 0x436   : > { %v6779_v62 = vpop.permute.xlu0 %1968 }
 0x437   : > { %11069 = vst [vmem:[#allocation220_spill] sm:$0xff] %v6779_v62 }
 0x43a   : > { %v6781_v55 = vpop.permute.xlu0 %1972 }
 0x43b   : > { %11070 = vst [vmem:[#allocation221_spill] sm:$0xff] %v6781_v55 }
 0x43e   : > { %v6783_v11 = vpop.permute.xlu0 %1976 }
 0x43f   : > { %11071 = vst [vmem:[#allocation222_spill] sm:$0xff] %v6783_v11 }
 0x442   : > { %v6785_v15 = vpop.permute.xlu0 %1980 }
 0x443   : > { %11072 = vst [vmem:[#allocation223_spill] sm:$0xff] %v6785_v15 }
 0x446   : > { %v6787_v9 = vpop.permute.xlu0 %1984 }
 0x447   : > { %11073 = vst [vmem:[#allocation224_spill] sm:$0xff] %v6787_v9 }
 0x44a   : > { %v6789_v27 = vpop.permute.xlu0 %1988 }
 0x44b   : > { %11074 = vst [vmem:[#allocation225_spill] sm:$0xff] %v6789_v27 }
 0x44e   : > { %v6791_v44 = vpop.permute.xlu0 %1992 }
 0x44f   : > { %11075 = vst [vmem:[#allocation226_spill] sm:$0xff] %v6791_v44 }
 0x452   : > { %v6793_v26 = vpop.permute.xlu0 %1996 }
 0x453   : > { %11076 = vst [vmem:[#allocation227_spill] sm:$0xff] %v6793_v26 }
 0x456   : > { %v6795_v14 = vpop.permute.xlu0 %2000 }
 0x457   : > { %11077 = vst [vmem:[#allocation228_spill] sm:$0xff] %v6795_v14  ;;  %v6817_v14 = vpop.permute.xlu1 %1966 }
 0x458   : > { %11088 = vst [vmem:[#allocation239_spill] sm:$0xff] %v6817_v14 }
 0x45a   : > { %v6797_v45 = vpop.permute.xlu0 %2004 }
 0x45b   : > { %11078 = vst [vmem:[#allocation229_spill] sm:$0xff] %v6797_v45 }
 0x45e   : > { %v6799_v39 = vpop.permute.xlu0 %2008 }
 0x45f   : > { %11079 = vst [vmem:[#allocation230_spill] sm:$0xff] %v6799_v39 }
 0x462   : > { %v6801_v62 = vpop.permute.xlu0 %2012 }
 0x463   : > { %11080 = vst [vmem:[#allocation231_spill] sm:$0xff] %v6801_v62 }
 0x466   : > { %v6803_v55 = vpop.permute.xlu0 %2016 }
 0x467   : > { %11081 = vst [vmem:[#allocation232_spill] sm:$0xff] %v6803_v55 }
 0x46a   : > { %v6805_v11 = vpop.permute.xlu0 %2020 }
 0x46b   : > { %11082 = vst [vmem:[#allocation233_spill] sm:$0xff] %v6805_v11 }
 0x46e   : > { %v6807_v15 = vpop.permute.xlu0 %2024 }
 0x46f   : > { %11083 = vst [vmem:[#allocation234_spill] sm:$0xff] %v6807_v15 }
 0x472   : > { %v6809_v9 = vpop.permute.xlu0 %2028 }
 0x473   : > { %11084 = vst [vmem:[#allocation235_spill] sm:$0xff] %v6809_v9 }
 0x476   : > { %v6811_v27 = vpop.permute.xlu0 %2032 }
 0x477   : > { %11085 = vst [vmem:[#allocation236_spill] sm:$0xff] %v6811_v27  ;;  %v6827_v27 = vpop.permute.xlu1 %1970 }
 0x478   : > { %11089 = vst [vmem:[#allocation240_spill] sm:$0xff] %v6827_v27 }
 0x47a   : > { %v6813_v44 = vpop.permute.xlu0 %2036 }
 0x47b   : > { %11086 = vst [vmem:[#allocation237_spill] sm:$0xff] %v6813_v44  ;;  %v6839_v9 = vpop.permute.xlu1 %1974 }
 0x47c   : > { %11090 = vst [vmem:[#allocation241_spill] sm:$0xff] %v6839_v9 }
 0x47e   : > { %v6815_v26 = vpop.permute.xlu0 %2040 }
 0x47f   : > { %11087 = vst [vmem:[#allocation238_spill] sm:$0xff] %v6815_v26 }
 0x48f   : > { %v6819_v45 = vpop.permute.xlu0 %2143 }
 0x490   : > { %v2147_v39 = vmul.f32 %v6819_v45, %v5722_v19  ;;  %v2146_v11 = vmul.f32 %v6819_v45, %v5706_v12  ;;  %v2149_v26 = vmul.f32 %v6819_v45, %v5734_v3  ;;  %v2148_v14 = vmul.f32 %v6819_v45, %v5703_v10 }
 0x491   : > { %v2151_v44 = vmul.f32 %v6819_v45, %v5747_v41  ;;  %v2155_v27 = vmul.f32 %v6819_v45, %v5771_v53  ;;  %v2185_v15 = vmul.f32 %v6819_v45, %v5955_v54 }
 0x492   : > { %2228 = vrot.lane.b32.xlu0 %v2147_v39, %s5284_s29  ;;  %2226 = vrot.lane.b32.xlu1 %v2146_v11, %s5284_s29  ;;  %v2150_v39 = vmul.f32 %v6819_v45, %v5719_v18  ;;  %v2153_v11 = vmul.f32 %v6819_v45, %v5759_v20 }
 0x496   : > { %2232 = vrot.lane.b32.xlu0 %v2149_v26, %s5284_s29  ;;  %2230 = vrot.lane.b32.xlu1 %v2148_v14, %s5284_s29  ;;  %v2152_v26 = vmul.f32 %v6819_v45, %v5731_v21  ;;  %v6849_v14 = vpop.permute.xlu1 %1978 }
 0x497   : > { %11091 = vst [vmem:[#allocation242_spill] sm:$0xff] %v6849_v14  ;;  %v2161_v14 = vmul.f32 %v6819_v45, %v5811_v46 }
 0x49a   : > { %2236 = vrot.lane.b32.xlu0 %v2151_v44, %s5284_s29  ;;  %2234 = vrot.lane.b32.xlu1 %v2150_v39, %s5284_s29  ;;  %v2154_v44 = vmul.f32 %v6819_v45, %v5744_v42  ;;  %v2157_v39 = vmul.f32 %v6819_v45, %v5784_v49  ;;  %v6861_v9 = vpop.permute.xlu1 %1982 }
 0x49b   : > { %11092 = vst [vmem:[#allocation243_spill] sm:$0xff] %v6861_v9 }
 0x49e   : > { %2240 = vrot.lane.b32.xlu0 %v2153_v11, %s5284_s29  ;;  %2238 = vrot.lane.b32.xlu1 %v2152_v26, %s5284_s29  ;;  %v2156_v11 = vmul.f32 %v6819_v45, %v5756_v7  ;;  %v2159_v26 = vmul.f32 %v6819_v45, %v5798_v48 }
 0x4a2   : > { %2244 = vrot.lane.b32.xlu0 %v2155_v27, %s5284_s29  ;;  %2242 = vrot.lane.b32.xlu1 %v2154_v44, %s5284_s29  ;;  %v2158_v27 = vmul.f32 %v6819_v45, %v5768_v40  ;;  %v6871_v44 = vpop.permute.xlu1 %1986 }
 0x4a3   : > { %11093 = vst [vmem:[#allocation244_spill] sm:$0xff] %v6871_v44  ;;  %v2167_v44 = vmul.f32 %v6819_v45, %v5849_v33 }
 0x4a6   : > { %2248 = vrot.lane.b32.xlu0 %v2157_v39, %s5284_s29  ;;  %2246 = vrot.lane.b32.xlu1 %v2156_v11, %s5284_s29  ;;  %v2160_v39 = vmul.f32 %v6819_v45, %v5781_v50  ;;  %v2163_v11 = vmul.f32 %v6819_v45, %v5823_v36  ;;  %v6883_v9 = vpop.permute.xlu1 %1990 }
 0x4a7   : > { %11094 = vst [vmem:[#allocation245_spill] sm:$0xff] %v6883_v9 }
 0x4aa   : > { %2252 = vrot.lane.b32.xlu0 %v2159_v26, %s5284_s29  ;;  %2250 = vrot.lane.b32.xlu1 %v2158_v27, %s5284_s29  ;;  %v2162_v26 = vmul.f32 %v6819_v45, %v5795_v17  ;;  %v2165_v27 = vmul.f32 %v6819_v45, %v5836_v34 }
 0x4ae   : > { %2256 = vrot.lane.b32.xlu0 %v2161_v14, %s5284_s29  ;;  %2254 = vrot.lane.b32.xlu1 %v2160_v39, %s5284_s29  ;;  %v2164_v14 = vmul.f32 %v6819_v45, %v5808_v47  ;;  %v6893_v39 = vpop.permute.xlu1 %1994 }
 0x4af   : > { %11095 = vst [vmem:[#allocation246_spill] sm:$0xff] %v6893_v39  ;;  %v2173_v39 = vmul.f32 %v6819_v45, %v5886_v2 }
 0x4b2   : > { %2260 = vrot.lane.b32.xlu0 %v2163_v11, %s5284_s29  ;;  %2258 = vrot.lane.b32.xlu1 %v2162_v26, %s5284_s29  ;;  %v2166_v11 = vmul.f32 %v6819_v45, %v5820_v37  ;;  %v2169_v26 = vmul.f32 %v6819_v45, %v5861_v32  ;;  %v6905_v9 = vpop.permute.xlu1 %1998 }
 0x4b3   : > { %11096 = vst [vmem:[#allocation247_spill] sm:$0xff] %v6905_v9 }
 0x4b6   : > { %2264 = vrot.lane.b32.xlu0 %v2165_v27, %s5284_s29  ;;  %2262 = vrot.lane.b32.xlu1 %v2164_v14, %s5284_s29  ;;  %v2168_v27 = vmul.f32 %v6819_v45, %v5833_v35  ;;  %v2171_v14 = vmul.f32 %v6819_v45, %v5874_v1 }
 0x4ba   : > { %2268 = vrot.lane.b32.xlu0 %v2167_v44, %s5284_s29  ;;  %2266 = vrot.lane.b32.xlu1 %v2166_v11, %s5284_s29  ;;  %v2170_v44 = vmul.f32 %v6819_v45, %v5846_v16  ;;  %v6915_v11 = vpop.permute.xlu1 %2002 }
 0x4bb   : > { %11097 = vst [vmem:[#allocation248_spill] sm:$0xff] %v6915_v11  ;;  %v2179_v11 = vmul.f32 %v6819_v45, %v5923_v31 }
 0x4be   : > { %2272 = vrot.lane.b32.xlu0 %v2169_v26, %s5284_s29  ;;  %2270 = vrot.lane.b32.xlu1 %v2168_v27, %s5284_s29  ;;  %v2172_v26 = vmul.f32 %v6819_v45, %v5858_v4  ;;  %v2175_v27 = vmul.f32 %v6819_v45, %v5898_v63  ;;  %v6927_v9 = vpop.permute.xlu1 %2006 }
 0x4bf   : > { %11098 = vst [vmem:[#allocation249_spill] sm:$0xff] %v6927_v9 }
 0x4c2   : > { %2276 = vrot.lane.b32.xlu0 %v2171_v14, %s5284_s29  ;;  %2274 = vrot.lane.b32.xlu1 %v2170_v44, %s5284_s29  ;;  %v2174_v14 = vmul.f32 %v6819_v45, %v5871_v30  ;;  %v2177_v44 = vmul.f32 %v6819_v45, %v5911_v60 }
 0x4c6   : > { %2280 = vrot.lane.b32.xlu0 %v2173_v39, %s5284_s29  ;;  %2278 = vrot.lane.b32.xlu1 %v2172_v26, %s5284_s29  ;;  %v2176_v39 = vmul.f32 %v6819_v45, %v5883_v6  ;;  %v6937_v26 = vpop.permute.xlu1 %2010 }
 0x4c7   : > { %11099 = vst [vmem:[#allocation250_spill] sm:$0xff] %v6937_v26 }
 0x4ca   : > { %2284 = vrot.lane.b32.xlu0 %v2175_v27, %s5284_s29  ;;  %2282 = vrot.lane.b32.xlu1 %v2174_v14, %s5284_s29  ;;  %v2178_v27 = vmul.f32 %v6819_v45, %v5895_v0  ;;  %v2181_v14 = vmul.f32 %v6819_v45, %v5935_v58  ;;  %v6949_v9 = vpop.permute.xlu1 %2014 }
 0x4cb   : > { %11100 = vst [vmem:[#allocation251_spill] sm:$0xff] %v6949_v9 }
 0x4ce   : > { %2288 = vrot.lane.b32.xlu0 %v2177_v44, %s5284_s29  ;;  %2286 = vrot.lane.b32.xlu1 %v2176_v39, %s5284_s29  ;;  %v2180_v44 = vmul.f32 %v6819_v45, %v5908_v61  ;;  %v2183_v39 = vmul.f32 %v6819_v45, %v5944_v52 }
 0x4d2   : > { %2292 = vrot.lane.b32.xlu0 %v2179_v11, %s5284_s29  ;;  %2290 = vrot.lane.b32.xlu1 %v2178_v27, %s5284_s29  ;;  %v2182_v11 = vmul.f32 %v6819_v45, %v5920_v5  ;;  %v6959_v27 = vpop.permute.xlu1 %2018 }
 0x4d3   : > { %11101 = vst [vmem:[#allocation252_spill] sm:$0xff] %v6959_v27 }
 0x4d6   : > { %2296 = vrot.lane.b32.xlu0 %v2181_v14, %s5284_s29  ;;  %2294 = vrot.lane.b32.xlu1 %v2180_v44, %s5284_s29  ;;  %v2184_v14 = vmul.f32 %v6819_v45, %v5932_v59  ;;  %v262_v44 = vld [vmem:[%s10446_s0 + $0x38] sm:$0xff]  ;;  %v6970_v9 = vpop.permute.xlu1 %2022 }
 0x4d7   : > { %11102 = vst [vmem:[#allocation253_spill] sm:$0xff] %v6970_v9 }
 0x4da   : > { %2300 = vrot.lane.b32.xlu0 %v2183_v39, %s5284_s29  ;;  %2298 = vrot.lane.b32.xlu1 %v2182_v11, %s5284_s29  ;;  %v6972_v39 = vpop.permute.xlu1 %2026 }
 0x4db   : > { %11103 = vst [vmem:[#allocation254_spill] sm:$0xff] %v6972_v39 }
 0x4de   : > { %2304 = vrot.lane.b32.xlu0 %v2185_v15, %s5284_s29  ;;  %2302 = vrot.lane.b32.xlu1 %v2184_v14, %s5284_s29  ;;  %v6974_v11 = vpop.permute.xlu1 %2030  ;;  %s4940_s29 = sshll.u32 %s5556_s24, 8 }
 0x4df   : > { %11104 = vst [vmem:[#allocation255_spill] sm:$0xff] %v6974_v11 }
 0x4e2   : > { %2405 = vperm.xlu1 %5078, %v262_v44   ;;  %v6976_v27 = vpop.permute.xlu1 %2034 }
 0x4e3   : > { %11105 = vst [vmem:[#allocation256_spill] sm:$0xff] %v6976_v27 }
 0x4e6   : > { %v6978_v55 = vpop.permute.xlu1 %2038 }
 0x4e7   : > { %11106 = vst [vmem:[#allocation257_spill] sm:$0xff] %v6978_v55 }
 0x4ea   : > { %v6980_v45 = vpop.permute.xlu1 %2042 }
 0x4eb   : > { %11107 = vst [vmem:[#allocation258_spill] sm:$0xff] %v6980_v45 }
 0x504   : > { %v6982_v15 = vpop.permute.xlu1 %2226 }
 0x505   : > { %11108 = vst [vmem:[#allocation259_spill] sm:$0xff] %v6982_v15 }
 0x508   : > { %v6984_v14 = vpop.permute.xlu1 %2230 }
 0x509   : > { %11109 = vst [vmem:[#allocation260_spill] sm:$0xff] %v6984_v14 }
 0x50c   : > { %v6986_v26 = vpop.permute.xlu1 %2234 }
 0x50d   : > { %11110 = vst [vmem:[#allocation261_spill] sm:$0xff] %v6986_v26 }
 0x510   : > { %v6988_v62 = vpop.permute.xlu1 %2238 }
 0x511   : > { %11111 = vst [vmem:[#allocation262_spill] sm:$0xff] %v6988_v62 }
 0x514   : > { %v6990_v9 = vpop.permute.xlu1 %2242 }
 0x515   : > { %11112 = vst [vmem:[#allocation263_spill] sm:$0xff] %v6990_v9 }
 0x518   : > { %v6992_v44 = vpop.permute.xlu1 %2246 }
 0x519   : > { %11113 = vst [vmem:[#allocation264_spill] sm:$0xff] %v6992_v44 }
 0x51c   : > { %v6994_v39 = vpop.permute.xlu1 %2250 }
 0x51d   : > { %11114 = vst [vmem:[#allocation265_spill] sm:$0xff] %v6994_v39 }
 0x520   : > { %v6996_v11 = vpop.permute.xlu1 %2254 }
 0x521   : > { %11115 = vst [vmem:[#allocation266_spill] sm:$0xff] %v6996_v11 }
 0x524   : > { %v6998_v27 = vpop.permute.xlu1 %2258 }
 0x525   : > { %11116 = vst [vmem:[#allocation267_spill] sm:$0xff] %v6998_v27 }
 0x528   : > { %v7000_v55 = vpop.permute.xlu1 %2262 }
 0x529   : > { %11117 = vst [vmem:[#allocation268_spill] sm:$0xff] %v7000_v55  ;;  %v7022_v55 = vpop.permute.xlu0 %2228 }
 0x52a   : > { %11128 = vst [vmem:[#allocation279_spill] sm:$0xff] %v7022_v55 }
 0x52c   : > { %v7002_v45 = vpop.permute.xlu1 %2266 }
 0x52d   : > { %11118 = vst [vmem:[#allocation269_spill] sm:$0xff] %v7002_v45 }
 0x530   : > { %v7004_v15 = vpop.permute.xlu1 %2270 }
 0x531   : > { %11119 = vst [vmem:[#allocation270_spill] sm:$0xff] %v7004_v15 }
 0x534   : > { %v7006_v14 = vpop.permute.xlu1 %2274 }
 0x535   : > { %11120 = vst [vmem:[#allocation271_spill] sm:$0xff] %v7006_v14 }
 0x538   : > { %v7008_v26 = vpop.permute.xlu1 %2278 }
 0x539   : > { %11121 = vst [vmem:[#allocation272_spill] sm:$0xff] %v7008_v26 }
 0x53c   : > { %v7010_v62 = vpop.permute.xlu1 %2282 }
 0x53d   : > { %11122 = vst [vmem:[#allocation273_spill] sm:$0xff] %v7010_v62 }
 0x540   : > { %v7012_v9 = vpop.permute.xlu1 %2286 }
 0x541   : > { %11123 = vst [vmem:[#allocation274_spill] sm:$0xff] %v7012_v9 }
 0x544   : > { %v7014_v44 = vpop.permute.xlu1 %2290 }
 0x545   : > { %11124 = vst [vmem:[#allocation275_spill] sm:$0xff] %v7014_v44 }
 0x548   : > { %v7016_v39 = vpop.permute.xlu1 %2294 }
 0x549   : > { %11125 = vst [vmem:[#allocation276_spill] sm:$0xff] %v7016_v39  ;;  %v7032_v39 = vpop.permute.xlu0 %2232 }
 0x54a   : > { %11129 = vst [vmem:[#allocation280_spill] sm:$0xff] %v7032_v39 }
 0x54c   : > { %v7018_v11 = vpop.permute.xlu1 %2298 }
 0x54d   : > { %11126 = vst [vmem:[#allocation277_spill] sm:$0xff] %v7018_v11  ;;  %v7044_v44 = vpop.permute.xlu0 %2236 }
 0x54e   : > { %11130 = vst [vmem:[#allocation281_spill] sm:$0xff] %v7044_v44 }
 0x550   : > { %v7020_v27 = vpop.permute.xlu1 %2302 }
 0x551   : > { %11127 = vst [vmem:[#allocation278_spill] sm:$0xff] %v7020_v27 }
 0x561   : > { %v7024_v45 = vpop.permute.xlu1 %2405 }
 0x562   : > { %v2409_v15 = vmul.f32 %v7024_v45, %v5722_v19  ;;  %v2408_v62 = vmul.f32 %v7024_v45, %v5706_v12  ;;  %v2411_v27 = vmul.f32 %v7024_v45, %v5734_v3  ;;  %v2410_v55 = vmul.f32 %v7024_v45, %v5703_v10 }
 0x563   : > { %v2413_v11 = vmul.f32 %v7024_v45, %v5747_v41  ;;  %v2417_v39 = vmul.f32 %v7024_v45, %v5771_v53  ;;  %v2447_v9 = vmul.f32 %v7024_v45, %v5955_v54 }
 0x564   : > { %2490 = vrot.lane.b32.xlu1 %v2409_v15, %s5285_s9  ;;  %2488 = vrot.lane.b32.xlu0 %v2408_v62, %s5285_s9  ;;  %v2412_v15 = vmul.f32 %v7024_v45, %v5719_v18  ;;  %v2415_v62 = vmul.f32 %v7024_v45, %v5759_v20 }
 0x568   : > { %2494 = vrot.lane.b32.xlu1 %v2411_v27, %s5285_s9  ;;  %2492 = vrot.lane.b32.xlu0 %v2410_v55, %s5285_s9  ;;  %v2414_v27 = vmul.f32 %v7024_v45, %v5731_v21  ;;  %v7054_v55 = vpop.permute.xlu0 %2240 }
 0x569   : > { %11131 = vst [vmem:[#allocation282_spill] sm:$0xff] %v7054_v55  ;;  %v2423_v55 = vmul.f32 %v7024_v45, %v5811_v46 }
 0x56c   : > { %2498 = vrot.lane.b32.xlu1 %v2413_v11, %s5285_s9  ;;  %2496 = vrot.lane.b32.xlu0 %v2412_v15, %s5285_s9  ;;  %v2416_v11 = vmul.f32 %v7024_v45, %v5744_v42  ;;  %v2419_v15 = vmul.f32 %v7024_v45, %v5784_v49  ;;  %v7066_v44 = vpop.permute.xlu0 %2244 }
 0x56d   : > { %11132 = vst [vmem:[#allocation283_spill] sm:$0xff] %v7066_v44 }
 0x570   : > { %2502 = vrot.lane.b32.xlu1 %v2415_v62, %s5285_s9  ;;  %2500 = vrot.lane.b32.xlu0 %v2414_v27, %s5285_s9  ;;  %v2418_v62 = vmul.f32 %v7024_v45, %v5756_v7  ;;  %v2421_v27 = vmul.f32 %v7024_v45, %v5798_v48 }
 0x574   : > { %2506 = vrot.lane.b32.xlu1 %v2417_v39, %s5285_s9  ;;  %2504 = vrot.lane.b32.xlu0 %v2416_v11, %s5285_s9  ;;  %v2420_v39 = vmul.f32 %v7024_v45, %v5768_v40  ;;  %v7076_v11 = vpop.permute.xlu0 %2248 }
 0x575   : > { %11133 = vst [vmem:[#allocation284_spill] sm:$0xff] %v7076_v11  ;;  %v2429_v11 = vmul.f32 %v7024_v45, %v5849_v33 }
 0x578   : > { %2510 = vrot.lane.b32.xlu1 %v2419_v15, %s5285_s9  ;;  %2508 = vrot.lane.b32.xlu0 %v2418_v62, %s5285_s9  ;;  %v2422_v15 = vmul.f32 %v7024_v45, %v5781_v50  ;;  %v2425_v62 = vmul.f32 %v7024_v45, %v5823_v36  ;;  %v7088_v44 = vpop.permute.xlu0 %2252 }
 0x579   : > { %11134 = vst [vmem:[#allocation285_spill] sm:$0xff] %v7088_v44 }
 0x57c   : > { %2514 = vrot.lane.b32.xlu1 %v2421_v27, %s5285_s9  ;;  %2512 = vrot.lane.b32.xlu0 %v2420_v39, %s5285_s9  ;;  %v2424_v27 = vmul.f32 %v7024_v45, %v5795_v17  ;;  %v2427_v39 = vmul.f32 %v7024_v45, %v5836_v34 }
 0x580   : > { %2518 = vrot.lane.b32.xlu1 %v2423_v55, %s5285_s9  ;;  %2516 = vrot.lane.b32.xlu0 %v2422_v15, %s5285_s9  ;;  %v2426_v55 = vmul.f32 %v7024_v45, %v5808_v47  ;;  %v7098_v15 = vpop.permute.xlu0 %2256 }
 0x581   : > { %11135 = vst [vmem:[#allocation286_spill] sm:$0xff] %v7098_v15  ;;  %v2435_v15 = vmul.f32 %v7024_v45, %v5886_v2 }
 0x584   : > { %2522 = vrot.lane.b32.xlu1 %v2425_v62, %s5285_s9  ;;  %2520 = vrot.lane.b32.xlu0 %v2424_v27, %s5285_s9  ;;  %v2428_v62 = vmul.f32 %v7024_v45, %v5820_v37  ;;  %v2431_v27 = vmul.f32 %v7024_v45, %v5861_v32  ;;  %v7110_v44 = vpop.permute.xlu0 %2260 }
 0x585   : > { %11136 = vst [vmem:[#allocation287_spill] sm:$0xff] %v7110_v44 }
 0x588   : > { %2526 = vrot.lane.b32.xlu1 %v2427_v39, %s5285_s9  ;;  %2524 = vrot.lane.b32.xlu0 %v2426_v55, %s5285_s9  ;;  %v2430_v39 = vmul.f32 %v7024_v45, %v5833_v35  ;;  %v2433_v55 = vmul.f32 %v7024_v45, %v5874_v1 }
 0x58c   : > { %2530 = vrot.lane.b32.xlu1 %v2429_v11, %s5285_s9  ;;  %2528 = vrot.lane.b32.xlu0 %v2428_v62, %s5285_s9  ;;  %v2432_v11 = vmul.f32 %v7024_v45, %v5846_v16  ;;  %v7120_v62 = vpop.permute.xlu0 %2264 }
 0x58d   : > { %11137 = vst [vmem:[#allocation288_spill] sm:$0xff] %v7120_v62  ;;  %v2441_v62 = vmul.f32 %v7024_v45, %v5923_v31 }
 0x590   : > { %2534 = vrot.lane.b32.xlu1 %v2431_v27, %s5285_s9  ;;  %2532 = vrot.lane.b32.xlu0 %v2430_v39, %s5285_s9  ;;  %v2434_v27 = vmul.f32 %v7024_v45, %v5858_v4  ;;  %v2437_v39 = vmul.f32 %v7024_v45, %v5898_v63  ;;  %v7132_v44 = vpop.permute.xlu0 %2268 }
 0x591   : > { %11138 = vst [vmem:[#allocation289_spill] sm:$0xff] %v7132_v44 }
 0x594   : > { %2538 = vrot.lane.b32.xlu1 %v2433_v55, %s5285_s9  ;;  %2536 = vrot.lane.b32.xlu0 %v2432_v11, %s5285_s9  ;;  %v2436_v55 = vmul.f32 %v7024_v45, %v5871_v30  ;;  %v2439_v11 = vmul.f32 %v7024_v45, %v5911_v60 }
 0x598   : > { %2542 = vrot.lane.b32.xlu1 %v2435_v15, %s5285_s9  ;;  %2540 = vrot.lane.b32.xlu0 %v2434_v27, %s5285_s9  ;;  %v2438_v15 = vmul.f32 %v7024_v45, %v5883_v6  ;;  %v7142_v27 = vpop.permute.xlu0 %2272 }
 0x599   : > { %11139 = vst [vmem:[#allocation290_spill] sm:$0xff] %v7142_v27 }
 0x59c   : > { %2546 = vrot.lane.b32.xlu1 %v2437_v39, %s5285_s9  ;;  %2544 = vrot.lane.b32.xlu0 %v2436_v55, %s5285_s9  ;;  %v2440_v39 = vmul.f32 %v7024_v45, %v5895_v0  ;;  %v2443_v55 = vmul.f32 %v7024_v45, %v5935_v58  ;;  %v7154_v44 = vpop.permute.xlu0 %2276 }
 0x59d   : > { %11140 = vst [vmem:[#allocation291_spill] sm:$0xff] %v7154_v44 }
 0x5a0   : > { %2550 = vrot.lane.b32.xlu1 %v2439_v11, %s5285_s9  ;;  %2548 = vrot.lane.b32.xlu0 %v2438_v15, %s5285_s9  ;;  %v2442_v11 = vmul.f32 %v7024_v45, %v5908_v61  ;;  %v2445_v15 = vmul.f32 %v7024_v45, %v5944_v52 }
 0x5a4   : > { %2554 = vrot.lane.b32.xlu1 %v2441_v62, %s5285_s9  ;;  %2552 = vrot.lane.b32.xlu0 %v2440_v39, %s5285_s9  ;;  %v2444_v62 = vmul.f32 %v7024_v45, %v5920_v5  ;;  %v7164_v39 = vpop.permute.xlu0 %2280 }
 0x5a5   : > { %11141 = vst [vmem:[#allocation292_spill] sm:$0xff] %v7164_v39 }
 0x5a8   : > { %2558 = vrot.lane.b32.xlu1 %v2443_v55, %s5285_s9  ;;  %2556 = vrot.lane.b32.xlu0 %v2442_v11, %s5285_s9  ;;  %v2446_v55 = vmul.f32 %v7024_v45, %v5932_v59  ;;  %v263_v11 = vld [vmem:[%s10446_s0 + $0x40] sm:$0xff]  ;;  %v7175_v44 = vpop.permute.xlu0 %2284 }
 0x5a9   : > { %11142 = vst [vmem:[#allocation293_spill] sm:$0xff] %v7175_v44 }
 0x5ac   : > { %2562 = vrot.lane.b32.xlu1 %v2445_v15, %s5285_s9  ;;  %2560 = vrot.lane.b32.xlu0 %v2444_v62, %s5285_s9  ;;  %v7177_v15 = vpop.permute.xlu0 %2288 }
 0x5ad   : > { %11143 = vst [vmem:[#allocation294_spill] sm:$0xff] %v7177_v15 }
 0x5b0   : > { %2566 = vrot.lane.b32.xlu1 %v2447_v9, %s5285_s9  ;;  %2564 = vrot.lane.b32.xlu0 %v2446_v55, %s5285_s9  ;;  %v7179_v62 = vpop.permute.xlu0 %2292  ;;  %s4948_s9 = sshll.u32 %s5261_s19, 6 }
 0x5b1   : > { %11144 = vst [vmem:[#allocation295_spill] sm:$0xff] %v7179_v62 }
 0x5b4   : > { %2667 = vperm.xlu0 %5077, %v263_v11   ;;  %v7181_v39 = vpop.permute.xlu0 %2296 }
 0x5b5   : > { %11145 = vst [vmem:[#allocation296_spill] sm:$0xff] %v7181_v39 }
 0x5b8   : > { %v7183_v26 = vpop.permute.xlu0 %2300 }
 0x5b9   : > { %11146 = vst [vmem:[#allocation297_spill] sm:$0xff] %v7183_v26 }
 0x5bc   : > { %v7185_v45 = vpop.permute.xlu0 %2304 }
 0x5bd   : > { %11147 = vst [vmem:[#allocation298_spill] sm:$0xff] %v7185_v45 }
 0x5d6   : > { %v7187_v9 = vpop.permute.xlu0 %2488 }
 0x5d7   : > { %11148 = vst [vmem:[#allocation299_spill] sm:$0xff] %v7187_v9 }
 0x5da   : > { %v7189_v55 = vpop.permute.xlu0 %2492 }
 0x5db   : > { %11149 = vst [vmem:[#allocation300_spill] sm:$0xff] %v7189_v55 }
 0x5de   : > { %v7191_v27 = vpop.permute.xlu0 %2496 }
 0x5df   : > { %11150 = vst [vmem:[#allocation301_spill] sm:$0xff] %v7191_v27 }
 0x5e2   : > { %v7193_v14 = vpop.permute.xlu0 %2500 }
 0x5e3   : > { %11151 = vst [vmem:[#allocation302_spill] sm:$0xff] %v7193_v14 }
 0x5e6   : > { %v7195_v44 = vpop.permute.xlu0 %2504 }
 0x5e7   : > { %11152 = vst [vmem:[#allocation303_spill] sm:$0xff] %v7195_v44 }
 0x5ea   : > { %v7197_v11 = vpop.permute.xlu0 %2508 }
 0x5eb   : > { %11153 = vst [vmem:[#allocation304_spill] sm:$0xff] %v7197_v11 }
 0x5ee   : > { %v7199_v15 = vpop.permute.xlu0 %2512 }
 0x5ef   : > { %11154 = vst [vmem:[#allocation305_spill] sm:$0xff] %v7199_v15 }
 0x5f2   : > { %v7201_v62 = vpop.permute.xlu0 %2516 }
 0x5f3   : > { %11155 = vst [vmem:[#allocation306_spill] sm:$0xff] %v7201_v62 }
 0x5f6   : > { %v7203_v39 = vpop.permute.xlu0 %2520 }
 0x5f7   : > { %11156 = vst [vmem:[#allocation307_spill] sm:$0xff] %v7203_v39 }
 0x5fa   : > { %v7205_v26 = vpop.permute.xlu0 %2524 }
 0x5fb   : > { %11157 = vst [vmem:[#allocation308_spill] sm:$0xff] %v7205_v26  ;;  %v7227_v26 = vpop.permute.xlu1 %2490 }
 0x5fc   : > { %11168 = vst [vmem:[#allocation319_spill] sm:$0xff] %v7227_v26 }
 0x5fe   : > { %v7207_v45 = vpop.permute.xlu0 %2528 }
 0x5ff   : > { %11158 = vst [vmem:[#allocation309_spill] sm:$0xff] %v7207_v45 }
 0x602   : > { %v7209_v9 = vpop.permute.xlu0 %2532 }
 0x603   : > { %11159 = vst [vmem:[#allocation310_spill] sm:$0xff] %v7209_v9 }
 0x606   : > { %v7211_v55 = vpop.permute.xlu0 %2536 }
 0x607   : > { %11160 = vst [vmem:[#allocation311_spill] sm:$0xff] %v7211_v55 }
 0x60a   : > { %v7213_v27 = vpop.permute.xlu0 %2540 }
 0x60b   : > { %11161 = vst [vmem:[#allocation312_spill] sm:$0xff] %v7213_v27 }
 0x60e   : > { %v7215_v14 = vpop.permute.xlu0 %2544 }
 0x60f   : > { %11162 = vst [vmem:[#allocation313_spill] sm:$0xff] %v7215_v14 }
 0x612   : > { %v7217_v44 = vpop.permute.xlu0 %2548 }
 0x613   : > { %11163 = vst [vmem:[#allocation314_spill] sm:$0xff] %v7217_v44 }
 0x616   : > { %v7219_v11 = vpop.permute.xlu0 %2552 }
 0x617   : > { %11164 = vst [vmem:[#allocation315_spill] sm:$0xff] %v7219_v11 }
 0x61a   : > { %v7221_v15 = vpop.permute.xlu0 %2556 }
 0x61b   : > { %11165 = vst [vmem:[#allocation316_spill] sm:$0xff] %v7221_v15  ;;  %v7237_v15 = vpop.permute.xlu1 %2494 }
 0x61c   : > { %11169 = vst [vmem:[#allocation320_spill] sm:$0xff] %v7237_v15 }
 0x61e   : > { %v7223_v62 = vpop.permute.xlu0 %2560 }
 0x61f   : > { %11166 = vst [vmem:[#allocation317_spill] sm:$0xff] %v7223_v62  ;;  %v7249_v11 = vpop.permute.xlu1 %2498 }
 0x620   : > { %11170 = vst [vmem:[#allocation321_spill] sm:$0xff] %v7249_v11 }
 0x622   : > { %v7225_v39 = vpop.permute.xlu0 %2564 }
 0x623   : > { %11167 = vst [vmem:[#allocation318_spill] sm:$0xff] %v7225_v39 }
 0x633   : > { %v7229_v45 = vpop.permute.xlu0 %2667 }
 0x634   : > { %v2671_v9 = vmul.f32 %v7229_v45, %v5722_v19  ;;  %v2670_v14 = vmul.f32 %v7229_v45, %v5706_v12  ;;  %v2673_v39 = vmul.f32 %v7229_v45, %v5734_v3  ;;  %v2672_v26 = vmul.f32 %v7229_v45, %v5703_v10 }
 0x635   : > { %v2675_v62 = vmul.f32 %v7229_v45, %v5747_v41  ;;  %v2679_v15 = vmul.f32 %v7229_v45, %v5771_v53  ;;  %v2709_v44 = vmul.f32 %v7229_v45, %v5955_v54 }
 0x636   : > { %2752 = vrot.lane.b32.xlu0 %v2671_v9, %s5286_s11  ;;  %2750 = vrot.lane.b32.xlu1 %v2670_v14, %s5286_s11  ;;  %v2674_v9 = vmul.f32 %v7229_v45, %v5719_v18  ;;  %v2677_v14 = vmul.f32 %v7229_v45, %v5759_v20 }
 0x63a   : > { %2756 = vrot.lane.b32.xlu0 %v2673_v39, %s5286_s11  ;;  %2754 = vrot.lane.b32.xlu1 %v2672_v26, %s5286_s11  ;;  %v2676_v39 = vmul.f32 %v7229_v45, %v5731_v21  ;;  %v7259_v26 = vpop.permute.xlu1 %2502 }
 0x63b   : > { %11171 = vst [vmem:[#allocation322_spill] sm:$0xff] %v7259_v26  ;;  %v2685_v26 = vmul.f32 %v7229_v45, %v5811_v46 }
 0x63e   : > { %2760 = vrot.lane.b32.xlu0 %v2675_v62, %s5286_s11  ;;  %2758 = vrot.lane.b32.xlu1 %v2674_v9, %s5286_s11  ;;  %v2678_v62 = vmul.f32 %v7229_v45, %v5744_v42  ;;  %v2681_v9 = vmul.f32 %v7229_v45, %v5784_v49  ;;  %v7271_v11 = vpop.permute.xlu1 %2506 }
 0x63f   : > { %11172 = vst [vmem:[#allocation323_spill] sm:$0xff] %v7271_v11 }
 0x642   : > { %2764 = vrot.lane.b32.xlu0 %v2677_v14, %s5286_s11  ;;  %2762 = vrot.lane.b32.xlu1 %v2676_v39, %s5286_s11  ;;  %v2680_v14 = vmul.f32 %v7229_v45, %v5756_v7  ;;  %v2683_v39 = vmul.f32 %v7229_v45, %v5798_v48 }
 0x646   : > { %2768 = vrot.lane.b32.xlu0 %v2679_v15, %s5286_s11  ;;  %2766 = vrot.lane.b32.xlu1 %v2678_v62, %s5286_s11  ;;  %v2682_v15 = vmul.f32 %v7229_v45, %v5768_v40  ;;  %v7281_v62 = vpop.permute.xlu1 %2510 }
 0x647   : > { %11173 = vst [vmem:[#allocation324_spill] sm:$0xff] %v7281_v62  ;;  %v2691_v62 = vmul.f32 %v7229_v45, %v5849_v33 }
 0x64a   : > { %2772 = vrot.lane.b32.xlu0 %v2681_v9, %s5286_s11  ;;  %2770 = vrot.lane.b32.xlu1 %v2680_v14, %s5286_s11  ;;  %v2684_v9 = vmul.f32 %v7229_v45, %v5781_v50  ;;  %v2687_v14 = vmul.f32 %v7229_v45, %v5823_v36  ;;  %v7293_v11 = vpop.permute.xlu1 %2514 }
 0x64b   : > { %11174 = vst [vmem:[#allocation325_spill] sm:$0xff] %v7293_v11 }
 0x64e   : > { %2776 = vrot.lane.b32.xlu0 %v2683_v39, %s5286_s11  ;;  %2774 = vrot.lane.b32.xlu1 %v2682_v15, %s5286_s11  ;;  %v2686_v39 = vmul.f32 %v7229_v45, %v5795_v17  ;;  %v2689_v15 = vmul.f32 %v7229_v45, %v5836_v34 }
 0x652   : > { %2780 = vrot.lane.b32.xlu0 %v2685_v26, %s5286_s11  ;;  %2778 = vrot.lane.b32.xlu1 %v2684_v9, %s5286_s11  ;;  %v2688_v26 = vmul.f32 %v7229_v45, %v5808_v47  ;;  %v7303_v9 = vpop.permute.xlu1 %2518 }
 0x653   : > { %11175 = vst [vmem:[#allocation326_spill] sm:$0xff] %v7303_v9  ;;  %v2697_v9 = vmul.f32 %v7229_v45, %v5886_v2 }
 0x656   : > { %2784 = vrot.lane.b32.xlu0 %v2687_v14, %s5286_s11  ;;  %2782 = vrot.lane.b32.xlu1 %v2686_v39, %s5286_s11  ;;  %v2690_v14 = vmul.f32 %v7229_v45, %v5820_v37  ;;  %v2693_v39 = vmul.f32 %v7229_v45, %v5861_v32  ;;  %v7315_v11 = vpop.permute.xlu1 %2522 }
 0x657   : > { %11176 = vst [vmem:[#allocation327_spill] sm:$0xff] %v7315_v11 }
 0x65a   : > { %2788 = vrot.lane.b32.xlu0 %v2689_v15, %s5286_s11  ;;  %2786 = vrot.lane.b32.xlu1 %v2688_v26, %s5286_s11  ;;  %v2692_v15 = vmul.f32 %v7229_v45, %v5833_v35  ;;  %v2695_v26 = vmul.f32 %v7229_v45, %v5874_v1 }
 0x65e   : > { %2792 = vrot.lane.b32.xlu0 %v2691_v62, %s5286_s11  ;;  %2790 = vrot.lane.b32.xlu1 %v2690_v14, %s5286_s11  ;;  %v2694_v62 = vmul.f32 %v7229_v45, %v5846_v16  ;;  %v7325_v14 = vpop.permute.xlu1 %2526 }
 0x65f   : > { %11177 = vst [vmem:[#allocation328_spill] sm:$0xff] %v7325_v14  ;;  %v2703_v14 = vmul.f32 %v7229_v45, %v5923_v31 }
 0x662   : > { %2796 = vrot.lane.b32.xlu0 %v2693_v39, %s5286_s11  ;;  %2794 = vrot.lane.b32.xlu1 %v2692_v15, %s5286_s11  ;;  %v2696_v39 = vmul.f32 %v7229_v45, %v5858_v4  ;;  %v2699_v15 = vmul.f32 %v7229_v45, %v5898_v63  ;;  %v7337_v11 = vpop.permute.xlu1 %2530 }
 0x663   : > { %11178 = vst [vmem:[#allocation329_spill] sm:$0xff] %v7337_v11 }
 0x666   : > { %2800 = vrot.lane.b32.xlu0 %v2695_v26, %s5286_s11  ;;  %2798 = vrot.lane.b32.xlu1 %v2694_v62, %s5286_s11  ;;  %v2698_v26 = vmul.f32 %v7229_v45, %v5871_v30  ;;  %v2701_v62 = vmul.f32 %v7229_v45, %v5911_v60 }
 0x66a   : > { %2804 = vrot.lane.b32.xlu0 %v2697_v9, %s5286_s11  ;;  %2802 = vrot.lane.b32.xlu1 %v2696_v39, %s5286_s11  ;;  %v2700_v9 = vmul.f32 %v7229_v45, %v5883_v6  ;;  %v7347_v39 = vpop.permute.xlu1 %2534 }
 0x66b   : > { %11179 = vst [vmem:[#allocation330_spill] sm:$0xff] %v7347_v39 }
 0x66e   : > { %2808 = vrot.lane.b32.xlu0 %v2699_v15, %s5286_s11  ;;  %2806 = vrot.lane.b32.xlu1 %v2698_v26, %s5286_s11  ;;  %v2702_v15 = vmul.f32 %v7229_v45, %v5895_v0  ;;  %v2705_v26 = vmul.f32 %v7229_v45, %v5935_v58  ;;  %v7359_v11 = vpop.permute.xlu1 %2538 }
 0x66f   : > { %11180 = vst [vmem:[#allocation331_spill] sm:$0xff] %v7359_v11 }
 0x672   : > { %2812 = vrot.lane.b32.xlu0 %v2701_v62, %s5286_s11  ;;  %2810 = vrot.lane.b32.xlu1 %v2700_v9, %s5286_s11  ;;  %v2704_v62 = vmul.f32 %v7229_v45, %v5908_v61  ;;  %v2707_v9 = vmul.f32 %v7229_v45, %v5944_v52 }
 0x676   : > { %2816 = vrot.lane.b32.xlu0 %v2703_v14, %s5286_s11  ;;  %2814 = vrot.lane.b32.xlu1 %v2702_v15, %s5286_s11  ;;  %v2706_v14 = vmul.f32 %v7229_v45, %v5920_v5  ;;  %v7369_v15 = vpop.permute.xlu1 %2542 }
 0x677   : > { %11181 = vst [vmem:[#allocation332_spill] sm:$0xff] %v7369_v15 }
 0x67a   : > { %2820 = vrot.lane.b32.xlu0 %v2705_v26, %s5286_s11  ;;  %2818 = vrot.lane.b32.xlu1 %v2704_v62, %s5286_s11  ;;  %v2708_v26 = vmul.f32 %v7229_v45, %v5932_v59  ;;  %v264_v62 = vld [vmem:[%s10446_s0 + $0x48] sm:$0xff]  ;;  %v7380_v11 = vpop.permute.xlu1 %2546 }
 0x67b   : > { %11182 = vst [vmem:[#allocation333_spill] sm:$0xff] %v7380_v11 }
 0x67e   : > { %2824 = vrot.lane.b32.xlu0 %v2707_v9, %s5286_s11  ;;  %2822 = vrot.lane.b32.xlu1 %v2706_v14, %s5286_s11  ;;  %v7382_v9 = vpop.permute.xlu1 %2550 }
 0x67f   : > { %11183 = vst [vmem:[#allocation334_spill] sm:$0xff] %v7382_v9 }
 0x682   : > { %2828 = vrot.lane.b32.xlu0 %v2709_v44, %s5286_s11  ;;  %2826 = vrot.lane.b32.xlu1 %v2708_v26, %s5286_s11  ;;  %v7384_v14 = vpop.permute.xlu1 %2554 }
 0x683   : > { %11184 = vst [vmem:[#allocation335_spill] sm:$0xff] %v7384_v14 }
 0x686   : > { %2929 = vperm.xlu1 %5078, %v264_v62   ;;  %v7386_v15 = vpop.permute.xlu1 %2558 }
 0x687   : > { %11185 = vst [vmem:[#allocation336_spill] sm:$0xff] %v7386_v15 }
 0x68a   : > { %v7388_v27 = vpop.permute.xlu1 %2562 }
 0x68b   : > { %11186 = vst [vmem:[#allocation337_spill] sm:$0xff] %v7388_v27 }
 0x68e   : > { %v7390_v45 = vpop.permute.xlu1 %2566 }
 0x68f   : > { %11187 = vst [vmem:[#allocation338_spill] sm:$0xff] %v7390_v45 }
 0x6a8   : > { %v7392_v44 = vpop.permute.xlu1 %2750 }
 0x6a9   : > { %11188 = vst [vmem:[#allocation339_spill] sm:$0xff] %v7392_v44 }
 0x6ac   : > { %v7394_v26 = vpop.permute.xlu1 %2754 }
 0x6ad   : > { %11189 = vst [vmem:[#allocation340_spill] sm:$0xff] %v7394_v26 }
 0x6b0   : > { %v7396_v39 = vpop.permute.xlu1 %2758 }
 0x6b1   : > { %11190 = vst [vmem:[#allocation341_spill] sm:$0xff] %v7396_v39 }
 0x6b4   : > { %v7398_v55 = vpop.permute.xlu1 %2762 }
 0x6b5   : > { %11191 = vst [vmem:[#allocation342_spill] sm:$0xff] %v7398_v55 }
 0x6b8   : > { %v7400_v11 = vpop.permute.xlu1 %2766 }
 0x6b9   : > { %11192 = vst [vmem:[#allocation343_spill] sm:$0xff] %v7400_v11 }
 0x6bc   : > { %v7402_v62 = vpop.permute.xlu1 %2770 }
 0x6bd   : > { %11193 = vst [vmem:[#allocation344_spill] sm:$0xff] %v7402_v62 }
 0x6c0   : > { %v7404_v9 = vpop.permute.xlu1 %2774 }
 0x6c1   : > { %11194 = vst [vmem:[#allocation345_spill] sm:$0xff] %v7404_v9 }
 0x6c4   : > { %v7406_v14 = vpop.permute.xlu1 %2778 }
 0x6c5   : > { %11195 = vst [vmem:[#allocation346_spill] sm:$0xff] %v7406_v14 }
 0x6c8   : > { %v7408_v15 = vpop.permute.xlu1 %2782 }
 0x6c9   : > { %11196 = vst [vmem:[#allocation347_spill] sm:$0xff] %v7408_v15 }
 0x6cc   : > { %v7410_v27 = vpop.permute.xlu1 %2786 }
 0x6cd   : > { %11197 = vst [vmem:[#allocation348_spill] sm:$0xff] %v7410_v27  ;;  %v7432_v27 = vpop.permute.xlu0 %2752 }
 0x6ce   : > { %11208 = vst [vmem:[#allocation359_spill] sm:$0xff] %v7432_v27 }
 0x6d0   : > { %v7412_v45 = vpop.permute.xlu1 %2790 }
 0x6d1   : > { %11198 = vst [vmem:[#allocation349_spill] sm:$0xff] %v7412_v45 }
 0x6d4   : > { %v7414_v44 = vpop.permute.xlu1 %2794 }
 0x6d5   : > { %11199 = vst [vmem:[#allocation350_spill] sm:$0xff] %v7414_v44 }
 0x6d8   : > { %v7416_v26 = vpop.permute.xlu1 %2798 }
 0x6d9   : > { %11200 = vst [vmem:[#allocation351_spill] sm:$0xff] %v7416_v26 }
 0x6dc   : > { %v7418_v39 = vpop.permute.xlu1 %2802 }
 0x6dd   : > { %11201 = vst [vmem:[#allocation352_spill] sm:$0xff] %v7418_v39 }
 0x6e0   : > { %v7420_v55 = vpop.permute.xlu1 %2806 }
 0x6e1   : > { %11202 = vst [vmem:[#allocation353_spill] sm:$0xff] %v7420_v55 }
 0x6e4   : > { %v7422_v11 = vpop.permute.xlu1 %2810 }
 0x6e5   : > { %11203 = vst [vmem:[#allocation354_spill] sm:$0xff] %v7422_v11 }
 0x6e8   : > { %v7424_v62 = vpop.permute.xlu1 %2814 }
 0x6e9   : > { %11204 = vst [vmem:[#allocation355_spill] sm:$0xff] %v7424_v62 }
 0x6ec   : > { %v7426_v9 = vpop.permute.xlu1 %2818 }
 0x6ed   : > { %11205 = vst [vmem:[#allocation356_spill] sm:$0xff] %v7426_v9  ;;  %v7442_v9 = vpop.permute.xlu0 %2756 }
 0x6ee   : > { %11209 = vst [vmem:[#allocation360_spill] sm:$0xff] %v7442_v9 }
 0x6f0   : > { %v7428_v14 = vpop.permute.xlu1 %2822 }
 0x6f1   : > { %11206 = vst [vmem:[#allocation357_spill] sm:$0xff] %v7428_v14  ;;  %v7454_v62 = vpop.permute.xlu0 %2760 }
 0x6f2   : > { %11210 = vst [vmem:[#allocation361_spill] sm:$0xff] %v7454_v62 }
 0x6f4   : > { %v7430_v15 = vpop.permute.xlu1 %2826 }
 0x6f5   : > { %11207 = vst [vmem:[#allocation358_spill] sm:$0xff] %v7430_v15 }
 0x705   : > { %v7434_v45 = vpop.permute.xlu1 %2929 }
 0x706   : > { %v2933_v44 = vmul.f32 %v7434_v45, %v5722_v19  ;;  %v2932_v55 = vmul.f32 %v7434_v45, %v5706_v12  ;;  %v2935_v15 = vmul.f32 %v7434_v45, %v5734_v3  ;;  %v2934_v27 = vmul.f32 %v7434_v45, %v5703_v10 }
 0x707   : > { %v2937_v14 = vmul.f32 %v7434_v45, %v5747_v41  ;;  %v2941_v9 = vmul.f32 %v7434_v45, %v5771_v53  ;;  %v2971_v11 = vmul.f32 %v7434_v45, %v5955_v54 }
 0x708   : > { %3014 = vrot.lane.b32.xlu1 %v2933_v44, %s5287_s4  ;;  %3012 = vrot.lane.b32.xlu0 %v2932_v55, %s5287_s4  ;;  %v2936_v44 = vmul.f32 %v7434_v45, %v5719_v18  ;;  %v2939_v55 = vmul.f32 %v7434_v45, %v5759_v20 }
 0x70c   : > { %3018 = vrot.lane.b32.xlu1 %v2935_v15, %s5287_s4  ;;  %3016 = vrot.lane.b32.xlu0 %v2934_v27, %s5287_s4  ;;  %v2938_v15 = vmul.f32 %v7434_v45, %v5731_v21  ;;  %v7464_v27 = vpop.permute.xlu0 %2764 }
 0x70d   : > { %11211 = vst [vmem:[#allocation362_spill] sm:$0xff] %v7464_v27  ;;  %v2947_v27 = vmul.f32 %v7434_v45, %v5811_v46 }
 0x710   : > { %3022 = vrot.lane.b32.xlu1 %v2937_v14, %s5287_s4  ;;  %3020 = vrot.lane.b32.xlu0 %v2936_v44, %s5287_s4  ;;  %v2940_v14 = vmul.f32 %v7434_v45, %v5744_v42  ;;  %v2943_v44 = vmul.f32 %v7434_v45, %v5784_v49  ;;  %v7476_v62 = vpop.permute.xlu0 %2768 }
 0x711   : > { %11212 = vst [vmem:[#allocation363_spill] sm:$0xff] %v7476_v62 }
 0x714   : > { %3026 = vrot.lane.b32.xlu1 %v2939_v55, %s5287_s4  ;;  %3024 = vrot.lane.b32.xlu0 %v2938_v15, %s5287_s4  ;;  %v2942_v55 = vmul.f32 %v7434_v45, %v5756_v7  ;;  %v2945_v15 = vmul.f32 %v7434_v45, %v5798_v48 }
 0x718   : > { %3030 = vrot.lane.b32.xlu1 %v2941_v9, %s5287_s4  ;;  %3028 = vrot.lane.b32.xlu0 %v2940_v14, %s5287_s4  ;;  %v2944_v9 = vmul.f32 %v7434_v45, %v5768_v40  ;;  %v7486_v14 = vpop.permute.xlu0 %2772 }
 0x719   : > { %11213 = vst [vmem:[#allocation364_spill] sm:$0xff] %v7486_v14  ;;  %v2953_v14 = vmul.f32 %v7434_v45, %v5849_v33 }
 0x71c   : > { %3034 = vrot.lane.b32.xlu1 %v2943_v44, %s5287_s4  ;;  %3032 = vrot.lane.b32.xlu0 %v2942_v55, %s5287_s4  ;;  %v2946_v44 = vmul.f32 %v7434_v45, %v5781_v50  ;;  %v2949_v55 = vmul.f32 %v7434_v45, %v5823_v36  ;;  %v7498_v62 = vpop.permute.xlu0 %2776 }
 0x71d   : > { %11214 = vst [vmem:[#allocation365_spill] sm:$0xff] %v7498_v62 }
 0x720   : > { %3038 = vrot.lane.b32.xlu1 %v2945_v15, %s5287_s4  ;;  %3036 = vrot.lane.b32.xlu0 %v2944_v9, %s5287_s4  ;;  %v2948_v15 = vmul.f32 %v7434_v45, %v5795_v17  ;;  %v2951_v9 = vmul.f32 %v7434_v45, %v5836_v34 }
 0x724   : > { %3042 = vrot.lane.b32.xlu1 %v2947_v27, %s5287_s4  ;;  %3040 = vrot.lane.b32.xlu0 %v2946_v44, %s5287_s4  ;;  %v2950_v27 = vmul.f32 %v7434_v45, %v5808_v47  ;;  %v7508_v44 = vpop.permute.xlu0 %2780 }
 0x725   : > { %11215 = vst [vmem:[#allocation366_spill] sm:$0xff] %v7508_v44  ;;  %v2959_v44 = vmul.f32 %v7434_v45, %v5886_v2 }
 0x728   : > { %3046 = vrot.lane.b32.xlu1 %v2949_v55, %s5287_s4  ;;  %3044 = vrot.lane.b32.xlu0 %v2948_v15, %s5287_s4  ;;  %v2952_v55 = vmul.f32 %v7434_v45, %v5820_v37  ;;  %v2955_v15 = vmul.f32 %v7434_v45, %v5861_v32  ;;  %v7520_v62 = vpop.permute.xlu0 %2784 }
 0x729   : > { %11216 = vst [vmem:[#allocation367_spill] sm:$0xff] %v7520_v62 }
 0x72c   : > { %3050 = vrot.lane.b32.xlu1 %v2951_v9, %s5287_s4  ;;  %3048 = vrot.lane.b32.xlu0 %v2950_v27, %s5287_s4  ;;  %v2954_v9 = vmul.f32 %v7434_v45, %v5833_v35  ;;  %v2957_v27 = vmul.f32 %v7434_v45, %v5874_v1 }
 0x730   : > { %3054 = vrot.lane.b32.xlu1 %v2953_v14, %s5287_s4  ;;  %3052 = vrot.lane.b32.xlu0 %v2952_v55, %s5287_s4  ;;  %v2956_v14 = vmul.f32 %v7434_v45, %v5846_v16  ;;  %v7530_v55 = vpop.permute.xlu0 %2788 }
 0x731   : > { %11217 = vst [vmem:[#allocation368_spill] sm:$0xff] %v7530_v55  ;;  %v2965_v55 = vmul.f32 %v7434_v45, %v5923_v31 }
 0x734   : > { %3058 = vrot.lane.b32.xlu1 %v2955_v15, %s5287_s4  ;;  %3056 = vrot.lane.b32.xlu0 %v2954_v9, %s5287_s4  ;;  %v2958_v15 = vmul.f32 %v7434_v45, %v5858_v4  ;;  %v2961_v9 = vmul.f32 %v7434_v45, %v5898_v63  ;;  %v7542_v62 = vpop.permute.xlu0 %2792 }
 0x735   : > { %11218 = vst [vmem:[#allocation369_spill] sm:$0xff] %v7542_v62 }
 0x738   : > { %3062 = vrot.lane.b32.xlu1 %v2957_v27, %s5287_s4  ;;  %3060 = vrot.lane.b32.xlu0 %v2956_v14, %s5287_s4  ;;  %v2960_v27 = vmul.f32 %v7434_v45, %v5871_v30  ;;  %v2963_v14 = vmul.f32 %v7434_v45, %v5911_v60 }
 0x73c   : > { %3066 = vrot.lane.b32.xlu1 %v2959_v44, %s5287_s4  ;;  %3064 = vrot.lane.b32.xlu0 %v2958_v15, %s5287_s4  ;;  %v2962_v44 = vmul.f32 %v7434_v45, %v5883_v6  ;;  %v7552_v15 = vpop.permute.xlu0 %2796 }
 0x73d   : > { %11219 = vst [vmem:[#allocation370_spill] sm:$0xff] %v7552_v15 }
 0x740   : > { %3070 = vrot.lane.b32.xlu1 %v2961_v9, %s5287_s4  ;;  %3068 = vrot.lane.b32.xlu0 %v2960_v27, %s5287_s4  ;;  %v2964_v9 = vmul.f32 %v7434_v45, %v5895_v0  ;;  %v2967_v27 = vmul.f32 %v7434_v45, %v5935_v58  ;;  %v7564_v62 = vpop.permute.xlu0 %2800 }
 0x741   : > { %11220 = vst [vmem:[#allocation371_spill] sm:$0xff] %v7564_v62 }
 0x744   : > { %3074 = vrot.lane.b32.xlu1 %v2963_v14, %s5287_s4  ;;  %3072 = vrot.lane.b32.xlu0 %v2962_v44, %s5287_s4  ;;  %v2966_v14 = vmul.f32 %v7434_v45, %v5908_v61  ;;  %v2969_v44 = vmul.f32 %v7434_v45, %v5944_v52 }
 0x748   : > { %3078 = vrot.lane.b32.xlu1 %v2965_v55, %s5287_s4  ;;  %3076 = vrot.lane.b32.xlu0 %v2964_v9, %s5287_s4  ;;  %v2968_v55 = vmul.f32 %v7434_v45, %v5920_v5  ;;  %v7574_v9 = vpop.permute.xlu0 %2804 }
 0x749   : > { %11221 = vst [vmem:[#allocation372_spill] sm:$0xff] %v7574_v9 }
 0x74c   : > { %3082 = vrot.lane.b32.xlu1 %v2967_v27, %s5287_s4  ;;  %3080 = vrot.lane.b32.xlu0 %v2966_v14, %s5287_s4  ;;  %v2970_v27 = vmul.f32 %v7434_v45, %v5932_v59  ;;  %v265_v14 = vld [vmem:[%s10446_s0 + $0x50] sm:$0xff]  ;;  %v7585_v62 = vpop.permute.xlu0 %2808 }
 0x74d   : > { %11222 = vst [vmem:[#allocation373_spill] sm:$0xff] %v7585_v62 }
 0x750   : > { %3086 = vrot.lane.b32.xlu1 %v2969_v44, %s5287_s4  ;;  %3084 = vrot.lane.b32.xlu0 %v2968_v55, %s5287_s4  ;;  %v7587_v44 = vpop.permute.xlu0 %2812 }
 0x751   : > { %11223 = vst [vmem:[#allocation374_spill] sm:$0xff] %v7587_v44 }
 0x754   : > { %3090 = vrot.lane.b32.xlu1 %v2971_v11, %s5287_s4  ;;  %3088 = vrot.lane.b32.xlu0 %v2970_v27, %s5287_s4  ;;  %v7589_v55 = vpop.permute.xlu0 %2816 }
 0x755   : > { %11224 = vst [vmem:[#allocation375_spill] sm:$0xff] %v7589_v55 }
 0x758   : > { %3191 = vperm.xlu0 %5077, %v265_v14   ;;  %v7591_v9 = vpop.permute.xlu0 %2820 }
 0x759   : > { %11225 = vst [vmem:[#allocation376_spill] sm:$0xff] %v7591_v9 }
 0x75c   : > { %v7593_v39 = vpop.permute.xlu0 %2824 }
 0x75d   : > { %11226 = vst [vmem:[#allocation377_spill] sm:$0xff] %v7593_v39 }
 0x760   : > { %v7595_v45 = vpop.permute.xlu0 %2828 }
 0x761   : > { %11227 = vst [vmem:[#allocation378_spill] sm:$0xff] %v7595_v45 }
 0x77a   : > { %v7597_v11 = vpop.permute.xlu0 %3012 }
 0x77b   : > { %11228 = vst [vmem:[#allocation379_spill] sm:$0xff] %v7597_v11 }
 0x77e   : > { %v7599_v27 = vpop.permute.xlu0 %3016 }
 0x77f   : > { %11229 = vst [vmem:[#allocation380_spill] sm:$0xff] %v7599_v27 }
 0x782   : > { %v7601_v15 = vpop.permute.xlu0 %3020 }
 0x783   : > { %11230 = vst [vmem:[#allocation381_spill] sm:$0xff] %v7601_v15 }
 0x786   : > { %v7603_v26 = vpop.permute.xlu0 %3024 }
 0x787   : > { %11231 = vst [vmem:[#allocation382_spill] sm:$0xff] %v7603_v26 }
 0x78a   : > { %v7605_v62 = vpop.permute.xlu0 %3028 }
 0x78b   : > { %11232 = vst [vmem:[#allocation383_spill] sm:$0xff] %v7605_v62 }
 0x78e   : > { %v7607_v14 = vpop.permute.xlu0 %3032 }
 0x78f   : > { %11233 = vst [vmem:[#allocation384_spill] sm:$0xff] %v7607_v14 }
 0x792   : > { %v7609_v44 = vpop.permute.xlu0 %3036 }
 0x793   : > { %11234 = vst [vmem:[#allocation385_spill] sm:$0xff] %v7609_v44 }
 0x796   : > { %v7611_v55 = vpop.permute.xlu0 %3040 }
 0x797   : > { %11235 = vst [vmem:[#allocation386_spill] sm:$0xff] %v7611_v55 }
 0x79a   : > { %v7613_v9 = vpop.permute.xlu0 %3044 }
 0x79b   : > { %11236 = vst [vmem:[#allocation387_spill] sm:$0xff] %v7613_v9 }
 0x79e   : > { %v7615_v39 = vpop.permute.xlu0 %3048 }
 0x79f   : > { %11237 = vst [vmem:[#allocation388_spill] sm:$0xff] %v7615_v39  ;;  %v7637_v39 = vpop.permute.xlu1 %3014 }
 0x7a0   : > { %11248 = vst [vmem:[#allocation399_spill] sm:$0xff] %v7637_v39 }
 0x7a2   : > { %v7617_v45 = vpop.permute.xlu0 %3052 }
 0x7a3   : > { %11238 = vst [vmem:[#allocation389_spill] sm:$0xff] %v7617_v45 }
 0x7a6   : > { %v7619_v11 = vpop.permute.xlu0 %3056 }
 0x7a7   : > { %11239 = vst [vmem:[#allocation390_spill] sm:$0xff] %v7619_v11 }
 0x7aa   : > { %v7621_v27 = vpop.permute.xlu0 %3060 }
 0x7ab   : > { %11240 = vst [vmem:[#allocation391_spill] sm:$0xff] %v7621_v27 }
 0x7ae   : > { %v7623_v15 = vpop.permute.xlu0 %3064 }
 0x7af   : > { %11241 = vst [vmem:[#allocation392_spill] sm:$0xff] %v7623_v15 }
 0x7b2   : > { %v7625_v26 = vpop.permute.xlu0 %3068 }
 0x7b3   : > { %11242 = vst [vmem:[#allocation393_spill] sm:$0xff] %v7625_v26 }
 0x7b6   : > { %v7627_v62 = vpop.permute.xlu0 %3072 }
 0x7b7   : > { %11243 = vst [vmem:[#allocation394_spill] sm:$0xff] %v7627_v62 }
 0x7ba   : > { %v7629_v14 = vpop.permute.xlu0 %3076 }
 0x7bb   : > { %11244 = vst [vmem:[#allocation395_spill] sm:$0xff] %v7629_v14 }
 0x7be   : > { %v7631_v44 = vpop.permute.xlu0 %3080 }
 0x7bf   : > { %11245 = vst [vmem:[#allocation396_spill] sm:$0xff] %v7631_v44  ;;  %v7647_v44 = vpop.permute.xlu1 %3018 }
 0x7c0   : > { %11249 = vst [vmem:[#allocation400_spill] sm:$0xff] %v7647_v44 }
 0x7c2   : > { %v7633_v55 = vpop.permute.xlu0 %3084 }
 0x7c3   : > { %11246 = vst [vmem:[#allocation397_spill] sm:$0xff] %v7633_v55  ;;  %v7659_v14 = vpop.permute.xlu1 %3022 }
 0x7c4   : > { %11250 = vst [vmem:[#allocation401_spill] sm:$0xff] %v7659_v14 }
 0x7c6   : > { %v7635_v9 = vpop.permute.xlu0 %3088 }
 0x7c7   : > { %11247 = vst [vmem:[#allocation398_spill] sm:$0xff] %v7635_v9 }
 0x7d7   : > { %v7639_v45 = vpop.permute.xlu0 %3191 }
 0x7d8   : > { %v3195_v11 = vmul.f32 %v7639_v45, %v5722_v19  ;;  %v3194_v26 = vmul.f32 %v7639_v45, %v5706_v12  ;;  %v3197_v9 = vmul.f32 %v7639_v45, %v5734_v3  ;;  %v3196_v39 = vmul.f32 %v7639_v45, %v5703_v10 }
 0x7d9   : > { %v3199_v55 = vmul.f32 %v7639_v45, %v5747_v41  ;;  %v3203_v44 = vmul.f32 %v7639_v45, %v5771_v53  ;;  %v3233_v62 = vmul.f32 %v7639_v45, %v5955_v54 }
 0x7da   : > { %3276 = vrot.lane.b32.xlu0 %v3195_v11, %s5288_s26  ;;  %3274 = vrot.lane.b32.xlu1 %v3194_v26, %s5288_s26  ;;  %v3198_v11 = vmul.f32 %v7639_v45, %v5719_v18  ;;  %v3201_v26 = vmul.f32 %v7639_v45, %v5759_v20 }
 0x7de   : > { %3280 = vrot.lane.b32.xlu0 %v3197_v9, %s5288_s26  ;;  %3278 = vrot.lane.b32.xlu1 %v3196_v39, %s5288_s26  ;;  %v3200_v9 = vmul.f32 %v7639_v45, %v5731_v21  ;;  %v7669_v39 = vpop.permute.xlu1 %3026 }
 0x7df   : > { %11251 = vst [vmem:[#allocation402_spill] sm:$0xff] %v7669_v39  ;;  %v3209_v39 = vmul.f32 %v7639_v45, %v5811_v46 }
 0x7e2   : > { %3284 = vrot.lane.b32.xlu0 %v3199_v55, %s5288_s26  ;;  %3282 = vrot.lane.b32.xlu1 %v3198_v11, %s5288_s26  ;;  %v3202_v55 = vmul.f32 %v7639_v45, %v5744_v42  ;;  %v3205_v11 = vmul.f32 %v7639_v45, %v5784_v49  ;;  %v7681_v14 = vpop.permute.xlu1 %3030 }
 0x7e3   : > { %11252 = vst [vmem:[#allocation403_spill] sm:$0xff] %v7681_v14 }
 0x7e6   : > { %3288 = vrot.lane.b32.xlu0 %v3201_v26, %s5288_s26  ;;  %3286 = vrot.lane.b32.xlu1 %v3200_v9, %s5288_s26  ;;  %v3204_v26 = vmul.f32 %v7639_v45, %v5756_v7  ;;  %v3207_v9 = vmul.f32 %v7639_v45, %v5798_v48 }
 0x7ea   : > { %3292 = vrot.lane.b32.xlu0 %v3203_v44, %s5288_s26  ;;  %3290 = vrot.lane.b32.xlu1 %v3202_v55, %s5288_s26  ;;  %v3206_v44 = vmul.f32 %v7639_v45, %v5768_v40  ;;  %v7691_v55 = vpop.permute.xlu1 %3034 }
 0x7eb   : > { %11253 = vst [vmem:[#allocation404_spill] sm:$0xff] %v7691_v55  ;;  %v3215_v55 = vmul.f32 %v7639_v45, %v5849_v33 }
 0x7ee   : > { %3296 = vrot.lane.b32.xlu0 %v3205_v11, %s5288_s26  ;;  %3294 = vrot.lane.b32.xlu1 %v3204_v26, %s5288_s26  ;;  %v3208_v11 = vmul.f32 %v7639_v45, %v5781_v50  ;;  %v3211_v26 = vmul.f32 %v7639_v45, %v5823_v36  ;;  %v7703_v14 = vpop.permute.xlu1 %3038 }
 0x7ef   : > { %11254 = vst [vmem:[#allocation405_spill] sm:$0xff] %v7703_v14 }
 0x7f2   : > { %3300 = vrot.lane.b32.xlu0 %v3207_v9, %s5288_s26  ;;  %3298 = vrot.lane.b32.xlu1 %v3206_v44, %s5288_s26  ;;  %v3210_v9 = vmul.f32 %v7639_v45, %v5795_v17  ;;  %v3213_v44 = vmul.f32 %v7639_v45, %v5836_v34 }
 0x7f6   : > { %3304 = vrot.lane.b32.xlu0 %v3209_v39, %s5288_s26  ;;  %3302 = vrot.lane.b32.xlu1 %v3208_v11, %s5288_s26  ;;  %v3212_v39 = vmul.f32 %v7639_v45, %v5808_v47  ;;  %v7713_v11 = vpop.permute.xlu1 %3042 }
 0x7f7   : > { %11255 = vst [vmem:[#allocation406_spill] sm:$0xff] %v7713_v11  ;;  %v3221_v11 = vmul.f32 %v7639_v45, %v5886_v2 }
 0x7fa   : > { %3308 = vrot.lane.b32.xlu0 %v3211_v26, %s5288_s26  ;;  %3306 = vrot.lane.b32.xlu1 %v3210_v9, %s5288_s26  ;;  %v3214_v26 = vmul.f32 %v7639_v45, %v5820_v37  ;;  %v3217_v9 = vmul.f32 %v7639_v45, %v5861_v32  ;;  %v7725_v14 = vpop.permute.xlu1 %3046 }
 0x7fb   : > { %11256 = vst [vmem:[#allocation407_spill] sm:$0xff] %v7725_v14 }
 0x7fe   : > { %3312 = vrot.lane.b32.xlu0 %v3213_v44, %s5288_s26  ;;  %3310 = vrot.lane.b32.xlu1 %v3212_v39, %s5288_s26  ;;  %v3216_v44 = vmul.f32 %v7639_v45, %v5833_v35  ;;  %v3219_v39 = vmul.f32 %v7639_v45, %v5874_v1 }
 0x802   : > { %3316 = vrot.lane.b32.xlu0 %v3215_v55, %s5288_s26  ;;  %3314 = vrot.lane.b32.xlu1 %v3214_v26, %s5288_s26  ;;  %v3218_v55 = vmul.f32 %v7639_v45, %v5846_v16  ;;  %v7735_v26 = vpop.permute.xlu1 %3050 }
 0x803   : > { %11257 = vst [vmem:[#allocation408_spill] sm:$0xff] %v7735_v26  ;;  %v3227_v26 = vmul.f32 %v7639_v45, %v5923_v31 }
 0x806   : > { %3320 = vrot.lane.b32.xlu0 %v3217_v9, %s5288_s26  ;;  %3318 = vrot.lane.b32.xlu1 %v3216_v44, %s5288_s26  ;;  %v3220_v9 = vmul.f32 %v7639_v45, %v5858_v4  ;;  %v3223_v44 = vmul.f32 %v7639_v45, %v5898_v63  ;;  %v7747_v14 = vpop.permute.xlu1 %3054 }
 0x807   : > { %11258 = vst [vmem:[#allocation409_spill] sm:$0xff] %v7747_v14 }
 0x80a   : > { %3324 = vrot.lane.b32.xlu0 %v3219_v39, %s5288_s26  ;;  %3322 = vrot.lane.b32.xlu1 %v3218_v55, %s5288_s26  ;;  %v3222_v39 = vmul.f32 %v7639_v45, %v5871_v30  ;;  %v3225_v55 = vmul.f32 %v7639_v45, %v5911_v60 }
 0x80e   : > { %3328 = vrot.lane.b32.xlu0 %v3221_v11, %s5288_s26  ;;  %3326 = vrot.lane.b32.xlu1 %v3220_v9, %s5288_s26  ;;  %v3224_v11 = vmul.f32 %v7639_v45, %v5883_v6  ;;  %v7757_v9 = vpop.permute.xlu1 %3058 }
 0x80f   : > { %11259 = vst [vmem:[#allocation410_spill] sm:$0xff] %v7757_v9 }
 0x812   : > { %3332 = vrot.lane.b32.xlu0 %v3223_v44, %s5288_s26  ;;  %3330 = vrot.lane.b32.xlu1 %v3222_v39, %s5288_s26  ;;  %v3226_v44 = vmul.f32 %v7639_v45, %v5895_v0  ;;  %v3229_v39 = vmul.f32 %v7639_v45, %v5935_v58  ;;  %v7769_v14 = vpop.permute.xlu1 %3062 }
 0x813   : > { %11260 = vst [vmem:[#allocation411_spill] sm:$0xff] %v7769_v14 }
 0x816   : > { %3336 = vrot.lane.b32.xlu0 %v3225_v55, %s5288_s26  ;;  %3334 = vrot.lane.b32.xlu1 %v3224_v11, %s5288_s26  ;;  %v3228_v55 = vmul.f32 %v7639_v45, %v5908_v61  ;;  %v3231_v11 = vmul.f32 %v7639_v45, %v5944_v52 }
 0x81a   : > { %3340 = vrot.lane.b32.xlu0 %v3227_v26, %s5288_s26  ;;  %3338 = vrot.lane.b32.xlu1 %v3226_v44, %s5288_s26  ;;  %v3230_v26 = vmul.f32 %v7639_v45, %v5920_v5  ;;  %v7779_v44 = vpop.permute.xlu1 %3066 }
 0x81b   : > { %11261 = vst [vmem:[#allocation412_spill] sm:$0xff] %v7779_v44 }
 0x81e   : > { %3344 = vrot.lane.b32.xlu0 %v3229_v39, %s5288_s26  ;;  %3342 = vrot.lane.b32.xlu1 %v3228_v55, %s5288_s26  ;;  %v3232_v39 = vmul.f32 %v7639_v45, %v5932_v59  ;;  %v266_v55 = vld [vmem:[%s10446_s0 + $0x58] sm:$0xff]  ;;  %v7790_v14 = vpop.permute.xlu1 %3070 }
 0x81f   : > { %11262 = vst [vmem:[#allocation413_spill] sm:$0xff] %v7790_v14 }
 0x822   : > { %3348 = vrot.lane.b32.xlu0 %v3231_v11, %s5288_s26  ;;  %3346 = vrot.lane.b32.xlu1 %v3230_v26, %s5288_s26  ;;  %v7792_v11 = vpop.permute.xlu1 %3074 }
 0x823   : > { %11263 = vst [vmem:[#allocation414_spill] sm:$0xff] %v7792_v11 }
 0x826   : > { %3352 = vrot.lane.b32.xlu0 %v3233_v62, %s5288_s26  ;;  %3350 = vrot.lane.b32.xlu1 %v3232_v39, %s5288_s26  ;;  %v7794_v26 = vpop.permute.xlu1 %3078 }
 0x827   : > { %11264 = vst [vmem:[#allocation415_spill] sm:$0xff] %v7794_v26 }
 0x82a   : > { %3453 = vperm.xlu1 %5078, %v266_v55   ;;  %v7796_v44 = vpop.permute.xlu1 %3082 }
 0x82b   : > { %11265 = vst [vmem:[#allocation416_spill] sm:$0xff] %v7796_v44 }
 0x82e   : > { %v7798_v15 = vpop.permute.xlu1 %3086 }
 0x82f   : > { %11266 = vst [vmem:[#allocation417_spill] sm:$0xff] %v7798_v15 }
 0x832   : > { %v7800_v45 = vpop.permute.xlu1 %3090 }
 0x833   : > { %11267 = vst [vmem:[#allocation418_spill] sm:$0xff] %v7800_v45 }
 0x84c   : > { %v7802_v62 = vpop.permute.xlu1 %3274 }
 0x84d   : > { %11268 = vst [vmem:[#allocation419_spill] sm:$0xff] %v7802_v62 }
 0x850   : > { %v7804_v39 = vpop.permute.xlu1 %3278 }
 0x851   : > { %11269 = vst [vmem:[#allocation420_spill] sm:$0xff] %v7804_v39 }
 0x854   : > { %v7806_v9 = vpop.permute.xlu1 %3282 }
 0x855   : > { %11270 = vst [vmem:[#allocation421_spill] sm:$0xff] %v7806_v9 }
 0x858   : > { %v7808_v27 = vpop.permute.xlu1 %3286 }
 0x859   : > { %11271 = vst [vmem:[#allocation422_spill] sm:$0xff] %v7808_v27 }
 0x85c   : > { %v7810_v14 = vpop.permute.xlu1 %3290 }
 0x85d   : > { %11272 = vst [vmem:[#allocation423_spill] sm:$0xff] %v7810_v14 }
 0x860   : > { %v7812_v55 = vpop.permute.xlu1 %3294 }
 0x861   : > { %11273 = vst [vmem:[#allocation424_spill] sm:$0xff] %v7812_v55 }
 0x864   : > { %v7814_v11 = vpop.permute.xlu1 %3298 }
 0x865   : > { %11274 = vst [vmem:[#allocation425_spill] sm:$0xff] %v7814_v11 }
 0x868   : > { %v7816_v26 = vpop.permute.xlu1 %3302 }
 0x869   : > { %11275 = vst [vmem:[#allocation426_spill] sm:$0xff] %v7816_v26 }
 0x86c   : > { %v7818_v44 = vpop.permute.xlu1 %3306 }
 0x86d   : > { %11276 = vst [vmem:[#allocation427_spill] sm:$0xff] %v7818_v44 }
 0x870   : > { %v7820_v15 = vpop.permute.xlu1 %3310 }
 0x871   : > { %11277 = vst [vmem:[#allocation428_spill] sm:$0xff] %v7820_v15  ;;  %v7842_v15 = vpop.permute.xlu0 %3276 }
 0x872   : > { %11288 = vst [vmem:[#allocation439_spill] sm:$0xff] %v7842_v15 }
 0x874   : > { %v7822_v45 = vpop.permute.xlu1 %3314 }
 0x875   : > { %11278 = vst [vmem:[#allocation429_spill] sm:$0xff] %v7822_v45 }
 0x878   : > { %v7824_v62 = vpop.permute.xlu1 %3318 }
 0x879   : > { %11279 = vst [vmem:[#allocation430_spill] sm:$0xff] %v7824_v62 }
 0x87c   : > { %v7826_v39 = vpop.permute.xlu1 %3322 }
 0x87d   : > { %11280 = vst [vmem:[#allocation431_spill] sm:$0xff] %v7826_v39 }
 0x880   : > { %v7828_v9 = vpop.permute.xlu1 %3326 }
 0x881   : > { %11281 = vst [vmem:[#allocation432_spill] sm:$0xff] %v7828_v9 }
 0x884   : > { %v7830_v27 = vpop.permute.xlu1 %3330 }
 0x885   : > { %11282 = vst [vmem:[#allocation433_spill] sm:$0xff] %v7830_v27 }
 0x888   : > { %v7832_v14 = vpop.permute.xlu1 %3334 }
 0x889   : > { %11283 = vst [vmem:[#allocation434_spill] sm:$0xff] %v7832_v14 }
 0x88c   : > { %v7834_v55 = vpop.permute.xlu1 %3338 }
 0x88d   : > { %11284 = vst [vmem:[#allocation435_spill] sm:$0xff] %v7834_v55 }
 0x890   : > { %v7836_v11 = vpop.permute.xlu1 %3342 }
 0x891   : > { %11285 = vst [vmem:[#allocation436_spill] sm:$0xff] %v7836_v11  ;;  %v7852_v11 = vpop.permute.xlu0 %3280 }
 0x892   : > { %11289 = vst [vmem:[#allocation440_spill] sm:$0xff] %v7852_v11 }
 0x894   : > { %v7838_v26 = vpop.permute.xlu1 %3346 }
 0x895   : > { %11286 = vst [vmem:[#allocation437_spill] sm:$0xff] %v7838_v26  ;;  %v7864_v55 = vpop.permute.xlu0 %3284 }
 0x896   : > { %11290 = vst [vmem:[#allocation441_spill] sm:$0xff] %v7864_v55 }
 0x898   : > { %v7840_v44 = vpop.permute.xlu1 %3350 }
 0x899   : > { %11287 = vst [vmem:[#allocation438_spill] sm:$0xff] %v7840_v44 }
 0x8a9   : > { %v7844_v45 = vpop.permute.xlu1 %3453 }
 0x8aa   : > { %v3457_v62 = vmul.f32 %v7844_v45, %v5722_v19  ;;  %v3456_v27 = vmul.f32 %v7844_v45, %v5706_v12  ;;  %v3459_v44 = vmul.f32 %v7844_v45, %v5734_v3  ;;  %v3458_v15 = vmul.f32 %v7844_v45, %v5703_v10 }
 0x8ab   : > { %v3461_v26 = vmul.f32 %v7844_v45, %v5747_v41  ;;  %v3465_v11 = vmul.f32 %v7844_v45, %v5771_v53  ;;  %v3495_v14 = vmul.f32 %v7844_v45, %v5955_v54 }
 0x8ac   : > { %3538 = vrot.lane.b32.xlu1 %v3457_v62, %s5289_s7  ;;  %3536 = vrot.lane.b32.xlu0 %v3456_v27, %s5289_s7  ;;  %v3460_v62 = vmul.f32 %v7844_v45, %v5719_v18  ;;  %v3463_v27 = vmul.f32 %v7844_v45, %v5759_v20 }
 0x8b0   : > { %3542 = vrot.lane.b32.xlu1 %v3459_v44, %s5289_s7  ;;  %3540 = vrot.lane.b32.xlu0 %v3458_v15, %s5289_s7  ;;  %v3462_v44 = vmul.f32 %v7844_v45, %v5731_v21  ;;  %v7874_v15 = vpop.permute.xlu0 %3288 }
 0x8b1   : > { %11291 = vst [vmem:[#allocation442_spill] sm:$0xff] %v7874_v15  ;;  %v3471_v15 = vmul.f32 %v7844_v45, %v5811_v46 }
 0x8b4   : > { %3546 = vrot.lane.b32.xlu1 %v3461_v26, %s5289_s7  ;;  %3544 = vrot.lane.b32.xlu0 %v3460_v62, %s5289_s7  ;;  %v3464_v26 = vmul.f32 %v7844_v45, %v5744_v42  ;;  %v3467_v62 = vmul.f32 %v7844_v45, %v5784_v49  ;;  %v7886_v55 = vpop.permute.xlu0 %3292 }
 0x8b5   : > { %11292 = vst [vmem:[#allocation443_spill] sm:$0xff] %v7886_v55 }
 0x8b8   : > { %3550 = vrot.lane.b32.xlu1 %v3463_v27, %s5289_s7  ;;  %3548 = vrot.lane.b32.xlu0 %v3462_v44, %s5289_s7  ;;  %v3466_v27 = vmul.f32 %v7844_v45, %v5756_v7  ;;  %v3469_v44 = vmul.f32 %v7844_v45, %v5798_v48 }
 0x8bc   : > { %3554 = vrot.lane.b32.xlu1 %v3465_v11, %s5289_s7  ;;  %3552 = vrot.lane.b32.xlu0 %v3464_v26, %s5289_s7  ;;  %v3468_v11 = vmul.f32 %v7844_v45, %v5768_v40  ;;  %v7896_v26 = vpop.permute.xlu0 %3296 }
 0x8bd   : > { %11293 = vst [vmem:[#allocation444_spill] sm:$0xff] %v7896_v26  ;;  %v3477_v26 = vmul.f32 %v7844_v45, %v5849_v33 }
 0x8c0   : > { %3558 = vrot.lane.b32.xlu1 %v3467_v62, %s5289_s7  ;;  %3556 = vrot.lane.b32.xlu0 %v3466_v27, %s5289_s7  ;;  %v3470_v62 = vmul.f32 %v7844_v45, %v5781_v50  ;;  %v3473_v27 = vmul.f32 %v7844_v45, %v5823_v36  ;;  %v7908_v55 = vpop.permute.xlu0 %3300 }
 0x8c1   : > { %11294 = vst [vmem:[#allocation445_spill] sm:$0xff] %v7908_v55 }
 0x8c4   : > { %3562 = vrot.lane.b32.xlu1 %v3469_v44, %s5289_s7  ;;  %3560 = vrot.lane.b32.xlu0 %v3468_v11, %s5289_s7  ;;  %v3472_v44 = vmul.f32 %v7844_v45, %v5795_v17  ;;  %v3475_v11 = vmul.f32 %v7844_v45, %v5836_v34 }
 0x8c8   : > { %3566 = vrot.lane.b32.xlu1 %v3471_v15, %s5289_s7  ;;  %3564 = vrot.lane.b32.xlu0 %v3470_v62, %s5289_s7  ;;  %v3474_v15 = vmul.f32 %v7844_v45, %v5808_v47  ;;  %v7918_v62 = vpop.permute.xlu0 %3304 }
 0x8c9   : > { %11295 = vst [vmem:[#allocation446_spill] sm:$0xff] %v7918_v62  ;;  %v3483_v62 = vmul.f32 %v7844_v45, %v5886_v2 }
 0x8cc   : > { %3570 = vrot.lane.b32.xlu1 %v3473_v27, %s5289_s7  ;;  %3568 = vrot.lane.b32.xlu0 %v3472_v44, %s5289_s7  ;;  %v3476_v27 = vmul.f32 %v7844_v45, %v5820_v37  ;;  %v3479_v44 = vmul.f32 %v7844_v45, %v5861_v32  ;;  %v7930_v55 = vpop.permute.xlu0 %3308 }
 0x8cd   : > { %11296 = vst [vmem:[#allocation447_spill] sm:$0xff] %v7930_v55 }
 0x8d0   : > { %3574 = vrot.lane.b32.xlu1 %v3475_v11, %s5289_s7  ;;  %3572 = vrot.lane.b32.xlu0 %v3474_v15, %s5289_s7  ;;  %v3478_v11 = vmul.f32 %v7844_v45, %v5833_v35  ;;  %v3481_v15 = vmul.f32 %v7844_v45, %v5874_v1 }
 0x8d4   : > { %3578 = vrot.lane.b32.xlu1 %v3477_v26, %s5289_s7  ;;  %3576 = vrot.lane.b32.xlu0 %v3476_v27, %s5289_s7  ;;  %v3480_v26 = vmul.f32 %v7844_v45, %v5846_v16  ;;  %v7940_v27 = vpop.permute.xlu0 %3312 }
 0x8d5   : > { %11297 = vst [vmem:[#allocation448_spill] sm:$0xff] %v7940_v27  ;;  %v3489_v27 = vmul.f32 %v7844_v45, %v5923_v31 }
 0x8d8   : > { %3582 = vrot.lane.b32.xlu1 %v3479_v44, %s5289_s7  ;;  %3580 = vrot.lane.b32.xlu0 %v3478_v11, %s5289_s7  ;;  %v3482_v44 = vmul.f32 %v7844_v45, %v5858_v4  ;;  %v3485_v11 = vmul.f32 %v7844_v45, %v5898_v63  ;;  %v7952_v55 = vpop.permute.xlu0 %3316 }
 0x8d9   : > { %11298 = vst [vmem:[#allocation449_spill] sm:$0xff] %v7952_v55 }
 0x8dc   : > { %3586 = vrot.lane.b32.xlu1 %v3481_v15, %s5289_s7  ;;  %3584 = vrot.lane.b32.xlu0 %v3480_v26, %s5289_s7  ;;  %v3484_v15 = vmul.f32 %v7844_v45, %v5871_v30  ;;  %v3487_v26 = vmul.f32 %v7844_v45, %v5911_v60 }
 0x8e0   : > { %3590 = vrot.lane.b32.xlu1 %v3483_v62, %s5289_s7  ;;  %3588 = vrot.lane.b32.xlu0 %v3482_v44, %s5289_s7  ;;  %v3486_v62 = vmul.f32 %v7844_v45, %v5883_v6  ;;  %v7962_v44 = vpop.permute.xlu0 %3320 }
 0x8e1   : > { %11299 = vst [vmem:[#allocation450_spill] sm:$0xff] %v7962_v44 }
 0x8e4   : > { %3594 = vrot.lane.b32.xlu1 %v3485_v11, %s5289_s7  ;;  %3592 = vrot.lane.b32.xlu0 %v3484_v15, %s5289_s7  ;;  %v3488_v11 = vmul.f32 %v7844_v45, %v5895_v0  ;;  %v3491_v15 = vmul.f32 %v7844_v45, %v5935_v58  ;;  %v7974_v55 = vpop.permute.xlu0 %3324 }
 0x8e5   : > { %11300 = vst [vmem:[#allocation451_spill] sm:$0xff] %v7974_v55 }
 0x8e8   : > { %3598 = vrot.lane.b32.xlu1 %v3487_v26, %s5289_s7  ;;  %3596 = vrot.lane.b32.xlu0 %v3486_v62, %s5289_s7  ;;  %v3490_v26 = vmul.f32 %v7844_v45, %v5908_v61  ;;  %v3493_v62 = vmul.f32 %v7844_v45, %v5944_v52 }
 0x8ec   : > { %3602 = vrot.lane.b32.xlu1 %v3489_v27, %s5289_s7  ;;  %3600 = vrot.lane.b32.xlu0 %v3488_v11, %s5289_s7  ;;  %v3492_v27 = vmul.f32 %v7844_v45, %v5920_v5  ;;  %v7984_v11 = vpop.permute.xlu0 %3328 }
 0x8ed   : > { %11301 = vst [vmem:[#allocation452_spill] sm:$0xff] %v7984_v11 }
 0x8f0   : > { %3606 = vrot.lane.b32.xlu1 %v3491_v15, %s5289_s7  ;;  %3604 = vrot.lane.b32.xlu0 %v3490_v26, %s5289_s7  ;;  %v3494_v15 = vmul.f32 %v7844_v45, %v5932_v59  ;;  %v267_v26 = vld [vmem:[%s10446_s0 + $0x60] sm:$0xff]  ;;  %v7995_v55 = vpop.permute.xlu0 %3332 }
 0x8f1   : > { %11302 = vst [vmem:[#allocation453_spill] sm:$0xff] %v7995_v55 }
 0x8f4   : > { %3610 = vrot.lane.b32.xlu1 %v3493_v62, %s5289_s7  ;;  %3608 = vrot.lane.b32.xlu0 %v3492_v27, %s5289_s7  ;;  %v7997_v62 = vpop.permute.xlu0 %3336 }
 0x8f5   : > { %11303 = vst [vmem:[#allocation454_spill] sm:$0xff] %v7997_v62 }
 0x8f8   : > { %3614 = vrot.lane.b32.xlu1 %v3495_v14, %s5289_s7  ;;  %3612 = vrot.lane.b32.xlu0 %v3494_v15, %s5289_s7  ;;  %v7999_v27 = vpop.permute.xlu0 %3340  ;;  %s10276_s7 = scalar_lea.vmem [#allocation7], %s4940_s29 }
 0x8f9   : > { %11304 = vst [vmem:[#allocation455_spill] sm:$0xff] %v7999_v27  ;;  %s4810_s18 = sshll.u32 %s10276_s7, 4  ;;  %s10373_s18 = int_to_ptr.vmem [resolvable:$true] %s4810_s18 }
 0x8fa   : > { %s5147_s4 = scalar_lea.vmem %s10373_s18, 4096 }
 0x8fb   : > { %p5148_p9 = scmp.ne.s32.totalorder %s10373_s18, %s5147_s4 }
 0x8fc   : > { %3715 = vperm.xlu0 %5077, %v267_v26   ;;  %v8001_v11 = vpop.permute.xlu0 %3344 }
 0x8fd   : > { %11305 = vst [vmem:[#allocation456_spill] sm:$0xff] %v8001_v11  ;;  %p5149_p6 = pnand %p5148_p9, %p12021_p0 }
 0x8ff   : > { %p5150_p8 = pneg %p5149_p6 }
 0x900   : > { %v8003_v9 = vpop.permute.xlu0 %3348 }
 0x901   : > { %11306 = vst [vmem:[#allocation457_spill] sm:$0xff] %v8003_v9 }
 0x904   : > { %v8005_v45 = vpop.permute.xlu0 %3352 }
 0x905   : > { %11307 = vst [vmem:[#allocation458_spill] sm:$0xff] %v8005_v45 }
 0x91e   : > { %v8007_v14 = vpop.permute.xlu0 %3536 }
 0x91f   : > { %11308 = vst [vmem:[#allocation459_spill] sm:$0xff] %v8007_v14 }
 0x922   : > { %v8009_v15 = vpop.permute.xlu0 %3540 }
 0x923   : > { %11309 = vst [vmem:[#allocation460_spill] sm:$0xff] %v8009_v15 }
 0x926   : > { %v8011_v44 = vpop.permute.xlu0 %3544 }
 0x927   : > { %11310 = vst [vmem:[#allocation461_spill] sm:$0xff] %v8011_v44 }
 0x92a   : > { %v8013_v39 = vpop.permute.xlu0 %3548 }
 0x92b   : > { %11311 = vst [vmem:[#allocation462_spill] sm:$0xff] %v8013_v39 }
 0x92e   : > { %v8015_v55 = vpop.permute.xlu0 %3552 }
 0x92f   : > { %11312 = vst [vmem:[#allocation463_spill] sm:$0xff] %v8015_v55 }
 0x932   : > { %v8017_v26 = vpop.permute.xlu0 %3556 }
 0x933   : > { %11313 = vst [vmem:[#allocation464_spill] sm:$0xff] %v8017_v26 }
 0x936   : > { %v8019_v62 = vpop.permute.xlu0 %3560 }
 0x937   : > { %11314 = vst [vmem:[#allocation465_spill] sm:$0xff] %v8019_v62 }
 0x93a   : > { %v8021_v27 = vpop.permute.xlu0 %3564 }
 0x93b   : > { %11315 = vst [vmem:[#allocation466_spill] sm:$0xff] %v8021_v27 }
 0x93e   : > { %v8023_v11 = vpop.permute.xlu0 %3568 }
 0x93f   : > { %11316 = vst [vmem:[#allocation467_spill] sm:$0xff] %v8023_v11 }
 0x942   : > { %v8025_v9 = vpop.permute.xlu0 %3572 }
 0x943   : > { %11317 = vst [vmem:[#allocation468_spill] sm:$0xff] %v8025_v9  ;;  %v8047_v9 = vpop.permute.xlu1 %3538 }
 0x944   : > { %11328 = vst [vmem:[#allocation479_spill] sm:$0xff] %v8047_v9 }
 0x946   : > { %v8027_v45 = vpop.permute.xlu0 %3576 }
 0x947   : > { %11318 = vst [vmem:[#allocation469_spill] sm:$0xff] %v8027_v45 }
 0x94a   : > { %v8029_v14 = vpop.permute.xlu0 %3580 }
 0x94b   : > { %11319 = vst [vmem:[#allocation470_spill] sm:$0xff] %v8029_v14 }
 0x94e   : > { %v8031_v15 = vpop.permute.xlu0 %3584 }
 0x94f   : > { %11320 = vst [vmem:[#allocation471_spill] sm:$0xff] %v8031_v15 }
 0x952   : > { %v8033_v44 = vpop.permute.xlu0 %3588 }
 0x953   : > { %11321 = vst [vmem:[#allocation472_spill] sm:$0xff] %v8033_v44 }
 0x956   : > { %v8035_v39 = vpop.permute.xlu0 %3592 }
 0x957   : > { %11322 = vst [vmem:[#allocation473_spill] sm:$0xff] %v8035_v39 }
 0x95a   : > { %v8037_v55 = vpop.permute.xlu0 %3596 }
 0x95b   : > { %11323 = vst [vmem:[#allocation474_spill] sm:$0xff] %v8037_v55 }
 0x95e   : > { %v8039_v26 = vpop.permute.xlu0 %3600 }
 0x95f   : > { %11324 = vst [vmem:[#allocation475_spill] sm:$0xff] %v8039_v26 }
 0x962   : > { %v8041_v62 = vpop.permute.xlu0 %3604 }
 0x963   : > { %11325 = vst [vmem:[#allocation476_spill] sm:$0xff] %v8041_v62  ;;  %v8057_v62 = vpop.permute.xlu1 %3542 }
 0x964   : > { %11329 = vst [vmem:[#allocation480_spill] sm:$0xff] %v8057_v62 }
 0x966   : > { %v8043_v27 = vpop.permute.xlu0 %3608 }
 0x967   : > { %11326 = vst [vmem:[#allocation477_spill] sm:$0xff] %v8043_v27  ;;  %v8069_v26 = vpop.permute.xlu1 %3546 }
 0x968   : > { %11330 = vst [vmem:[#allocation481_spill] sm:$0xff] %v8069_v26 }
 0x96a   : > { %v8045_v11 = vpop.permute.xlu0 %3612 }
 0x96b   : > { %11327 = vst [vmem:[#allocation478_spill] sm:$0xff] %v8045_v11 }
 0x97b   : > { %v8049_v45 = vpop.permute.xlu0 %3715 }
 0x97c   : > { %v3719_v14 = vmul.f32 %v8049_v45, %v5722_v19  ;;  %v3718_v39 = vmul.f32 %v8049_v45, %v5706_v12  ;;  %v3721_v11 = vmul.f32 %v8049_v45, %v5734_v3  ;;  %v3720_v9 = vmul.f32 %v8049_v45, %v5703_v10 }
 0x97d   : > { %v3723_v27 = vmul.f32 %v8049_v45, %v5747_v41  ;;  %v3727_v62 = vmul.f32 %v8049_v45, %v5771_v53  ;;  %v3757_v55 = vmul.f32 %v8049_v45, %v5955_v54 }
 0x97e   : > { %3800 = vrot.lane.b32.xlu0 %v3719_v14, %s5290_s12  ;;  %3798 = vrot.lane.b32.xlu1 %v3718_v39, %s5290_s12  ;;  %v3722_v14 = vmul.f32 %v8049_v45, %v5719_v18  ;;  %v3725_v39 = vmul.f32 %v8049_v45, %v5759_v20 }
 0x982   : > { %3804 = vrot.lane.b32.xlu0 %v3721_v11, %s5290_s12  ;;  %3802 = vrot.lane.b32.xlu1 %v3720_v9, %s5290_s12  ;;  %v3724_v11 = vmul.f32 %v8049_v45, %v5731_v21  ;;  %v8079_v9 = vpop.permute.xlu1 %3550 }
 0x983   : > { %11331 = vst [vmem:[#allocation482_spill] sm:$0xff] %v8079_v9  ;;  %v3733_v9 = vmul.f32 %v8049_v45, %v5811_v46 }
 0x986   : > { %3808 = vrot.lane.b32.xlu0 %v3723_v27, %s5290_s12  ;;  %3806 = vrot.lane.b32.xlu1 %v3722_v14, %s5290_s12  ;;  %v3726_v27 = vmul.f32 %v8049_v45, %v5744_v42  ;;  %v3729_v14 = vmul.f32 %v8049_v45, %v5784_v49  ;;  %v8091_v26 = vpop.permute.xlu1 %3554 }
 0x987   : > { %11332 = vst [vmem:[#allocation483_spill] sm:$0xff] %v8091_v26 }
 0x98a   : > { %3812 = vrot.lane.b32.xlu0 %v3725_v39, %s5290_s12  ;;  %3810 = vrot.lane.b32.xlu1 %v3724_v11, %s5290_s12  ;;  %v3728_v39 = vmul.f32 %v8049_v45, %v5756_v7  ;;  %v3731_v11 = vmul.f32 %v8049_v45, %v5798_v48 }
 0x98e   : > { %3816 = vrot.lane.b32.xlu0 %v3727_v62, %s5290_s12  ;;  %3814 = vrot.lane.b32.xlu1 %v3726_v27, %s5290_s12  ;;  %v3730_v62 = vmul.f32 %v8049_v45, %v5768_v40  ;;  %v8101_v27 = vpop.permute.xlu1 %3558 }
 0x98f   : > { %11333 = vst [vmem:[#allocation484_spill] sm:$0xff] %v8101_v27  ;;  %v3739_v27 = vmul.f32 %v8049_v45, %v5849_v33 }
 0x992   : > { %3820 = vrot.lane.b32.xlu0 %v3729_v14, %s5290_s12  ;;  %3818 = vrot.lane.b32.xlu1 %v3728_v39, %s5290_s12  ;;  %v3732_v14 = vmul.f32 %v8049_v45, %v5781_v50  ;;  %v3735_v39 = vmul.f32 %v8049_v45, %v5823_v36  ;;  %v8113_v26 = vpop.permute.xlu1 %3562 }
 0x993   : > { %11334 = vst [vmem:[#allocation485_spill] sm:$0xff] %v8113_v26 }
 0x996   : > { %3824 = vrot.lane.b32.xlu0 %v3731_v11, %s5290_s12  ;;  %3822 = vrot.lane.b32.xlu1 %v3730_v62, %s5290_s12  ;;  %v3734_v11 = vmul.f32 %v8049_v45, %v5795_v17  ;;  %v3737_v62 = vmul.f32 %v8049_v45, %v5836_v34 }
 0x99a   : > { %3828 = vrot.lane.b32.xlu0 %v3733_v9, %s5290_s12  ;;  %3826 = vrot.lane.b32.xlu1 %v3732_v14, %s5290_s12  ;;  %v3736_v9 = vmul.f32 %v8049_v45, %v5808_v47  ;;  %v8123_v14 = vpop.permute.xlu1 %3566 }
 0x99b   : > { %11335 = vst [vmem:[#allocation486_spill] sm:$0xff] %v8123_v14  ;;  %v3745_v14 = vmul.f32 %v8049_v45, %v5886_v2 }
 0x99e   : > { %3832 = vrot.lane.b32.xlu0 %v3735_v39, %s5290_s12  ;;  %3830 = vrot.lane.b32.xlu1 %v3734_v11, %s5290_s12  ;;  %v3738_v39 = vmul.f32 %v8049_v45, %v5820_v37  ;;  %v3741_v11 = vmul.f32 %v8049_v45, %v5861_v32  ;;  %v8135_v26 = vpop.permute.xlu1 %3570 }
 0x99f   : > { %11336 = vst [vmem:[#allocation487_spill] sm:$0xff] %v8135_v26 }
 0x9a2   : > { %3836 = vrot.lane.b32.xlu0 %v3737_v62, %s5290_s12  ;;  %3834 = vrot.lane.b32.xlu1 %v3736_v9, %s5290_s12  ;;  %v3740_v62 = vmul.f32 %v8049_v45, %v5833_v35  ;;  %v3743_v9 = vmul.f32 %v8049_v45, %v5874_v1 }
 0x9a6   : > { %3840 = vrot.lane.b32.xlu0 %v3739_v27, %s5290_s12  ;;  %3838 = vrot.lane.b32.xlu1 %v3738_v39, %s5290_s12  ;;  %v3742_v27 = vmul.f32 %v8049_v45, %v5846_v16  ;;  %v8145_v39 = vpop.permute.xlu1 %3574 }
 0x9a7   : > { %11337 = vst [vmem:[#allocation488_spill] sm:$0xff] %v8145_v39  ;;  %v3751_v39 = vmul.f32 %v8049_v45, %v5923_v31 }
 0x9aa   : > { %3844 = vrot.lane.b32.xlu0 %v3741_v11, %s5290_s12  ;;  %3842 = vrot.lane.b32.xlu1 %v3740_v62, %s5290_s12  ;;  %v3744_v11 = vmul.f32 %v8049_v45, %v5858_v4  ;;  %v3747_v62 = vmul.f32 %v8049_v45, %v5898_v63  ;;  %v8157_v26 = vpop.permute.xlu1 %3578 }
 0x9ab   : > { %11338 = vst [vmem:[#allocation489_spill] sm:$0xff] %v8157_v26 }
 0x9ae   : > { %3848 = vrot.lane.b32.xlu0 %v3743_v9, %s5290_s12  ;;  %3846 = vrot.lane.b32.xlu1 %v3742_v27, %s5290_s12  ;;  %v3746_v9 = vmul.f32 %v8049_v45, %v5871_v30  ;;  %v3749_v27 = vmul.f32 %v8049_v45, %v5911_v60 }
 0x9b2   : > { %3852 = vrot.lane.b32.xlu0 %v3745_v14, %s5290_s12  ;;  %3850 = vrot.lane.b32.xlu1 %v3744_v11, %s5290_s12  ;;  %v3748_v14 = vmul.f32 %v8049_v45, %v5883_v6  ;;  %v8167_v11 = vpop.permute.xlu1 %3582 }
 0x9b3   : > { %11339 = vst [vmem:[#allocation490_spill] sm:$0xff] %v8167_v11 }
 0x9b6   : > { %3856 = vrot.lane.b32.xlu0 %v3747_v62, %s5290_s12  ;;  %3854 = vrot.lane.b32.xlu1 %v3746_v9, %s5290_s12  ;;  %v3750_v62 = vmul.f32 %v8049_v45, %v5895_v0  ;;  %v3753_v9 = vmul.f32 %v8049_v45, %v5935_v58  ;;  %v8179_v26 = vpop.permute.xlu1 %3586 }
 0x9b7   : > { %11340 = vst [vmem:[#allocation491_spill] sm:$0xff] %v8179_v26 }
 0x9ba   : > { %3860 = vrot.lane.b32.xlu0 %v3749_v27, %s5290_s12  ;;  %3858 = vrot.lane.b32.xlu1 %v3748_v14, %s5290_s12  ;;  %v3752_v27 = vmul.f32 %v8049_v45, %v5908_v61  ;;  %v3755_v14 = vmul.f32 %v8049_v45, %v5944_v52 }
 0x9be   : > { %3864 = vrot.lane.b32.xlu0 %v3751_v39, %s5290_s12  ;;  %3862 = vrot.lane.b32.xlu1 %v3750_v62, %s5290_s12  ;;  %v3754_v39 = vmul.f32 %v8049_v45, %v5920_v5  ;;  %v8189_v62 = vpop.permute.xlu1 %3590 }
 0x9bf   : > { %11341 = vst [vmem:[#allocation492_spill] sm:$0xff] %v8189_v62 }
 0x9c2   : > { %3868 = vrot.lane.b32.xlu0 %v3753_v9, %s5290_s12  ;;  %3866 = vrot.lane.b32.xlu1 %v3752_v27, %s5290_s12  ;;  %v3756_v9 = vmul.f32 %v8049_v45, %v5932_v59  ;;  %v268_v27 = vld [vmem:[%s10446_s0 + $0x68] sm:$0xff]  ;;  %v8200_v26 = vpop.permute.xlu1 %3594 }
 0x9c3   : > { %11342 = vst [vmem:[#allocation493_spill] sm:$0xff] %v8200_v26 }
 0x9c6   : > { %3872 = vrot.lane.b32.xlu0 %v3755_v14, %s5290_s12  ;;  %3870 = vrot.lane.b32.xlu1 %v3754_v39, %s5290_s12  ;;  %v8202_v14 = vpop.permute.xlu1 %3598 }
 0x9c7   : > { %11343 = vst [vmem:[#allocation494_spill] sm:$0xff] %v8202_v14 }
 0x9ca   : > { %3876 = vrot.lane.b32.xlu0 %v3757_v55, %s5290_s12  ;;  %3874 = vrot.lane.b32.xlu1 %v3756_v9, %s5290_s12  ;;  %v8204_v39 = vpop.permute.xlu1 %3602  ;;  %s4807_s12 = sadd.s32 %s4948_s9, %s4943_s8 }
 0x9cb   : > { %11344 = vst [vmem:[#allocation495_spill] sm:$0xff] %v8204_v39  ;;  %s4945_s19 = sshll.u32 %s4807_s12, 7 }
 0x9ce   : > { %3977 = vperm.xlu1 %5078, %v268_v27   ;;  %v8206_v62 = vpop.permute.xlu1 %3606 }
 0x9cf   : > { %11345 = vst [vmem:[#allocation496_spill] sm:$0xff] %v8206_v62 }
 0x9d2   : > { %v8208_v44 = vpop.permute.xlu1 %3610 }
 0x9d3   : > { %11346 = vst [vmem:[#allocation497_spill] sm:$0xff] %v8208_v44 }
 0x9d6   : > { %v8210_v45 = vpop.permute.xlu1 %3614 }
 0x9d7   : > { %11347 = vst [vmem:[#allocation498_spill] sm:$0xff] %v8210_v45 }
 0x9f0   : > { %v8212_v55 = vpop.permute.xlu1 %3798 }
 0x9f1   : > { %11348 = vst [vmem:[#allocation499_spill] sm:$0xff] %v8212_v55 }
 0x9f4   : > { %v8214_v9 = vpop.permute.xlu1 %3802 }
 0x9f5   : > { %11349 = vst [vmem:[#allocation500_spill] sm:$0xff] %v8214_v9 }
 0x9f8   : > { %v8216_v11 = vpop.permute.xlu1 %3806 }
 0x9f9   : > { %11350 = vst [vmem:[#allocation501_spill] sm:$0xff] %v8216_v11 }
 0x9fc   : > { %v8218_v15 = vpop.permute.xlu1 %3810 }
 0x9fd   : > { %11351 = vst [vmem:[#allocation502_spill] sm:$0xff] %v8218_v15 }
 0xa00   : > { %v8220_v26 = vpop.permute.xlu1 %3814 }
 0xa01   : > { %11352 = vst [vmem:[#allocation503_spill] sm:$0xff] %v8220_v26 }
 0xa04   : > { %v8222_v27 = vpop.permute.xlu1 %3818 }
 0xa05   : > { %11353 = vst [vmem:[#allocation504_spill] sm:$0xff] %v8222_v27 }
 0xa08   : > { %v8224_v14 = vpop.permute.xlu1 %3822 }
 0xa09   : > { %11354 = vst [vmem:[#allocation505_spill] sm:$0xff] %v8224_v14 }
 0xa0c   : > { %v8226_v39 = vpop.permute.xlu1 %3826 }
 0xa0d   : > { %11355 = vst [vmem:[#allocation506_spill] sm:$0xff] %v8226_v39 }
 0xa10   : > { %v8228_v62 = vpop.permute.xlu1 %3830 }
 0xa11   : > { %11356 = vst [vmem:[#allocation507_spill] sm:$0xff] %v8228_v62 }
 0xa14   : > { %v8230_v44 = vpop.permute.xlu1 %3834 }
 0xa15   : > { %11357 = vst [vmem:[#allocation508_spill] sm:$0xff] %v8230_v44  ;;  %v8252_v44 = vpop.permute.xlu0 %3800 }
 0xa16   : > { %11363 = vst [vmem:[#allocation514_spill] sm:$0xff] %v8252_v44 }
 0xa18   : > { %v8232_v45 = vpop.permute.xlu1 %3838 }
 0xa19   : > { %11358 = vst [vmem:[#allocation509_spill] sm:$0xff] %v8232_v45 }
 0xa1c   : > { %v8234_v55 = vpop.permute.xlu1 %3842 }
 0xa1d   : > { %11359 = vst [vmem:[#allocation510_spill] sm:$0xff] %v8234_v55 }
 0xa20   : > { %v8236_v9 = vpop.permute.xlu1 %3846 }
 0xa24   : > { %v8238_v11 = vpop.permute.xlu1 %3850 }
 0xa28   : > { %v8240_v15 = vpop.permute.xlu1 %3854 }
 0xa29   : > { %11360 = vst [vmem:[#allocation511_spill] sm:$0xff] %v8240_v15 }
 0xa2c   : > { %v8242_v26 = vpop.permute.xlu1 %3858 }
 0xa30   : > { %v8244_v27 = vpop.permute.xlu1 %3862 }
 0xa34   : > { %v8246_v14 = vpop.permute.xlu1 %3866 }
 0xa35   : > { %11361 = vst [vmem:[#allocation512_spill] sm:$0xff] %v8246_v14  ;;  %v8262_v14 = vpop.permute.xlu0 %3804 }
 0xa36   : > { %11364 = vst [vmem:[#allocation515_spill] sm:$0xff] %v8262_v14 }
 0xa38   : > { %v8248_v39 = vpop.permute.xlu1 %3870 }
 0xa3c   : > { %v8250_v62 = vpop.permute.xlu1 %3874 }
 0xa3d   : > { %11362 = vst [vmem:[#allocation513_spill] sm:$0xff] %v8250_v62 }
 0xa4d   : > { %v8254_v45 = vpop.permute.xlu1 %3977 }
 0xa4e   : > { %v3981_v55 = vmul.f32 %v8254_v45, %v5722_v19  ;;  %v3980_v15 = vmul.f32 %v8254_v45, %v5706_v12  ;;  %v3983_v62 = vmul.f32 %v8254_v45, %v5734_v3  ;;  %v3982_v44 = vmul.f32 %v8254_v45, %v5703_v10  ;;  %v8274_v19 = vpop.permute.xlu0 %3808 }
 0xa4f   : > { %v3985_v12 = vmul.f32 %v8254_v45, %v5747_v41  ;;  %11365 = vst [vmem:[#allocation516_spill] sm:$0xff] %v8274_v19  ;;  %v3989_v14 = vmul.f32 %v8254_v45, %v5771_v53 }
 0xa50   : > { %4062 = vrot.lane.b32.xlu1 %v3981_v55, %s5291_s20  ;;  %4060 = vrot.lane.b32.xlu0 %v3980_v15, %s5291_s20  ;;  %v3984_v55 = vmul.f32 %v8254_v45, %v5719_v18  ;;  %v3987_v15 = vmul.f32 %v8254_v45, %v5759_v20 }
 0xa54   : > { %4066 = vrot.lane.b32.xlu1 %v3983_v62, %s5291_s20  ;;  %4064 = vrot.lane.b32.xlu0 %v3982_v44, %s5291_s20  ;;  %v3986_v62 = vmul.f32 %v8254_v45, %v5731_v21  ;;  %v8284_v44 = vpop.permute.xlu0 %3812 }
 0xa55   : > { %11366 = vst [vmem:[#allocation517_spill] sm:$0xff] %v8284_v44  ;;  %v3995_v44 = vmul.f32 %v8254_v45, %v5811_v46 }
 0xa58   : > { %4070 = vrot.lane.b32.xlu1 %v3985_v12, %s5291_s20  ;;  %4068 = vrot.lane.b32.xlu0 %v3984_v55, %s5291_s20  ;;  %v3988_v12 = vmul.f32 %v8254_v45, %v5744_v42  ;;  %v3991_v55 = vmul.f32 %v8254_v45, %v5784_v49  ;;  %v8296_v19 = vpop.permute.xlu0 %3816  ;;  %v11466_v49 = vld [vmem:[#allocation254_spill] sm:$0xff] }
 0xa59   : > { %11367 = vst [vmem:[#allocation518_spill] sm:$0xff] %v8296_v19  ;;  %v11467_v42 = vld [vmem:[#allocation234_spill] sm:$0xff] }
 0xa5c   : > { %4074 = vrot.lane.b32.xlu1 %v3987_v15, %s5291_s20  ;;  %4072 = vrot.lane.b32.xlu0 %v3986_v62, %s5291_s20  ;;  %v3990_v15 = vmul.f32 %v8254_v45, %v5756_v7  ;;  %v3993_v62 = vmul.f32 %v8254_v45, %v5798_v48  ;;  %v11411_v7 = vld [vmem:[#allocation114_spill] sm:$0xff] }
 0xa60   : > { %4078 = vrot.lane.b32.xlu1 %v3989_v14, %s5291_s20  ;;  %4076 = vrot.lane.b32.xlu0 %v3988_v12, %s5291_s20  ;;  %v3992_v14 = vmul.f32 %v8254_v45, %v5768_v40  ;;  %v8306_v12 = vpop.permute.xlu0 %3820 }
 0xa61   : > { %11368 = vst [vmem:[#allocation519_spill] sm:$0xff] %v8306_v12  ;;  %v4001_v12 = vmul.f32 %v8254_v45, %v5849_v33  ;;  %v11389_v33 = vld [vmem:[#allocation109_spill] sm:$0xff] }
 0xa64   : > { %4082 = vrot.lane.b32.xlu1 %v3991_v55, %s5291_s20  ;;  %4080 = vrot.lane.b32.xlu0 %v3990_v15, %s5291_s20  ;;  %v3994_v55 = vmul.f32 %v8254_v45, %v5781_v50  ;;  %v3997_v15 = vmul.f32 %v8254_v45, %v5823_v36  ;;  %v8318_v19 = vpop.permute.xlu0 %3824 }
 0xa65   : > { %11369 = vst [vmem:[#allocation520_spill] sm:$0xff] %v8318_v19 }
 0xa68   : > { %4086 = vrot.lane.b32.xlu1 %v3993_v62, %s5291_s20  ;;  %4084 = vrot.lane.b32.xlu0 %v3992_v14, %s5291_s20  ;;  %v3996_v62 = vmul.f32 %v8254_v45, %v5795_v17  ;;  %v3999_v14 = vmul.f32 %v8254_v45, %v5836_v34  ;;  %v11391_v34 = vld [vmem:[#allocation80_spill] sm:$0xff] }
 0xa6c   : > { %4090 = vrot.lane.b32.xlu1 %v3995_v44, %s5291_s20  ;;  %4088 = vrot.lane.b32.xlu0 %v3994_v55, %s5291_s20  ;;  %v3998_v44 = vmul.f32 %v8254_v45, %v5808_v47  ;;  %v8328_v55 = vpop.permute.xlu0 %3828 }
 0xa6d   : > { %11370 = vst [vmem:[#allocation521_spill] sm:$0xff] %v8328_v55  ;;  %v4007_v55 = vmul.f32 %v8254_v45, %v5886_v2  ;;  %v11383_v2 = vrot.slane %v5676_v57, %v5594_v23 }
 0xa70   : > { %4094 = vrot.lane.b32.xlu1 %v3997_v15, %s5291_s20  ;;  %4092 = vrot.lane.b32.xlu0 %v3996_v62, %s5291_s20  ;;  %v4000_v15 = vmul.f32 %v8254_v45, %v5820_v37  ;;  %v4003_v62 = vmul.f32 %v8254_v45, %v5861_v32  ;;  %v8340_v19 = vpop.permute.xlu0 %3832  ;;  %v11387_v32 = vld [vmem:[#allocation76_spill] sm:$0xff]  ;;  %v11392_v37 = vld [vmem:[#allocation113_spill] sm:$0xff] }
 0xa71   : > { %11371 = vst [vmem:[#allocation522_spill] sm:$0xff] %v8340_v19 }
 0xa74   : > { %4098 = vrot.lane.b32.xlu1 %v3999_v14, %s5291_s20  ;;  %4096 = vrot.lane.b32.xlu0 %v3998_v44, %s5291_s20  ;;  %v4002_v14 = vmul.f32 %v8254_v45, %v5833_v35  ;;  %v4005_v44 = vmul.f32 %v8254_v45, %v5874_v1  ;;  %v1016_v1 = vsel %vm996_vm0, %v6106_v43, %v6168_v51  ;;  %v11390_v35 = vld [vmem:[#allocation111_spill] sm:$0xff] }
 0xa78   : > { %4102 = vrot.lane.b32.xlu1 %v4001_v12, %s5291_s20  ;;  %4100 = vrot.lane.b32.xlu0 %v4000_v15, %s5291_s20  ;;  %v4004_v12 = vmul.f32 %v8254_v45, %v5846_v16  ;;  %v8350_v15 = vpop.permute.xlu0 %3836  ;;  %v11388_v16 = vld [vmem:[#allocation78_spill] sm:$0xff] }
 0xa79   : > { %11372 = vst [vmem:[#allocation523_spill] sm:$0xff] %v8350_v15  ;;  %v4013_v15 = vmul.f32 %v8254_v45, %v5923_v31  ;;  %v11377_v31 = vrot.slane %v5612_v29, %v5591_v22  ;;  %v1021_v51 = vsel %vm996_vm0, %v11389_v33, %v11388_v16  ;;  %v11394_v33 = vrot.slane %v5676_v57, %v5600_v25 }
 0xa7b   : > { %v544_v43 = vmul.f32 %v11394_v33, %v5699_v8  ;;  %v11398_v33 = vld [vmem:[#allocation117_spill] sm:$0xff] }
 0xa7c   : > { %4106 = vrot.lane.b32.xlu1 %v4003_v62, %s5291_s20  ;;  %4104 = vrot.lane.b32.xlu0 %v4002_v14, %s5291_s20  ;;  %v4006_v62 = vmul.f32 %v8254_v45, %v5858_v4  ;;  %v4009_v14 = vmul.f32 %v8254_v45, %v5898_v63  ;;  %v8362_v19 = vpop.permute.xlu0 %3840  ;;  %v11380_v63 = vrot.slane %v5672_v56, %v5597_v24  ;;  %v11386_v4 = vld [vmem:[#allocation107_spill] sm:$0xff] }
 0xa7d   : > { %11373 = vst [vmem:[#allocation524_spill] sm:$0xff] %v8362_v19 }
 0xa80   : > { %4110 = vrot.lane.b32.xlu1 %v4005_v44, %s5291_s20  ;;  %4108 = vrot.lane.b32.xlu0 %v4004_v12, %s5291_s20  ;;  %v4008_v44 = vmul.f32 %v8254_v45, %v5871_v30  ;;  %v4011_v12 = vmul.f32 %v8254_v45, %v5911_v60  ;;  %v11378_v60 = vrot.slane %v5612_v29, %v5600_v25 }
 0xa81   : > { %v11384_v30 = vrot.slane %v5676_v57, %v5597_v24 }
 0xa84   : > { %4114 = vrot.lane.b32.xlu1 %v4007_v55, %s5291_s20  ;;  %4112 = vrot.lane.b32.xlu0 %v4006_v62, %s5291_s20  ;;  %v4010_v55 = vmul.f32 %v8254_v45, %v5883_v6  ;;  %v8372_v62 = vpop.permute.xlu0 %3844  ;;  %v11381_v6 = vrot.slane %v5672_v56, %v5591_v22 }
 0xa88   : > { %4118 = vrot.lane.b32.xlu1 %v4009_v14, %s5291_s20  ;;  %4116 = vrot.lane.b32.xlu0 %v4008_v44, %s5291_s20  ;;  %v4012_v14 = vmul.f32 %v8254_v45, %v5895_v0  ;;  %v4015_v44 = vmul.f32 %v8254_v45, %v5935_v58  ;;  %v8384_v19 = vpop.permute.xlu0 %3848  ;;  %v4019_v58 = vmul.f32 %v8254_v45, %v5955_v54 }
 0xa89   : > { %v11379_v0 = vrot.slane %v5672_v56, %v5594_v23 }
 0xa8c   : > { %4122 = vrot.lane.b32.xlu1 %v4011_v12, %s5291_s20  ;;  %4120 = vrot.lane.b32.xlu0 %v4010_v55, %s5291_s20  ;;  %v4014_v12 = vmul.f32 %v8254_v45, %v5908_v61  ;;  %v4017_v55 = vmul.f32 %v8254_v45, %v5944_v52  ;;  %v535_v61 = vmul.f32 %v11377_v31, %v5699_v8 }
 0xa8d   : > { %v539_v31 = vmul.f32 %v11381_v6, %v5699_v8  ;;  %v1017_v6 = vsel %vm996_vm0, %v6108_v13, %v6174_v38  ;;  %v1022_v13 = vsel %vm996_vm0, %v11388_v16, %v11390_v35 }
 0xa90   : > { %4126 = vrot.lane.b32.xlu1 %v4013_v15, %s5291_s20  ;;  %4124 = vrot.lane.b32.xlu0 %v4012_v14, %s5291_s20  ;;  %v4016_v15 = vmul.f32 %v8254_v45, %v5920_v5  ;;  %v8394_v14 = vpop.permute.xlu0 %3852 }
 0xa94   : > { %4130 = vrot.lane.b32.xlu1 %v4015_v44, %s5291_s20  ;;  %4128 = vrot.lane.b32.xlu0 %v4014_v12, %s5291_s20  ;;  %v4018_v44 = vmul.f32 %v8254_v45, %v5932_v59  ;;  %v269_v12 = vld [vmem:[%s10446_s0 + $0x70] sm:$0xff]  ;;  %v8405_v52 = vpop.permute.xlu0 %3856 }
 0xa98   : > { %4134 = vrot.lane.b32.xlu1 %v4017_v55, %s5291_s20  ;;  %4132 = vrot.lane.b32.xlu0 %v4016_v15, %s5291_s20  ;;  %v8407_v55 = vpop.permute.xlu0 %3860 }
 0xa9c   : > { %4138 = vrot.lane.b32.xlu1 %v4019_v58, %s5291_s20  ;;  %4136 = vrot.lane.b32.xlu0 %v4018_v44, %s5291_s20  ;;  %v8409_v15 = vpop.permute.xlu0 %3864  ;;  %v11374_v58 = vrot.slane %v5609_v28, %v5600_v25  ;;  %v11375_v44 = vrot.slane %v5612_v29, %v5594_v23  ;;  %v11397_v23 = vld [vmem:[#allocation83_spill] sm:$0xff]  ;;  %s10380_s20 = scalar_lea.hbm %s10449_s3, %s4945_s19 }
 0xa9e   : > { %v532_v45 = vmul.f32 %v11374_v58, %v5699_v8  ;;  %v533_v54 = vmul.f32 %v11375_v44, %v5699_v8  ;;  %v536_v58 = vmul.f32 %v11378_v60, %v5699_v8  ;;  %v537_v44 = vmul.f32 %v11379_v0, %v5699_v8 }
 0xa9f   : > { %v541_v0 = vmul.f32 %v11383_v2, %v5699_v8 }
 0xaa0   : > { %4239 = vperm.xlu0 %5077, %v269_v12   ;;  %v8411_v5 = vpop.permute.xlu0 %3868  ;;  %v11376_v12 = vrot.slane %v5612_v29, %v5597_v24  ;;  %v11382_v29 = vrot.slane %v5672_v56, %v5600_v25  ;;  %v11385_v56 = vld [vmem:[#allocation75_spill] sm:$0xff]  ;;  %v1080_v47 = vadd.f32 %v1016_v1, %v532_v45  ;;  %v1081_v17 = vadd.f32 %v1017_v6, %v533_v54  ;;  %v11399_v54 = vld [vmem:[#allocation85_spill] sm:$0xff]  ;;  %v11401_v45 = vld [vmem:[#allocation130_spill] sm:$0xff] }
 0xaa1   : > { %v1019_v2 = vsel %vm996_vm0, %v11385_v56, %v11386_v4  ;;  %v1085_v50 = vadd.f32 %v1021_v51, %v537_v44  ;;  %v11395_v24 = vld [vmem:[#allocation115_spill] sm:$0xff]  ;;  %v1027_v1 = vsel %vm996_vm0, %v11397_v23, %v11398_v33  ;;  %v11402_v44 = vld [vmem:[#allocation106_spill] sm:$0xff]  ;;  %v11406_v6 = vld [vmem:[#allocation133_spill] sm:$0xff] }
 0xaa2   : > { %v534_v59 = vmul.f32 %v11376_v12, %v5699_v8  ;;  %v538_v12 = vmul.f32 %v11380_v63, %v5699_v8  ;;  %v540_v60 = vmul.f32 %v11382_v29, %v5699_v8  ;;  %v542_v63 = vmul.f32 %v11384_v30, %v5699_v8 }
 0xaa3   : > { %v1018_v29 = vsel %vm996_vm0, %v6174_v38, %v11385_v56  ;;  %v1020_v30 = vsel %vm996_vm0, %v11386_v4, %v11387_v32  ;;  %v1023_v38 = vsel %vm996_vm0, %v11390_v35, %v11391_v34  ;;  %v1024_v56 = vsel %vm996_vm0, %v11391_v34, %v11392_v37 }
 0xaa4   : > { %v11393_v32 = vrot.slane %v5676_v57, %v5591_v22  ;;  %v8492_v16 = vpop.permute.xlu0 %3872  ;;  %v1082_v35 = vadd.f32 %v1018_v29, %v534_v59  ;;  %v1083_v36 = vadd.f32 %v1019_v2, %v535_v61  ;;  %v1084_v28 = vadd.f32 %v1020_v30, %v536_v58  ;;  %v11396_v22 = vld [vmem:[#allocation81_spill] sm:$0xff]  ;;  %v11407_v2 = vld [vmem:[#allocation134_spill] sm:$0xff] }
 0xaa5   : > { %v1086_v34 = vadd.f32 %v1022_v13, %v538_v12  ;;  %v1087_v37 = vadd.f32 %v1023_v38, %v539_v31  ;;  %v1088_v46 = vadd.f32 %v1024_v56, %v540_v60  ;;  %v1026_v57 = vsel %vm996_vm0, %v11395_v24, %v11397_v23  ;;  %v11400_v61 = vld [vmem:[#allocation105_spill] sm:$0xff]  ;;  %v11403_v12 = vld [vmem:[#allocation131_spill] sm:$0xff]  ;;  %v11404_v31 = vld [vmem:[#allocation132_spill] sm:$0xff] }
 0xaa6   : > { %v543_v4 = vmul.f32 %v11393_v32, %v5699_v8  ;;  %v1025_v32 = vsel %vm996_vm0, %v11396_v22, %v11395_v24  ;;  %v1028_v59 = vsel %vm996_vm0, %v11398_v33, %v11399_v54  ;;  %v1278_v58 = vsel %vm1258_vm1, %v11401_v45, %v11400_v61  ;;  %v11405_v60 = vld [vmem:[#allocation108_spill] sm:$0xff]  ;;  %v11408_v30 = vld [vmem:[#allocation110_spill] sm:$0xff]  ;;  %v11410_v61 = vld [vmem:[#allocation135_spill] sm:$0xff] }
 0xaa7   : > { %v1279_v22 = vsel %vm1258_vm1, %v11403_v12, %v11402_v44  ;;  %v1280_v24 = vsel %vm1258_vm1, %v11402_v44, %v11404_v31  ;;  %v1281_v23 = vsel %vm1258_vm1, %v11404_v31, %v11405_v60  ;;  %v1282_v29 = vsel %vm1258_vm1, %v11405_v60, %v11406_v6  ;;  %v11409_v13 = vld [vmem:[#allocation112_spill] sm:$0xff] }
 0xaa8   : > { %v1283_v51 = vsel %vm1258_vm1, %v11408_v30, %v11407_v2  ;;  %v1284_v38 = vsel %vm1258_vm1, %v11407_v2, %v11409_v13  ;;  %v1089_v56 = vadd.f32 %v1025_v32, %v541_v0  ;;  %v1090_v33 = vadd.f32 %v1026_v57, %v542_v63  ;;  %v8530_v12 = vpop.permute.xlu0 %3876  ;;  %v11412_v63 = vld [vmem:[#allocation116_spill] sm:$0xff]  ;;  %v11414_v57 = vld [vmem:[#allocation137_spill] sm:$0xff] }
 0xaa9   : > { %v1091_v54 = vadd.f32 %v1027_v1, %v543_v4  ;;  %v1285_v44 = vsel %vm1258_vm1, %v11409_v13, %v11410_v61  ;;  %v1092_v31 = vadd.f32 %v1028_v59, %v544_v43  ;;  %v1342_v45 = vadd.f32 %v1278_v58, %v1080_v47  ;;  %v11413_v4 = vld [vmem:[#allocation136_spill] sm:$0xff]  ;;  %v11417_v43 = vld [vmem:[#allocation151_spill] sm:$0xff]  ;;  %v11425_v2 = vld [vmem:[#allocation173_spill] sm:$0xff] }
 0xaaa   : > { %v1343_v60 = vadd.f32 %v1279_v22, %v1081_v17  ;;  %v1344_v6 = vadd.f32 %v1280_v24, %v1082_v35  ;;  %v1345_v25 = vadd.f32 %v1281_v23, %v1083_v36  ;;  %v1346_v8 = vadd.f32 %v1282_v29, %v1084_v28  ;;  %v11415_v17 = vld [vmem:[#allocation118_spill] sm:$0xff]  ;;  %v11421_v1 = vld [vmem:[#allocation152_spill] sm:$0xff]  ;;  %v11422_v59 = vld [vmem:[#allocation171_spill] sm:$0xff] }
 0xaab   : > { %v1347_v30 = vadd.f32 %v1283_v51, %v1085_v50  ;;  %v1348_v40 = vadd.f32 %v1284_v38, %v1086_v34  ;;  %v1349_v48 = vadd.f32 %v1285_v44, %v1087_v37  ;;  %v1286_v0 = vsel %vm1258_vm1, %v11410_v61, %v11411_v7  ;;  %v11416_v36 = vld [vmem:[#allocation138_spill] sm:$0xff]  ;;  %v11423_v22 = vld [vmem:[#allocation172_spill] sm:$0xff]  ;;  %v11424_v23 = vld [vmem:[#allocation153_spill] sm:$0xff] }
 0xaac   : > { %v1287_v32 = vsel %vm1258_vm1, %v11413_v4, %v11412_v63  ;;  %v1288_v47 = vsel %vm1258_vm1, %v11412_v63, %v11414_v57  ;;  %v1289_v28 = vsel %vm1258_vm1, %v11414_v57, %v11415_v17  ;;  %v1290_v50 = vsel %vm1258_vm1, %v11415_v17, %v11416_v36  ;;  %v11418_v35 = vld [vmem:[#allocation170_spill] sm:$0xff]  ;;  %v11428_v4 = vld [vmem:[#allocation155_spill] sm:$0xff] }
 0xaad   : > { %v1540_v7 = vsel %vm1520_vm2, %v11418_v35, %v11417_v43  ;;  %v1541_v58 = vsel %vm1520_vm2, %v11422_v59, %v11421_v1  ;;  %v1542_v24 = vsel %vm1520_vm2, %v11421_v1, %v11423_v22  ;;  %v1543_v29 = vsel %vm1520_vm2, %v11423_v22, %v11424_v23  ;;  %v11426_v61 = vld [vmem:[#allocation174_spill] sm:$0xff] }
 0xaae   : > { %v1544_v51 = vsel %vm1520_vm2, %v11424_v23, %v11425_v2  ;;  %v1350_v13 = vadd.f32 %v1286_v0, %v1088_v46  ;;  %v1351_v38 = vadd.f32 %v1287_v32, %v1089_v56  ;;  %v11427_v44 = vld [vmem:[#allocation154_spill] sm:$0xff]  ;;  %v1546_v57 = vsel %vm1520_vm2, %v11426_v61, %v11428_v4  ;;  %v11431_v0 = vld [vmem:[#allocation175_spill] sm:$0xff]  ;;  %v11432_v2 = vld [vmem:[#allocation156_spill] sm:$0xff] }
 0xaaf   : > { %v1545_v63 = vsel %vm1520_vm2, %v11427_v44, %v11426_v61  ;;  %v1352_v17 = vadd.f32 %v1288_v47, %v1090_v33  ;;  %v1353_v36 = vadd.f32 %v1289_v28, %v1091_v54  ;;  %v1354_v43 = vadd.f32 %v1290_v50, %v1092_v31  ;;  %v11433_v54 = vld [vmem:[#allocation157_spill] sm:$0xff]  ;;  %v11438_v47 = vld [vmem:[#allocation191_spill] sm:$0xff]  ;;  %v11439_v28 = vld [vmem:[#allocation210_spill] sm:$0xff] }
 0xab0   : > { %v1604_v1 = vadd.f32 %v1540_v7, %v1342_v45  ;;  %v1605_v59 = vadd.f32 %v1541_v58, %v1343_v60  ;;  %v1606_v22 = vadd.f32 %v1542_v24, %v1344_v6  ;;  %v1607_v35 = vadd.f32 %v1543_v29, %v1345_v25  ;;  %v11434_v45 = vld [vmem:[#allocation176_spill] sm:$0xff]  ;;  %v11435_v25 = vld [vmem:[#allocation177_spill] sm:$0xff]  ;;  %v11436_v60 = vld [vmem:[#allocation158_spill] sm:$0xff] }
 0xab1   : > { %v1609_v56 = vadd.f32 %v1545_v63, %v1347_v30  ;;  %v1547_v32 = vsel %vm1520_vm2, %v11428_v4, %v11431_v0  ;;  %v1610_v23 = vadd.f32 %v1546_v57, %v1348_v40  ;;  %v1548_v33 = vsel %vm1520_vm2, %v11431_v0, %v11432_v2  ;;  %v11437_v30 = vld [vmem:[#allocation178_spill] sm:$0xff]  ;;  %v11440_v7 = vld [vmem:[#allocation192_spill] sm:$0xff]  ;;  %v11441_v58 = vld [vmem:[#allocation211_spill] sm:$0xff] }
 0xab2   : > { %v1549_v31 = vsel %vm1520_vm2, %v11434_v45, %v11433_v54  ;;  %v1551_v6 = vsel %vm1520_vm2, %v11435_v25, %v11436_v60  ;;  %v1552_v40 = vsel %vm1520_vm2, %v11436_v60, %v11437_v30  ;;  %v1802_v50 = vsel %vm1782_vm3, %v11439_v28, %v11438_v47  ;;  %v11442_v29 = vld [vmem:[#allocation212_spill] sm:$0xff]  ;;  %v11443_v44 = vld [vmem:[#allocation193_spill] sm:$0xff]  ;;  %v11445_v0 = vld [vmem:[#allocation214_spill] sm:$0xff] }
 0xab3   : > { %v1803_v24 = vsel %vm1782_vm3, %v11441_v58, %v11440_v7  ;;  %v1611_v61 = vadd.f32 %v1547_v32, %v1349_v48  ;;  %v1805_v63 = vsel %vm1782_vm3, %v11442_v29, %v11443_v44  ;;  %v11444_v4 = vld [vmem:[#allocation213_spill] sm:$0xff]  ;;  %v11446_v2 = vld [vmem:[#allocation194_spill] sm:$0xff]  ;;  %v1612_v60 = vadd.f32 %v1548_v33, %v1350_v13 }
 0xab4   : > { %v1806_v57 = vsel %vm1782_vm3, %v11443_v44, %v11444_v4  ;;  %v1613_v30 = vadd.f32 %v1549_v31, %v1351_v38  ;;  %v1615_v48 = vadd.f32 %v1551_v6, %v1353_v36  ;;  %v1616_v32 = vadd.f32 %v1552_v40, %v1354_v43  ;;  %v11449_v44 = vld [vmem:[#allocation195_spill] sm:$0xff]  ;;  %v11452_v38 = vld [vmem:[#allocation197_spill] sm:$0xff]  ;;  %v11461_v40 = vld [vmem:[#allocation232_spill] sm:$0xff] }
 0xab5   : > { %v1867_v58 = vadd.f32 %v1803_v24, %v1605_v59  ;;  %v1869_v28 = vadd.f32 %v1805_v63, %v1607_v35  ;;  %v1808_v4 = vsel %vm1782_vm3, %v11445_v0, %v11449_v44  ;;  %v11456_v43 = vld [vmem:[#allocation217_spill] sm:$0xff]  ;;  %v11457_v59 = vld [vmem:[#allocation198_spill] sm:$0xff]  ;;  %v11459_v31 = vld [vmem:[#allocation231_spill] sm:$0xff] }
 0xac2   : > { %v8550_v34 = vpop.permute.xlu1 %4062  ;;  %v8552_v37 = vpop.permute.xlu0 %4060 }
 0xac3   : > { %11419 = vst [vmem:[#allocation75_spill] sm:$0xff] %v8550_v34  ;;  %11420 = vst [vmem:[#allocation107_spill] sm:$0xff] %v8552_v37  ;;  %v1608_v37 = vadd.f32 %v1544_v51, %v1346_v8  ;;  %v1550_v8 = vsel %vm1520_vm2, %v11433_v54, %v11435_v25  ;;  %v1804_v51 = vsel %vm1782_vm3, %v11440_v7, %v11442_v29 }
 0xac4   : > { %v1807_v54 = vsel %vm1782_vm3, %v11446_v2, %v11445_v0  ;;  %v1614_v47 = vadd.f32 %v1550_v8, %v1352_v17  ;;  %v1866_v7 = vadd.f32 %v1802_v50, %v1604_v1  ;;  %v1868_v29 = vadd.f32 %v1804_v51, %v1606_v22  ;;  %v11450_v2 = vld [vmem:[#allocation215_spill] sm:$0xff]  ;;  %v11453_v17 = vld [vmem:[#allocation216_spill] sm:$0xff]  ;;  %v11460_v8 = vld [vmem:[#allocation250_spill] sm:$0xff] }
 0xac5   : > { %v1811_v36 = vsel %vm1782_vm3, %v11453_v17, %v11452_v38  ;;  %v1812_v1 = vsel %vm1782_vm3, %v11452_v38, %v11456_v43  ;;  %v1813_v22 = vsel %vm1782_vm3, %v11456_v43, %v11457_v59  ;;  %v2064_v6 = vsel %vm2044_vm4, %v11460_v8, %v11459_v31  ;;  %v11462_v50 = vld [vmem:[#allocation251_spill] sm:$0xff]  ;;  %v11463_v51 = vld [vmem:[#allocation252_spill] sm:$0xff] }
 0xac6   : > { %v8572_v34 = vpop.permute.xlu1 %4066  ;;  %v8574_v46 = vpop.permute.xlu0 %4064  ;;  %v2065_v24 = vsel %vm2044_vm4, %v11462_v50, %v11461_v40  ;;  %v2066_v63 = vsel %vm2044_vm4, %v11461_v40, %v11463_v51  ;;  %v1875_v17 = vadd.f32 %v1811_v36, %v1613_v30  ;;  %v1876_v43 = vadd.f32 %v1812_v1, %v1614_v47  ;;  %v11470_v30 = vld [vmem:[#allocation236_spill] sm:$0xff] }
 0xac7   : > { %11429 = vst [vmem:[#allocation76_spill] sm:$0xff] %v8572_v34  ;;  %11430 = vst [vmem:[#allocation78_spill] sm:$0xff] %v8574_v46  ;;  %v1870_v34 = vadd.f32 %v1806_v57, %v1608_v37  ;;  %v1871_v46 = vadd.f32 %v1807_v54, %v1609_v56  ;;  %v11458_v56 = vld [vmem:[#allocation218_spill] sm:$0xff]  ;;  %v11464_v57 = vld [vmem:[#allocation233_spill] sm:$0xff]  ;;  %v2128_v31 = vadd.f32 %v2064_v6, %v1866_v7 }
 0xac8   : > { %v1814_v33 = vsel %vm1782_vm3, %v11457_v59, %v11458_v56  ;;  %v2067_v0 = vsel %vm2044_vm4, %v11463_v51, %v11464_v57  ;;  %v11465_v54 = vld [vmem:[#allocation253_spill] sm:$0xff]  ;;  %v1877_v59 = vadd.f32 %v1813_v22, %v1615_v48  ;;  %v2129_v40 = vadd.f32 %v2065_v24, %v1867_v58  ;;  %v11474_v7 = vld [vmem:[#allocation238_spill] sm:$0xff]  ;;  %v11478_v1 = vld [vmem:[#allocation272_spill] sm:$0xff] }
 0xac9   : > { %v1878_v56 = vadd.f32 %v1814_v33, %v1616_v32  ;;  %v11471_v48 = vld [vmem:[#allocation237_spill] sm:$0xff]  ;;  %v11472_v32 = vld [vmem:[#allocation256_spill] sm:$0xff]  ;;  %v11475_v58 = vld [vmem:[#allocation258_spill] sm:$0xff] }
 0xaca   : > { %v8612_v45 = vpop.permute.xlu1 %4070  ;;  %v8614_v25 = vpop.permute.xlu0 %4068  ;;  %v11479_v22 = vld [vmem:[#allocation291_spill] sm:$0xff]  ;;  %v11480_v6 = vld [vmem:[#allocation292_spill] sm:$0xff] }
 0xacb   : > { %11447 = vst [vmem:[#allocation109_spill] sm:$0xff] %v8612_v45  ;;  %11448 = vst [vmem:[#allocation111_spill] sm:$0xff] %v8614_v25  ;;  %v1809_v45 = vsel %vm1782_vm3, %v11449_v44, %v11450_v2  ;;  %v11451_v25 = vld [vmem:[#allocation196_spill] sm:$0xff]  ;;  %v1872_v44 = vadd.f32 %v1808_v4, %v1610_v23  ;;  %v11468_v23 = vld [vmem:[#allocation235_spill] sm:$0xff]  ;;  %v2327_v33 = vsel %vm2306_vm5, %v11479_v22, %v11478_v1 }
 0xacc   : > { %v1810_v13 = vsel %vm1782_vm3, %v11450_v2, %v11451_v25  ;;  %v2068_v25 = vsel %vm2044_vm4, %v11464_v57, %v11465_v54  ;;  %v1873_v2 = vadd.f32 %v1809_v45, %v1611_v61  ;;  %v2069_v57 = vsel %vm2044_vm4, %v11467_v42, %v11466_v49  ;;  %v11469_v45 = vld [vmem:[#allocation255_spill] sm:$0xff] }
 0xacd   : > { %v1874_v38 = vadd.f32 %v1810_v13, %v1612_v60  ;;  %v2132_v51 = vadd.f32 %v2068_v25, %v1870_v34  ;;  %v2070_v61 = vsel %vm2044_vm4, %v11466_v49, %v11468_v23  ;;  %v2071_v60 = vsel %vm2044_vm4, %v11468_v23, %v11469_v45  ;;  %v11476_v4 = vld [vmem:[#allocation271_spill] sm:$0xff]  ;;  %v11477_v13 = vld [vmem:[#allocation290_spill] sm:$0xff] }
 0xace   : > { %v8628_v35 = vpop.permute.xlu1 %4074  ;;  %v8630_v37 = vpop.permute.xlu0 %4072  ;;  %v2072_v47 = vsel %vm2044_vm4, %v11469_v45, %v11470_v30  ;;  %v2073_v34 = vsel %vm2044_vm4, %v11472_v32, %v11471_v48  ;;  %v2326_v36 = vsel %vm2306_vm5, %v11477_v13, %v11476_v4  ;;  %v2328_v24 = vsel %vm2306_vm5, %v11478_v1, %v11480_v6  ;;  %v11483_v45 = vld [vmem:[#allocation273_spill] sm:$0xff] }
 0xacf   : > { %11454 = vst [vmem:[#allocation80_spill] sm:$0xff] %v8628_v35  ;;  %11455 = vst [vmem:[#allocation113_spill] sm:$0xff] %v8630_v37  ;;  %v2130_v35 = vadd.f32 %v2066_v63, %v1868_v29  ;;  %v2131_v37 = vadd.f32 %v2067_v0, %v1869_v28  ;;  %v11473_v28 = vld [vmem:[#allocation257_spill] sm:$0xff]  ;;  %v2076_v29 = vsel %vm2044_vm4, %v11474_v7, %v11475_v58 }
 0xad0   : > { %v2074_v42 = vsel %vm2044_vm4, %v11471_v48, %v11473_v28  ;;  %v2075_v49 = vsel %vm2044_vm4, %v11473_v28, %v11474_v7  ;;  %v2133_v54 = vadd.f32 %v2069_v57, %v1871_v46  ;;  %v2134_v25 = vadd.f32 %v2070_v61, %v1872_v44  ;;  %v11484_v1 = vld [vmem:[#allocation293_spill] sm:$0xff]  ;;  %v11485_v46 = vld [vmem:[#allocation294_spill] sm:$0xff]  ;;  %v11487_v57 = vld [vmem:[#allocation275_spill] sm:$0xff] }
 0xad1   : > { %v2135_v23 = vadd.f32 %v2071_v60, %v1873_v2  ;;  %v2329_v30 = vsel %vm2306_vm5, %v11480_v6, %v11483_v45  ;;  %v2136_v48 = vadd.f32 %v2072_v47, %v1874_v38  ;;  %v2137_v32 = vadd.f32 %v2073_v34, %v1875_v17  ;;  %v11486_v44 = vld [vmem:[#allocation274_spill] sm:$0xff]  ;;  %v11493_v60 = vld [vmem:[#allocation297_spill] sm:$0xff] }
 0xad2   : > { %v8656_v50 = vpop.permute.xlu1 %4078  ;;  %v8658_v8 = vpop.permute.xlu0 %4076  ;;  %v2138_v28 = vadd.f32 %v2074_v42, %v1876_v43  ;;  %v2139_v7 = vadd.f32 %v2075_v49, %v1877_v59  ;;  %v2140_v58 = vadd.f32 %v2076_v29, %v1878_v56  ;;  %v2390_v4 = vadd.f32 %v2326_v36, %v2128_v31  ;;  %v11489_v59 = vld [vmem:[#allocation295_spill] sm:$0xff]  ;;  %v11490_v56 = vld [vmem:[#allocation276_spill] sm:$0xff]  ;;  %v11491_v31 = vld [vmem:[#allocation277_spill] sm:$0xff] }
 0xad3   : > { %v2391_v22 = vadd.f32 %v2327_v33, %v2129_v40  ;;  %v2392_v13 = vadd.f32 %v2328_v24, %v2130_v35  ;;  %v2331_v2 = vsel %vm2306_vm5, %v11486_v44, %v11485_v46  ;;  %v2332_v38 = vsel %vm2306_vm5, %v11485_v46, %v11487_v57  ;;  %v11492_v40 = vld [vmem:[#allocation296_spill] sm:$0xff]  ;;  %v11494_v34 = vld [vmem:[#allocation278_spill] sm:$0xff]  ;;  %v11496_v36 = vld [vmem:[#allocation311_spill] sm:$0xff] }
 0xad4   : > { %v2333_v35 = vsel %vm2306_vm5, %v11487_v57, %v11489_v59  ;;  %v2335_v61 = vsel %vm2306_vm5, %v11492_v40, %v11491_v31  ;;  %v2336_v47 = vsel %vm2306_vm5, %v11491_v31, %v11493_v60  ;;  %v2337_v42 = vsel %vm2306_vm5, %v11493_v60, %v11494_v34  ;;  %v11495_v49 = vld [vmem:[#allocation298_spill] sm:$0xff]  ;;  %v11500_v44 = vld [vmem:[#allocation332_spill] sm:$0xff] }
 0xad5   : > { %v2338_v29 = vsel %vm2306_vm5, %v11494_v34, %v11495_v49  ;;  %v11497_v33 = vld [vmem:[#allocation330_spill] sm:$0xff]  ;;  %v2399_v40 = vadd.f32 %v2335_v61, %v2137_v32  ;;  %v2400_v49 = vadd.f32 %v2336_v47, %v2138_v28 }
 0xad6   : > { %v8693_v63 = vpop.permute.xlu1 %4082  ;;  %v8695_v0 = vpop.permute.xlu0 %4080  ;;  %v2588_v6 = vsel %vm2568_vm6, %v11497_v33, %v11496_v36  ;;  %v2401_v36 = vadd.f32 %v2337_v42, %v2139_v7  ;;  %v11502_v33 = vld [vmem:[#allocation313_spill] sm:$0xff]  ;;  %v11507_v7 = vld [vmem:[#allocation335_spill] sm:$0xff]  ;;  %v11512_v47 = vld [vmem:[#allocation318_spill] sm:$0xff] }
 0xad7   : > { %11481 = vst [vmem:[#allocation115_spill] sm:$0xff] %v8693_v63  ;;  %11482 = vst [vmem:[#allocation81_spill] sm:$0xff] %v8695_v0  ;;  %v2330_v63 = vsel %vm2306_vm5, %v11483_v45, %v11484_v1  ;;  %v2393_v0 = vadd.f32 %v2329_v30, %v2131_v37  ;;  %v2334_v37 = vsel %vm2306_vm5, %v11489_v59, %v11490_v56  ;;  %v11498_v30 = vld [vmem:[#allocation312_spill] sm:$0xff]  ;;  %v11499_v1 = vld [vmem:[#allocation331_spill] sm:$0xff] }
 0xad8   : > { %v2394_v24 = vadd.f32 %v2330_v63, %v2132_v51  ;;  %v2395_v45 = vadd.f32 %v2331_v2, %v2133_v54  ;;  %v2589_v46 = vsel %vm2568_vm6, %v11499_v1, %v11498_v30  ;;  %v2590_v57 = vsel %vm2568_vm6, %v11498_v30, %v11500_v44 }
 0xad9   : > { %v2396_v59 = vadd.f32 %v2332_v38, %v2134_v25  ;;  %v2397_v56 = vadd.f32 %v2333_v35, %v2135_v23  ;;  %v2398_v31 = vadd.f32 %v2334_v37, %v2136_v48  ;;  %v2402_v51 = vadd.f32 %v2338_v29, %v2140_v58  ;;  %v11504_v23 = vld [vmem:[#allocation334_spill] sm:$0xff]  ;;  %v11506_v38 = vld [vmem:[#allocation315_spill] sm:$0xff]  ;;  %v11508_v58 = vld [vmem:[#allocation316_spill] sm:$0xff] }
 0xada   : > { %v8709_v17 = vpop.permute.xlu1 %4086  ;;  %v8711_v43 = vpop.permute.xlu0 %4084  ;;  %v2652_v63 = vadd.f32 %v2588_v6, %v2390_v4  ;;  %v2653_v54 = vadd.f32 %v2589_v46, %v2391_v22  ;;  %v2654_v2 = vadd.f32 %v2590_v57, %v2392_v13  ;;  %v2591_v1 = vsel %vm2568_vm6, %v11500_v44, %v11502_v33  ;;  %v11505_v48 = vld [vmem:[#allocation314_spill] sm:$0xff]  ;;  %v11509_v22 = vld [vmem:[#allocation317_spill] sm:$0xff]  ;;  %v11510_v35 = vld [vmem:[#allocation336_spill] sm:$0xff] }
 0xadb   : > { %11488 = vst [vmem:[#allocation83_spill] sm:$0xff] %v8709_v17  ;;  %v11503_v17 = vld [vmem:[#allocation333_spill] sm:$0xff]  ;;  %v2593_v32 = vsel %vm2568_vm6, %v11505_v48, %v11504_v23  ;;  %v2594_v28 = vsel %vm2568_vm6, %v11504_v23, %v11506_v38  ;;  %v2595_v13 = vsel %vm2568_vm6, %v11506_v38, %v11507_v7  ;;  %v2596_v4 = vsel %vm2568_vm6, %v11507_v7, %v11508_v58  ;;  %v11515_v46 = vld [vmem:[#allocation338_spill] sm:$0xff]  ;;  %v11516_v57 = vld [vmem:[#allocation351_spill] sm:$0xff] }
 0xadc   : > { %v2592_v25 = vsel %vm2568_vm6, %v11502_v33, %v11503_v17  ;;  %v2597_v17 = vsel %vm2568_vm6, %v11510_v35, %v11509_v22  ;;  %v11511_v37 = vld [vmem:[#allocation337_spill] sm:$0xff]  ;;  %v2655_v6 = vadd.f32 %v2591_v1, %v2393_v0  ;;  %v2600_v44 = vsel %vm2568_vm6, %v11512_v47, %v11515_v46  ;;  %v11517_v23 = vld [vmem:[#allocation370_spill] sm:$0xff]  ;;  %v11519_v35 = vld [vmem:[#allocation371_spill] sm:$0xff] }
 0xadd   : > { %v2598_v61 = vsel %vm2568_vm6, %v11509_v22, %v11511_v37  ;;  %v2599_v42 = vsel %vm2568_vm6, %v11511_v37, %v11512_v47  ;;  %v2656_v30 = vadd.f32 %v2592_v25, %v2394_v24  ;;  %v2850_v48 = vsel %vm2830_vm7, %v11517_v23, %v11516_v57  ;;  %v11518_v22 = vld [vmem:[#allocation352_spill] sm:$0xff]  ;;  %v11521_v46 = vld [vmem:[#allocation353_spill] sm:$0xff] }
 0xade   : > { %v8740_v60 = vpop.permute.xlu1 %4090  ;;  %v8742_v34 = vpop.permute.xlu0 %4088  ;;  %v2657_v38 = vadd.f32 %v2593_v32, %v2395_v45  ;;  %v2658_v7 = vadd.f32 %v2594_v28, %v2396_v59  ;;  %v2659_v58 = vadd.f32 %v2595_v13, %v2397_v56  ;;  %v2851_v37 = vsel %vm2830_vm7, %v11519_v35, %v11518_v22  ;;  %v11520_v25 = vld [vmem:[#allocation372_spill] sm:$0xff]  ;;  %v11527_v32 = vld [vmem:[#allocation355_spill] sm:$0xff] }
 0xadf   : > { %11501 = vst [vmem:[#allocation117_spill] sm:$0xff] %v8740_v60  ;;  %v2661_v60 = vadd.f32 %v2597_v17, %v2399_v40  ;;  %v8784_v0 = vadd.f32 %v2599_v42, %v2401_v36  ;;  %v8786_v24 = vadd.f32 %v2600_v44, %v2402_v51  ;;  %v2914_v1 = vadd.f32 %v2850_v48, %v2652_v63  ;;  %v11524_v40 = vld [vmem:[#allocation373_spill] sm:$0xff]  ;;  %v11525_v36 = vld [vmem:[#allocation374_spill] sm:$0xff]  ;;  %v11528_v13 = vld [vmem:[#allocation375_spill] sm:$0xff] }
 0xae0   : > { %v2852_v47 = vsel %vm2830_vm7, %v11518_v22, %v11520_v25  ;;  %v2853_v45 = vsel %vm2830_vm7, %v11520_v25, %v11521_v46  ;;  %v11526_v51 = vld [vmem:[#allocation354_spill] sm:$0xff]  ;;  %v2856_v28 = vsel %vm2830_vm7, %v11525_v36, %v11527_v32  ;;  %v11529_v17 = vld [vmem:[#allocation356_spill] sm:$0xff]  ;;  %v11532_v22 = vld [vmem:[#allocation377_spill] sm:$0xff] }
 0xae1   : > { %v2855_v63 = vsel %vm2830_vm7, %v11526_v51, %v11525_v36  ;;  %v11531_v42 = vld [vmem:[#allocation376_spill] sm:$0xff]  ;;  %v2916_v57 = vadd.f32 %v2852_v47, %v2654_v2  ;;  %v2917_v48 = vadd.f32 %v2853_v45, %v2655_v6  ;;  %v11534_v25 = vld [vmem:[#allocation410_spill] sm:$0xff]  ;;  %v8822_v51 = vadd.f32 %v2856_v28, %v2658_v7  ;;  %v11537_v47 = vld [vmem:[#allocation431_spill] sm:$0xff] }
 0xae2   : > { %v8771_v29 = vpop.permute.xlu1 %4094  ;;  %v8773_v33 = vpop.permute.xlu0 %4092  ;;  %v2919_v36 = vadd.f32 %v2855_v63, %v2657_v38  ;;  %v11538_v45 = vld [vmem:[#allocation450_spill] sm:$0xff]  ;;  %v11539_v38 = vld [vmem:[#allocation392_spill] sm:$0xff]  ;;  %v11540_v7 = vld [vmem:[#allocation411_spill] sm:$0xff] }
 0xae3   : > { %11513 = vst [vmem:[#allocation85_spill] sm:$0xff] %v8771_v29  ;;  %11514 = vst [vmem:[#allocation105_spill] sm:$0xff] %v8773_v33  ;;  %v2660_v29 = vadd.f32 %v2596_v4, %v2398_v31  ;;  %v2662_v33 = vadd.f32 %v2598_v61, %v2400_v49  ;;  %v2915_v31 = vadd.f32 %v2851_v37, %v2653_v54  ;;  %v11530_v61 = vld [vmem:[#allocation357_spill] sm:$0xff]  ;;  %v11533_v37 = vld [vmem:[#allocation391_spill] sm:$0xff] }
 0xae4   : > { %v2854_v49 = vsel %vm2830_vm7, %v11521_v46, %v11524_v40  ;;  %v2857_v4 = vsel %vm2830_vm7, %v11527_v32, %v11528_v13  ;;  %v2858_v54 = vsel %vm2830_vm7, %v11528_v13, %v11529_v17  ;;  %v2859_v44 = vsel %vm2830_vm7, %v11531_v42, %v11530_v61  ;;  %v11541_v63 = vld [vmem:[#allocation412_spill] sm:$0xff]  ;;  %v11543_v28 = vld [vmem:[#allocation413_spill] sm:$0xff] }
 0xae5   : > { %v2860_v35 = vsel %vm2830_vm7, %v11530_v61, %v11532_v22  ;;  %v3112_v46 = vsel %vm3092_vm8, %v11534_v25, %v11533_v37  ;;  %v2918_v40 = vadd.f32 %v2854_v49, %v2656_v30  ;;  %v8828_v17 = vadd.f32 %v2857_v4, %v2659_v58  ;;  %v11554_v23 = vld [vmem:[#allocation472_spill] sm:$0xff] }
 0xae6   : > { %v8794_v59 = vpop.permute.xlu1 %4098  ;;  %v8796_v56 = vpop.permute.xlu0 %4096  ;;  %v8830_v2 = vadd.f32 %v2858_v54, %v2660_v29  ;;  %v8832_v6 = vadd.f32 %v2859_v44, %v2661_v60  ;;  %v3374_v61 = vsel %vm3354_vm9, %v11538_v45, %v11537_v47  ;;  %v8837_v42 = vadd.f32 %v2860_v35, %v2662_v33  ;;  %v11542_v29 = vld [vmem:[#allocation393_spill] sm:$0xff]  ;;  %v11544_v33 = vld [vmem:[#allocation471_spill] sm:$0xff]  ;;  %v11545_v54 = vld [vmem:[#allocation490_spill] sm:$0xff] }
 0xae7   : > { %11522 = vst [vmem:[#allocation106_spill] sm:$0xff] %v8794_v59  ;;  %11523 = vst [vmem:[#allocation131_spill] sm:$0xff] %v8796_v56  ;;  %v3176_v30 = vadd.f32 %v3112_v46, %v2914_v1  ;;  %v3113_v49 = vsel %vm3092_vm8, %v11540_v7, %v11539_v38  ;;  %v3114_v58 = vsel %vm3092_vm8, %v11539_v38, %v11541_v63  ;;  %v11546_v44 = vld [vmem:[#allocation358_spill] sm:$0xff]  ;;  %v11547_v46 = vld [vmem:[#allocation432_spill] sm:$0xff] }
 0xae8   : > { %v3115_v60 = vsel %vm3092_vm8, %v11541_v63, %v11542_v29  ;;  %v3116_v4 = vsel %vm3092_vm8, %v11542_v29, %v11543_v28  ;;  %v3636_v1 = vsel %vm3616_vm10, %v11545_v54, %v11544_v33  ;;  %v2861_v35 = vsel %vm2830_vm7, %v11532_v22, %v11546_v44  ;;  %v11548_v47 = vld [vmem:[#allocation451_spill] sm:$0xff]  ;;  %v11551_v33 = vld [vmem:[#allocation452_spill] sm:$0xff]  ;;  %v11552_v45 = vld [vmem:[#allocation414_spill] sm:$0xff] }
 0xae9   : > { %v3438_v37 = vadd.f32 %v3374_v61, %v3176_v30  ;;  %v3375_v38 = vsel %vm3354_vm9, %v11548_v47, %v11547_v46  ;;  %v3177_v28 = vadd.f32 %v3113_v49, %v2915_v31  ;;  %v3898_v22 = vsel %vm3878_vm11, %v8372_v62, %v8236_v9  ;;  %v11553_v59 = vld [vmem:[#allocation394_spill] sm:$0xff]  ;;  %v11556_v49 = vld [vmem:[#allocation492_spill] sm:$0xff]  ;;  %v11557_v56 = vld [vmem:[#allocation433_spill] sm:$0xff] }
 0xaea   : > { %v8824_v32 = vpop.permute.xlu1 %4102  ;;  %v8826_v13 = vpop.permute.xlu0 %4100  ;;  %v3178_v61 = vadd.f32 %v3114_v58, %v2916_v57  ;;  %v3179_v30 = vadd.f32 %v3115_v60, %v2917_v48  ;;  %v3180_v47 = vadd.f32 %v3116_v4, %v2918_v40  ;;  %v3377_v9 = vsel %vm3354_vm9, %v11551_v33, %v11557_v56  ;;  %v11558_v58 = vld [vmem:[#allocation453_spill] sm:$0xff] }
 0xaeb   : > { %11535 = vst [vmem:[#allocation132_spill] sm:$0xff] %v8824_v32  ;;  %11536 = vst [vmem:[#allocation108_spill] sm:$0xff] %v8826_v13  ;;  %v11550_v13 = vld [vmem:[#allocation378_spill] sm:$0xff]  ;;  %v3376_v32 = vsel %vm3354_vm9, %v11547_v46, %v11551_v33  ;;  %v3700_v54 = vadd.f32 %v3636_v1, %v3438_v37  ;;  %v3439_v25 = vadd.f32 %v3375_v38, %v3177_v28  ;;  %v11560_v38 = vld [vmem:[#allocation395_spill] sm:$0xff] }
 0xaec   : > { %v2862_v29 = vsel %vm2830_vm7, %v11546_v44, %v11550_v13  ;;  %v11555_v13 = vld [vmem:[#allocation491_spill] sm:$0xff]  ;;  %v3638_v44 = vsel %vm3616_vm10, %v11554_v23, %v11556_v49  ;;  %v3440_v46 = vadd.f32 %v3376_v32, %v3178_v61  ;;  %v3899_v60 = vsel %vm3878_vm11, %v8384_v19, %v8238_v11  ;;  %v11561_v33 = vld [vmem:[#allocation473_spill] sm:$0xff] }
 0xaed   : > { %v3637_v31 = vsel %vm3616_vm10, %v11555_v13, %v11554_v23  ;;  %v3962_v57 = vadd.f32 %v3898_v22, %v3700_v54  ;;  %v3900_v23 = vsel %vm3878_vm11, %v8238_v11, %v8394_v14  ;;  %v3441_v28 = vadd.f32 %v3377_v9, %v3179_v30  ;;  %v11562_v22 = vld [vmem:[#allocation493_spill] sm:$0xff]  ;;  %v11563_v13 = vld [vmem:[#allocation454_spill] sm:$0xff] }
 0xaee   : > { %v8860_v7 = vpop.permute.xlu1 %4106  ;;  %v8862_v63 = vpop.permute.xlu0 %4104  ;;  %v3701_v54 = vadd.f32 %v3637_v31, %v3439_v25  ;;  %v3702_v1 = vadd.f32 %v3638_v44, %v3440_v46  ;;  %v3639_v19 = vsel %vm3616_vm10, %v11556_v49, %v11561_v33  ;;  %v3640_v11 = vsel %vm3616_vm10, %v11561_v33, %v11562_v22  ;;  %v11571_v33 = vld [vmem:[#allocation435_spill] sm:$0xff] }
 0xaef   : > { %11549 = vst [vmem:[#allocation133_spill] sm:$0xff] %v8862_v63  ;;  %v3117_v63 = vsel %vm3092_vm8, %v11553_v59, %v11552_v45  ;;  %v3378_v59 = vsel %vm3354_vm9, %v11557_v56, %v11558_v58  ;;  %v3118_v56 = vsel %vm3092_vm8, %v11552_v45, %v11560_v38  ;;  %v3703_v9 = vadd.f32 %v3639_v19, %v3441_v28 }
 0xaf0   : > { %v3181_v4 = vadd.f32 %v3117_v63, %v2919_v36  ;;  %v3442_v61 = vadd.f32 %v3378_v59, %v3180_v47  ;;  %v11564_v36 = vld [vmem:[#allocation434_spill] sm:$0xff]  ;;  %v3963_v63 = vadd.f32 %v3899_v60, %v3701_v54  ;;  %v3964_v31 = vadd.f32 %v3900_v23, %v3702_v1  ;;  %v11568_v23 = vld [vmem:[#allocation415_spill] sm:$0xff] }
 0xaf1   : > { %v3379_v25 = vsel %vm3354_vm9, %v11564_v36, %v11563_v13  ;;  %v2925_v60 = vadd.f32 %v2861_v35, %v8784_v0  ;;  %v11569_v54 = vld [vmem:[#allocation494_spill] sm:$0xff]  ;;  %v3380_v28 = vsel %vm3354_vm9, %v11563_v13, %v11571_v33  ;;  %v11572_v0 = vld [vmem:[#allocation455_spill] sm:$0xff] }
 0xaf2   : > { %v4111_v48 = vpop.permute.xlu1 %4110  ;;  %v4109_v40 = vpop.permute.xlu0 %4108  ;;  %v3443_v1 = vadd.f32 %v3379_v25, %v3181_v4  ;;  %v3381_v35 = vsel %vm3354_vm9, %v11571_v33, %v11572_v0 }
 0xaf3   : > { %v4160_v32 = vsel %vm4140_vm12, %v8860_v7, %v4109_v40  ;;  %v3704_v40 = vadd.f32 %v3640_v11, %v3442_v61 }
 0xaf4   : > { %v8896_v37 = vadd.f32 %v4160_v32, %v3962_v57  ;;  %v11565_v57 = vld [vmem:[#allocation511_spill] sm:$0xff]  ;;  %v3182_v32 = vadd.f32 %v3118_v56, %v8822_v51  ;;  %v3903_v51 = vsel %vm3878_vm11, %v8242_v26, %v8407_v55 }
 0xaf5   : > { %v3901_v45 = vsel %vm3878_vm11, %v8394_v14, %v11565_v57  ;;  %v3902_v30 = vsel %vm3878_vm11, %v11565_v57, %v8405_v52  ;;  %v3119_v14 = vsel %vm3092_vm8, %v11560_v38, %v11568_v23  ;;  %v11570_v52 = vld [vmem:[#allocation474_spill] sm:$0xff]  ;;  %v11576_v57 = vld [vmem:[#allocation475_spill] sm:$0xff] }
 0xaf6   : > { %11559 = vst [vmem:[#allocation134_spill] sm:$0xff] %v8896_v37  ;;  %v4115_v44 = vpop.permute.xlu1 %4114  ;;  %v4113_v46 = vpop.permute.xlu0 %4112  ;;  %v3965_v19 = vadd.f32 %v3901_v45, %v3703_v9  ;;  %v3966_v22 = vadd.f32 %v3902_v30, %v3704_v40  ;;  %v3183_v56 = vadd.f32 %v3119_v14, %v8828_v17  ;;  %v3642_v26 = vsel %vm3616_vm10, %v11569_v54, %v11576_v57  ;;  %v11578_v17 = vld [vmem:[#allocation397_spill] sm:$0xff]  ;;  %v11579_v30 = vld [vmem:[#allocation416_spill] sm:$0xff] }
 0xaf7   : > { %v4161_v49 = vsel %vm4140_vm12, %v4111_v48, %v4113_v46  ;;  %v4162_v47 = vsel %vm4140_vm12, %v4113_v46, %v4115_v44  ;;  %v3641_v48 = vsel %vm3616_vm10, %v11570_v52, %v11569_v54  ;;  %v11580_v14 = vld [vmem:[#allocation436_spill] sm:$0xff]  ;;  %v3904_v54 = vsel %vm3878_vm11, %v8407_v55, %v8244_v27 }
 0xaf8   : > { %v8918_v58 = vadd.f32 %v4161_v49, %v3963_v63  ;;  %v8920_v59 = vadd.f32 %v4162_v47, %v3964_v31  ;;  %v3705_v36 = vadd.f32 %v3641_v48, %v3443_v1  ;;  %v2926_v63 = vadd.f32 %v2862_v29, %v8786_v24  ;;  %v11575_v31 = vld [vmem:[#allocation396_spill] sm:$0xff] }
 0xaf9   : > { %v3120_v46 = vsel %vm3092_vm8, %v11568_v23, %v11575_v31  ;;  %v3121_v49 = vsel %vm3092_vm8, %v11579_v30, %v11578_v17  ;;  %v3444_v47 = vadd.f32 %v3380_v28, %v3182_v32  ;;  %v3445_v9 = vadd.f32 %v3381_v35, %v3183_v56 }
 0xafa   : > { %11566 = vst [vmem:[#allocation110_spill] sm:$0xff] %v8918_v58  ;;  %11567 = vst [vmem:[#allocation112_spill] sm:$0xff] %v8920_v59  ;;  %v4119_v11 = vpop.permute.xlu1 %4118  ;;  %v4117_v61 = vpop.permute.xlu0 %4116  ;;  %v3967_v40 = vadd.f32 %v3903_v51, %v3705_v36  ;;  %v3382_v23 = vsel %vm3354_vm9, %v11572_v0, %v11580_v14  ;;  %v3905_v52 = vsel %vm3878_vm11, %v8244_v27, %v8409_v15  ;;  %v11584_v0 = vld [vmem:[#allocation476_spill] sm:$0xff]  ;;  %v11592_v14 = vld [vmem:[#allocation477_spill] sm:$0xff] }
 0xafb   : > { %v4163_v38 = vsel %vm4140_vm12, %v4115_v44, %v4117_v61  ;;  %v4164_v4 = vsel %vm4140_vm12, %v4117_v61, %v4119_v11  ;;  %v11577_v44 = vld [vmem:[#allocation495_spill] sm:$0xff]  ;;  %v3184_v32 = vadd.f32 %v3120_v46, %v8830_v2  ;;  %v3706_v1 = vadd.f32 %v3642_v26, %v3444_v47  ;;  %v11583_v61 = vld [vmem:[#allocation398_spill] sm:$0xff]  ;;  %v11585_v2 = vld [vmem:[#allocation437_spill] sm:$0xff] }
 0xafc   : > { %v8942_v13 = vadd.f32 %v4163_v38, %v3965_v19  ;;  %v8944_v25 = vadd.f32 %v4164_v4, %v3966_v22  ;;  %v3643_v45 = vsel %vm3616_vm10, %v11576_v57, %v11577_v44  ;;  %v11582_v19 = vld [vmem:[#allocation417_spill] sm:$0xff]  ;;  %v3185_v11 = vadd.f32 %v3121_v49, %v8832_v6  ;;  %v11586_v51 = vld [vmem:[#allocation456_spill] sm:$0xff] }
 0xafd   : > { %v3707_v33 = vadd.f32 %v3643_v45, %v3445_v9  ;;  %v3122_v22 = vsel %vm3092_vm8, %v11578_v17, %v11582_v19  ;;  %v3123_v55 = vsel %vm3092_vm8, %v11582_v19, %v11583_v61  ;;  %v3644_v27 = vsel %vm3616_vm10, %v11577_v44, %v11584_v0  ;;  %v11587_v46 = vld [vmem:[#allocation457_spill] sm:$0xff]  ;;  %v11588_v57 = vld [vmem:[#allocation512_spill] sm:$0xff]  ;;  %v11591_v9 = vld [vmem:[#allocation418_spill] sm:$0xff] }
 0xafe   : > { %11573 = vst [vmem:[#allocation135_spill] sm:$0xff] %v8942_v13  ;;  %11574 = vst [vmem:[#allocation114_spill] sm:$0xff] %v8944_v25  ;;  %v4123_v24 = vpop.permute.xlu1 %4122  ;;  %v4121_v29 = vpop.permute.xlu0 %4120  ;;  %v3446_v35 = vadd.f32 %v3382_v23, %v3184_v32  ;;  %v3383_v38 = vsel %vm3354_vm9, %v11586_v51, %v11585_v2  ;;  %v3968_v4 = vadd.f32 %v3904_v54, %v3706_v1  ;;  %v11593_v23 = vld [vmem:[#allocation496_spill] sm:$0xff]  ;;  %v11594_v54 = vld [vmem:[#allocation497_spill] sm:$0xff] }
 0xaff   : > { %v4165_v48 = vsel %vm4140_vm12, %v4121_v29, %v4123_v24  ;;  %v3969_v56 = vadd.f32 %v3905_v52, %v3707_v33  ;;  %v3384_v6 = vsel %vm3354_vm9, %v11585_v2, %v11587_v46  ;;  %v3906_v26 = vsel %vm3878_vm11, %v8409_v15, %v11588_v57  ;;  %v11598_v51 = vld [vmem:[#allocation478_spill] sm:$0xff] }
 0xb00   : > { %v8970_v28 = vadd.f32 %v4165_v48, %v3967_v40  ;;  %v3186_v17 = vadd.f32 %v3122_v22, %v8837_v42  ;;  %v3708_v30 = vadd.f32 %v3644_v27, %v3446_v35  ;;  %v3124_v40 = vsel %vm3092_vm8, %v11583_v61, %v11591_v9  ;;  %v11595_v48 = vld [vmem:[#allocation438_spill] sm:$0xff] }
 0xb01   : > { %v3187_v29 = vadd.f32 %v3123_v55, %v2925_v60  ;;  %v3645_v15 = vsel %vm3616_vm10, %v11593_v23, %v11592_v14  ;;  %v3447_v52 = vadd.f32 %v3383_v38, %v3185_v11  ;;  %v3385_v32 = vsel %vm3354_vm9, %v11587_v46, %v11595_v48  ;;  %v11596_v22 = vld [vmem:[#allocation458_spill] sm:$0xff] }
 0xb02   : > { %11581 = vst [vmem:[#allocation116_spill] sm:$0xff] %v8970_v28  ;;  %v4127_v36 = vpop.permute.xlu1 %4126  ;;  %v4125_v31 = vpop.permute.xlu0 %4124  ;;  %v3448_v42 = vadd.f32 %v3384_v6, %v3186_v17  ;;  %v3970_v1 = vadd.f32 %v3906_v26, %v3708_v30  ;;  %v3386_v60 = vsel %vm3354_vm9, %v11595_v48, %v11596_v22  ;;  %v3907_v61 = vsel %vm3878_vm11, %v8411_v5, %v8248_v39  ;;  %v11649_v28 = vld [vmem:[#allocation41_spill] sm:$0xff] }
 0xb03   : > { %v4166_v45 = vsel %vm4140_vm12, %v4123_v24, %v4125_v31  ;;  %v4167_v44 = vsel %vm4140_vm12, %v4125_v31, %v4127_v36  ;;  %v3646_v24 = vsel %vm3616_vm10, %v11592_v14, %v11594_v54  ;;  %v3908_v11 = vsel %vm3878_vm11, %v8248_v39, %v8492_v16 }
 0xb04   : > { %v8994_v49 = vadd.f32 %v4166_v45, %v3968_v4  ;;  %v8996_v47 = vadd.f32 %v4167_v44, %v3969_v56  ;;  %v3188_v0 = vadd.f32 %v3124_v40, %v2926_v63  ;;  %v3709_v27 = vadd.f32 %v3645_v15, %v3447_v52  ;;  %v11599_v4 = vld [vmem:[#allocation498_spill] sm:$0xff] }
 0xb05   : > { %v3710_v35 = vadd.f32 %v3646_v24, %v3448_v42  ;;  %v3647_v38 = vsel %vm3616_vm10, %v11594_v54, %v11598_v51  ;;  %v3648_v56 = vsel %vm3616_vm10, %v11598_v51, %v11599_v4  ;;  %v3449_v5 = vadd.f32 %v3385_v32, %v3187_v29  ;;  %v11605_v42 = vld [vmem:[#allocation27_spill] sm:$0xff]  ;;  %v11606_v32 = vld [vmem:[#allocation25_spill] sm:$0xff] }
 0xb06   : > { %11589 = vst [vmem:[#allocation136_spill] sm:$0xff] %v8994_v49  ;;  %11590 = vst [vmem:[#allocation137_spill] sm:$0xff] %v8996_v47  ;;  %v4131_v33 = vpop.permute.xlu1 %4130  ;;  %v4129_v19 = vpop.permute.xlu0 %4128  ;;  %v3450_v31 = vadd.f32 %v3386_v60, %v3188_v0  ;;  %v3971_v46 = vadd.f32 %v3907_v61, %v3709_v27  ;;  %v11607_v0 = vld [vmem:[#allocation29_spill] sm:$0xff] }
 0xb07   : > { %v4168_v55 = vsel %vm4140_vm12, %v4127_v36, %v4129_v19  ;;  %v3972_v6 = vadd.f32 %v3908_v11, %v3710_v35  ;;  %v11600_v36 = vld [vmem:[#allocation513_spill] sm:$0xff]  ;;  %v3711_v17 = vadd.f32 %v3647_v38, %v3449_v5  ;;  %v11608_v35 = vld [vmem:[#allocation35_spill] sm:$0xff]  ;;  %v11609_v38 = vld [vmem:[#allocation30_spill] sm:$0xff] }
 0xb08   : > { %v9020_v2 = vadd.f32 %v4168_v55, %v3970_v1  ;;  %v3909_v63 = vsel %vm3878_vm11, %v8492_v16, %v11600_v36  ;;  %v3910_v26 = vsel %vm3878_vm11, %v11600_v36, %v8530_v12  ;;  %v3712_v30 = vadd.f32 %v3648_v56, %v3450_v31  ;;  %v11610_v56 = vld [vmem:[#allocation37_spill] sm:$0xff]  ;;  %v11611_v31 = vld [vmem:[#allocation32_spill] sm:$0xff] }
 0xb09   : > { %v3973_v29 = vadd.f32 %v3909_v63, %v3711_v17  ;;  %v11618_v17 = vld [vmem:[#allocation15_spill] sm:$0xff] }
 0xb0a   : > { %11597 = vst [vmem:[#allocation118_spill] sm:$0xff] %v9020_v2  ;;  %v4135_v39 = vpop.permute.xlu1 %4134  ;;  %v4133_v57 = vpop.permute.xlu0 %4132  ;;  %v3974_v14 = vadd.f32 %v3910_v26, %v3712_v30  ;;  %v11616_v26 = vld [vmem:[#allocation17_spill] sm:$0xff] }
 0xb0b   : > { %v4169_v45 = vsel %vm4140_vm12, %v4131_v33, %v4133_v57  ;;  %v4170_v44 = vsel %vm4140_vm12, %v4133_v57, %v4135_v39  ;;  %v11614_v57 = vld [vmem:[#allocation16_spill] sm:$0xff]  ;;  %v11643_v2 = vld [vmem:[#allocation21_spill] sm:$0xff] }
 0xb0c   : > { %v9036_v9 = vadd.f32 %v4169_v45, %v3971_v46  ;;  %v9038_v40 = vadd.f32 %v4170_v44, %v3972_v6  ;;  %v11612_v6 = vld [vmem:[#allocation24_spill] sm:$0xff] }
 0xb0e   : > { %11601 = vst [vmem:[#allocation138_spill] sm:$0xff] %v9036_v9  ;;  %11602 = vst [vmem:[#allocation151_spill] sm:$0xff] %v9038_v40  ;;  %v4139_v23 = vpop.permute.xlu1 %4138  ;;  %v4137_v15 = vpop.permute.xlu0 %4136  ;;  %v11642_v9 = vld [vmem:[#allocation64_spill] sm:$0xff] }
 0xb0f   : > { %v4171_v16 = vsel %vm4140_vm12, %v4135_v39, %v4137_v15  ;;  %v4172_v54 = vsel %vm4140_vm12, %v4137_v15, %v4139_v23  ;;  %v11613_v39 = vld [vmem:[#allocation19_spill] sm:$0xff] }
 0xb10   : > { %v9042_v24 = vadd.f32 %v4171_v16, %v3973_v29  ;;  %v9044_v12 = vadd.f32 %v4172_v54, %v3974_v14  ;;  %v11615_v36 = vrot.slane %v11613_v39, %v11614_v57  ;;  %v11617_v45 = vrot.slane %v11613_v39, %v11616_v26  ;;  %v11620_v14 = vld [vmem:[#allocation18_spill] sm:$0xff]  ;;  %v11622_v16 = vld [vmem:[#allocation20_spill] sm:$0xff] }
 0xb11   : > { %v11619_v30 = vrot.slane %v11613_v39, %v11618_v17  ;;  %v11621_v23 = vrot.slane %v11613_v39, %v11620_v14  ;;  %v11623_v54 = vrot.slane %v11622_v16, %v11614_v57  ;;  %v11631_v39 = vld [vmem:[#allocation34_spill] sm:$0xff] }
 0xb12   : > { %11603 = vst [vmem:[#allocation152_spill] sm:$0xff] %v9042_v24  ;;  %11604 = vst [vmem:[#allocation171_spill] sm:$0xff] %v9044_v12  ;;  %v513_v63 = vmul.f32 %v11615_v36, %v11612_v6  ;;  %v514_v44 = vmul.f32 %v11617_v45, %v11612_v6  ;;  %v11638_v12 = vld [vmem:[#allocation62_spill] sm:$0xff] }
 0xb13   : > { %v515_v29 = vmul.f32 %v11619_v30, %v11612_v6  ;;  %v516_v15 = vmul.f32 %v11621_v23, %v11612_v6 }
 0xb1f   : > { %v9046_v52 = vpop.permute.xlu0 %4239 }
 0xb20   : > { %v4243_v48 = vmul.f32 %v9046_v52, %v11605_v42  ;;  %v4242_v1 = vmul.f32 %v9046_v52, %v11606_v32  ;;  %v4245_v33 = vmul.f32 %v9046_v52, %v5734_v3  ;;  %v4244_v19 = vmul.f32 %v9046_v52, %v5703_v10 }
 0xb21   : > { %v4247_v22 = vmul.f32 %v9046_v52, %v5747_v41  ;;  %v4246_v60 = vmul.f32 %v9046_v52, %v5719_v18  ;;  %v4249_v61 = vmul.f32 %v9046_v52, %v5759_v20  ;;  %v4248_v11 = vmul.f32 %v9046_v52, %v5731_v21 }
 0xb22   : > { %4324 = vrot.lane.b32.xlu0 %v4243_v48, %s5292_s5  ;;  %4322 = vrot.lane.b32.xlu1 %v4242_v1, %s5292_s5  ;;  %v4251_v55 = vmul.f32 %v9046_v52, %v5771_v53  ;;  %v4250_v27 = vmul.f32 %v9046_v52, %v11607_v0  ;;  %v4253_v51 = vmul.f32 %v9046_v52, %v11608_v35  ;;  %v11757_v35 = vld [vmem:[#allocation241_spill] sm:$0xff] }
 0xb23   : > { %v4252_v4 = vmul.f32 %v9046_v52, %v11609_v38  ;;  %v4255_v5 = vmul.f32 %v9046_v52, %v11610_v56  ;;  %v4254_v46 = vmul.f32 %v9046_v52, %v11611_v31  ;;  %v517_v48 = vmul.f32 %v11623_v54, %v11612_v6  ;;  %v11634_v54 = vld [vmem:[#allocation23_spill] sm:$0xff]  ;;  %v11655_v31 = vld [vmem:[#allocation68_spill] sm:$0xff] }
 0xb24   : > { %v11624_v1 = vrot.slane %v11622_v16, %v11616_v26  ;;  %v4256_v36 = vmul.f32 %v9046_v52, %v11631_v39  ;;  %v11650_v39 = vld [vmem:[#allocation36_spill] sm:$0xff] }
 0xb26   : > { %4328 = vrot.lane.b32.xlu0 %v4245_v33, %s5292_s5  ;;  %4326 = vrot.lane.b32.xlu1 %v4244_v19, %s5292_s5  ;;  %v518_v33 = vmul.f32 %v11624_v1, %v11612_v6  ;;  %v11625_v19 = vrot.slane %v11622_v16, %v11618_v17  ;;  %v11635_v1 = vrot.slane %v11634_v54, %v11614_v57 }
 0xb2a   : > { %4332 = vrot.lane.b32.xlu0 %v4247_v22, %s5292_s5  ;;  %4330 = vrot.lane.b32.xlu1 %v4246_v60, %s5292_s5  ;;  %v519_v22 = vmul.f32 %v11625_v19, %v11612_v6  ;;  %v11626_v60 = vrot.slane %v11622_v16, %v11620_v14  ;;  %v525_v19 = vmul.f32 %v11635_v1, %v11612_v6  ;;  %v11641_v1 = vld [vmem:[#allocation77_spill] sm:$0xff] }
 0xb2e   : > { %4336 = vrot.lane.b32.xlu0 %v4249_v61, %s5292_s5  ;;  %4334 = vrot.lane.b32.xlu1 %v4248_v11, %s5292_s5  ;;  %v520_v61 = vmul.f32 %v11626_v60, %v11612_v6  ;;  %v11627_v11 = vld [vmem:[#allocation22_spill] sm:$0xff]  ;;  %v11636_v60 = vrot.slane %v11634_v54, %v11616_v26 }
 0xb2f   : > { %v11632_v45 = vrot.slane %v11627_v11, %v11618_v17  ;;  %v11633_v23 = vrot.slane %v11627_v11, %v11620_v14 }
 0xb31   : > { %v523_v30 = vmul.f32 %v11632_v45, %v11612_v6  ;;  %v524_v16 = vmul.f32 %v11633_v23, %v11612_v6  ;;  %v11639_v45 = vrot.slane %v11634_v54, %v11618_v17  ;;  %v11640_v23 = vrot.slane %v11634_v54, %v11620_v14  ;;  %v11646_v54 = vld [vmem:[#allocation79_spill] sm:$0xff] }
 0xb32   : > { %4340 = vrot.lane.b32.xlu0 %v4251_v55, %s5292_s5  ;;  %4338 = vrot.lane.b32.xlu1 %v4250_v27, %s5292_s5  ;;  %v11628_v55 = vrot.slane %v11627_v11, %v11614_v57  ;;  %v11645_v14 = vrot.slane %v11643_v2, %v11616_v26 }
 0xb33   : > { %v528_v40 = vmul.f32 %v11640_v23, %v11612_v6  ;;  %v11647_v23 = vld [vmem:[#allocation82_spill] sm:$0xff] }
 0xb34   : > { %v521_v27 = vmul.f32 %v11628_v55, %v11612_v6  ;;  %v526_v55 = vmul.f32 %v11636_v60, %v11612_v6 }
 0xb36   : > { %4344 = vrot.lane.b32.xlu0 %v4253_v51, %s5292_s5  ;;  %4342 = vrot.lane.b32.xlu1 %v4252_v4, %s5292_s5  ;;  %v11629_v51 = vrot.slane %v11627_v11, %v11616_v26  ;;  %v527_v11 = vmul.f32 %v11639_v45, %v11612_v6  ;;  %v11644_v45 = vrot.slane %v11643_v2, %v11614_v57 }
 0xb37   : > { %v4258_v57 = vmul.f32 %v9046_v52, %v11650_v39  ;;  %v11656_v39 = vld [vmem:[#allocation87_spill] sm:$0xff] }
 0xb38   : > { %v522_v4 = vmul.f32 %v11629_v51, %v11612_v6  ;;  %v11637_v51 = vld [vmem:[#allocation63_spill] sm:$0xff]  ;;  %v529_v47 = vmul.f32 %v11644_v45, %v11612_v6 }
 0xb39   : > { %v997_v24 = vsel %vm996_vm0, %v11638_v12, %v11637_v51  ;;  %v998_v60 = vsel %vm996_vm0, %v11637_v51, %v11641_v1  ;;  %v999_v12 = vsel %vm996_vm0, %v11641_v1, %v11642_v9  ;;  %v11648_v51 = vld [vmem:[#allocation65_spill] sm:$0xff]  ;;  %v4259_v1 = vmul.f32 %v9046_v52, %v11649_v28 }
 0xb3a   : > { %4348 = vrot.lane.b32.xlu0 %v4255_v5, %s5292_s5  ;;  %4346 = vrot.lane.b32.xlu1 %v4254_v46, %s5292_s5  ;;  %v11630_v5 = vld [vmem:[#allocation39_spill] sm:$0xff]  ;;  %v1001_v49 = vsel %vm996_vm0, %v11648_v51, %v11647_v23  ;;  %v1061_v45 = vadd.f32 %v997_v24, %v513_v63  ;;  %v1005_v24 = vsel %vm996_vm0, %v11656_v39, %v11655_v31  ;;  %v11657_v63 = vld [vmem:[#allocation89_spill] sm:$0xff] }
 0xb3b   : > { %v4257_v46 = vmul.f32 %v9046_v52, %v11630_v5  ;;  %v11651_v5 = vld [vmem:[#allocation66_spill] sm:$0xff]  ;;  %v11654_v51 = vld [vmem:[#allocation67_spill] sm:$0xff]  ;;  %v1063_v56 = vadd.f32 %v999_v12, %v515_v29 }
 0xb3c   : > { %v1002_v26 = vsel %vm996_vm0, %v11647_v23, %v11651_v5  ;;  %v1006_v23 = vsel %vm996_vm0, %v11655_v31, %v11657_v63 }
 0xb3e   : > { %4352 = vrot.lane.b32.xlu0 %v4257_v46, %s5292_s5  ;;  %4350 = vrot.lane.b32.xlu1 %v4256_v36, %s5292_s5  ;;  %v530_v46 = vmul.f32 %v11645_v14, %v11612_v6  ;;  %v1000_v36 = vsel %vm996_vm0, %v11642_v9, %v11646_v54  ;;  %v11652_v14 = vld [vmem:[#allocation84_spill] sm:$0xff]  ;;  %v11653_v9 = vrot.slane %v11643_v2, %v11618_v17  ;;  %v270_v17 = vld [vmem:[%s10446_s0 + $0x78] sm:$0xff] }
 0xb3f   : > { %v1003_v25 = vsel %vm996_vm0, %v11651_v5, %v11652_v14  ;;  %v1004_v28 = vsel %vm996_vm0, %v11652_v14, %v11654_v51  ;;  %v1062_v5 = vadd.f32 %v998_v60, %v514_v44  ;;  %v1064_v2 = vadd.f32 %v1000_v36, %v516_v15  ;;  %v11659_v51 = vld [vmem:[#allocation92_spill] sm:$0xff]  ;;  %v11662_v60 = vld [vmem:[#allocation70_spill] sm:$0xff] }
 0xb40   : > { %v531_v54 = vmul.f32 %v11653_v9, %v11612_v6  ;;  %v1065_v6 = vadd.f32 %v1001_v49, %v517_v48  ;;  %v1066_v14 = vadd.f32 %v1002_v26, %v518_v33  ;;  %v11658_v9 = vld [vmem:[#allocation69_spill] sm:$0xff]  ;;  %v1067_v44 = vadd.f32 %v1003_v25, %v519_v22  ;;  %v11661_v48 = vld [vmem:[#allocation94_spill] sm:$0xff]  ;;  %v11663_v33 = vld [vmem:[#allocation71_spill] sm:$0xff] }
 0xb41   : > { %v1007_v39 = vsel %vm996_vm0, %v11657_v63, %v11658_v9  ;;  %v1008_v31 = vsel %vm996_vm0, %v11658_v9, %v11659_v51  ;;  %v1068_v29 = vadd.f32 %v1004_v28, %v520_v61  ;;  %v1069_v15 = vadd.f32 %v1005_v24, %v521_v27  ;;  %v11664_v26 = vld [vmem:[#allocation97_spill] sm:$0xff]  ;;  %v11665_v28 = vld [vmem:[#allocation72_spill] sm:$0xff]  ;;  %v11667_v27 = vld [vmem:[#allocation99_spill] sm:$0xff] }
 0xb42   : > { %4356 = vrot.lane.b32.xlu0 %v4259_v1, %s5292_s5  ;;  %4354 = vrot.lane.b32.xlu1 %v4258_v57, %s5292_s5  ;;  %v11660_v1 = vld [vmem:[#allocation38_spill] sm:$0xff]  ;;  %v1070_v49 = vadd.f32 %v1006_v23, %v522_v4  ;;  %v1009_v12 = vsel %vm996_vm0, %v11662_v60, %v11661_v48  ;;  %v1010_v36 = vsel %vm996_vm0, %v11661_v48, %v11663_v33  ;;  %v11666_v61 = vld [vmem:[#allocation73_spill] sm:$0xff] }
 0xb43   : > { %v4260_v57 = vmul.f32 %v9046_v52, %v11660_v1  ;;  %v1011_v63 = vsel %vm996_vm0, %v11663_v33, %v11664_v26  ;;  %v1071_v9 = vadd.f32 %v1007_v39, %v523_v30  ;;  %v1072_v25 = vadd.f32 %v1008_v31, %v524_v16  ;;  %v11668_v24 = vld [vmem:[#allocation102_spill] sm:$0xff]  ;;  %v11671_v16 = vld [vmem:[#allocation43_spill] sm:$0xff]  ;;  %v11675_v1 = vld [vmem:[#allocation120_spill] sm:$0xff] }
 0xb44   : > { %v1012_v22 = vsel %vm996_vm0, %v11664_v26, %v11665_v28  ;;  %v1013_v4 = vsel %vm996_vm0, %v11667_v27, %v11666_v61  ;;  %v1014_v23 = vsel %vm996_vm0, %v11666_v61, %v11668_v24  ;;  %v11669_v51 = vld [vmem:[#allocation74_spill] sm:$0xff]  ;;  %v1073_v39 = vadd.f32 %v1009_v12, %v525_v19  ;;  %v11672_v33 = vld [vmem:[#allocation119_spill] sm:$0xff]  ;;  %v11674_v27 = vld [vmem:[#allocation88_spill] sm:$0xff] }
 0xb45   : > { %v1015_v48 = vsel %vm996_vm0, %v11668_v24, %v11669_v51  ;;  %v1074_v31 = vadd.f32 %v1010_v36, %v526_v55  ;;  %v1075_v60 = vadd.f32 %v1011_v63, %v527_v11  ;;  %v11673_v26 = vld [vmem:[#allocation86_spill] sm:$0xff]  ;;  %v1260_v61 = vsel %vm1258_vm1, %v11672_v33, %v11674_v27  ;;  %v11677_v36 = vld [vmem:[#allocation91_spill] sm:$0xff]  ;;  %v11678_v63 = vld [vmem:[#allocation121_spill] sm:$0xff] }
 0xb46   : > { %4358 = vrot.lane.b32.xlu0 %v4260_v57, %s5292_s5  ;;  %4501 = vperm.xlu1 %5078, %v270_v17   ;;  %v11670_v57 = vld [vmem:[#allocation40_spill] sm:$0xff]  ;;  %v4261_v17 = vmul.f32 %v9046_v52, %v11671_v16  ;;  %v1259_v28 = vsel %vm1258_vm1, %v11673_v26, %v11672_v33  ;;  %v1261_v24 = vsel %vm1258_vm1, %v11674_v27, %v11675_v1  ;;  %v11676_v51 = vld [vmem:[#allocation90_spill] sm:$0xff] }
 0xb47   : > { %v4262_v30 = vmul.f32 %v9046_v52, %v11670_v57  ;;  %v1262_v57 = vsel %vm1258_vm1, %v11675_v1, %v11676_v51  ;;  %v1076_v19 = vadd.f32 %v1012_v22, %v528_v40  ;;  %v1077_v55 = vadd.f32 %v1013_v4, %v529_v47  ;;  %v11679_v26 = vld [vmem:[#allocation122_spill] sm:$0xff]  ;;  %v11681_v1 = vld [vmem:[#allocation45_spill] sm:$0xff]  ;;  %v11683_v22 = vld [vmem:[#allocation123_spill] sm:$0xff] }
 0xb48   : > { %v1078_v11 = vadd.f32 %v1014_v23, %v530_v46  ;;  %v1079_v12 = vadd.f32 %v1015_v48, %v531_v54  ;;  %v1263_v33 = vsel %vm1258_vm1, %v11678_v63, %v11677_v36  ;;  %v1264_v27 = vsel %vm1258_vm1, %v11677_v36, %v11679_v26  ;;  %v11680_v16 = vld [vmem:[#allocation42_spill] sm:$0xff]  ;;  %v11682_v46 = vld [vmem:[#allocation93_spill] sm:$0xff]  ;;  %v11684_v23 = vld [vmem:[#allocation124_spill] sm:$0xff] }
 0xb49   : > { %v4264_v13 = vmul.f32 %v9046_v52, %v11680_v16  ;;  %v1323_v51 = vadd.f32 %v1259_v28, %v1061_v45  ;;  %v1325_v40 = vadd.f32 %v1261_v24, %v1063_v56  ;;  %v1326_v47 = vadd.f32 %v1262_v57, %v1064_v2  ;;  %v11685_v48 = vld [vmem:[#allocation95_spill] sm:$0xff]  ;;  %v11686_v56 = vld [vmem:[#allocation96_spill] sm:$0xff]  ;;  %v11687_v57 = vld [vmem:[#allocation125_spill] sm:$0xff] }
 0xb4a   : > { %4362 = vrot.lane.b32.xlu0 %v4262_v30, %s5292_s5  ;;  %4360 = vrot.lane.b32.xlu1 %v4261_v17, %s5292_s5  ;;  %v4263_v30 = vmul.f32 %v9046_v52, %v11681_v1  ;;  %v1324_v17 = vadd.f32 %v1260_v61, %v1062_v5  ;;  %v1265_v54 = vsel %vm1258_vm1, %v11679_v26, %v11682_v46  ;;  %v11688_v61 = vld [vmem:[#allocation98_spill] sm:$0xff]  ;;  %v11689_v63 = vld [vmem:[#allocation100_spill] sm:$0xff]  ;;  %v11696_v16 = vld [vmem:[#allocation129_spill] sm:$0xff] }
 0xb4b   : > { %v1266_v4 = vsel %vm1258_vm1, %v11682_v46, %v11683_v22  ;;  %v1267_v36 = vsel %vm1258_vm1, %v11685_v48, %v11684_v23  ;;  %v1327_v45 = vadd.f32 %v1263_v33, %v1065_v6  ;;  %v1328_v5 = vadd.f32 %v1264_v27, %v1066_v14  ;;  %v11690_v26 = vld [vmem:[#allocation126_spill] sm:$0xff]  ;;  %v11691_v46 = vld [vmem:[#allocation44_spill] sm:$0xff]  ;;  %v11692_v14 = vld [vmem:[#allocation47_spill] sm:$0xff] }
 0xb4c   : > { %v1268_v2 = vsel %vm1258_vm1, %v11684_v23, %v11686_v56  ;;  %v1269_v28 = vsel %vm1258_vm1, %v11686_v56, %v11687_v57  ;;  %v1270_v24 = vsel %vm1258_vm1, %v11687_v57, %v11688_v61  ;;  %v4266_v6 = vmul.f32 %v9046_v52, %v11691_v46  ;;  %v11693_v23 = vld [vmem:[#allocation127_spill] sm:$0xff]  ;;  %v11694_v56 = vld [vmem:[#allocation101_spill] sm:$0xff]  ;;  %v11695_v61 = vld [vmem:[#allocation128_spill] sm:$0xff] }
 0xb4d   : > { %v4265_v33 = vmul.f32 %v9046_v52, %v11692_v14  ;;  %v1329_v27 = vadd.f32 %v1265_v54, %v1067_v44  ;;  %v1331_v22 = vadd.f32 %v1267_v36, %v1069_v15  ;;  %v1272_v48 = vsel %vm1258_vm1, %v11689_v63, %v11693_v23  ;;  %v11697_v46 = vld [vmem:[#allocation103_spill] sm:$0xff] }
 0xb4e   : > { %4366 = vrot.lane.b32.xlu0 %v4264_v13, %s5292_s5  ;;  %4364 = vrot.lane.b32.xlu1 %v4263_v30, %s5292_s5  ;;  %v1271_v13 = vsel %vm1258_vm1, %v11690_v26, %v11689_v63  ;;  %v1330_v30 = vadd.f32 %v1266_v4, %v1068_v29  ;;  %v1273_v57 = vsel %vm1258_vm1, %v11693_v23, %v11694_v56  ;;  %v11698_v4 = vld [vmem:[#allocation104_spill] sm:$0xff]  ;;  %v11699_v63 = vld [vmem:[#allocation130_spill] sm:$0xff] }
 0xb4f   : > { %v1274_v26 = vsel %vm1258_vm1, %v11694_v56, %v11695_v61  ;;  %v1275_v1 = vsel %vm1258_vm1, %v11697_v46, %v11696_v16  ;;  %v1332_v44 = vadd.f32 %v1268_v2, %v1070_v49  ;;  %v1333_v29 = vadd.f32 %v1269_v28, %v1071_v9  ;;  %v11700_v56 = vld [vmem:[#allocation46_spill] sm:$0xff]  ;;  %v11701_v46 = vld [vmem:[#allocation49_spill] sm:$0xff]  ;;  %v11704_v2 = vld [vmem:[#allocation140_spill] sm:$0xff] }
 0xb50   : > { %v1334_v15 = vadd.f32 %v1270_v24, %v1072_v25  ;;  %v1335_v54 = vadd.f32 %v1271_v13, %v1073_v39  ;;  %v1276_v36 = vsel %vm1258_vm1, %v11696_v16, %v11698_v4  ;;  %v1277_v23 = vsel %vm1258_vm1, %v11698_v4, %v11699_v63  ;;  %v11702_v25 = vld [vmem:[#allocation159_spill] sm:$0xff]  ;;  %v11705_v24 = vld [vmem:[#allocation160_spill] sm:$0xff] }
 0xb51   : > { %v4268_v61 = vmul.f32 %v9046_v52, %v11700_v56  ;;  %v1336_v14 = vadd.f32 %v1272_v48, %v1074_v31  ;;  %v9320_v49 = vadd.f32 %v1274_v26, %v1076_v19  ;;  %v9322_v9 = vadd.f32 %v1275_v1, %v1077_v55  ;;  %v11703_v39 = vld [vmem:[#allocation139_spill] sm:$0xff]  ;;  %v11706_v19 = vld [vmem:[#allocation141_spill] sm:$0xff]  ;;  %v11707_v1 = vld [vmem:[#allocation142_spill] sm:$0xff] }
 0xb52   : > { %4370 = vrot.lane.b32.xlu0 %v4266_v6, %s5292_s5  ;;  %4368 = vrot.lane.b32.xlu1 %v4265_v33, %s5292_s5  ;;  %v4267_v6 = vmul.f32 %v9046_v52, %v11701_v46  ;;  %v1337_v33 = vadd.f32 %v1273_v57, %v1075_v60  ;;  %v1521_v16 = vsel %vm1520_vm2, %v11703_v39, %v11702_v25  ;;  %v11708_v48 = vld [vmem:[#allocation161_spill] sm:$0xff]  ;;  %v11709_v26 = vld [vmem:[#allocation162_spill] sm:$0xff]  ;;  %v11710_v63 = vld [vmem:[#allocation143_spill] sm:$0xff] }
 0xb53   : > { %v1522_v28 = vsel %vm1520_vm2, %v11702_v25, %v11704_v2  ;;  %v1523_v13 = vsel %vm1520_vm2, %v11704_v2, %v11705_v24  ;;  %v9335_v31 = vadd.f32 %v1276_v36, %v1078_v11  ;;  %v9337_v60 = vadd.f32 %v1277_v23, %v1079_v12  ;;  %v11711_v11 = vld [vmem:[#allocation48_spill] sm:$0xff]  ;;  %v11712_v36 = vld [vmem:[#allocation51_spill] sm:$0xff]  ;;  %v11716_v56 = vld [vmem:[#allocation145_spill] sm:$0xff] }
 0xb54   : > { %v1524_v55 = vsel %vm1520_vm2, %v11705_v24, %v11706_v19  ;;  %v1525_v57 = vsel %vm1520_vm2, %v11708_v48, %v11707_v1  ;;  %v1526_v4 = vsel %vm1520_vm2, %v11707_v1, %v11709_v26  ;;  %v4270_v12 = vmul.f32 %v9046_v52, %v11711_v11  ;;  %v11713_v2 = vld [vmem:[#allocation163_spill] sm:$0xff]  ;;  %v11714_v19 = vld [vmem:[#allocation164_spill] sm:$0xff]  ;;  %v11717_v46 = vld [vmem:[#allocation165_spill] sm:$0xff] }
 0xb55   : > { %v4269_v23 = vmul.f32 %v9046_v52, %v11712_v36  ;;  %v1586_v25 = vadd.f32 %v1522_v28, %v1324_v17  ;;  %v1587_v39 = vadd.f32 %v1523_v13, %v1325_v40  ;;  %v1528_v24 = vsel %vm1520_vm2, %v11710_v63, %v11713_v2  ;;  %v11715_v48 = vld [vmem:[#allocation144_spill] sm:$0xff]  ;;  %v11718_v28 = vld [vmem:[#allocation146_spill] sm:$0xff] }
 0xb56   : > { %4374 = vrot.lane.b32.xlu0 %v4268_v61, %s5292_s5  ;;  %4372 = vrot.lane.b32.xlu1 %v4267_v6, %s5292_s5  ;;  %v1527_v61 = vsel %vm1520_vm2, %v11709_v26, %v11710_v63  ;;  %v1585_v6 = vadd.f32 %v1521_v16, %v1323_v51  ;;  %v1529_v1 = vsel %vm1520_vm2, %v11715_v48, %v11714_v19  ;;  %v11719_v63 = vld [vmem:[#allocation147_spill] sm:$0xff]  ;;  %v11720_v2 = vld [vmem:[#allocation166_spill] sm:$0xff] }
 0xb57   : > { %v1530_v26 = vsel %vm1520_vm2, %v11714_v19, %v11716_v56  ;;  %v1531_v11 = vsel %vm1520_vm2, %v11716_v56, %v11717_v46  ;;  %v1588_v51 = vadd.f32 %v1524_v55, %v1326_v47  ;;  %v1589_v17 = vadd.f32 %v1525_v57, %v1327_v45  ;;  %v11721_v48 = vld [vmem:[#allocation50_spill] sm:$0xff]  ;;  %v11722_v56 = vld [vmem:[#allocation53_spill] sm:$0xff]  ;;  %v11724_v55 = vld [vmem:[#allocation148_spill] sm:$0xff] }
 0xb58   : > { %v1590_v40 = vadd.f32 %v1526_v4, %v1328_v5  ;;  %v1591_v16 = vadd.f32 %v1527_v61, %v1329_v27  ;;  %v1532_v13 = vsel %vm1520_vm2, %v11717_v46, %v11718_v28  ;;  %v1533_v19 = vsel %vm1520_vm2, %v11720_v2, %v11719_v63  ;;  %v11723_v5 = vld [vmem:[#allocation167_spill] sm:$0xff]  ;;  %v11730_v28 = vld [vmem:[#allocation182_spill] sm:$0xff]  ;;  %v11732_v2 = vld [vmem:[#allocation52_spill] sm:$0xff] }
 0xb59   : > { %v4272_v36 = vmul.f32 %v9046_v52, %v11721_v48  ;;  %v1592_v59 = vadd.f32 %v1528_v24, %v1330_v30  ;;  %v1594_v47 = vadd.f32 %v1530_v26, %v1332_v44  ;;  %v1595_v45 = vadd.f32 %v1531_v11, %v1333_v29  ;;  %v11725_v57 = vld [vmem:[#allocation199_spill] sm:$0xff]  ;;  %v11727_v44 = vld [vmem:[#allocation180_spill] sm:$0xff] }
 0xb5a   : > { %4378 = vrot.lane.b32.xlu0 %v4270_v12, %s5292_s5  ;;  %4376 = vrot.lane.b32.xlu1 %v4269_v23, %s5292_s5  ;;  %v4271_v12 = vmul.f32 %v9046_v52, %v11722_v56  ;;  %v1593_v23 = vadd.f32 %v1529_v1, %v1331_v22  ;;  %v1534_v27 = vsel %vm1520_vm2, %v11719_v63, %v11723_v5  ;;  %v11726_v4 = vld [vmem:[#allocation179_spill] sm:$0xff]  ;;  %v11728_v11 = vld [vmem:[#allocation200_spill] sm:$0xff]  ;;  %v11729_v1 = vld [vmem:[#allocation181_spill] sm:$0xff] }
 0xb5b   : > { %v1535_v46 = vsel %vm1520_vm2, %v11723_v5, %v11724_v55  ;;  %v1783_v61 = vsel %vm1782_vm3, %v11726_v4, %v11725_v57  ;;  %v1596_v30 = vadd.f32 %v1532_v13, %v1334_v15  ;;  %v1597_v22 = vadd.f32 %v1533_v19, %v1335_v54  ;;  %v11731_v63 = vld [vmem:[#allocation201_spill] sm:$0xff]  ;;  %v11733_v54 = vld [vmem:[#allocation55_spill] sm:$0xff] }
 0xb5c   : > { %v1784_v29 = vsel %vm1782_vm3, %v11725_v57, %v11727_v44  ;;  %v1785_v24 = vsel %vm1782_vm3, %v11727_v44, %v11728_v11  ;;  %v1786_v26 = vsel %vm1782_vm3, %v11728_v11, %v11729_v1  ;;  %v4274_v15 = vmul.f32 %v9046_v52, %v11732_v2  ;;  %v11735_v44 = vld [vmem:[#allocation202_spill] sm:$0xff]  ;;  %v11736_v1 = vld [vmem:[#allocation183_spill] sm:$0xff]  ;;  %v11755_v56 = vld [vmem:[#allocation221_spill] sm:$0xff] }
 0xb5d   : > { %v4273_v13 = vmul.f32 %v9046_v52, %v11733_v54  ;;  %v1598_v19 = vadd.f32 %v1534_v27, %v1336_v14  ;;  %v1599_v57 = vadd.f32 %v1535_v46, %v1337_v33  ;;  %v1847_v4 = vadd.f32 %v1783_v61, %v1585_v6  ;;  %v11737_v2 = vld [vmem:[#allocation203_spill] sm:$0xff]  ;;  %v11739_v46 = vld [vmem:[#allocation184_spill] sm:$0xff] }
 0xb5e   : > { %4382 = vrot.lane.b32.xlu0 %v4272_v36, %s5292_s5  ;;  %4380 = vrot.lane.b32.xlu1 %v4271_v12, %s5292_s5  ;;  %v1787_v36 = vsel %vm1782_vm3, %v11731_v63, %v11730_v28  ;;  %v11734_v12 = vld [vmem:[#allocation168_spill] sm:$0xff]  ;;  %v1788_v11 = vsel %vm1782_vm3, %v11730_v28, %v11735_v44  ;;  %v1789_v63 = vsel %vm1782_vm3, %v11735_v44, %v11736_v1  ;;  %v11740_v28 = vld [vmem:[#allocation185_spill] sm:$0xff]  ;;  %v11741_v44 = vld [vmem:[#allocation54_spill] sm:$0xff] }
 0xb5f   : > { %v9409_v5 = vsel %vm1520_vm2, %v11724_v55, %v11734_v12  ;;  %v1790_v48 = vsel %vm1782_vm3, %v11736_v1, %v11737_v2  ;;  %v1848_v14 = vadd.f32 %v1784_v29, %v1586_v25  ;;  %v1849_v27 = vadd.f32 %v1785_v24, %v1587_v39  ;;  %v11738_v55 = vld [vmem:[#allocation204_spill] sm:$0xff]  ;;  %v11742_v2 = vld [vmem:[#allocation57_spill] sm:$0xff]  ;;  %v11745_v24 = vld [vmem:[#allocation187_spill] sm:$0xff] }
 0xb60   : > { %v1850_v33 = vadd.f32 %v1786_v26, %v1588_v51  ;;  %v1851_v6 = vadd.f32 %v1787_v36, %v1589_v17  ;;  %v1791_v61 = vsel %vm1782_vm3, %v11739_v46, %v11738_v55  ;;  %v1792_v12 = vsel %vm1782_vm3, %v11738_v55, %v11740_v28  ;;  %v11743_v39 = vld [vmem:[#allocation205_spill] sm:$0xff]  ;;  %v11744_v17 = vld [vmem:[#allocation186_spill] sm:$0xff]  ;;  %v11747_v55 = vld [vmem:[#allocation207_spill] sm:$0xff] }
 0xb61   : > { %v4276_v54 = vmul.f32 %v9046_v52, %v11741_v44  ;;  %v1852_v1 = vadd.f32 %v1788_v11, %v1590_v40  ;;  %v1854_v25 = vadd.f32 %v1790_v48, %v1592_v59  ;;  %v1793_v51 = vsel %vm1782_vm3, %v11740_v28, %v11743_v39  ;;  %v11746_v26 = vld [vmem:[#allocation206_spill] sm:$0xff]  ;;  %v11749_v11 = vld [vmem:[#allocation239_spill] sm:$0xff] }
 0xb62   : > { %4386 = vrot.lane.b32.xlu0 %v4274_v15, %s5292_s5  ;;  %4384 = vrot.lane.b32.xlu1 %v4273_v13, %s5292_s5  ;;  %v4275_v15 = vmul.f32 %v9046_v52, %v11742_v2  ;;  %v1853_v13 = vadd.f32 %v1789_v63, %v1591_v16  ;;  %v1794_v29 = vsel %vm1782_vm3, %v11743_v39, %v11744_v17  ;;  %v11748_v16 = vld [vmem:[#allocation188_spill] sm:$0xff]  ;;  %v11750_v63 = vld [vmem:[#allocation219_spill] sm:$0xff] }
 0xb63   : > { %v1795_v36 = vsel %vm1782_vm3, %v11746_v26, %v11745_v24  ;;  %v1796_v46 = vsel %vm1782_vm3, %v11745_v24, %v11747_v55  ;;  %v1855_v59 = vadd.f32 %v1791_v61, %v1593_v23  ;;  %v1856_v40 = vadd.f32 %v1792_v12, %v1594_v47  ;;  %v11751_v39 = vld [vmem:[#allocation220_spill] sm:$0xff]  ;;  %v11754_v47 = vld [vmem:[#allocation59_spill] sm:$0xff] }
 0xb64   : > { %v1797_v48 = vsel %vm1782_vm3, %v11747_v55, %v11748_v16  ;;  %v2045_v28 = vsel %vm2044_vm4, %v11750_v63, %v11749_v11  ;;  %v2046_v17 = vsel %vm2044_vm4, %v11749_v11, %v11751_v39  ;;  %v11752_v26 = vld [vmem:[#allocation240_spill] sm:$0xff]  ;;  %v4277_v61 = vmul.f32 %v9046_v52, %v11754_v47 }
 0xb65   : > { %v11753_v24 = vld [vmem:[#allocation56_spill] sm:$0xff]  ;;  %v1857_v12 = vadd.f32 %v1793_v51, %v1595_v45  ;;  %v1859_v55 = vadd.f32 %v1795_v36, %v1597_v22  ;;  %v1860_v44 = vadd.f32 %v1796_v46, %v1598_v19  ;;  %v1861_v2 = vadd.f32 %v1797_v48, %v1599_v57  ;;  %v11758_v45 = vld [vmem:[#allocation242_spill] sm:$0xff]  ;;  %v11759_v22 = vld [vmem:[#allocation223_spill] sm:$0xff] }
 0xb66   : > { %4390 = vrot.lane.b32.xlu0 %v4276_v54, %s5292_s5  ;;  %4388 = vrot.lane.b32.xlu1 %v4275_v15, %s5292_s5  ;;  %v2047_v54 = vsel %vm2044_vm4, %v11751_v39, %v11752_v26  ;;  %v4278_v23 = vmul.f32 %v9046_v52, %v11753_v24  ;;  %v1858_v15 = vadd.f32 %v1794_v29, %v1596_v30  ;;  %v11756_v24 = vld [vmem:[#allocation222_spill] sm:$0xff]  ;;  %v11760_v57 = vld [vmem:[#allocation243_spill] sm:$0xff]  ;;  %v11764_v36 = vld [vmem:[#allocation224_spill] sm:$0xff] }
 0xb67   : > { %v2109_v63 = vadd.f32 %v2045_v28, %v1847_v4  ;;  %v2048_v11 = vsel %vm2044_vm4, %v11752_v26, %v11755_v56  ;;  %v2110_v39 = vadd.f32 %v2046_v17, %v1848_v14  ;;  %v2111_v38 = vadd.f32 %v2047_v54, %v1849_v27  ;;  %v11761_v4 = vld [vmem:[#allocation58_spill] sm:$0xff]  ;;  %v11762_v27 = vld [vmem:[#allocation60_spill] sm:$0xff]  ;;  %v11765_v48 = vld [vmem:[#allocation225_spill] sm:$0xff] }
 0xb68   : > { %v2049_v47 = vsel %vm2044_vm4, %v11757_v35, %v11756_v24  ;;  %v2050_v30 = vsel %vm2044_vm4, %v11756_v24, %v11758_v45  ;;  %v2051_v19 = vsel %vm2044_vm4, %v11758_v45, %v11759_v22  ;;  %v2052_v56 = vsel %vm2044_vm4, %v11759_v22, %v11760_v57  ;;  %v11763_v35 = vld [vmem:[#allocation244_spill] sm:$0xff]  ;;  %v11766_v17 = vld [vmem:[#allocation245_spill] sm:$0xff]  ;;  %v11768_v45 = vld [vmem:[#allocation227_spill] sm:$0xff] }
 0xb69   : > { %v4280_v14 = vmul.f32 %v9046_v52, %v11761_v4  ;;  %v4279_v51 = vmul.f32 %v9046_v52, %v11762_v27  ;;  %v2112_v29 = vadd.f32 %v2048_v11, %v1850_v33  ;;  %v2053_v46 = vsel %vm2044_vm4, %v11764_v36, %v11763_v35  ;;  %v11769_v22 = vld [vmem:[#allocation246_spill] sm:$0xff]  ;;  %v11785_v4 = vld [vmem:[#allocation265_spill] sm:$0xff] }
 0xb6a   : > { %4394 = vrot.lane.b32.xlu0 %v4278_v23, %s5292_s5  ;;  %4392 = vrot.lane.b32.xlu1 %v4277_v61, %s5292_s5  ;;  %v2054_v28 = vsel %vm2044_vm4, %v11763_v35, %v11765_v48  ;;  %v2055_v26 = vsel %vm2044_vm4, %v11765_v48, %v11766_v17  ;;  %v2113_v54 = vadd.f32 %v2049_v47, %v1851_v6  ;;  %v11767_v23 = vld [vmem:[#allocation226_spill] sm:$0xff]  ;;  %v11770_v35 = vld [vmem:[#allocation247_spill] sm:$0xff] }
 0xb6b   : > { %v2114_v24 = vadd.f32 %v2050_v30, %v1852_v1  ;;  %v2056_v61 = vsel %vm2044_vm4, %v11766_v17, %v11767_v23  ;;  %v2115_v33 = vadd.f32 %v2051_v19, %v1853_v13  ;;  %v2116_v11 = vadd.f32 %v2052_v56, %v1854_v25  ;;  %v11771_v30 = vld [vmem:[#allocation61_spill] sm:$0xff]  ;;  %v11773_v25 = vld [vmem:[#allocation279_spill] sm:$0xff] }
 0xb6c   : > { %v2057_v57 = vsel %vm2044_vm4, %v11769_v22, %v11768_v45  ;;  %v2058_v36 = vsel %vm2044_vm4, %v11768_v45, %v11770_v35  ;;  %v2117_v6 = vadd.f32 %v2053_v46, %v1855_v59  ;;  %v2118_v1 = vadd.f32 %v2054_v28, %v1856_v40  ;;  %v11774_v19 = vld [vmem:[#allocation259_spill] sm:$0xff]  ;;  %v11776_v40 = vld [vmem:[#allocation280_spill] sm:$0xff]  ;;  %v11778_v46 = vld [vmem:[#allocation262_spill] sm:$0xff] }
 0xb6d   : > { %v2119_v47 = vadd.f32 %v2055_v26, %v1857_v12  ;;  %v4281_v48 = vmul.f32 %v9046_v52, %v11771_v30  ;;  %v2120_v17 = vadd.f32 %v2056_v61, %v1858_v15  ;;  %v2307_v56 = vsel %vm2306_vm5, %v11774_v19, %v11773_v25  ;;  %v11777_v52 = vld [vmem:[#allocation261_spill] sm:$0xff]  ;;  %v11780_v61 = vld [vmem:[#allocation282_spill] sm:$0xff] }
 0xb6e   : > { %4398 = vrot.lane.b32.xlu0 %v4280_v14, %s5292_s5  ;;  %4396 = vrot.lane.b32.xlu1 %v4279_v51, %s5292_s5  ;;  %v11772_v14 = vld [vmem:[#allocation228_spill] sm:$0xff]  ;;  %v2121_v45 = vadd.f32 %v2057_v57, %v1859_v55  ;;  %v2122_v59 = vadd.f32 %v2058_v36, %v1860_v44  ;;  %v2310_v15 = vsel %vm2306_vm5, %v11776_v40, %v11777_v52  ;;  %v11779_v28 = vld [vmem:[#allocation281_spill] sm:$0xff]  ;;  %v11781_v55 = vld [vmem:[#allocation263_spill] sm:$0xff] }
 0xb6f   : > { %v2059_v13 = vsel %vm2044_vm4, %v11770_v35, %v11772_v14  ;;  %v11775_v51 = vld [vmem:[#allocation260_spill] sm:$0xff]  ;;  %v2311_v26 = vsel %vm2306_vm5, %v11779_v28, %v11778_v46  ;;  %v2312_v22 = vsel %vm2306_vm5, %v11778_v46, %v11780_v61  ;;  %v2313_v44 = vsel %vm2306_vm5, %v11780_v61, %v11781_v55  ;;  %v11782_v57 = vld [vmem:[#allocation283_spill] sm:$0xff]  ;;  %v11786_v30 = vld [vmem:[#allocation285_spill] sm:$0xff] }
 0xb70   : > { %v2308_v23 = vsel %vm2306_vm5, %v11773_v25, %v11775_v51  ;;  %v2309_v12 = vsel %vm2306_vm5, %v11775_v51, %v11776_v40  ;;  %v2314_v35 = vsel %vm2306_vm5, %v11781_v55, %v11782_v57  ;;  %v2123_v36 = vadd.f32 %v2059_v13, %v1861_v2  ;;  %v11784_v51 = vld [vmem:[#allocation264_spill] sm:$0xff] }
 0xb71   : > { %v2371_v25 = vadd.f32 %v2307_v56, %v2109_v63  ;;  %v2372_v19 = vadd.f32 %v2308_v23, %v2110_v39  ;;  %v2373_v52 = vadd.f32 %v2309_v12, %v2111_v38  ;;  %v2374_v28 = vadd.f32 %v2310_v15, %v2112_v29  ;;  %v11787_v39 = vld [vmem:[#allocation266_spill] sm:$0xff]  ;;  %v11788_v56 = vld [vmem:[#allocation267_spill] sm:$0xff] }
 0xb72   : > { %4400 = vrot.lane.b32.xlu1 %v4281_v48, %s5292_s5  ;;  %v11783_v48 = vld [vmem:[#allocation284_spill] sm:$0xff]  ;;  %v2317_v61 = vsel %vm2306_vm5, %v11785_v4, %v11786_v30  ;;  %v2375_v27 = vadd.f32 %v2311_v26, %v2113_v54  ;;  %v2376_v58 = vadd.f32 %v2312_v22, %v2114_v24  ;;  %v2377_v55 = vadd.f32 %v2313_v44, %v2115_v33  ;;  %v11789_v38 = vld [vmem:[#allocation286_spill] sm:$0xff]  ;;  %v11790_v23 = vld [vmem:[#allocation287_spill] sm:$0xff]  ;;  %s5294_s5 = smov [#allocation7]  }
 0xb73   : > { %v2315_v40 = vsel %vm2306_vm5, %v11784_v51, %v11783_v48  ;;  %v2316_v46 = vsel %vm2306_vm5, %v11783_v48, %v11785_v4  ;;  %v2378_v2 = vadd.f32 %v2314_v35, %v2116_v11  ;;  %v2318_v13 = vsel %vm2306_vm5, %v11786_v30, %v11787_v39  ;;  %v11791_v4 = vld [vmem:[#allocation268_spill] sm:$0xff]  ;;  %v11792_v24 = vld [vmem:[#allocation319_spill] sm:$0xff]  ;;  %v11796_v44 = vld [vmem:[#allocation301_spill] sm:$0xff]  ;;  %s5151_s6 = sshll.u32 %s5294_s5, 4  ;;  %s5152_s6 = int_to_ptr.vmem [resolvable:$false] %s5151_s6 }
 0xb74   : > { %v2379_v63 = vadd.f32 %v2315_v40, %v2117_v6  ;;  %v2319_v29 = vsel %vm2306_vm5, %v11789_v38, %v11788_v56  ;;  %v2320_v12 = vsel %vm2306_vm5, %v11788_v56, %v11790_v23  ;;  %v2380_v15 = vadd.f32 %v2316_v46, %v2118_v1  ;;  %v11793_v33 = vld [vmem:[#allocation299_spill] sm:$0xff]  ;;  %v11794_v6 = vld [vmem:[#allocation300_spill] sm:$0xff]  ;;  %v11798_v35 = vld [vmem:[#allocation321_spill] sm:$0xff]  ;;  %s5153_s26 = scalar_lea.vmem %s5152_s6, 8192  ;;  %p5154_p1 = scmp.lt.s32.totalorder %s10373_s18, %s5152_s6 }
 0xb75   : > { %v2381_v57 = vadd.f32 %v2317_v61, %v2119_v47  ;;  %v2321_v54 = vsel %vm2306_vm5, %v11790_v23, %v11791_v4  ;;  %v2569_v11 = vsel %vm2568_vm6, %v11793_v33, %v11792_v24  ;;  %v2570_v30 = vsel %vm2568_vm6, %v11792_v24, %v11794_v6  ;;  %v11795_v26 = vld [vmem:[#allocation320_spill] sm:$0xff]  ;;  %v11797_v47 = vld [vmem:[#allocation302_spill] sm:$0xff]  ;;  %v11800_v23 = vld [vmem:[#allocation303_spill] sm:$0xff]  ;;  %p5155_p12 = scmp.lt.s32.totalorder %s5153_s26, %s5147_s4 }
 0xb76   : > { %v2571_v22 = vsel %vm2568_vm6, %v11794_v6, %v11795_v26  ;;  %v2572_v1 = vsel %vm2568_vm6, %v11795_v26, %v11796_v44  ;;  %v2573_v48 = vsel %vm2568_vm6, %v11798_v35, %v11797_v47  ;;  %v2382_v51 = vadd.f32 %v2318_v13, %v2120_v17  ;;  %v11799_v61 = vld [vmem:[#allocation322_spill] sm:$0xff]  ;;  %v11801_v33 = vld [vmem:[#allocation323_spill] sm:$0xff]  ;;  %v11803_v13 = vld [vmem:[#allocation304_spill] sm:$0xff] }
 0xb77   : > { %v2383_v40 = vadd.f32 %v2319_v29, %v2121_v45  ;;  %v2384_v46 = vadd.f32 %v2320_v12, %v2122_v59  ;;  %v2574_v39 = vsel %vm2568_vm6, %v11797_v47, %v11799_v61  ;;  %v2385_v56 = vadd.f32 %v2321_v54, %v2123_v36  ;;  %v11802_v59 = vld [vmem:[#allocation324_spill] sm:$0xff]  ;;  %v11804_v12 = vld [vmem:[#allocation305_spill] sm:$0xff]  ;;  %p5156_p10 = por %p5155_p12, %p5154_p1 }
 0xb78   : > { %v2633_v38 = vadd.f32 %v2569_v11, %v2371_v25  ;;  %v2575_v24 = vsel %vm2568_vm6, %v11799_v61, %v11800_v23  ;;  %v2576_v6 = vsel %vm2568_vm6, %v11800_v23, %v11801_v33  ;;  %v2634_v26 = vadd.f32 %v2570_v30, %v2372_v19  ;;  %v11805_v25 = vld [vmem:[#allocation325_spill] sm:$0xff]  ;;  %v11806_v61 = vld [vmem:[#allocation306_spill] sm:$0xff] }
 0xb79   : > { %v2635_v44 = vadd.f32 %v2571_v22, %v2373_v52  ;;  %v2636_v35 = vadd.f32 %v2572_v1, %v2374_v28  ;;  %v2637_v17 = vadd.f32 %v2573_v48, %v2375_v27  ;;  %v2638_v45 = vadd.f32 %v2574_v39, %v2376_v58  ;;  %v11807_v27 = vld [vmem:[#allocation307_spill] sm:$0xff]  ;;  %v11808_v58 = vld [vmem:[#allocation326_spill] sm:$0xff]  ;;  %v11810_v22 = vld [vmem:[#allocation308_spill] sm:$0xff]  ;;  %p5157_p2 = pnand %p5156_p10, %p5150_p8 }
 0xb7a   : > { %v2577_v29 = vsel %vm2568_vm6, %v11803_v13, %v11802_v59  ;;  %v2578_v36 = vsel %vm2568_vm6, %v11802_v59, %v11804_v12  ;;  %v2579_v54 = vsel %vm2568_vm6, %v11804_v12, %v11805_v25  ;;  %v2639_v11 = vadd.f32 %v2575_v24, %v2377_v55  ;;  %v11809_v28 = vld [vmem:[#allocation327_spill] sm:$0xff]  ;;  %v11814_v59 = vld [vmem:[#allocation360_spill] sm:$0xff] }
 0xb7b   : > { %v2640_v47 = vadd.f32 %v2576_v6, %v2378_v2  ;;  %v2580_v19 = vsel %vm2568_vm6, %v11805_v25, %v11806_v61  ;;  %v2581_v52 = vsel %vm2568_vm6, %v11808_v58, %v11807_v27  ;;  %v2582_v30 = vsel %vm2568_vm6, %v11807_v27, %v11809_v28  ;;  %v11811_v48 = vld [vmem:[#allocation359_spill] sm:$0xff]  ;;  %v11813_v2 = vld [vmem:[#allocation340_spill] sm:$0xff]  ;;  %v11815_v61 = vld [vmem:[#allocation341_spill] sm:$0xff] }
 0xb7c   : > { %v2583_v1 = vsel %vm2568_vm6, %v11809_v28, %v11810_v22  ;;  %v11812_v39 = vld [vmem:[#allocation339_spill] sm:$0xff]  ;;  %v2832_v23 = vsel %vm2830_vm7, %v11811_v48, %v11813_v2  ;;  %v2641_v24 = vadd.f32 %v2577_v29, %v2379_v63  ;;  %v2642_v33 = vadd.f32 %v2578_v36, %v2380_v15  ;;  %v11816_v58 = vld [vmem:[#allocation342_spill] sm:$0xff]  ;;  %v11817_v28 = vld [vmem:[#allocation361_spill] sm:$0xff] }
 0xb7d   : > { %v2831_v55 = vsel %vm2830_vm7, %v11812_v39, %v11811_v48  ;;  %v2643_v6 = vadd.f32 %v2579_v54, %v2381_v57  ;;  %v2833_v13 = vsel %vm2830_vm7, %v11813_v2, %v11814_v59  ;;  %v2644_v12 = vadd.f32 %v2580_v19, %v2382_v51  ;;  %v11818_v57 = vld [vmem:[#allocation362_spill] sm:$0xff]  ;;  %v11819_v36 = vld [vmem:[#allocation343_spill] sm:$0xff]  ;;  %v11821_v2 = vld [vmem:[#allocation364_spill] sm:$0xff] }
 0xb7e   : > { %v2645_v25 = vadd.f32 %v2581_v52, %v2383_v40  ;;  %v2834_v27 = vsel %vm2830_vm7, %v11814_v59, %v11815_v61  ;;  %v2835_v39 = vsel %vm2830_vm7, %v11817_v28, %v11816_v58  ;;  %v2646_v0 = vadd.f32 %v2582_v30, %v2384_v46  ;;  %v11820_v40 = vld [vmem:[#allocation363_spill] sm:$0xff]  ;;  %v11822_v46 = vld [vmem:[#allocation344_spill] sm:$0xff]  ;;  %v11827_v59 = vld [vmem:[#allocation366_spill] sm:$0xff] }
 0xb7f   : > { %v2647_v53 = vadd.f32 %v2583_v1, %v2385_v56  ;;  %v2895_v48 = vadd.f32 %v2831_v55, %v2633_v38  ;;  %v2896_v63 = vadd.f32 %v2832_v23, %v2634_v26  ;;  %v2897_v15 = vadd.f32 %v2833_v13, %v2635_v44  ;;  %v11823_v38 = vld [vmem:[#allocation345_spill] sm:$0xff]  ;;  %v11825_v1 = vld [vmem:[#allocation346_spill] sm:$0xff]  ;;  %v11826_v23 = vld [vmem:[#allocation347_spill] sm:$0xff] }
 0xb80   : > { %v2836_v29 = vsel %vm2830_vm7, %v11816_v58, %v11818_v57  ;;  %v2837_v51 = vsel %vm2830_vm7, %v11818_v57, %v11819_v36  ;;  %v2838_v54 = vsel %vm2830_vm7, %v11819_v36, %v11820_v40  ;;  %v2898_v19 = vadd.f32 %v2834_v27, %v2636_v35  ;;  %v11824_v44 = vld [vmem:[#allocation365_spill] sm:$0xff]  ;;  %v11829_v28 = vld [vmem:[#allocation348_spill] sm:$0xff]  ;;  %v11830_v40 = vld [vmem:[#allocation399_spill] sm:$0xff] }
 0xb81   : > { %v2899_v52 = vadd.f32 %v2835_v39, %v2637_v17  ;;  %v2839_v56 = vsel %vm2830_vm7, %v11822_v46, %v11821_v2  ;;  %v2840_v26 = vsel %vm2830_vm7, %v11821_v2, %v11823_v38  ;;  %v2841_v30 = vsel %vm2830_vm7, %v11823_v38, %v11824_v44  ;;  %v11828_v17 = vld [vmem:[#allocation367_spill] sm:$0xff]  ;;  %v11832_v38 = vld [vmem:[#allocation380_spill] sm:$0xff] }
 0xb82   : > { %v2842_v55 = vsel %vm2830_vm7, %v11824_v44, %v11825_v1  ;;  %v2843_v35 = vsel %vm2830_vm7, %v11827_v59, %v11826_v23  ;;  %v2844_v13 = vsel %vm2830_vm7, %v11826_v23, %v11828_v17  ;;  %v2900_v61 = vadd.f32 %v2836_v29, %v2638_v45  ;;  %v11831_v2 = vld [vmem:[#allocation379_spill] sm:$0xff] }
 0xb83   : > { %v2901_v27 = vadd.f32 %v2837_v51, %v2639_v11  ;;  %v2902_v58 = vadd.f32 %v2838_v54, %v2640_v47  ;;  %v2845_v39 = vsel %vm2830_vm7, %v11828_v17, %v11829_v28  ;;  %v2903_v57 = vadd.f32 %v2839_v56, %v2641_v24  ;;  %v11833_v47 = vld [vmem:[#allocation400_spill] sm:$0xff]  ;;  %v11835_v51 = vld [vmem:[#allocation382_spill] sm:$0xff]  ;;  %v11836_v54 = vld [vmem:[#allocation401_spill] sm:$0xff] }
 0xb84   : > { %v2904_v36 = vadd.f32 %v2840_v26, %v2642_v33  ;;  %v3093_v46 = vsel %vm3092_vm8, %v11831_v2, %v11830_v40  ;;  %v3094_v44 = vsel %vm3092_vm8, %v11830_v40, %v11832_v38  ;;  %v2905_v1 = vadd.f32 %v2841_v30, %v2643_v6  ;;  %v11834_v33 = vld [vmem:[#allocation381_spill] sm:$0xff]  ;;  %v11839_v30 = vld [vmem:[#allocation403_spill] sm:$0xff]  ;;  %v11841_v17 = vld [vmem:[#allocation384_spill] sm:$0xff] }
 0xb85   : > { %v2906_v59 = vadd.f32 %v2842_v55, %v2644_v12  ;;  %v9650_v23 = vadd.f32 %v2843_v35, %v2645_v25  ;;  %v9652_v45 = vadd.f32 %v2844_v13, %v2646_v0  ;;  %v9654_v11 = vadd.f32 %v2845_v39, %v2647_v53  ;;  %v11837_v25 = vld [vmem:[#allocation402_spill] sm:$0xff]  ;;  %v11838_v53 = vld [vmem:[#allocation383_spill] sm:$0xff]  ;;  %v11840_v35 = vld [vmem:[#allocation404_spill] sm:$0xff] }
 0xb86   : > { %v3095_v24 = vsel %vm3092_vm8, %v11832_v38, %v11833_v47  ;;  %v3096_v29 = vsel %vm3092_vm8, %v11833_v47, %v11834_v33  ;;  %v3097_v56 = vsel %vm3092_vm8, %v11836_v54, %v11835_v51  ;;  %v3157_v6 = vadd.f32 %v3093_v46, %v2895_v48  ;;  %v11842_v39 = vld [vmem:[#allocation385_spill] sm:$0xff]  ;;  %v11844_v40 = vld [vmem:[#allocation419_spill] sm:$0xff] }
 0xb87   : > { %v3158_v12 = vadd.f32 %v3094_v44, %v2896_v63  ;;  %v3098_v0 = vsel %vm3092_vm8, %v11835_v51, %v11837_v25  ;;  %v3099_v26 = vsel %vm3092_vm8, %v11837_v25, %v11838_v53  ;;  %v3100_v55 = vsel %vm3092_vm8, %v11838_v53, %v11839_v30  ;;  %v11843_v63 = vld [vmem:[#allocation439_spill] sm:$0xff]  ;;  %v11845_v47 = vld [vmem:[#allocation405_spill] sm:$0xff]  ;;  %v11846_v25 = vld [vmem:[#allocation386_spill] sm:$0xff] }
 0xb88   : > { %v3101_v13 = vsel %vm3092_vm8, %v11841_v17, %v11840_v35  ;;  %v3102_v48 = vsel %vm3092_vm8, %v11840_v35, %v11842_v39  ;;  %v3355_v2 = vsel %vm3354_vm9, %v11844_v40, %v11843_v63  ;;  %v3159_v46 = vadd.f32 %v3095_v24, %v2897_v15  ;;  %v11847_v30 = vld [vmem:[#allocation479_spill] sm:$0xff]  ;;  %v11849_v24 = vld [vmem:[#allocation420_spill] sm:$0xff] }
 0xb89   : > { %v3160_v38 = vadd.f32 %v3096_v29, %v2898_v19  ;;  %v3161_v44 = vadd.f32 %v3097_v56, %v2899_v52  ;;  %v3103_v33 = vsel %vm3092_vm8, %v11842_v39, %v11845_v47  ;;  %v3162_v51 = vadd.f32 %v3098_v0, %v2900_v61  ;;  %v11848_v17 = vld [vmem:[#allocation459_spill] sm:$0xff]  ;;  %v11851_v56 = vld [vmem:[#allocation514_spill] sm:$0xff]  ;;  %v11858_v40 = vld [vmem:[#allocation480_spill] sm:$0xff] }
 0xb8a   : > { %v3163_v54 = vadd.f32 %v3099_v26, %v2901_v27  ;;  %v3104_v53 = vsel %vm3092_vm8, %v11845_v47, %v11846_v25  ;;  %v3617_v35 = vsel %vm3616_vm10, %v11848_v17, %v11847_v30  ;;  %v3164_v37 = vadd.f32 %v3100_v55, %v2902_v58  ;;  %v11850_v27 = vld [vmem:[#allocation440_spill] sm:$0xff]  ;;  %v11852_v0 = vld [vmem:[#allocation499_spill] sm:$0xff] }
 0xb8b   : > { %v9692_v21 = vadd.f32 %v3101_v13, %v2903_v57  ;;  %v9694_v15 = vadd.f32 %v3102_v48, %v2904_v36  ;;  %v3419_v19 = vadd.f32 %v3355_v2, %v3157_v6  ;;  %v9696_v52 = vadd.f32 %v3103_v33, %v2905_v1  ;;  %v11853_v57 = vld [vmem:[#allocation387_spill] sm:$0xff]  ;;  %v11854_v36 = vld [vmem:[#allocation406_spill] sm:$0xff]  ;;  %v11855_v1 = vld [vmem:[#allocation421_spill] sm:$0xff] }
 0xb8c   : > { %v3356_v61 = vsel %vm3354_vm9, %v11843_v63, %v11849_v24  ;;  %v3357_v29 = vsel %vm3354_vm9, %v11849_v24, %v11850_v27  ;;  %v3879_v26 = vsel %vm3878_vm11, %v11852_v0, %v11851_v56  ;;  %v9707_v58 = vadd.f32 %v3104_v53, %v2906_v59  ;;  %v11856_v39 = vld [vmem:[#allocation407_spill] sm:$0xff]  ;;  %v11857_v63 = vld [vmem:[#allocation460_spill] sm:$0xff]  ;;  %v11861_v24 = vld [vmem:[#allocation422_spill] sm:$0xff] }
 0xb8d   : > { %v9712_v6 = vsel %vm3092_vm8, %v11854_v36, %v11853_v57  ;;  %v3358_v55 = vsel %vm3354_vm9, %v11850_v27, %v11855_v1  ;;  %v3681_v13 = vadd.f32 %v3617_v35, %v3419_v19  ;;  %v9720_v48 = vsel %vm3092_vm8, %v11853_v57, %v11856_v39  ;;  %v11859_v47 = vld [vmem:[#allocation75_spill] sm:$0xff]  ;;  %v11862_v27 = vld [vmem:[#allocation441_spill] sm:$0xff]  ;;  %v11863_v57 = vld [vmem:[#allocation500_spill] sm:$0xff] }
 0xb8e   : > { %v3618_v59 = vsel %vm3616_vm10, %v11847_v30, %v11857_v63  ;;  %v3619_v2 = vsel %vm3616_vm10, %v11857_v63, %v11858_v40  ;;  %v11860_v33 = vld [vmem:[#allocation107_spill] sm:$0xff]  ;;  %v3420_v53 = vadd.f32 %v3356_v61, %v3158_v12  ;;  %v3421_v17 = vadd.f32 %v3357_v29, %v3159_v46  ;;  %v11865_v63 = vld [vmem:[#allocation442_spill] sm:$0xff] }
 0xb8f   : > { %v4141_v25 = vsel %vm4140_vm12, %v11860_v33, %v11859_v47  ;;  %v3943_v35 = vadd.f32 %v3879_v26, %v3681_v13  ;;  %v3422_v19 = vadd.f32 %v3358_v55, %v3160_v38  ;;  %v3359_v0 = vsel %vm3354_vm9, %v11862_v27, %v11861_v24  ;;  %v11864_v36 = vld [vmem:[#allocation515_spill] sm:$0xff]  ;;  %v11866_v55 = vld [vmem:[#allocation461_spill] sm:$0xff]  ;;  %v11867_v33 = vld [vmem:[#allocation78_spill] sm:$0xff] }
 0xb90   : > { %v3880_v30 = vsel %vm3878_vm11, %v11851_v56, %v11863_v57  ;;  %v3881_v1 = vsel %vm3878_vm11, %v11863_v57, %v11864_v36  ;;  %v3360_v12 = vsel %vm3354_vm9, %v11861_v24, %v11865_v63  ;;  %v3682_v46 = vadd.f32 %v3618_v59, %v3420_v53  ;;  %v11868_v27 = vld [vmem:[#allocation76_spill] sm:$0xff] }
 0xb91   : > { %v3683_v61 = vadd.f32 %v3619_v2, %v3421_v17  ;;  %v4205_v29 = vadd.f32 %v4141_v25, %v3943_v35  ;;  %v3620_v13 = vsel %vm3616_vm10, %v11858_v40, %v11866_v55  ;;  %v4142_v56 = vsel %vm4140_vm12, %v11859_v47, %v11867_v33  ;;  %v11869_v17 = vld [vmem:[#allocation423_spill] sm:$0xff]  ;;  %v11871_v55 = vld [vmem:[#allocation501_spill] sm:$0xff] }
 0xb92   : > { %v4143_v57 = vsel %vm4140_vm12, %v11867_v33, %v11868_v27  ;;  %v3423_v24 = vadd.f32 %v3359_v0, %v3161_v44  ;;  %v3944_v59 = vadd.f32 %v3880_v30, %v3682_v46  ;;  %v3424_v53 = vadd.f32 %v3360_v12, %v3162_v51  ;;  %v11870_v35 = vld [vmem:[#allocation443_spill] sm:$0xff]  ;;  %v11873_v44 = vld [vmem:[#allocation481_spill] sm:$0xff]  ;;  %v11874_v12 = vld [vmem:[#allocation482_spill] sm:$0xff] }
 0xb93   : > { %v3945_v2 = vadd.f32 %v3881_v1, %v3683_v61  ;;  %v3361_v40 = vsel %vm3354_vm9, %v11865_v63, %v11869_v17  ;;  %v3362_v47 = vsel %vm3354_vm9, %v11869_v17, %v11870_v35  ;;  %v3882_v33 = vsel %vm3878_vm11, %v11864_v36, %v11871_v55  ;;  %v11875_v46 = vld [vmem:[#allocation111_spill] sm:$0xff]  ;;  %v11878_v55 = vld [vmem:[#allocation502_spill] sm:$0xff] }
 0xb94   : > { %v4325_v38 = vpop.permute.xlu0 %4324  ;;  %v4323_v26 = vpop.permute.xlu1 %4322  ;;  %v3684_v18 = vadd.f32 %v3620_v13, %v3422_v19  ;;  %v4144_v61 = vsel %vm4140_vm12, %v11868_v27, %v11875_v46  ;;  %v3425_v36 = vadd.f32 %v3361_v40, %v3163_v54  ;;  %v11880_v27 = vld [vmem:[#allocation517_spill] sm:$0xff] }
 0xb95   : > { %v4403_v20 = vsel %vm4402_vm13, %v4323_v26, %v4325_v38  ;;  %v11872_v26 = vld [vmem:[#allocation462_spill] sm:$0xff]  ;;  %v4207_v30 = vadd.f32 %v4143_v57, %v3945_v2  ;;  %v3426_v57 = vadd.f32 %v3362_v47, %v3164_v37  ;;  %v11877_v2 = vld [vmem:[#allocation424_spill] sm:$0xff]  ;;  %v11883_v46 = vld [vmem:[#allocation113_spill] sm:$0xff] }
 0xb96   : > { %v9753_v25 = vadd.f32 %v4403_v20, %v4205_v29  ;;  %v3621_v0 = vsel %vm3616_vm10, %v11873_v44, %v11872_v26  ;;  %v4206_v20 = vadd.f32 %v4142_v56, %v3944_v59  ;;  %v3622_v63 = vsel %vm3616_vm10, %v11872_v26, %v11874_v12  ;;  %v11876_v59 = vld [vmem:[#allocation444_spill] sm:$0xff] }
 0xb97   : > { %v3946_v13 = vadd.f32 %v3882_v33, %v3684_v18  ;;  %v3363_v35 = vsel %vm3354_vm9, %v11877_v2, %v11876_v59  ;;  %v11879_v26 = vld [vmem:[#allocation516_spill] sm:$0xff]  ;;  %v3686_v54 = vadd.f32 %v3622_v63, %v3424_v53  ;;  %v11881_v18 = vld [vmem:[#allocation463_spill] sm:$0xff] }
 0xb98   : > { %v4329_v51 = vpop.permute.xlu0 %4328  ;;  %v4327_v1 = vpop.permute.xlu1 %4326  ;;  %v3883_v44 = vsel %vm3878_vm11, %v11879_v26, %v11878_v55  ;;  %v3623_v40 = vsel %vm3616_vm10, %v11874_v12, %v11881_v18  ;;  %v11885_v2 = vld [vmem:[#allocation80_spill] sm:$0xff] }
 0xb99   : > { %v4404_v29 = vsel %vm4402_vm13, %v4325_v38, %v4327_v1  ;;  %v4405_v19 = vsel %vm4402_vm13, %v4327_v1, %v4329_v51  ;;  %v3884_v38 = vsel %vm3878_vm11, %v11878_v55, %v11880_v27  ;;  %v3685_v1 = vadd.f32 %v3621_v0, %v3423_v24 }
 0xb9a   : > { %v9775_v17 = vadd.f32 %v4404_v29, %v4206_v20  ;;  %v9777_v56 = vadd.f32 %v4405_v19, %v4207_v30  ;;  %v4208_v33 = vadd.f32 %v4144_v61, %v3946_v13  ;;  %v11882_v20 = vld [vmem:[#allocation483_spill] sm:$0xff]  ;;  %v11884_v29 = vld [vmem:[#allocation109_spill] sm:$0xff]  ;;  %v4146_v24 = vsel %vm4140_vm12, %v11883_v46, %v11885_v2 }
 0xb9b   : > { %v3624_v30 = vsel %vm3616_vm10, %v11881_v18, %v11882_v20  ;;  %v4145_v19 = vsel %vm4140_vm12, %v11884_v29, %v11883_v46  ;;  %v3427_v0 = vadd.f32 %v3363_v35, %v9692_v21  ;;  %v3947_v12 = vadd.f32 %v3883_v44, %v3685_v1  ;;  %v11886_v13 = vld [vmem:[#allocation425_spill] sm:$0xff]  ;;  %v11887_v18 = vld [vmem:[#allocation503_spill] sm:$0xff]  ;;  %v11888_v29 = vld [vmem:[#allocation518_spill] sm:$0xff] }
 0xb9c   : > { %v4333_v37 = vpop.permute.xlu0 %4332  ;;  %v4331_v47 = vpop.permute.xlu1 %4330  ;;  %v3948_v63 = vadd.f32 %v3884_v38, %v3686_v54  ;;  %v3364_v55 = vsel %vm3354_vm9, %v11876_v59, %v11886_v13  ;;  %v3687_v26 = vadd.f32 %v3623_v40, %v3425_v36  ;;  %v3885_v20 = vsel %vm3878_vm11, %v11880_v27, %v11887_v18  ;;  %v11890_v21 = vld [vmem:[#allocation464_spill] sm:$0xff] }
 0xb9d   : > { %v4406_v53 = vsel %vm4402_vm13, %v4329_v51, %v4331_v47  ;;  %v3886_v46 = vsel %vm3878_vm11, %v11887_v18, %v11888_v29  ;;  %v3688_v51 = vadd.f32 %v3624_v30, %v3426_v57  ;;  %v11889_v47 = vld [vmem:[#allocation484_spill] sm:$0xff]  ;;  %v4209_v44 = vadd.f32 %v4145_v19, %v3947_v12 }
 0xb9e   : > { %v9802_v61 = vadd.f32 %v4406_v53, %v4208_v33  ;;  %v3625_v35 = vsel %vm3616_vm10, %v11890_v21, %v11889_v47  ;;  %v4210_v38 = vadd.f32 %v4146_v24, %v3948_v63  ;;  %v4147_v36 = vsel %vm4140_vm12, %v11885_v2, %v8658_v8  ;;  %v11891_v53 = vld [vmem:[#allocation445_spill] sm:$0xff] }
 0xb9f   : > { %v4148_v59 = vsel %vm4140_vm12, %v8658_v8, %v8656_v50  ;;  %v3949_v40 = vadd.f32 %v3885_v20, %v3687_v26  ;;  %v3950_v33 = vadd.f32 %v3886_v46, %v3688_v51  ;;  %v3169_v24 = vadd.f32 %v9712_v6, %v9650_v23  ;;  %v11892_v8 = vld [vmem:[#allocation519_spill] sm:$0xff]  ;;  %v11893_v50 = vld [vmem:[#allocation504_spill] sm:$0xff]  ;;  %v11894_v26 = vld [vmem:[#allocation465_spill] sm:$0xff] }
 0xba0   : > { %v4337_v1 = vpop.permute.xlu0 %4336  ;;  %v4335_v54 = vpop.permute.xlu1 %4334  ;;  %v3365_v2 = vsel %vm3354_vm9, %v11886_v13, %v11891_v53  ;;  %v3428_v12 = vadd.f32 %v3364_v55, %v9694_v15  ;;  %v3689_v63 = vadd.f32 %v3625_v35, %v3427_v0  ;;  %v3626_v18 = vsel %vm3616_vm10, %v11889_v47, %v11894_v26  ;;  %v11895_v23 = vld [vmem:[#allocation485_spill] sm:$0xff]  ;;  %v11896_v13 = vld [vmem:[#allocation115_spill] sm:$0xff] }
 0xba1   : > { %v4407_v27 = vsel %vm4402_vm13, %v4333_v37, %v4335_v54  ;;  %v4408_v57 = vsel %vm4402_vm13, %v4335_v54, %v4337_v1  ;;  %v3887_v37 = vsel %vm3878_vm11, %v11893_v50, %v11892_v8  ;;  %v4211_v20 = vadd.f32 %v4147_v36, %v3949_v40  ;;  %v11897_v21 = vld [vmem:[#allocation81_spill] sm:$0xff]  ;;  %v11898_v36 = vld [vmem:[#allocation426_spill] sm:$0xff]  ;;  %v11901_v40 = vld [vmem:[#allocation427_spill] sm:$0xff] }
 0xba2   : > { %v9824_v30 = vadd.f32 %v4407_v27, %v4209_v44  ;;  %v9826_v19 = vadd.f32 %v4408_v57, %v4210_v38  ;;  %v4212_v29 = vadd.f32 %v4148_v59, %v3950_v33  ;;  %v3627_v6 = vsel %vm3616_vm10, %v11894_v26, %v11895_v23  ;;  %v11899_v27 = vld [vmem:[#allocation505_spill] sm:$0xff]  ;;  %v11900_v57 = vld [vmem:[#allocation520_spill] sm:$0xff]  ;;  %v11902_v33 = vld [vmem:[#allocation446_spill] sm:$0xff] }
 0xba3   : > { %v4149_v15 = vsel %vm4140_vm12, %v11897_v21, %v11896_v13  ;;  %v3429_v35 = vadd.f32 %v3365_v2, %v9696_v52  ;;  %v3951_v44 = vadd.f32 %v3887_v37, %v3689_v63  ;;  %v3170_v54 = vadd.f32 %v9720_v48, %v9652_v45  ;;  %v11903_v26 = vld [vmem:[#allocation466_spill] sm:$0xff]  ;;  %v11905_v21 = vld [vmem:[#allocation388_spill] sm:$0xff] }
 0xba4   : > { %v4341_v46 = vpop.permute.xlu0 %4340  ;;  %v4339_v51 = vpop.permute.xlu1 %4338  ;;  %v3366_v59 = vsel %vm3354_vm9, %v11891_v53, %v11898_v36  ;;  %v3889_v52 = vsel %vm3878_vm11, %v11899_v27, %v11900_v57  ;;  %v3367_v2 = vsel %vm3354_vm9, %v11902_v33, %v11901_v40  ;;  %v3690_v50 = vadd.f32 %v3626_v18, %v3428_v12  ;;  %v11910_v33 = vld [vmem:[#allocation487_spill] sm:$0xff] }
 0xba5   : > { %v4409_v55 = vsel %vm4402_vm13, %v4337_v1, %v4339_v51  ;;  %v4410_v0 = vsel %vm4402_vm13, %v4339_v51, %v4341_v46  ;;  %v3888_v1 = vsel %vm3878_vm11, %v11892_v8, %v11899_v27  ;;  %v3691_v37 = vadd.f32 %v3627_v6, %v3429_v35 }
 0xba6   : > { %v9849_v47 = vadd.f32 %v4409_v55, %v4211_v20  ;;  %v9851_v38 = vadd.f32 %v4410_v0, %v4212_v29  ;;  %v4213_v63 = vadd.f32 %v4149_v15, %v3951_v44  ;;  %v3628_v53 = vsel %vm3616_vm10, %v11895_v23, %v11903_v26  ;;  %v11904_v20 = vld [vmem:[#allocation83_spill] sm:$0xff]  ;;  %v11907_v0 = vld [vmem:[#allocation506_spill] sm:$0xff]  ;;  %v11911_v26 = vld [vmem:[#allocation428_spill] sm:$0xff] }
 0xba7   : > { %v4150_v8 = vsel %vm4140_vm12, %v11896_v13, %v8711_v43  ;;  %v4151_v29 = vsel %vm4140_vm12, %v8711_v43, %v11904_v20  ;;  %v3430_v12 = vadd.f32 %v3366_v59, %v9707_v58  ;;  %v3952_v18 = vadd.f32 %v3888_v1, %v3690_v50  ;;  %v11906_v15 = vld [vmem:[#allocation447_spill] sm:$0xff]  ;;  %v11909_v58 = vld [vmem:[#allocation486_spill] sm:$0xff] }
 0xba8   : > { %v4345_v45 = vpop.permute.xlu0 %4344  ;;  %v4343_v48 = vpop.permute.xlu1 %4342  ;;  %v3953_v51 = vadd.f32 %v3889_v52, %v3691_v37  ;;  %v3107_v23 = vsel %vm3092_vm8, %v11856_v39, %v11905_v21  ;;  %v3368_v13 = vsel %vm3354_vm9, %v11901_v40, %v11906_v15  ;;  %v3431_v55 = vadd.f32 %v3367_v2, %v3169_v24  ;;  %v11908_v44 = vld [vmem:[#allocation467_spill] sm:$0xff] }
 0xba9   : > { %v4411_v46 = vsel %vm4402_vm13, %v4343_v48, %v4345_v45  ;;  %v3890_v43 = vsel %vm3878_vm11, %v11900_v57, %v11907_v0  ;;  %v3692_v35 = vadd.f32 %v3628_v53, %v3430_v12  ;;  %v3629_v36 = vsel %vm3616_vm10, %v11909_v58, %v11908_v44  ;;  %v11917_v0 = vld [vmem:[#allocation117_spill] sm:$0xff] }
 0xbaa   : > { %v9878_v6 = vadd.f32 %v4411_v46, %v4213_v63  ;;  %v4214_v59 = vadd.f32 %v4150_v8, %v3952_v18  ;;  %v4215_v27 = vadd.f32 %v4151_v29, %v3953_v51  ;;  %v3630_v39 = vsel %vm3616_vm10, %v11908_v44, %v11910_v33  ;;  %v11912_v8 = vld [vmem:[#allocation507_spill] sm:$0xff]  ;;  %v11913_v29 = vld [vmem:[#allocation521_spill] sm:$0xff] }
 0xbab   : > { %v4152_v24 = vsel %vm4140_vm12, %v11904_v20, %v8742_v34  ;;  %v3432_v2 = vadd.f32 %v3368_v13, %v3170_v54  ;;  %v3954_v50 = vadd.f32 %v3890_v43, %v3692_v35  ;;  %v1600_v48 = vadd.f32 %v9409_v5, %v9320_v49  ;;  %v11915_v49 = vld [vmem:[#allocation468_spill] sm:$0xff]  ;;  %v11918_v35 = vld [vmem:[#allocation85_spill] sm:$0xff] }
 0xbac   : > { %v4349_v1 = vpop.permute.xlu0 %4348  ;;  %v4347_v52 = vpop.permute.xlu1 %4346  ;;  %v3369_v53 = vsel %vm3354_vm9, %v11906_v15, %v11911_v26  ;;  %v3891_v34 = vsel %vm3878_vm11, %v11913_v29, %v11912_v8  ;;  %v3171_v20 = vadd.f32 %v3107_v23, %v9654_v11  ;;  %v3693_v46 = vadd.f32 %v3629_v36, %v3431_v55  ;;  %v11916_v15 = vld [vmem:[#allocation105_spill] sm:$0xff] }
 0xbad   : > { %v4412_v40 = vsel %vm4402_vm13, %v4345_v45, %v4347_v52  ;;  %v4413_v57 = vsel %vm4402_vm13, %v4347_v52, %v4349_v1  ;;  %v11914_v45 = vld [vmem:[#allocation522_spill] sm:$0xff]  ;;  %v3694_v12 = vadd.f32 %v3630_v39, %v3432_v2  ;;  %v4216_v18 = vadd.f32 %v4152_v24, %v3954_v50  ;;  %v11924_v2 = vld [vmem:[#allocation208_spill] sm:$0xff] }
 0xbae   : > { %v9900_v37 = vadd.f32 %v4412_v40, %v4214_v59  ;;  %v9902_v63 = vadd.f32 %v4413_v57, %v4215_v27  ;;  %v3892_v54 = vsel %vm3878_vm11, %v11912_v8, %v11914_v45  ;;  %v3631_v5 = vsel %vm3616_vm10, %v11910_v33, %v11915_v49  ;;  %v11919_v59 = vld [vmem:[#allocation169_spill] sm:$0xff]  ;;  %v11921_v33 = vld [vmem:[#allocation150_spill] sm:$0xff]  ;;  %v11923_v57 = vld [vmem:[#allocation508_spill] sm:$0xff] }
 0xbaf   : > { %v4153_v43 = vsel %vm4140_vm12, %v11917_v0, %v11916_v15  ;;  %v4154_v44 = vsel %vm4140_vm12, %v11916_v15, %v11918_v35  ;;  %v3433_v11 = vadd.f32 %v3369_v53, %v3171_v20  ;;  %v3955_v23 = vadd.f32 %v3891_v34, %v3693_v46  ;;  %v11920_v27 = vld [vmem:[#allocation149_spill] sm:$0xff]  ;;  %v11922_v24 = vld [vmem:[#allocation170_spill] sm:$0xff]  ;;  %v11928_v0 = vld [vmem:[#allocation248_spill] sm:$0xff] }
 0xbb0   : > { %v4353_v51 = vpop.permute.xlu0 %4352  ;;  %v4351_v13 = vpop.permute.xlu1 %4350  ;;  %v3956_v55 = vadd.f32 %v3892_v54, %v3694_v12  ;;  %v1537_v52 = vsel %vm1520_vm2, %v11920_v27, %v11919_v59  ;;  %v1538_v39 = vsel %vm1520_vm2, %v11919_v59, %v11921_v33  ;;  %v1539_v40 = vsel %vm1520_vm2, %v11921_v33, %v11922_v24  ;;  %v11925_v20 = vld [vmem:[#allocation209_spill] sm:$0xff]  ;;  %v11932_v33 = vld [vmem:[#allocation288_spill] sm:$0xff] }
 0xbb1   : > { %v4414_v58 = vsel %vm4402_vm13, %v4349_v1, %v4351_v13  ;;  %v3893_v1 = vsel %vm3878_vm11, %v11914_v45, %v11923_v57  ;;  %v1798_v50 = vsel %vm1782_vm3, %v11748_v16, %v11924_v2  ;;  %v3695_v53 = vadd.f32 %v3631_v5, %v3433_v11  ;;  %v11926_v46 = vld [vmem:[#allocation189_spill] sm:$0xff] }
 0xbb2   : > { %v9926_v36 = vadd.f32 %v4414_v58, %v4216_v18  ;;  %v4217_v8 = vadd.f32 %v4153_v43, %v3955_v23  ;;  %v4218_v29 = vadd.f32 %v4154_v44, %v3956_v55  ;;  %v1799_v12 = vsel %vm1782_vm3, %v11926_v46, %v11925_v20  ;;  %v11927_v18 = vld [vmem:[#allocation131_spill] sm:$0xff]  ;;  %v11929_v55 = vld [vmem:[#allocation190_spill] sm:$0xff]  ;;  %v11930_v59 = vld [vmem:[#allocation249_spill] sm:$0xff] }
 0xbb3   : > { %v4155_v13 = vsel %vm4140_vm12, %v11918_v35, %v11927_v18  ;;  %v2060_v16 = vsel %vm2044_vm4, %v11772_v14, %v11928_v0  ;;  %v3957_v5 = vadd.f32 %v3893_v1, %v3695_v53  ;;  %v1601_v58 = vadd.f32 %v1537_v52, %v9322_v9  ;;  %v11931_v27 = vld [vmem:[#allocation229_spill] sm:$0xff] }
 0xbb4   : > { %v4357_v34 = vpop.permute.xlu0 %4356  ;;  %v4355_v54 = vpop.permute.xlu1 %4354  ;;  %v1602_v11 = vadd.f32 %v1538_v39, %v9335_v31  ;;  %v1603_v23 = vadd.f32 %v1539_v40, %v9337_v60  ;;  %v1862_v35 = vadd.f32 %v1798_v50, %v1600_v48  ;;  %v2061_v14 = vsel %vm2044_vm4, %v11931_v27, %v11930_v59  ;;  %v11933_v31 = vld [vmem:[#allocation210_spill] sm:$0xff]  ;;  %v11935_v50 = vld [vmem:[#allocation289_spill] sm:$0xff] }
 0xbb5   : > { %v4415_v15 = vsel %vm4402_vm13, %v4353_v51, %v4355_v54  ;;  %v4416_v45 = vsel %vm4402_vm13, %v4355_v54, %v4357_v34  ;;  %v1800_v51 = vsel %vm1782_vm3, %v11925_v20, %v11929_v55  ;;  %v2322_v24 = vsel %vm2306_vm5, %v11791_v4, %v11932_v33  ;;  %v11934_v39 = vld [vmem:[#allocation230_spill] sm:$0xff]  ;;  %v11936_v53 = vld [vmem:[#allocation269_spill] sm:$0xff] }
 0xbb6   : > { %v9954_v43 = vadd.f32 %v4415_v15, %v4217_v8  ;;  %v9956_v44 = vadd.f32 %v4416_v45, %v4218_v29  ;;  %v4219_v1 = vadd.f32 %v4155_v13, %v3957_v5  ;;  %v1863_v9 = vadd.f32 %v1799_v12, %v1601_v58  ;;  %v11937_v8 = vld [vmem:[#allocation328_spill] sm:$0xff]  ;;  %v11938_v12 = vld [vmem:[#allocation250_spill] sm:$0xff]  ;;  %v11941_v5 = vld [vmem:[#allocation309_spill] sm:$0xff] }
 0xbb7   : > { %v1801_v60 = vsel %vm1782_vm3, %v11929_v55, %v11933_v31  ;;  %v2124_v48 = vadd.f32 %v2060_v16, %v1862_v35  ;;  %v2062_v40 = vsel %vm2044_vm4, %v11930_v59, %v11934_v39  ;;  %v2323_v4 = vsel %vm2306_vm5, %v11936_v53, %v11935_v50  ;;  %v11939_v45 = vld [vmem:[#allocation270_spill] sm:$0xff]  ;;  %v11940_v16 = vld [vmem:[#allocation329_spill] sm:$0xff]  ;;  %v11942_v35 = vld [vmem:[#allocation368_spill] sm:$0xff] }
 0xbb8   : > { %v9970_v2 = vpop.permute.xlu0 %4358  ;;  %v2584_v29 = vsel %vm2568_vm6, %v11810_v22, %v11937_v8  ;;  %v1864_v20 = vadd.f32 %v1800_v51, %v1602_v11  ;;  %v2125_v46 = vadd.f32 %v2061_v14, %v1863_v9  ;;  %v1865_v15 = vadd.f32 %v1801_v60, %v1603_v23  ;;  %v11943_v59 = vld [vmem:[#allocation290_spill] sm:$0xff]  ;;  %v11946_v9 = vld [vmem:[#allocation349_spill] sm:$0xff]  ;;  %v11947_v60 = vld [vmem:[#allocation408_spill] sm:$0xff] }
 0xbb9   : > { %v4417_v52 = vsel %vm4402_vm13, %v4357_v34, %v9970_v2  ;;  %v2063_v34 = vsel %vm2044_vm4, %v11934_v39, %v11938_v12  ;;  %v2386_v13 = vadd.f32 %v2322_v24, %v2124_v48  ;;  %v2324_v0 = vsel %vm2306_vm5, %v11935_v50, %v11939_v45  ;;  %v11944_v33 = vld [vmem:[#allocation310_spill] sm:$0xff]  ;;  %v11952_v12 = vld [vmem:[#allocation448_spill] sm:$0xff] }
 0xbba   : > { %v9986_v54 = vadd.f32 %v4417_v52, %v4219_v1  ;;  %v2585_v58 = vsel %vm2568_vm6, %v11941_v5, %v11940_v16  ;;  %v2846_v22 = vsel %vm2830_vm7, %v11829_v28, %v11942_v35  ;;  %v2126_v55 = vadd.f32 %v2062_v40, %v1864_v20  ;;  %v11945_v1 = vld [vmem:[#allocation369_spill] sm:$0xff]  ;;  %v11948_v39 = vld [vmem:[#allocation330_spill] sm:$0xff] }
 0xbbb   : > { %v2387_v51 = vadd.f32 %v2323_v4, %v2125_v46  ;;  %v2325_v23 = vsel %vm2306_vm5, %v11939_v45, %v11943_v59  ;;  %v2648_v27 = vadd.f32 %v2584_v29, %v2386_v13  ;;  %v2127_v14 = vadd.f32 %v2063_v34, %v1865_v15  ;;  %v11949_v4 = vld [vmem:[#allocation350_spill] sm:$0xff]  ;;  %v11950_v29 = vld [vmem:[#allocation409_spill] sm:$0xff]  ;;  %v11957_v59 = vld [vmem:[#allocation488_spill] sm:$0xff] }
 0xbbc   : > { %v10000_v11 = vpop.permute.xlu0 %4362  ;;  %v2586_v24 = vsel %vm2568_vm6, %v11940_v16, %v11944_v33  ;;  %v2847_v31 = vsel %vm2830_vm7, %v11946_v9, %v11945_v1  ;;  %v3108_v28 = vsel %vm3092_vm8, %v11905_v21, %v11947_v60  ;;  %v2388_v48 = vadd.f32 %v2324_v0, %v2126_v55  ;;  %v11951_v20 = vld [vmem:[#allocation389_spill] sm:$0xff]  ;;  %v11953_v45 = vld [vmem:[#allocation370_spill] sm:$0xff]  ;;  %v11960_v60 = vld [vmem:[#allocation523_spill] sm:$0xff] }
 0xbbd   : > { %v2649_v52 = vadd.f32 %v2585_v58, %v2387_v51  ;;  %v2587_v40 = vsel %vm2568_vm6, %v11944_v33, %v11948_v39  ;;  %v2910_v50 = vadd.f32 %v2846_v22, %v2648_v27  ;;  %v2389_v53 = vadd.f32 %v2325_v23, %v2127_v14  ;;  %v11954_v58 = vld [vmem:[#allocation390_spill] sm:$0xff]  ;;  %v11955_v22 = vld [vmem:[#allocation449_spill] sm:$0xff] }
 0xbbe   : > { %v2848_v8 = vsel %vm2830_vm7, %v11945_v1, %v11949_v4  ;;  %v3109_v46 = vsel %vm3092_vm8, %v11951_v20, %v11950_v29  ;;  %v3370_v21 = vsel %vm3354_vm9, %v11911_v26, %v11952_v12  ;;  %v2650_v13 = vadd.f32 %v2586_v24, %v2388_v48  ;;  %v11956_v55 = vld [vmem:[#allocation429_spill] sm:$0xff]  ;;  %v11958_v24 = vld [vmem:[#allocation410_spill] sm:$0xff] }
 0xbbf   : > { %v2911_v15 = vadd.f32 %v2847_v31, %v2649_v52  ;;  %v2849_v0 = vsel %vm2830_vm7, %v11949_v4, %v11953_v45  ;;  %v3172_v16 = vadd.f32 %v3108_v28, %v2910_v50  ;;  %v2651_v5 = vadd.f32 %v2587_v40, %v2389_v53  ;;  %v11959_v9 = vld [vmem:[#allocation430_spill] sm:$0xff]  ;;  %v11961_v40 = vld [vmem:[#allocation489_spill] sm:$0xff] }
 0xbc0   : > { %v10026_v34 = vpop.permute.xlu0 %4366  ;;  %v3110_v35 = vsel %vm3092_vm8, %v11950_v29, %v11954_v58  ;;  %v3371_v51 = vsel %vm3354_vm9, %v11956_v55, %v11955_v22  ;;  %v3632_v26 = vsel %vm3616_vm10, %v11915_v49, %v11957_v59  ;;  %v2912_v23 = vadd.f32 %v2848_v8, %v2650_v13  ;;  %v11962_v50 = vld [vmem:[#allocation469_spill] sm:$0xff]  ;;  %v11963_v8 = vld [vmem:[#allocation470_spill] sm:$0xff]  ;;  %v11970_v59 = vld [vmem:[#allocation132_spill] sm:$0xff] }
 0xbc1   : > { %v3173_v27 = vadd.f32 %v3109_v46, %v2911_v15  ;;  %v3434_v14 = vadd.f32 %v3370_v21, %v3172_v16  ;;  %v2913_v33 = vadd.f32 %v2849_v0, %v2651_v5  ;;  %v3111_v1 = vsel %vm3092_vm8, %v11954_v58, %v11958_v24  ;;  %v11964_v20 = vld [vmem:[#allocation106_spill] sm:$0xff]  ;;  %v11966_v5 = vld [vmem:[#allocation524_spill] sm:$0xff]  ;;  %v11967_v58 = vld [vmem:[#allocation509_spill] sm:$0xff] }
 0xbc2   : > { %v3372_v31 = vsel %vm3354_vm9, %v11955_v22, %v11959_v9  ;;  %v3894_v28 = vsel %vm3878_vm11, %v11923_v57, %v11960_v60  ;;  %v3174_v52 = vadd.f32 %v3110_v35, %v2912_v23  ;;  %v3633_v53 = vsel %vm3616_vm10, %v11962_v50, %v11961_v40  ;;  %v11965_v13 = vld [vmem:[#allocation450_spill] sm:$0xff] }
 0xbc3   : > { %v3435_v39 = vadd.f32 %v3371_v51, %v3173_v27  ;;  %v3696_v49 = vadd.f32 %v3632_v26, %v3434_v14  ;;  %v3634_v29 = vsel %vm3616_vm10, %v11961_v40, %v11963_v8  ;;  %v4156_v46 = vsel %vm4140_vm12, %v11927_v18, %v11964_v20  ;;  %v11968_v22 = vld [vmem:[#allocation510_spill] sm:$0xff]  ;;  %v11971_v26 = vld [vmem:[#allocation108_spill] sm:$0xff] }
 0xbc4   : > { %v4371_v48 = vpop.permute.xlu0 %4370  ;;  %v3175_v21 = vadd.f32 %v3111_v1, %v2913_v33  ;;  %v3373_v15 = vsel %vm3354_vm9, %v11959_v9, %v11965_v13  ;;  %v3436_v45 = vadd.f32 %v3372_v31, %v3174_v52  ;;  %v3895_v35 = vsel %vm3878_vm11, %v11967_v58, %v11966_v5  ;;  %v11972_v33 = vld [vmem:[#allocation133_spill] sm:$0xff]  ;;  %v11976_v58 = vld [vmem:[#allocation134_spill] sm:$0xff] }
 0xbc5   : > { %v10052_v4 = vpop.permute.xlu1 %4501  ;;  %v3958_v0 = vadd.f32 %v3894_v28, %v3696_v49  ;;  %v3697_v16 = vadd.f32 %v3633_v53, %v3435_v39  ;;  %v3896_v18 = vsel %vm3878_vm11, %v11966_v5, %v11968_v22  ;;  %v4157_v23 = vsel %vm4140_vm12, %v11971_v26, %v11970_v59 }
 0xbc6   : > { %v4505_v57 = vmul.f32 %v10052_v4, %v11605_v42  ;;  %v4504_v12 = vmul.f32 %v10052_v4, %v11606_v32  ;;  %v11969_v42 = vld [vmem:[#allocation490_spill] sm:$0xff]  ;;  %v3698_v55 = vadd.f32 %v3634_v29, %v3436_v45  ;;  %v4158_v24 = vsel %vm4140_vm12, %v11970_v59, %v11972_v33 }
 0xbc7   : > { %v3635_v32 = vsel %vm3616_vm10, %v11963_v8, %v11969_v42  ;;  %v4220_v51 = vadd.f32 %v4156_v46, %v3958_v0  ;;  %v4507_v9 = vmul.f32 %v10052_v4, %v5734_v3  ;;  %v4506_v31 = vmul.f32 %v10052_v4, %v5703_v10  ;;  %v11973_v29 = vld [vmem:[#allocation26_spill] sm:$0xff]  ;;  %v11975_v0 = vld [vmem:[#allocation28_spill] sm:$0xff] }
 0xbc8   : > { %4586 = vrot.lane.b32.xlu1 %v4505_v57, %s5293_s10  ;;  %4584 = vrot.lane.b32.xlu0 %v4504_v12, %s5293_s10  ;;  %v4375_v27 = vpop.permute.xlu0 %4374  ;;  %v3437_v60 = vadd.f32 %v3373_v15, %v3175_v21  ;;  %v3959_v28 = vadd.f32 %v3895_v35, %v3697_v16  ;;  %v3960_v52 = vadd.f32 %v3896_v18, %v3698_v55  ;;  %v11974_v15 = vld [vmem:[#allocation31_spill] sm:$0xff] }
 0xbc9   : > { %v4361_v14 = vpop.permute.xlu1 %4360  ;;  %v3897_v49 = vsel %vm3878_vm11, %v11968_v22, %v8372_v62  ;;  %v4159_v3 = vsel %vm4140_vm12, %v11972_v33, %v8860_v7  ;;  %v4509_v62 = vmul.f32 %v10052_v4, %v5747_v41  ;;  %v4508_v20 = vmul.f32 %v10052_v4, %v11973_v29  ;;  %v11980_v33 = vld [vmem:[#allocation35_spill] sm:$0xff] }
 0xbca   : > { %v4418_v1 = vsel %vm4402_vm13, %v9970_v2, %v4361_v14  ;;  %v3699_v2 = vadd.f32 %v3635_v32, %v3437_v60  ;;  %v4221_v40 = vadd.f32 %v4157_v23, %v3959_v28  ;;  %v4222_v10 = vadd.f32 %v4158_v24, %v3960_v52  ;;  %v11978_v32 = vld [vmem:[#allocation29_spill] sm:$0xff]  ;;  %v11982_v60 = vld [vmem:[#allocation112_spill] sm:$0xff]  ;;  %v11983_v52 = vld [vmem:[#allocation135_spill] sm:$0xff] }
 0xbcb   : > { %v10090_v39 = vadd.f32 %v4418_v1, %v4220_v51  ;;  %v4511_v45 = vmul.f32 %v10052_v4, %v11974_v15  ;;  %v4510_v16 = vmul.f32 %v10052_v4, %v11975_v0  ;;  %v4512_v55 = vmul.f32 %v10052_v4, %v11978_v32  ;;  %v11979_v51 = vld [vmem:[#allocation110_spill] sm:$0xff] }
 0xbcc   : > { %4590 = vrot.lane.b32.xlu1 %v4507_v9, %s5293_s10  ;;  %4588 = vrot.lane.b32.xlu0 %v4506_v31, %s5293_s10  ;;  %v3961_v46 = vadd.f32 %v3897_v49, %v3699_v2  ;;  %v4379_v57 = vpop.permute.xlu0 %4378  ;;  %v4515_v24 = vmul.f32 %v10052_v4, %v11980_v33  ;;  %v11981_v1 = vld [vmem:[#allocation30_spill] sm:$0xff] }
 0xbcd   : > { %v4365_v50 = vpop.permute.xlu1 %4364  ;;  %v4514_v9 = vmul.f32 %v10052_v4, %v11981_v1 }
 0xbce   : > { %v4419_v53 = vsel %vm4402_vm13, %v10000_v11, %v4365_v50  ;;  %v4420_v8 = vsel %vm4402_vm13, %v4365_v50, %v10026_v34  ;;  %v4223_v7 = vadd.f32 %v4159_v3, %v3961_v46 }
 0xbcf   : > { %v10108_v12 = vadd.f32 %v4419_v53, %v4221_v40  ;;  %v10110_v21 = vadd.f32 %v4420_v8, %v4222_v10  ;;  %v11984_v40 = vld [vmem:[#allocation37_spill] sm:$0xff]  ;;  %v11985_v10 = vld [vmem:[#allocation32_spill] sm:$0xff]  ;;  %v11986_v53 = vld [vmem:[#allocation114_spill] sm:$0xff] }
 0xbd0   : > { %4594 = vrot.lane.b32.xlu1 %v4509_v62, %s5293_s10  ;;  %4592 = vrot.lane.b32.xlu0 %v4508_v20, %s5293_s10  ;;  %v4383_v22 = vpop.permute.xlu0 %4382  ;;  %v4517_v3 = vmul.f32 %v10052_v4, %v11984_v40  ;;  %v4516_v50 = vmul.f32 %v10052_v4, %v11985_v10  ;;  %v11998_v10 = vld [vmem:[#allocation45_spill] sm:$0xff] }
 0xbd1   : > { %v4369_v11 = vpop.permute.xlu1 %4368 }
 0xbd2   : > { %v4421_v13 = vsel %vm4402_vm13, %v10026_v34, %v4369_v11  ;;  %v4422_v41 = vsel %vm4402_vm13, %v4369_v11, %v4371_v48  ;;  %v11977_v48 = vld [vmem:[#allocation33_spill] sm:$0xff]  ;;  %v11988_v11 = vld [vmem:[#allocation34_spill] sm:$0xff] }
 0xbd3   : > { %v10121_v5 = vadd.f32 %v4421_v13, %v4223_v7  ;;  %v10124_v35 = vadd.f32 %v4422_v41, %v11976_v58  ;;  %v4513_v42 = vmul.f32 %v10052_v4, %v11977_v48  ;;  %v4518_v13 = vmul.f32 %v10052_v4, %v11988_v11  ;;  %v11989_v41 = vld [vmem:[#allocation116_spill] sm:$0xff] }
 0xbd4   : > { %4598 = vrot.lane.b32.xlu1 %v4511_v45, %s5293_s10  ;;  %4596 = vrot.lane.b32.xlu0 %v4510_v16, %s5293_s10  ;;  %v4387_v31 = vpop.permute.xlu0 %4386  ;;  %v11990_v45 = vld [vmem:[#allocation136_spill] sm:$0xff] }
 0xbd5   : > { %v4373_v18 = vpop.permute.xlu1 %4372  ;;  %v11992_v48 = vld [vmem:[#allocation36_spill] sm:$0xff] }
 0xbd6   : > { %v4423_v34 = vsel %vm4402_vm13, %v4373_v18, %v4375_v27  ;;  %v11991_v18 = vld [vmem:[#allocation41_spill] sm:$0xff] }
 0xbd7   : > { %v10134_v59 = vadd.f32 %v4423_v34, %v11979_v51  ;;  %v4521_v34 = vmul.f32 %v10052_v4, %v11991_v18  ;;  %v12006_v18 = vld [vmem:[#allocation51_spill] sm:$0xff] }
 0xbd8   : > { %4602 = vrot.lane.b32.xlu1 %v4513_v42, %s5293_s10  ;;  %4600 = vrot.lane.b32.xlu0 %v4512_v55, %s5293_s10  ;;  %v4391_v62 = vpop.permute.xlu0 %4390  ;;  %v4520_v42 = vmul.f32 %v10052_v4, %v11992_v48  ;;  %v11993_v55 = vld [vmem:[#allocation137_spill] sm:$0xff]  ;;  %v12007_v48 = vld [vmem:[#allocation46_spill] sm:$0xff] }
 0xbd9   : > { %v4377_v26 = vpop.permute.xlu1 %4376 }
 0xbda   : > { %v4424_v23 = vsel %vm4402_vm13, %v4375_v27, %v4377_v26  ;;  %v4425_v14 = vsel %vm4402_vm13, %v4377_v26, %v4379_v57  ;;  %v11994_v26 = vld [vmem:[#allocation118_spill] sm:$0xff] }
 0xbdb   : > { %v10145_v28 = vadd.f32 %v4424_v23, %v11982_v60  ;;  %v10148_v49 = vadd.f32 %v4425_v14, %v11983_v52  ;;  %v11997_v60 = vld [vmem:[#allocation138_spill] sm:$0xff] }
 0xbdc   : > { %4606 = vrot.lane.b32.xlu1 %v4515_v24, %s5293_s10  ;;  %4604 = vrot.lane.b32.xlu0 %v4514_v9, %s5293_s10  ;;  %v4395_v32 = vpop.permute.xlu0 %4394  ;;  %v11995_v24 = vld [vmem:[#allocation43_spill] sm:$0xff]  ;;  %v11996_v9 = vld [vmem:[#allocation38_spill] sm:$0xff] }
 0xbdd   : > { %v4381_v27 = vpop.permute.xlu1 %4380  ;;  %v4523_v1 = vmul.f32 %v10052_v4, %v11995_v24 }
 0xbde   : > { %v4426_v2 = vsel %vm4402_vm13, %v4379_v57, %v4381_v27  ;;  %v11987_v57 = vld [vmem:[#allocation39_spill] sm:$0xff] }
 0xbdf   : > { %v10158_v8 = vadd.f32 %v4426_v2, %v11986_v53  ;;  %v4519_v7 = vmul.f32 %v10052_v4, %v11987_v57  ;;  %v11999_v53 = vld [vmem:[#allocation40_spill] sm:$0xff] }
 0xbe0   : > { %4610 = vrot.lane.b32.xlu1 %v4517_v3, %s5293_s10  ;;  %4608 = vrot.lane.b32.xlu0 %v4516_v50, %s5293_s10  ;;  %v10200_v27 = vpop.permute.xlu0 %4398  ;;  %v4525_v50 = vmul.f32 %v10052_v4, %v11998_v10 }
 0xbe1   : > { %v4385_v29 = vpop.permute.xlu1 %4384 }
 0xbe2   : > { %v4427_v20 = vsel %vm4402_vm13, %v4383_v22, %v4385_v29  ;;  %v4428_v46 = vsel %vm4402_vm13, %v4385_v29, %v4387_v31  ;;  %v12000_v29 = vld [vmem:[#allocation151_spill] sm:$0xff] }
 0xbe3   : > { %v10169_v15 = vadd.f32 %v4427_v20, %v11989_v41  ;;  %v10172_v0 = vadd.f32 %v4428_v46, %v11990_v45  ;;  %v12001_v46 = vld [vmem:[#allocation152_spill] sm:$0xff]  ;;  %v12004_v45 = vld [vmem:[#allocation49_spill] sm:$0xff] }
 0xbe4   : > { %4614 = vrot.lane.b32.xlu1 %v4519_v7, %s5293_s10  ;;  %4612 = vrot.lane.b32.xlu0 %v4518_v13, %s5293_s10  ;;  %v12002_v7 = vld [vmem:[#allocation47_spill] sm:$0xff]  ;;  %v12003_v13 = vld [vmem:[#allocation42_spill] sm:$0xff] }
 0xbe5   : > { %v4389_v16 = vpop.permute.xlu1 %4388  ;;  %v4527_v11 = vmul.f32 %v10052_v4, %v12002_v7  ;;  %v4526_v41 = vmul.f32 %v10052_v4, %v12003_v13 }
 0xbe6   : > { %v4429_v58 = vsel %vm4402_vm13, %v4387_v31, %v4389_v16  ;;  %v4430_v22 = vsel %vm4402_vm13, %v4389_v16, %v4391_v62  ;;  %v4522_v31 = vmul.f32 %v10052_v4, %v11996_v9  ;;  %v4524_v62 = vmul.f32 %v10052_v4, %v11999_v53 }
 0xbe7   : > { %v10183_v51 = vadd.f32 %v4429_v58, %v11993_v55  ;;  %v10186_v23 = vadd.f32 %v4430_v22, %v11994_v26  ;;  %v4529_v16 = vmul.f32 %v10052_v4, %v12004_v45  ;;  %v12005_v58 = vld [vmem:[#allocation44_spill] sm:$0xff] }
 0xbe8   : > { %4618 = vrot.lane.b32.xlu1 %v4521_v34, %s5293_s10  ;;  %4616 = vrot.lane.b32.xlu0 %v4520_v42, %s5293_s10  ;;  %v4528_v22 = vmul.f32 %v10052_v4, %v12005_v58  ;;  %v4531_v34 = vmul.f32 %v10052_v4, %v12006_v18  ;;  %v4530_v42 = vmul.f32 %v10052_v4, %v12007_v48  ;;  %v12009_v26 = vld [vmem:[#allocation48_spill] sm:$0xff] }
 0xbe9   : > { %v4393_v14 = vpop.permute.xlu1 %4392 }
 0xbea   : > { %v4431_v33 = vsel %vm4402_vm13, %v4393_v14, %v4395_v32  ;;  %v4532_v14 = vmul.f32 %v10052_v4, %v12009_v26 }
 0xbeb   : > { %v10196_v52 = vadd.f32 %v4431_v33, %v11997_v60  ;;  %v12010_v33 = vld [vmem:[#allocation55_spill] sm:$0xff] }
 0xbec   : > { %4622 = vrot.lane.b32.xlu1 %v4523_v1, %s5293_s10  ;;  %4620 = vrot.lane.b32.xlu0 %v4522_v31, %s5293_s10  ;;  %v4535_v24 = vmul.f32 %v10052_v4, %v12010_v33  ;;  %v12011_v1 = vld [vmem:[#allocation50_spill] sm:$0xff]  ;;  %v12012_v31 = vld [vmem:[#allocation57_spill] sm:$0xff] }
 0xbed   : > { %v4397_v2 = vpop.permute.xlu1 %4396  ;;  %v4534_v9 = vmul.f32 %v10052_v4, %v12011_v1  ;;  %v4537_v60 = vmul.f32 %v10052_v4, %v12012_v31 }
 0xbee   : > { %v4432_v40 = vsel %vm4402_vm13, %v4395_v32, %v4397_v2  ;;  %v4433_v3 = vsel %vm4402_vm13, %v4397_v2, %v10200_v27  ;;  %v12008_v32 = vld [vmem:[#allocation53_spill] sm:$0xff]  ;;  %v12013_v2 = vld [vmem:[#allocation52_spill] sm:$0xff] }
 0xbef   : > { %v10210_v20 = vadd.f32 %v4432_v40, %v12000_v29  ;;  %v10213_v57 = vadd.f32 %v4433_v3, %v12001_v46  ;;  %v4533_v55 = vmul.f32 %v10052_v4, %v12008_v32  ;;  %v4536_v40 = vmul.f32 %v10052_v4, %v12013_v2  ;;  %v12014_v3 = vld [vmem:[#allocation59_spill] sm:$0xff]  ;;  %v12017_v46 = vld [vmem:[#allocation56_spill] sm:$0xff] }
 0xbf0   : > { %4626 = vrot.lane.b32.xlu1 %v4525_v50, %s5293_s10  ;;  %4624 = vrot.lane.b32.xlu0 %v4524_v62, %s5293_s10  ;;  %v4539_v10 = vmul.f32 %v10052_v4, %v12014_v3  ;;  %v12015_v50 = vld [vmem:[#allocation54_spill] sm:$0xff]  ;;  %v12016_v62 = vld [vmem:[#allocation60_spill] sm:$0xff]  ;;  %v4540_v7 = vmul.f32 %v10052_v4, %v12017_v46 }
 0xbf1   : > { %v4538_v53 = vmul.f32 %v10052_v4, %v12015_v50  ;;  %v4541_v29 = vmul.f32 %v10052_v4, %v12016_v62 }
 0xbf4   : > { %4630 = vrot.lane.b32.xlu1 %v4527_v11, %s5293_s10  ;;  %4628 = vrot.lane.b32.xlu0 %v4526_v41, %s5293_s10  ;;  %v12018_v11 = vld [vmem:[#allocation61_spill] sm:$0xff]  ;;  %v12019_v41 = vld [vmem:[#allocation58_spill] sm:$0xff] }
 0xbf5   : > { %v4543_v13 = vmul.f32 %v10052_v4, %v12018_v11  ;;  %v4542_v45 = vmul.f32 %v10052_v4, %v12019_v41 }
 0xbf8   : > { %4634 = vrot.lane.b32.xlu1 %v4529_v16, %s5293_s10  ;;  %4632 = vrot.lane.b32.xlu0 %v4528_v22, %s5293_s10  ;;  %v10271_v16 = vpop.permute.xlu1 %4400 }
 0xbfc   : > { %4638 = vrot.lane.b32.xlu1 %v4531_v34, %s5293_s10  ;;  %4636 = vrot.lane.b32.xlu0 %v4530_v42, %s5293_s10 }
 0xc00   : > { %4642 = vrot.lane.b32.xlu1 %v4533_v55, %s5293_s10  ;;  %4640 = vrot.lane.b32.xlu0 %v4532_v14, %s5293_s10 }
 0xc04   : > { %4646 = vrot.lane.b32.xlu1 %v4535_v24, %s5293_s10  ;;  %4644 = vrot.lane.b32.xlu0 %v4534_v9, %s5293_s10 }
 0xc08   : > { %4650 = vrot.lane.b32.xlu1 %v4537_v60, %s5293_s10  ;;  %4648 = vrot.lane.b32.xlu0 %v4536_v40, %s5293_s10 }
 0xc0c   : > { %4654 = vrot.lane.b32.xlu1 %v4539_v10, %s5293_s10  ;;  %4652 = vrot.lane.b32.xlu0 %v4538_v53, %s5293_s10 }
 0xc10   : > { %4658 = vrot.lane.b32.xlu1 %v4541_v29, %s5293_s10  ;;  %4656 = vrot.lane.b32.xlu0 %v4540_v7, %s5293_s10 }
 0xc14   : > { %4662 = vrot.lane.b32.xlu1 %v4543_v13, %s5293_s10  ;;  %4660 = vrot.lane.b32.xlu0 %v4542_v45, %s5293_s10 }
 0xc3a   : > { %v4585_v58 = vpop.permute.xlu0 %4584  ;;  %v4587_v22 = vpop.permute.xlu1 %4586 }
 0xc3b   : > { %v4665_v18 = vsel %vm4664_vm14, %v4585_v58, %v4587_v22 }
 0xc3c   : > { %v4729_v34 = vadd.f32 %v4665_v18, %v9753_v25 }
 0xc3e   : > { %4761 = vst [vmem:[%s10276_s7] sm:$0xff] %v4729_v34  ;;  %v4589_v4 = vpop.permute.xlu0 %4588  ;;  %v4591_v48 = vpop.permute.xlu1 %4590 }
 0xc3f   : > { %v4666_v42 = vsel %vm4664_vm14, %v4587_v22, %v4589_v4  ;;  %v4667_v32 = vsel %vm4664_vm14, %v4589_v4, %v4591_v48 }
 0xc40   : > { %v4730_v55 = vadd.f32 %v4666_v42, %v9775_v17  ;;  %v4731_v26 = vadd.f32 %v4667_v32, %v9777_v56 }
 0xc42   : > { %4762 = vst [vmem:[%s10276_s7 + $0x8] sm:$0xff] %v4730_v55  ;;  %4763 = vst [vmem:[%s10276_s7 + $0x10] sm:$0xff] %v4731_v26  ;;  %v4593_v25 = vpop.permute.xlu0 %4592  ;;  %v4595_v14 = vpop.permute.xlu1 %4594 }
 0xc43   : > { %v4668_v33 = vsel %vm4664_vm14, %v4591_v48, %v4593_v25 }
 0xc44   : > { %v4732_v24 = vadd.f32 %v4668_v33, %v9802_v61 }
 0xc46   : > { %4764 = vst [vmem:[%s10276_s7 + $0x18] sm:$0xff] %v4732_v24  ;;  %v4597_v1 = vpop.permute.xlu0 %4596  ;;  %v4599_v9 = vpop.permute.xlu1 %4598 }
 0xc47   : > { %v4669_v31 = vsel %vm4664_vm14, %v4595_v14, %v4597_v1  ;;  %v4670_v17 = vsel %vm4664_vm14, %v4597_v1, %v4599_v9 }
 0xc48   : > { %v4733_v60 = vadd.f32 %v4669_v31, %v9824_v30  ;;  %v4734_v56 = vadd.f32 %v4670_v17, %v9826_v19 }
 0xc4a   : > { %4765 = vst [vmem:[%s10276_s7 + $0x20] sm:$0xff] %v4733_v60  ;;  %4766 = vst [vmem:[%s10276_s7 + $0x28] sm:$0xff] %v4734_v56  ;;  %v4601_v2 = vpop.permute.xlu0 %4600  ;;  %v4603_v40 = vpop.permute.xlu1 %4602 }
 0xc4b   : > { %v4671_v61 = vsel %vm4664_vm14, %v4599_v9, %v4601_v2  ;;  %v4672_v3 = vsel %vm4664_vm14, %v4601_v2, %v4603_v40 }
 0xc4c   : > { %v4735_v10 = vadd.f32 %v4671_v61, %v9849_v47  ;;  %v4736_v50 = vadd.f32 %v4672_v3, %v9851_v38 }
 0xc4e   : > { %4767 = vst [vmem:[%s10276_s7 + $0x30] sm:$0xff] %v4735_v10  ;;  %4768 = vst [vmem:[%s10276_s7 + $0x38] sm:$0xff] %v4736_v50  ;;  %v4605_v30 = vpop.permute.xlu0 %4604  ;;  %v4607_v53 = vpop.permute.xlu1 %4606 }
 0xc4f   : > { %v4673_v19 = vsel %vm4664_vm14, %v4605_v30, %v4607_v53 }
 0xc50   : > { %v4737_v62 = vadd.f32 %v4673_v19, %v9878_v6 }
 0xc52   : > { %4769 = vst [vmem:[%s10276_s7 + $0x40] sm:$0xff] %v4737_v62  ;;  %v4609_v29 = vpop.permute.xlu0 %4608  ;;  %v4611_v46 = vpop.permute.xlu1 %4610 }
 0xc53   : > { %v4674_v7 = vsel %vm4664_vm14, %v4607_v53, %v4609_v29  ;;  %v4675_v11 = vsel %vm4664_vm14, %v4609_v29, %v4611_v46 }
 0xc54   : > { %v4738_v47 = vadd.f32 %v4674_v7, %v9900_v37  ;;  %v4739_v38 = vadd.f32 %v4675_v11, %v9902_v63 }
 0xc56   : > { %4770 = vst [vmem:[%s10276_s7 + $0x48] sm:$0xff] %v4738_v47  ;;  %4771 = vst [vmem:[%s10276_s7 + $0x50] sm:$0xff] %v4739_v38  ;;  %v4613_v13 = vpop.permute.xlu0 %4612  ;;  %v4615_v41 = vpop.permute.xlu1 %4614 }
 0xc57   : > { %v4676_v45 = vsel %vm4664_vm14, %v4611_v46, %v4613_v13 }
 0xc58   : > { %v4740_v6 = vadd.f32 %v4676_v45, %v9926_v36 }
 0xc5a   : > { %4772 = vst [vmem:[%s10276_s7 + $0x58] sm:$0xff] %v4740_v6  ;;  %v4617_v58 = vpop.permute.xlu0 %4616  ;;  %v4619_v22 = vpop.permute.xlu1 %4618 }
 0xc5b   : > { %v4677_v18 = vsel %vm4664_vm14, %v4615_v41, %v4617_v58  ;;  %v4678_v37 = vsel %vm4664_vm14, %v4617_v58, %v4619_v22  ;;  %v12020_v58 = vld [vmem:[#allocation171_spill] sm:$0xff] }
 0xc5c   : > { %v4741_v34 = vadd.f32 %v4677_v18, %v9954_v43  ;;  %v4742_v63 = vadd.f32 %v4678_v37, %v9956_v44 }
 0xc5e   : > { %4773 = vst [vmem:[%s10276_s7 + $0x60] sm:$0xff] %v4741_v34  ;;  %4774 = vst [vmem:[%s10276_s7 + $0x68] sm:$0xff] %v4742_v63  ;;  %v4621_v4 = vpop.permute.xlu0 %4620  ;;  %v4623_v48 = vpop.permute.xlu1 %4622 }
 0xc5f   : > { %v4679_v36 = vsel %vm4664_vm14, %v4619_v22, %v4621_v4  ;;  %v4680_v42 = vsel %vm4664_vm14, %v4621_v4, %v4623_v48 }
 0xc60   : > { %v4743_v32 = vadd.f32 %v4679_v36, %v9986_v54  ;;  %v4744_v55 = vadd.f32 %v4680_v42, %v10090_v39 }
 0xc62   : > { %4775 = vst [vmem:[%s10276_s7 + $0x70] sm:$0xff] %v4743_v32  ;;  %4776 = vst [vmem:[%s10276_s7 + $0x78] sm:$0xff] %v4744_v55  ;;  %v4625_v43 = vpop.permute.xlu0 %4624  ;;  %v4627_v26 = vpop.permute.xlu1 %4626 }
 0xc63   : > { %v4681_v44 = vsel %vm4664_vm14, %v4625_v43, %v4627_v26 }
 0xc64   : > { %v4745_v25 = vadd.f32 %v4681_v44, %v10108_v12 }
 0xc66   : > { %4777 = vst [vmem:[%s10276_s7 + $0x80] sm:$0xff] %v4745_v25  ;;  %v4629_v14 = vpop.permute.xlu0 %4628  ;;  %v4631_v33 = vpop.permute.xlu1 %4630 }
 0xc67   : > { %v4682_v24 = vsel %vm4664_vm14, %v4627_v26, %v4629_v14  ;;  %v4683_v1 = vsel %vm4664_vm14, %v4629_v14, %v4631_v33 }
 0xc68   : > { %v4746_v54 = vadd.f32 %v4682_v24, %v10110_v21  ;;  %v4747_v39 = vadd.f32 %v4683_v1, %v10121_v5 }
 0xc6a   : > { %4778 = vst [vmem:[%s10276_s7 + $0x88] sm:$0xff] %v4746_v54  ;;  %4779 = vst [vmem:[%s10276_s7 + $0x90] sm:$0xff] %v4747_v39  ;;  %v4633_v9 = vpop.permute.xlu0 %4632  ;;  %v4635_v31 = vpop.permute.xlu1 %4634 }
 0xc6b   : > { %v4684_v17 = vsel %vm4664_vm14, %v4631_v33, %v4633_v9 }
 0xc6c   : > { %v4748_v12 = vadd.f32 %v4684_v17, %v10124_v35 }
 0xc6e   : > { %4780 = vst [vmem:[%s10276_s7 + $0x98] sm:$0xff] %v4748_v12  ;;  %v4637_v60 = vpop.permute.xlu0 %4636  ;;  %v4639_v56 = vpop.permute.xlu1 %4638 }
 0xc6f   : > { %v4685_v2 = vsel %vm4664_vm14, %v4635_v31, %v4637_v60  ;;  %v4686_v21 = vsel %vm4664_vm14, %v4637_v60, %v4639_v56 }
 0xc70   : > { %v4749_v40 = vadd.f32 %v4685_v2, %v10134_v59  ;;  %v4750_v5 = vadd.f32 %v4686_v21, %v10145_v28 }
 0xc72   : > { %4781 = vst [vmem:[%s10276_s7 + $0xa0] sm:$0xff] %v4749_v40  ;;  %4782 = vst [vmem:[%s10276_s7 + $0xa8] sm:$0xff] %v4750_v5  ;;  %v4641_v61 = vpop.permute.xlu0 %4640  ;;  %v4643_v3 = vpop.permute.xlu1 %4642 }
 0xc73   : > { %v4687_v35 = vsel %vm4664_vm14, %v4639_v56, %v4641_v61  ;;  %v4688_v10 = vsel %vm4664_vm14, %v4641_v61, %v4643_v3 }
 0xc74   : > { %v4751_v50 = vadd.f32 %v4687_v35, %v10148_v49  ;;  %v4752_v30 = vadd.f32 %v4688_v10, %v10158_v8 }
 0xc76   : > { %4783 = vst [vmem:[%s10276_s7 + $0xb0] sm:$0xff] %v4751_v50  ;;  %4784 = vst [vmem:[%s10276_s7 + $0xb8] sm:$0xff] %v4752_v30  ;;  %v4645_v59 = vpop.permute.xlu0 %4644  ;;  %v4647_v28 = vpop.permute.xlu1 %4646 }
 0xc77   : > { %v4689_v53 = vsel %vm4664_vm14, %v4645_v59, %v4647_v28 }
 0xc78   : > { %v4753_v19 = vadd.f32 %v4689_v53, %v10169_v15 }
 0xc7a   : > { %4785 = vst [vmem:[%s10276_s7 + $0xc0] sm:$0xff] %v4753_v19  ;;  %v4649_v62 = vpop.permute.xlu0 %4648  ;;  %v4651_v29 = vpop.permute.xlu1 %4650 }
 0xc7b   : > { %v4690_v46 = vsel %vm4664_vm14, %v4647_v28, %v4649_v62  ;;  %v4691_v49 = vsel %vm4664_vm14, %v4649_v62, %v4651_v29 }
 0xc7c   : > { %v4754_v8 = vadd.f32 %v4690_v46, %v10172_v0  ;;  %v4755_v7 = vadd.f32 %v4691_v49, %v10183_v51  ;;  %v4434_v0 = vsel %vm4402_vm13, %v10200_v27, %v10271_v16 }
 0xc7d   : > { %v4498_v22 = vadd.f32 %v4434_v0, %v12020_v58 }
 0xc7e   : > { %4786 = vst [vmem:[%s10276_s7 + $0xc8] sm:$0xff] %v4754_v8  ;;  %4787 = vst [vmem:[%s10276_s7 + $0xd0] sm:$0xff] %v4755_v7  ;;  %v4653_v11 = vpop.permute.xlu0 %4652  ;;  %v4655_v47 = vpop.permute.xlu1 %4654 }
 0xc7f   : > { %v4692_v15 = vsel %vm4664_vm14, %v4651_v29, %v4653_v11 }
 0xc80   : > { %v4756_v38 = vadd.f32 %v4692_v15, %v10186_v23 }
 0xc82   : > { %4788 = vst [vmem:[%s10276_s7 + $0xd8] sm:$0xff] %v4756_v38  ;;  %v4657_v13 = vpop.permute.xlu0 %4656  ;;  %v4659_v41 = vpop.permute.xlu1 %4658 }
 0xc83   : > { %v4693_v51 = vsel %vm4664_vm14, %v4655_v47, %v4657_v13  ;;  %v4694_v45 = vsel %vm4664_vm14, %v4657_v13, %v4659_v41 }
 0xc84   : > { %v4757_v6 = vadd.f32 %v4693_v51, %v10196_v52  ;;  %v4758_v23 = vadd.f32 %v4694_v45, %v10210_v20 }
 0xc86   : > { %4789 = vst [vmem:[%s10276_s7 + $0xe0] sm:$0xff] %v4757_v6  ;;  %4790 = vst [vmem:[%s10276_s7 + $0xe8] sm:$0xff] %v4758_v23  ;;  %v4661_v18 = vpop.permute.xlu0 %4660  ;;  %v4663_v27 = vpop.permute.xlu1 %4662 }
 0xc87   : > { %v4695_v16 = vsel %vm4664_vm14, %v4659_v41, %v4661_v18  ;;  %v4696_v52 = vsel %vm4664_vm14, %v4661_v18, %v4663_v27 }
 0xc88   : > { %v4759_v20 = vadd.f32 %v4695_v16, %v10213_v57  ;;  %v4760_v37 = vadd.f32 %v4696_v52, %v4498_v22 }
 0xc8a   : > { %4791 = vst [vmem:[%s10276_s7 + $0xf0] sm:$0xff] %v4759_v20  ;;  %4792 = vst [vmem:[%s10276_s7 + $0xf8] sm:$0xff] %v4760_v37 }
 0xc8b   : > { %5160 = shalt.err (!%p5157_p2)
}
 0xc8c   : > { %s5161_s10 = scalar_lea.hbm %s10380_s20, 4096  ;;  %s5165_s8 = scalar_lea.hbm %s10449_s3, 16384 }
 0xc8d   : > { %p5162_p4 = scmp.ne.s32.totalorder %s10380_s20, %s5161_s10  ;;  %p5166_p3 = scmp.lt.u32.totalorder %s10380_s20, %s10449_s3 }
 0xc8e   : > { %p5167_p5 = scmp.lt.u32.totalorder %s5165_s8, %s5161_s10  ;;  %p5169_p9 = scmp.lt.u32.totalorder %s5161_s10, %s10380_s20 }
 0xc8f   : > { %p5163_p7 = pnand %p5162_p4, %p12021_p0 }
 0xc90   : > { %p5168_p11 = por %p5167_p5, %p5166_p3 }
 0xc91   : > { %p5164_p13 = pneg %p5163_p7 }
 0xc92   : > { %p5170_p6 = por %p5169_p9, %p5168_p11 }
 0xc94   : > { %p5171_p8 = pnand %p5170_p6, %p5164_p13 }
 0xc96   : > { %5174 = shalt.err (!%p5171_p8)
}
 0xc97   : > { %s5295_s19 = smov 512   ;;  %s5296_s30 = smov 1024  }
 0xc98   : > { %s5297_s11 = smov 32  }
 0xc99   : > { %4954 = dma.vmem_to_hbm [thread:$0]  (%p12021_p0), %s10373_s18, 4096, %s10380_s20, %s4794_s27, %s5295_s19, %s5296_s30, %s5297_s11  }
 0xc9a PF: > { %p4968_p1 = scmp.ge.s32.totalorder %s5273_s22, 2  ;;  %s4825_s4 = sand.u32 1, %s5245_s15  }
 0xc9b   : > { %p12022_p12 = scmp.ne.s32.totalorder %s10851_s23, 0  ;;  %s4826_s5 = scalar_lea.sflag [#allocation4], %s4825_s4 }
 0xc9d   : > { %p4964_p10 = pnand %p4968_p1, %p12022_p12 }
 0xc9f   : > { %5228 = dma.done.wait (!%p4964_p10), %s4826_s5, 4096  }
 0xca0   : > { %5230 = vsyncadd (!%p4964_p10), %s4826_s5, 4294963200  ;;  %s22_s22 = sadd.s32 1, %s5273_s22   ;;  %s12023_s18 = sld [smem:[#allocation11_spill]] }
 0xca1   : > { %p19_p2 = scmp.ge.s32.totalorder %s22_s22, 6   ;;  %s12024_s19 = sld [smem:[#allocation12_spill]] }
 0xca2   : > { %s12025_s20 = sld [smem:[#allocation13_spill]]  ;;  %s12026_s28 = sld [smem:[#allocation14_spill]] }
 0xca3   : > { %s12027_s12 = smov %s5237_s13  ;;  %s12028_s13 = smov %s5241_s14 }
 0xca4   : > { %s12029_s14 = smov %s5499_s21  ;;  %s12030_s15 = smov %s5249_s16 }
 0xca5   : > { %s12031_s16 = smov %s5253_s17  ;;  %s12032_s17 = smov %s5427_s25 }
 0xca6   :  { %21 = sbr.rel (!%p19_p2) target bundleno = 11 (0xb), region = 90 }
 0xca8   : > { %s12033_s21 = smov %s12026_s28 }
 0xcad   :  { %4831 = vsyncpa [#allocation3], 1 }
 0xcae   :  { %4833 = vsyncpa [#allocation3 + $0x1], 1 }
 0xcaf   :  { %4834 = vsyncpa [#allocation6], 1 }
 0xcb0   :  { %4836 = vsyncpa [#allocation6 + $0x1], 1 }
 0xcb1   :  { %4837 = vsyncpa [#allocation4], 1 }
 0xcb2   :  { %4839 = vsyncpa [#allocation4 + $0x1], 1 }

</bundles_post_ra>
